<compile_context>
chip_gen: v7x
topology: tpu7x:2x2x1
jax: 0.10.0
libtpu: 0.0.40
codegen_flags: <defaults>
</compile_context>

<pallas_src>
import jax
import jax.numpy as jnp
from jax import lax
from jax.experimental import pallas as pl
from jax.experimental.pallas import tpu as pltpu

# ---------------- tiny synthetic wav2vec2 config ----------------
CONV_DIM = (32, 32)
CONV_KERNEL = (10, 3)
CONV_STRIDE = (5, 2)
HIDDEN = 32
NUM_LAYERS = 2
NUM_HEADS = 4
HEAD_DIM = HIDDEN // NUM_HEADS
INTERMEDIATE = 64
POS_CONV_KERNEL = 16
POS_CONV_GROUPS = 4
NUM_CLASSES = 3
LN_EPS = 1e-5
NEG_INF = -1e30

SAMPLES = 800                                             # fixed input length
T0 = (SAMPLES - CONV_KERNEL[0]) // CONV_STRIDE[0] + 1     # 159 conv0 frames
T0P = T0 + (-T0) % 8                                      # 160 (sublane aligned)
T1 = (T0 - CONV_KERNEL[1]) // CONV_STRIDE[1] + 1          # 79 conv1 frames
TP = T1 + (-T1) % 8                                       # 80 (sublane aligned)
POS_PAD = POS_CONV_KERNEL // 2                            # 8
NC_PAD = 128                                              # lane-dense logits width
N_BASE = 13                                               # packed arrays before layers
N_PER_LAYER = 12


# ---------------- in-kernel helpers (f32 math) ----------------
def _gelu(x):
    c = 0.7978845608028654  # sqrt(2/pi)
    return 0.5 * x * (1.0 + jnp.tanh(c * (x + 0.044715 * x * x * x)))


def _layernorm(x, g, b, eps=LN_EPS):
    mu = jnp.mean(x, axis=-1, keepdims=True)
    var = jnp.mean(jnp.square(x - mu), axis=-1, keepdims=True)
    return (x - mu) * lax.rsqrt(var + eps) * g + b


def _mm(a, b):
    return jnp.dot(a, b, preferred_element_type=jnp.float32)


def _mm_nt(a, b):
    # A @ B^T without materializing a transpose (contract last dims of both).
    return lax.dot_general(a, b, (((1,), (1,)), ((), ())),
                           preferred_element_type=jnp.float32)


# ---------------- the single fused kernel ----------------
def _fused_kernel(p0_ref, *rest):
    hbuf = rest[-1]                       # VMEM scratch (TP + POS_CONV_KERNEL, HIDDEN)
    o_ref = rest[-2]                      # (1, TP, NC_PAD)
    w = rest[:-2]                         # packed weights
    (w0_r, gng_r, gnb_r, sel_r, w1s_r, fplg_r, fplb_r, fpw_r, fpb_r,
     wpos_r, posb_r, elg_r, elb_r) = w[:N_BASE]
    layer_ws = [w[N_BASE + N_PER_LAYER * l: N_BASE + N_PER_LAYER * (l + 1)]
                for l in range(NUM_LAYERS)]
    dw_r, db_r, ow_r, obp_r = w[N_BASE + N_PER_LAYER * NUM_LAYERS:]
    f32 = jnp.float32

    # ---- conv0 GEMM + GroupNorm(per channel over time; stats via MXU) + GELU ----
    y0 = _mm(p0_ref[0], w0_r[...])                                     # (T0P, C0)
    stat = jnp.where(lax.broadcasted_iota(jnp.int32, (8, T0P), 1) < T0,
                     1.0 / T0, 0.0).astype(f32)                        # (8, T0P)
    mu = _mm(stat, y0)[0:1, :]                                         # (1, C0)
    ex2 = _mm(stat, y0 * y0)[0:1, :]
    var = ex2 - mu * mu
    y0 = _gelu((y0 - mu) * lax.rsqrt(var + LN_EPS) * gng_r[...] + gnb_r[...])

    # ---- conv1 (stride-2 gather via selection matmul) + GELU + LN + projection ----
    g3 = _mm(sel_r[...], y0)                                           # (3*TP, C0)
    y1 = (_mm(g3[0:TP, :], w1s_r[0:CONV_DIM[0], :])
          + _mm(g3[TP:2 * TP, :], w1s_r[CONV_DIM[0]:2 * CONV_DIM[0], :])
          + _mm(g3[2 * TP:3 * TP, :], w1s_r[2 * CONV_DIM[0]:3 * CONV_DIM[0], :]))
    y1 = _layernorm(_gelu(y1), fplg_r[...], fplb_r[...])
    h = _mm(y1, fpw_r[...]) + fpb_r[...]                               # (TP, HIDDEN)

    # ---- positional conv: 16 shifted taps read from a VMEM scratch ----
    valid = (lax.broadcasted_iota(jnp.int32, (TP, 1), 0) < T1).astype(f32)
    hbuf[0:POS_PAD, :] = jnp.zeros((POS_PAD, HIDDEN), f32)
    hbuf[POS_PAD:POS_PAD + TP, :] = h * valid
    hbuf[POS_PAD + TP:POS_CONV_KERNEL + TP, :] = jnp.zeros(
        (POS_CONV_KERNEL - POS_PAD, HIDDEN), f32)
    acc = jnp.zeros((TP, HIDDEN), f32)
    for k in range(POS_CONV_KERNEL):
        acc = acc + _mm(hbuf[pl.ds(k, TP), :],
                        wpos_r[HIDDEN * k:HIDDEN * (k + 1), :])
    h = _layernorm(h + _gelu(acc + posb_r[...]), elg_r[...], elb_r[...])

    # ---- transformer encoder layers (transpose-free multi-head attention) ----
    kmask = jnp.where(lax.broadcasted_iota(jnp.int32, (1, TP), 1) < T1,
                      0.0, NEG_INF).astype(f32)                        # (1, TP)
    scale = HEAD_DIM ** -0.5
    for lw in layer_ws:
        (wqkv_r, bqkv_r, wo_r, ob_r, l1g_r, l1b_r,
         f1w_r, f1b_r, f2w_r, f2b_r, l2g_r, l2b_r) = lw
        attn = jnp.zeros((TP, HIDDEN), f32)
        for hh in range(NUM_HEADS):
            qi, ki, vi = hh, NUM_HEADS + hh, 2 * NUM_HEADS + hh
            q = _mm_nt(h, wqkv_r[HEAD_DIM * qi:HEAD_DIM * (qi + 1), :]) \
                + bqkv_r[qi:qi + 1, :]                                 # (TP, d)
            kk = _mm_nt(h, wqkv_r[HEAD_DIM * ki:HEAD_DIM * (ki + 1), :]) \
                + bqkv_r[ki:ki + 1, :]
            v = _mm_nt(h, wqkv_r[HEAD_DIM * vi:HEAD_DIM * (vi + 1), :]) \
                + bqkv_r[vi:vi + 1, :]
            s = _mm_nt(q * scale, kk) + kmask                          # (TP, TP)
            p = jnp.exp(s - jnp.max(s, axis=-1, keepdims=True))
            p = p * pl.reciprocal(jnp.sum(p, axis=-1, keepdims=True), approx=True)
            attn = attn + _mm(_mm(p, v),
                              wo_r[HEAD_DIM * hh:HEAD_DIM * (hh + 1), :])
        attn = attn + ob_r[...]
        h1 = _layernorm(h + attn, l1g_r[...], l1b_r[...])
        ff = _gelu(_mm(h1, f1w_r[...]) + f1b_r[...])
        ff = _mm(ff, f2w_r[...]) + f2b_r[...]
        h = _layernorm(h1 + ff, l2g_r[...], l2b_r[...])

    # ---- classification head (dense + tanh + lane-dense padded out_proj) ----
    y = jnp.tanh(_mm(h, dw_r[...]) + db_r[...])
    o_ref[0] = (_mm(y, ow_r[...]) + obp_r[...]).astype(o_ref.dtype)


# ---------------- one-time weight packing (outside the jitted forward) ----------------
def pack_params(p):
    C0, C1 = CONV_DIM
    K0, K1 = CONV_KERNEL
    packed = []
    # conv0 + groupnorm
    packed.append(p["conv0_w"].reshape(C0, K0).T)                        # (K0, C0)
    packed.append(p["gn_g"].reshape(1, C0))
    packed.append(p["gn_b"].reshape(1, C0))
    # conv1 stride-2 selection matrix: row (tap*TP + t) selects conv0 frame 2t+tap
    rows = jnp.arange(3 * TP)
    src = 2 * (rows % TP) + rows // TP
    sel = (src[:, None] == jnp.arange(T0P)[None, :]).astype(jnp.float32)  # (3*TP, T0P)
    packed.append(sel)
    # conv1 per-tap weights stacked along rows: rows [C0*k : C0*(k+1)] = W_k (in,out)
    w1 = p["conv1_w"]                                                    # (C1, C0, K1)
    packed.append(jnp.concatenate([w1[:, :, k].T for k in range(K1)], axis=0))
    # feature-projection LN + dense
    packed.append(p["fp_ln_g"].reshape(1, C1))
    packed.append(p["fp_ln_b"].reshape(1, C1))
    packed.append(p["fp_w"])
    packed.append(p["fp_b"].reshape(1, HIDDEN))
    # grouped positional conv -> per-tap dense (block-diagonal) (in,out) matrices
    cpg = HIDDEN // POS_CONV_GROUPS
    wfull = jnp.zeros((POS_CONV_KERNEL, HIDDEN, HIDDEN), jnp.float32)    # (k, in, out)
    for g in range(POS_CONV_GROUPS):
        blk = p["pos_conv_w"][g * cpg:(g + 1) * cpg]                     # (out, in, k)
        wfull = wfull.at[:, g * cpg:(g + 1) * cpg, g * cpg:(g + 1) * cpg].set(
            jnp.transpose(blk, (2, 1, 0)))
    packed.append(wfull.reshape(POS_CONV_KERNEL * HIDDEN, HIDDEN))
    packed.append(p["pos_conv_b"].reshape(1, HIDDEN))
    packed.append(p["enc_ln_g"].reshape(1, HIDDEN))
    packed.append(p["enc_ln_b"].reshape(1, HIDDEN))
    # encoder layers: per-head transposed Q/K/V blocks + biases, then the rest
    for lp in p["layers"]:
        blocks, biases = [], []
        for name in ("q", "k", "v"):
            wmat, bvec = lp[f"{name}_w"], lp[f"{name}_b"]
            for hh in range(NUM_HEADS):
                blocks.append(wmat[:, hh * HEAD_DIM:(hh + 1) * HEAD_DIM].T)   # (d, H)
                biases.append(bvec[hh * HEAD_DIM:(hh + 1) * HEAD_DIM].reshape(1, HEAD_DIM))
        packed.append(jnp.concatenate(blocks, axis=0))                   # (3*H, H)
        packed.append(jnp.concatenate(biases, axis=0))                   # (12, d)
        packed.append(lp["o_w"])
        packed.append(lp["o_b"].reshape(1, HIDDEN))
        packed.append(lp["ln1_g"].reshape(1, HIDDEN))
        packed.append(lp["ln1_b"].reshape(1, HIDDEN))
        packed.append(lp["ff1_w"])
        packed.append(lp["ff1_b"].reshape(1, INTERMEDIATE))
        packed.append(lp["ff2_w"])
        packed.append(lp["ff2_b"].reshape(1, HIDDEN))
        packed.append(lp["ln2_g"].reshape(1, HIDDEN))
        packed.append(lp["ln2_b"].reshape(1, HIDDEN))
    # classification head (out_proj lane-padded to NC_PAD for dense stores)
    packed.append(p["dense_w"])
    packed.append(p["dense_b"].reshape(1, HIDDEN))
    packed.append(jnp.zeros((HIDDEN, NC_PAD), jnp.float32).at[:, :NUM_CLASSES].set(p["out_w"]))
    packed.append(jnp.zeros((1, NC_PAD), jnp.float32).at[0, :NUM_CLASSES].set(p["out_b"]))
    return tuple(packed)


# ---------------- forward: one pallas_call ----------------
def forward(packed, waveform):
    B, S = waveform.shape
    assert S == SAMPLES and CONV_KERNEL[0] == 2 * CONV_STRIDE[0]
    assert SAMPLES == T0P * CONV_STRIDE[0]
    # conv0 im2col via reshape/concat (no gather): patch t = wave[5t : 5t+10]
    r = waveform.reshape(B, T0P, CONV_STRIDE[0])
    r_next = jnp.concatenate(
        [r[:, 1:, :], jnp.zeros((B, 1, CONV_STRIDE[0]), r.dtype)], axis=1)
    patches0 = jnp.concatenate([r, r_next], axis=-1)                    # (B, T0P, K0)

    in_specs = [pl.BlockSpec((1, T0P, CONV_KERNEL[0]), lambda b: (b, 0, 0))]
    in_specs += [pl.BlockSpec(a.shape, lambda b: (0, 0)) for a in packed]
    logits = pl.pallas_call(
        _fused_kernel,
        out_shape=jax.ShapeDtypeStruct((B, TP, NC_PAD), jnp.float32),
        grid=(B,),
        in_specs=in_specs,
        out_specs=pl.BlockSpec((1, TP, NC_PAD), lambda b: (b, 0, 0)),
        scratch_shapes=[pltpu.VMEM((TP + POS_CONV_KERNEL, HIDDEN), jnp.float32)],
        compiler_params=pltpu.CompilerParams(dimension_semantics=("parallel",)),
    )(patches0, *packed)
    return logits[:, :T1, :NUM_CLASSES]


# ---------------- deterministic parameter init ----------------
def init_params(key):
    keys = iter(jax.random.split(key, 64))

    def w(shape, scale=0.02):
        return scale * jax.random.normal(next(keys), shape, dtype=jnp.float32)

    p = {
        "conv0_w": w((CONV_DIM[0], 1, CONV_KERNEL[0])),
        "conv1_w": w((CONV_DIM[1], CONV_DIM[0], CONV_KERNEL[1])),
        "gn_g": jnp.ones((CONV_DIM[0],), jnp.float32),
        "gn_b": jnp.zeros((CONV_DIM[0],), jnp.float32),
        "fp_ln_g": jnp.ones((CONV_DIM[-1],), jnp.float32),
        "fp_ln_b": jnp.zeros((CONV_DIM[-1],), jnp.float32),
        "fp_w": w((CONV_DIM[-1], HIDDEN)),
        "fp_b": jnp.zeros((HIDDEN,), jnp.float32),
        "pos_conv_w": w((HIDDEN, HIDDEN // POS_CONV_GROUPS, POS_CONV_KERNEL)),
        "pos_conv_b": jnp.zeros((HIDDEN,), jnp.float32),
        "enc_ln_g": jnp.ones((HIDDEN,), jnp.float32),
        "enc_ln_b": jnp.zeros((HIDDEN,), jnp.float32),
        "dense_w": w((HIDDEN, HIDDEN)),
        "dense_b": jnp.zeros((HIDDEN,), jnp.float32),
        "out_w": w((HIDDEN, NUM_CLASSES)),
        "out_b": jnp.zeros((NUM_CLASSES,), jnp.float32),
    }
    layers = []
    for _ in range(NUM_LAYERS):
        layers.append({
            "q_w": w((HIDDEN, HIDDEN)), "q_b": jnp.zeros((HIDDEN,), jnp.float32),
            "k_w": w((HIDDEN, HIDDEN)), "k_b": jnp.zeros((HIDDEN,), jnp.float32),
            "v_w": w((HIDDEN, HIDDEN)), "v_b": jnp.zeros((HIDDEN,), jnp.float32),
            "o_w": w((HIDDEN, HIDDEN)), "o_b": jnp.zeros((HIDDEN,), jnp.float32),
            "ln1_g": jnp.ones((HIDDEN,), jnp.float32),
            "ln1_b": jnp.zeros((HIDDEN,), jnp.float32),
            "ff1_w": w((HIDDEN, INTERMEDIATE)),
            "ff1_b": jnp.zeros((INTERMEDIATE,), jnp.float32),
            "ff2_w": w((INTERMEDIATE, HIDDEN)),
            "ff2_b": jnp.zeros((HIDDEN,), jnp.float32),
            "ln2_g": jnp.ones((HIDDEN,), jnp.float32),
            "ln2_b": jnp.zeros((HIDDEN,), jnp.float32),
        })
    p["layers"] = layers
    return p


if __name__ == "__main__":
    key = jax.random.PRNGKey(0)
    pkey, xkey = jax.random.split(key)
    params = init_params(pkey)
    packed = pack_params(params)        # one-time packing, outside the jitted forward

    batch = 2
    waveform = jax.random.normal(xkey, (batch, SAMPLES), dtype=jnp.float32)

    logits = jax.jit(forward)(packed, waveform)
    jax.block_until_ready(logits)

    assert logits.shape == (batch, T1, NUM_CLASSES), logits.shape
    assert logits.dtype == jnp.float32
    print("KERNEL_OK")
</pallas_src>

<mosaic_0001>
module attributes {stable_mosaic.version = 11 : i64} {
  func.func @_fused_kernel(%arg0: i32, %arg1: memref<1x160x10xf32, #tpu.memory_space<vmem>>, %arg2: memref<10x32xf32, #tpu.memory_space<vmem>>, %arg3: memref<1x32xf32, #tpu.memory_space<vmem>>, %arg4: memref<1x32xf32, #tpu.memory_space<vmem>>, %arg5: memref<240x160xf32, #tpu.memory_space<vmem>>, %arg6: memref<96x32xf32, #tpu.memory_space<vmem>>, %arg7: memref<1x32xf32, #tpu.memory_space<vmem>>, %arg8: memref<1x32xf32, #tpu.memory_space<vmem>>, %arg9: memref<32x32xf32, #tpu.memory_space<vmem>>, %arg10: memref<1x32xf32, #tpu.memory_space<vmem>>, %arg11: memref<512x32xf32, #tpu.memory_space<vmem>>, %arg12: memref<1x32xf32, #tpu.memory_space<vmem>>, %arg13: memref<1x32xf32, #tpu.memory_space<vmem>>, %arg14: memref<1x32xf32, #tpu.memory_space<vmem>>, %arg15: memref<96x32xf32, #tpu.memory_space<vmem>>, %arg16: memref<12x8xf32, #tpu.memory_space<vmem>>, %arg17: memref<32x32xf32, #tpu.memory_space<vmem>>, %arg18: memref<1x32xf32, #tpu.memory_space<vmem>>, %arg19: memref<1x32xf32, #tpu.memory_space<vmem>>, %arg20: memref<1x32xf32, #tpu.memory_space<vmem>>, %arg21: memref<32x64xf32, #tpu.memory_space<vmem>>, %arg22: memref<1x64xf32, #tpu.memory_space<vmem>>, %arg23: memref<64x32xf32, #tpu.memory_space<vmem>>, %arg24: memref<1x32xf32, #tpu.memory_space<vmem>>, %arg25: memref<1x32xf32, #tpu.memory_space<vmem>>, %arg26: memref<1x32xf32, #tpu.memory_space<vmem>>, %arg27: memref<96x32xf32, #tpu.memory_space<vmem>>, %arg28: memref<12x8xf32, #tpu.memory_space<vmem>>, %arg29: memref<32x32xf32, #tpu.memory_space<vmem>>, %arg30: memref<1x32xf32, #tpu.memory_space<vmem>>, %arg31: memref<1x32xf32, #tpu.memory_space<vmem>>, %arg32: memref<1x32xf32, #tpu.memory_space<vmem>>, %arg33: memref<32x64xf32, #tpu.memory_space<vmem>>, %arg34: memref<1x64xf32, #tpu.memory_space<vmem>>, %arg35: memref<64x32xf32, #tpu.memory_space<vmem>>, %arg36: memref<1x32xf32, #tpu.memory_space<vmem>>, %arg37: memref<1x32xf32, #tpu.memory_space<vmem>>, %arg38: memref<1x32xf32, #tpu.memory_space<vmem>>, %arg39: memref<32x32xf32, #tpu.memory_space<vmem>>, %arg40: memref<1x32xf32, #tpu.memory_space<vmem>>, %arg41: memref<32x128xf32, #tpu.memory_space<vmem>>, %arg42: memref<1x128xf32, #tpu.memory_space<vmem>>, %arg43: memref<1x80x128xf32, #tpu.memory_space<vmem>>, %arg44: memref<96x32xf32, #tpu.memory_space<vmem>>) attributes {dimension_semantics = [#tpu.dimension_semantics<parallel>], iteration_bounds = array<i64: 2>, scalar_prefetch = 0 : i64, scratch_operands = 1 : i64, tpu.core_type = #tpu.core_type<tc>, window_params = [{transform_indices = @transform_0, window_bounds = array<i64: 1, 160, 10>}, {pipeline_mode = #tpu.pipeline_mode<synchronous>, transform_indices = @transform_1, window_bounds = array<i64: 10, 32>}, {pipeline_mode = #tpu.pipeline_mode<synchronous>, transform_indices = @transform_2, window_bounds = array<i64: 1, 32>}, {pipeline_mode = #tpu.pipeline_mode<synchronous>, transform_indices = @transform_3, window_bounds = array<i64: 1, 32>}, {pipeline_mode = #tpu.pipeline_mode<synchronous>, transform_indices = @transform_4, window_bounds = array<i64: 240, 160>}, {pipeline_mode = #tpu.pipeline_mode<synchronous>, transform_indices = @transform_5, window_bounds = array<i64: 96, 32>}, {pipeline_mode = #tpu.pipeline_mode<synchronous>, transform_indices = @transform_6, window_bounds = array<i64: 1, 32>}, {pipeline_mode = #tpu.pipeline_mode<synchronous>, transform_indices = @transform_7, window_bounds = array<i64: 1, 32>}, {pipeline_mode = #tpu.pipeline_mode<synchronous>, transform_indices = @transform_8, window_bounds = array<i64: 32, 32>}, {pipeline_mode = #tpu.pipeline_mode<synchronous>, transform_indices = @transform_9, window_bounds = array<i64: 1, 32>}, {pipeline_mode = #tpu.pipeline_mode<synchronous>, transform_indices = @transform_10, window_bounds = array<i64: 512, 32>}, {pipeline_mode = #tpu.pipeline_mode<synchronous>, transform_indices = @transform_11, window_bounds = array<i64: 1, 32>}, {pipeline_mode = #tpu.pipeline_mode<synchronous>, transform_indices = @transform_12, window_bounds = array<i64: 1, 32>}, {pipeline_mode = #tpu.pipeline_mode<synchronous>, transform_indices = @transform_13, window_bounds = array<i64: 1, 32>}, {pipeline_mode = #tpu.pipeline_mode<synchronous>, transform_indices = @transform_14, window_bounds = array<i64: 96, 32>}, {pipeline_mode = #tpu.pipeline_mode<synchronous>, transform_indices = @transform_15, window_bounds = array<i64: 12, 8>}, {pipeline_mode = #tpu.pipeline_mode<synchronous>, transform_indices = @transform_16, window_bounds = array<i64: 32, 32>}, {pipeline_mode = #tpu.pipeline_mode<synchronous>, transform_indices = @transform_17, window_bounds = array<i64: 1, 32>}, {pipeline_mode = #tpu.pipeline_mode<synchronous>, transform_indices = @transform_18, window_bounds = array<i64: 1, 32>}, {pipeline_mode = #tpu.pipeline_mode<synchronous>, transform_indices = @transform_19, window_bounds = array<i64: 1, 32>}, {pipeline_mode = #tpu.pipeline_mode<synchronous>, transform_indices = @transform_20, window_bounds = array<i64: 32, 64>}, {pipeline_mode = #tpu.pipeline_mode<synchronous>, transform_indices = @transform_21, window_bounds = array<i64: 1, 64>}, {pipeline_mode = #tpu.pipeline_mode<synchronous>, transform_indices = @transform_22, window_bounds = array<i64: 64, 32>}, {pipeline_mode = #tpu.pipeline_mode<synchronous>, transform_indices = @transform_23, window_bounds = array<i64: 1, 32>}, {pipeline_mode = #tpu.pipeline_mode<synchronous>, transform_indices = @transform_24, window_bounds = array<i64: 1, 32>}, {pipeline_mode = #tpu.pipeline_mode<synchronous>, transform_indices = @transform_25, window_bounds = array<i64: 1, 32>}, {pipeline_mode = #tpu.pipeline_mode<synchronous>, transform_indices = @transform_26, window_bounds = array<i64: 96, 32>}, {pipeline_mode = #tpu.pipeline_mode<synchronous>, transform_indices = @transform_27, window_bounds = array<i64: 12, 8>}, {pipeline_mode = #tpu.pipeline_mode<synchronous>, transform_indices = @transform_28, window_bounds = array<i64: 32, 32>}, {pipeline_mode = #tpu.pipeline_mode<synchronous>, transform_indices = @transform_29, window_bounds = array<i64: 1, 32>}, {pipeline_mode = #tpu.pipeline_mode<synchronous>, transform_indices = @transform_30, window_bounds = array<i64: 1, 32>}, {pipeline_mode = #tpu.pipeline_mode<synchronous>, transform_indices = @transform_31, window_bounds = array<i64: 1, 32>}, {pipeline_mode = #tpu.pipeline_mode<synchronous>, transform_indices = @transform_32, window_bounds = array<i64: 32, 64>}, {pipeline_mode = #tpu.pipeline_mode<synchronous>, transform_indices = @transform_33, window_bounds = array<i64: 1, 64>}, {pipeline_mode = #tpu.pipeline_mode<synchronous>, transform_indices = @transform_34, window_bounds = array<i64: 64, 32>}, {pipeline_mode = #tpu.pipeline_mode<synchronous>, transform_indices = @transform_35, window_bounds = array<i64: 1, 32>}, {pipeline_mode = #tpu.pipeline_mode<synchronous>, transform_indices = @transform_36, window_bounds = array<i64: 1, 32>}, {pipeline_mode = #tpu.pipeline_mode<synchronous>, transform_indices = @transform_37, window_bounds = array<i64: 1, 32>}, {pipeline_mode = #tpu.pipeline_mode<synchronous>, transform_indices = @transform_38, window_bounds = array<i64: 32, 32>}, {pipeline_mode = #tpu.pipeline_mode<synchronous>, transform_indices = @transform_39, window_bounds = array<i64: 1, 32>}, {pipeline_mode = #tpu.pipeline_mode<synchronous>, transform_indices = @transform_40, window_bounds = array<i64: 32, 128>}, {pipeline_mode = #tpu.pipeline_mode<synchronous>, transform_indices = @transform_41, window_bounds = array<i64: 1, 128>}, {transform_indices = @transform_42, window_bounds = array<i64: 1, 80, 128>}]} {
    %c0 = arith.constant 0 : index
    %c0_0 = arith.constant 0 : index
    %c0_1 = arith.constant 0 : index
    %0 = vector.load %arg1[%c0, %c0_0, %c0_1] : memref<1x160x10xf32, #tpu.memory_space<vmem>>, vector<1x160x10xf32>
    %1 = vector.shape_cast %0 : vector<1x160x10xf32> to vector<160x10xf32>
    %c0_2 = arith.constant 0 : index
    %c0_3 = arith.constant 0 : index
    %2 = vector.load %arg2[%c0_2, %c0_3] : memref<10x32xf32, #tpu.memory_space<vmem>>, vector<10x32xf32>
    %cst = arith.constant dense<0.000000e+00> : vector<160x32xf32>
    %3 = tpu.matmul %1, %2, %cst {dimension_numbers = #tpu.dot_dimension_numbers<[1], [0], [0], [1], [0, 0, 1, 1], [], []>} : vector<160x10xf32>, vector<10x32xf32>, vector<160x32xf32> -> vector<160x32xf32>
    %4 = tpu.iota {dimensions = array<i32: 1>} : vector<8x160xi32>
    %c159_i32 = arith.constant 159 : i32
    %5 = vector.broadcast %c159_i32 : i32 to vector<8x160xi32>
    %6 = arith.cmpi slt, %4, %5 : vector<8x160xi32>
    %cst_4 = arith.constant 0.00628930796 : f32
    %cst_5 = arith.constant 0.000000e+00 : f32
    %7 = vector.broadcast %cst_4 : f32 to vector<8x160xf32>
    %8 = vector.broadcast %cst_5 : f32 to vector<8x160xf32>
    %9 = arith.select %6, %7, %8 : vector<8x160xi1>, vector<8x160xf32>
    %cst_6 = arith.constant dense<0.000000e+00> : vector<8x32xf32>
    %10 = tpu.matmul %9, %3, %cst_6 {dimension_numbers = #tpu.dot_dimension_numbers<[1], [0], [0], [1], [0, 0, 1, 1], [], []>} : vector<8x160xf32>, vector<160x32xf32>, vector<8x32xf32> -> vector<8x32xf32>
    %11 = vector.extract_strided_slice %10 {offsets = [0, 0], sizes = [1, 32], strides = [1, 1]} : vector<8x32xf32> to vector<1x32xf32>
    %12 = arith.mulf %3, %3 : vector<160x32xf32>
    %cst_7 = arith.constant dense<0.000000e+00> : vector<8x32xf32>
    %13 = tpu.matmul %9, %12, %cst_7 {dimension_numbers = #tpu.dot_dimension_numbers<[1], [0], [0], [1], [0, 0, 1, 1], [], []>} : vector<8x160xf32>, vector<160x32xf32>, vector<8x32xf32> -> vector<8x32xf32>
    %14 = vector.extract_strided_slice %13 {offsets = [0, 0], sizes = [1, 32], strides = [1, 1]} : vector<8x32xf32> to vector<1x32xf32>
    %15 = arith.mulf %11, %11 : vector<1x32xf32>
    %16 = arith.subf %14, %15 : vector<1x32xf32>
    %17 = vector.broadcast %11 : vector<1x32xf32> to vector<160x32xf32>
    %18 = arith.subf %3, %17 : vector<160x32xf32>
    %cst_8 = arith.constant 9.99999974E-6 : f32
    %19 = vector.broadcast %cst_8 : f32 to vector<1x32xf32>
    %20 = arith.addf %16, %19 : vector<1x32xf32>
    %21 = math.rsqrt %20 : vector<1x32xf32>
    %22 = vector.broadcast %21 : vector<1x32xf32> to vector<160x32xf32>
    %23 = arith.mulf %18, %22 : vector<160x32xf32>
    %c0_9 = arith.constant 0 : index
    %c0_10 = arith.constant 0 : index
    %24 = vector.load %arg3[%c0_9, %c0_10] : memref<1x32xf32, #tpu.memory_space<vmem>>, vector<1x32xf32>
    %25 = vector.broadcast %24 : vector<1x32xf32> to vector<160x32xf32>
    %26 = arith.mulf %23, %25 : vector<160x32xf32>
    %c0_11 = arith.constant 0 : index
    %c0_12 = arith.constant 0 : index
    %27 = vector.load %arg4[%c0_11, %c0_12] : memref<1x32xf32, #tpu.memory_space<vmem>>, vector<1x32xf32>
    %28 = vector.broadcast %27 : vector<1x32xf32> to vector<160x32xf32>
    %29 = arith.addf %26, %28 : vector<160x32xf32>
    %cst_13 = arith.constant 5.000000e-01 : f32
    %30 = vector.broadcast %cst_13 : f32 to vector<160x32xf32>
    %31 = arith.mulf %30, %29 : vector<160x32xf32>
    %cst_14 = arith.constant 4.471500e-02 : f32
    %32 = vector.broadcast %cst_14 : f32 to vector<160x32xf32>
    %33 = arith.mulf %32, %29 : vector<160x32xf32>
    %34 = arith.mulf %33, %29 : vector<160x32xf32>
    %35 = arith.mulf %34, %29 : vector<160x32xf32>
    %36 = arith.addf %29, %35 : vector<160x32xf32>
    %cst_15 = arith.constant 0.797884583 : f32
    %37 = vector.broadcast %cst_15 : f32 to vector<160x32xf32>
    %38 = arith.mulf %37, %36 : vector<160x32xf32>
    %39 = math.tanh %38 : vector<160x32xf32>
    %cst_16 = arith.constant 1.000000e+00 : f32
    %40 = vector.broadcast %cst_16 : f32 to vector<160x32xf32>
    %41 = arith.addf %40, %39 : vector<160x32xf32>
    %42 = arith.mulf %31, %41 : vector<160x32xf32>
    %c0_17 = arith.constant 0 : index
    %c0_18 = arith.constant 0 : index
    %43 = vector.load %arg5[%c0_17, %c0_18] : memref<240x160xf32, #tpu.memory_space<vmem>>, vector<240x160xf32>
    %cst_19 = arith.constant dense<0.000000e+00> : vector<240x32xf32>
    %44 = tpu.matmul %43, %42, %cst_19 {dimension_numbers = #tpu.dot_dimension_numbers<[1], [0], [0], [1], [0, 0, 1, 1], [], []>} : vector<240x160xf32>, vector<160x32xf32>, vector<240x32xf32> -> vector<240x32xf32>
    %45 = vector.extract_strided_slice %44 {offsets = [0, 0], sizes = [80, 32], strides = [1, 1]} : vector<240x32xf32> to vector<80x32xf32>
    %c0_20 = arith.constant 0 : index
    %c0_21 = arith.constant 0 : index
    %46 = vector.load %arg6[%c0_20, %c0_21] : memref<96x32xf32, #tpu.memory_space<vmem>>, vector<32x32xf32>
    %cst_22 = arith.constant dense<0.000000e+00> : vector<80x32xf32>
    %47 = tpu.matmul %45, %46, %cst_22 {dimension_numbers = #tpu.dot_dimension_numbers<[1], [0], [0], [1], [0, 0, 1, 1], [], []>} : vector<80x32xf32>, vector<32x32xf32>, vector<80x32xf32> -> vector<80x32xf32>
    %48 = vector.extract_strided_slice %44 {offsets = [80, 0], sizes = [80, 32], strides = [1, 1]} : vector<240x32xf32> to vector<80x32xf32>
    %c32 = arith.constant 32 : index
    %c0_23 = arith.constant 0 : index
    %49 = vector.load %arg6[%c32, %c0_23] : memref<96x32xf32, #tpu.memory_space<vmem>>, vector<32x32xf32>
    %cst_24 = arith.constant dense<0.000000e+00> : vector<80x32xf32>
    %50 = tpu.matmul %48, %49, %cst_24 {dimension_numbers = #tpu.dot_dimension_numbers<[1], [0], [0], [1], [0, 0, 1, 1], [], []>} : vector<80x32xf32>, vector<32x32xf32>, vector<80x32xf32> -> vector<80x32xf32>
    %51 = arith.addf %47, %50 : vector<80x32xf32>
    %52 = vector.extract_strided_slice %44 {offsets = [160, 0], sizes = [80, 32], strides = [1, 1]} : vector<240x32xf32> to vector<80x32xf32>
    %c64 = arith.constant 64 : index
    %c0_25 = arith.constant 0 : index
    %53 = vector.load %arg6[%c64, %c0_25] : memref<96x32xf32, #tpu.memory_space<vmem>>, vector<32x32xf32>
    %cst_26 = arith.constant dense<0.000000e+00> : vector<80x32xf32>
    %54 = tpu.matmul %52, %53, %cst_26 {dimension_numbers = #tpu.dot_dimension_numbers<[1], [0], [0], [1], [0, 0, 1, 1], [], []>} : vector<80x32xf32>, vector<32x32xf32>, vector<80x32xf32> -> vector<80x32xf32>
    %55 = arith.addf %51, %54 : vector<80x32xf32>
    %cst_27 = arith.constant 5.000000e-01 : f32
    %56 = vector.broadcast %cst_27 : f32 to vector<80x32xf32>
    %57 = arith.mulf %56, %55 : vector<80x32xf32>
    %cst_28 = arith.constant 4.471500e-02 : f32
    %58 = vector.broadcast %cst_28 : f32 to vector<80x32xf32>
    %59 = arith.mulf %58, %55 : vector<80x32xf32>
    %60 = arith.mulf %59, %55 : vector<80x32xf32>
    %61 = arith.mulf %60, %55 : vector<80x32xf32>
    %62 = arith.addf %55, %61 : vector<80x32xf32>
    %cst_29 = arith.constant 0.797884583 : f32
    %63 = vector.broadcast %cst_29 : f32 to vector<80x32xf32>
    %64 = arith.mulf %63, %62 : vector<80x32xf32>
    %65 = math.tanh %64 : vector<80x32xf32>
    %cst_30 = arith.constant 1.000000e+00 : f32
    %66 = vector.broadcast %cst_30 : f32 to vector<80x32xf32>
    %67 = arith.addf %66, %65 : vector<80x32xf32>
    %68 = arith.mulf %57, %67 : vector<80x32xf32>
    %c0_31 = arith.constant 0 : index
    %c0_32 = arith.constant 0 : index
    %69 = vector.load %arg7[%c0_31, %c0_32] : memref<1x32xf32, #tpu.memory_space<vmem>>, vector<1x32xf32>
    %c0_33 = arith.constant 0 : index
    %c0_34 = arith.constant 0 : index
    %70 = vector.load %arg8[%c0_33, %c0_34] : memref<1x32xf32, #tpu.memory_space<vmem>>, vector<1x32xf32>
    %cst_35 = arith.constant dense<0.000000e+00> : vector<80xf32>
    %71 = vector.multi_reduction <add>, %68, %cst_35 [1] : vector<80x32xf32> to vector<80xf32>
    %72 = vector.shape_cast %71 : vector<80xf32> to vector<80x1xf32>
    %cst_36 = arith.constant 3.200000e+01 : f32
    %73 = vector.broadcast %cst_36 : f32 to vector<80x1xf32>
    %74 = arith.divf %72, %73 : vector<80x1xf32>
    %75 = vector.broadcast %74 : vector<80x1xf32> to vector<80x32xf32>
    %76 = arith.subf %68, %75 : vector<80x32xf32>
    %77 = arith.mulf %76, %76 : vector<80x32xf32>
    %cst_37 = arith.constant dense<0.000000e+00> : vector<80xf32>
    %78 = vector.multi_reduction <add>, %77, %cst_37 [1] : vector<80x32xf32> to vector<80xf32>
    %79 = vector.shape_cast %78 : vector<80xf32> to vector<80x1xf32>
    %cst_38 = arith.constant 3.200000e+01 : f32
    %80 = vector.broadcast %cst_38 : f32 to vector<80x1xf32>
    %81 = arith.divf %79, %80 : vector<80x1xf32>
    %82 = vector.broadcast %74 : vector<80x1xf32> to vector<80x32xf32>
    %83 = arith.subf %68, %82 : vector<80x32xf32>
    %cst_39 = arith.constant 9.99999974E-6 : f32
    %84 = vector.broadcast %cst_39 : f32 to vector<80x1xf32>
    %85 = arith.addf %81, %84 : vector<80x1xf32>
    %86 = math.rsqrt %85 : vector<80x1xf32>
    %87 = vector.broadcast %86 : vector<80x1xf32> to vector<80x32xf32>
    %88 = arith.mulf %83, %87 : vector<80x32xf32>
    %89 = vector.broadcast %69 : vector<1x32xf32> to vector<80x32xf32>
    %90 = arith.mulf %88, %89 : vector<80x32xf32>
    %91 = vector.broadcast %70 : vector<1x32xf32> to vector<80x32xf32>
    %92 = arith.addf %90, %91 : vector<80x32xf32>
    %c0_40 = arith.constant 0 : index
    %c0_41 = arith.constant 0 : index
    %93 = vector.load %arg9[%c0_40, %c0_41] : memref<32x32xf32, #tpu.memory_space<vmem>>, vector<32x32xf32>
    %cst_42 = arith.constant dense<0.000000e+00> : vector<80x32xf32>
    %94 = tpu.matmul %92, %93, %cst_42 {dimension_numbers = #tpu.dot_dimension_numbers<[1], [0], [0], [1], [0, 0, 1, 1], [], []>} : vector<80x32xf32>, vector<32x32xf32>, vector<80x32xf32> -> vector<80x32xf32>
    %c0_43 = arith.constant 0 : index
    %c0_44 = arith.constant 0 : index
    %95 = vector.load %arg10[%c0_43, %c0_44] : memref<1x32xf32, #tpu.memory_space<vmem>>, vector<1x32xf32>
    %96 = vector.broadcast %95 : vector<1x32xf32> to vector<80x32xf32>
    %97 = arith.addf %94, %96 : vector<80x32xf32>
    %98 = tpu.iota {dimensions = array<i32: 0>} : vector<80x1xi32>
    %c79_i32 = arith.constant 79 : i32
    %99 = vector.broadcast %c79_i32 : i32 to vector<80x1xi32>
    %100 = arith.cmpi slt, %98, %99 : vector<80x1xi32>
    %101 = arith.extui %100 : vector<80x1xi1> to vector<80x1xi32>
    %102 = arith.sitofp %101 : vector<80x1xi32> to vector<80x1xf32>
    %cst_45 = arith.constant 0.000000e+00 : f32
    %103 = vector.broadcast %cst_45 : f32 to vector<8x32xf32>
    %c0_46 = arith.constant 0 : index
    %c0_47 = arith.constant 0 : index
    %104 = vector.load %arg44[%c0_46, %c0_47] : memref<96x32xf32, #tpu.memory_space<vmem>>, vector<8x32xf32>
    tpu.vector_store %arg44[%c0_46, %c0_47], %103 {strides = array<i32>} : memref<96x32xf32, #tpu.memory_space<vmem>>, vector<8x32xf32>,
    %105 = vector.broadcast %102 : vector<80x1xf32> to vector<80x32xf32>
    %106 = arith.mulf %97, %105 : vector<80x32xf32>
    %c8 = arith.constant 8 : index
    %c0_48 = arith.constant 0 : index
    %107 = vector.load %arg44[%c8, %c0_48] : memref<96x32xf32, #tpu.memory_space<vmem>>, vector<80x32xf32>
    tpu.vector_store %arg44[%c8, %c0_48], %106 {strides = array<i32>} : memref<96x32xf32, #tpu.memory_space<vmem>>, vector<80x32xf32>,
    %cst_49 = arith.constant 0.000000e+00 : f32
    %108 = vector.broadcast %cst_49 : f32 to vector<8x32xf32>
    %c88 = arith.constant 88 : index
    %c0_50 = arith.constant 0 : index
    %109 = vector.load %arg44[%c88, %c0_50] : memref<96x32xf32, #tpu.memory_space<vmem>>, vector<8x32xf32>
    tpu.vector_store %arg44[%c88, %c0_50], %108 {strides = array<i32>} : memref<96x32xf32, #tpu.memory_space<vmem>>, vector<8x32xf32>,
    %cst_51 = arith.constant 0.000000e+00 : f32
    %110 = vector.broadcast %cst_51 : f32 to vector<80x32xf32>
    %c0_52 = arith.constant 0 : index
    %c0_53 = arith.constant 0 : index
    %111 = vector.load %arg44[%c0_52, %c0_53] : memref<96x32xf32, #tpu.memory_space<vmem>>, vector<80x32xf32>
    %c0_54 = arith.constant 0 : index
    %c0_55 = arith.constant 0 : index
    %112 = vector.load %arg11[%c0_54, %c0_55] : memref<512x32xf32, #tpu.memory_space<vmem>>, vector<32x32xf32>
    %cst_56 = arith.constant dense<0.000000e+00> : vector<80x32xf32>
    %113 = tpu.matmul %111, %112, %cst_56 {dimension_numbers = #tpu.dot_dimension_numbers<[1], [0], [0], [1], [0, 0, 1, 1], [], []>} : vector<80x32xf32>, vector<32x32xf32>, vector<80x32xf32> -> vector<80x32xf32>
    %114 = arith.addf %110, %113 : vector<80x32xf32>
    %c1 = arith.constant 1 : index
    %c0_57 = arith.constant 0 : index
    %115 = vector.load %arg44[%c1, %c0_57] : memref<96x32xf32, #tpu.memory_space<vmem>>, vector<80x32xf32>
    %c32_58 = arith.constant 32 : index
    %c0_59 = arith.constant 0 : index
    %116 = vector.load %arg11[%c32_58, %c0_59] : memref<512x32xf32, #tpu.memory_space<vmem>>, vector<32x32xf32>
    %cst_60 = arith.constant dense<0.000000e+00> : vector<80x32xf32>
    %117 = tpu.matmul %115, %116, %cst_60 {dimension_numbers = #tpu.dot_dimension_numbers<[1], [0], [0], [1], [0, 0, 1, 1], [], []>} : vector<80x32xf32>, vector<32x32xf32>, vector<80x32xf32> -> vector<80x32xf32>
    %118 = arith.addf %114, %117 : vector<80x32xf32>
    %c2 = arith.constant 2 : index
    %c0_61 = arith.constant 0 : index
    %119 = vector.load %arg44[%c2, %c0_61] : memref<96x32xf32, #tpu.memory_space<vmem>>, vector<80x32xf32>
    %c64_62 = arith.constant 64 : index
    %c0_63 = arith.constant 0 : index
    %120 = vector.load %arg11[%c64_62, %c0_63] : memref<512x32xf32, #tpu.memory_space<vmem>>, vector<32x32xf32>
    %cst_64 = arith.constant dense<0.000000e+00> : vector<80x32xf32>
    %121 = tpu.matmul %119, %120, %cst_64 {dimension_numbers = #tpu.dot_dimension_numbers<[1], [0], [0], [1], [0, 0, 1, 1], [], []>} : vector<80x32xf32>, vector<32x32xf32>, vector<80x32xf32> -> vector<80x32xf32>
    %122 = arith.addf %118, %121 : vector<80x32xf32>
    %c3 = arith.constant 3 : index
    %c0_65 = arith.constant 0 : index
    %123 = vector.load %arg44[%c3, %c0_65] : memref<96x32xf32, #tpu.memory_space<vmem>>, vector<80x32xf32>
    %c96 = arith.constant 96 : index
    %c0_66 = arith.constant 0 : index
    %124 = vector.load %arg11[%c96, %c0_66] : memref<512x32xf32, #tpu.memory_space<vmem>>, vector<32x32xf32>
    %cst_67 = arith.constant dense<0.000000e+00> : vector<80x32xf32>
    %125 = tpu.matmul %123, %124, %cst_67 {dimension_numbers = #tpu.dot_dimension_numbers<[1], [0], [0], [1], [0, 0, 1, 1], [], []>} : vector<80x32xf32>, vector<32x32xf32>, vector<80x32xf32> -> vector<80x32xf32>
    %126 = arith.addf %122, %125 : vector<80x32xf32>
    %c4 = arith.constant 4 : index
    %c0_68 = arith.constant 0 : index
    %127 = vector.load %arg44[%c4, %c0_68] : memref<96x32xf32, #tpu.memory_space<vmem>>, vector<80x32xf32>
    %c128 = arith.constant 128 : index
    %c0_69 = arith.constant 0 : index
    %128 = vector.load %arg11[%c128, %c0_69] : memref<512x32xf32, #tpu.memory_space<vmem>>, vector<32x32xf32>
    %cst_70 = arith.constant dense<0.000000e+00> : vector<80x32xf32>
    %129 = tpu.matmul %127, %128, %cst_70 {dimension_numbers = #tpu.dot_dimension_numbers<[1], [0], [0], [1], [0, 0, 1, 1], [], []>} : vector<80x32xf32>, vector<32x32xf32>, vector<80x32xf32> -> vector<80x32xf32>
    %130 = arith.addf %126, %129 : vector<80x32xf32>
    %c5 = arith.constant 5 : index
    %c0_71 = arith.constant 0 : index
    %131 = vector.load %arg44[%c5, %c0_71] : memref<96x32xf32, #tpu.memory_space<vmem>>, vector<80x32xf32>
    %c160 = arith.constant 160 : index
    %c0_72 = arith.constant 0 : index
    %132 = vector.load %arg11[%c160, %c0_72] : memref<512x32xf32, #tpu.memory_space<vmem>>, vector<32x32xf32>
    %cst_73 = arith.constant dense<0.000000e+00> : vector<80x32xf32>
    %133 = tpu.matmul %131, %132, %cst_73 {dimension_numbers = #tpu.dot_dimension_numbers<[1], [0], [0], [1], [0, 0, 1, 1], [], []>} : vector<80x32xf32>, vector<32x32xf32>, vector<80x32xf32> -> vector<80x32xf32>
    %134 = arith.addf %130, %133 : vector<80x32xf32>
    %c6 = arith.constant 6 : index
    %c0_74 = arith.constant 0 : index
    %135 = vector.load %arg44[%c6, %c0_74] : memref<96x32xf32, #tpu.memory_space<vmem>>, vector<80x32xf32>
    %c192 = arith.constant 192 : index
    %c0_75 = arith.constant 0 : index
    %136 = vector.load %arg11[%c192, %c0_75] : memref<512x32xf32, #tpu.memory_space<vmem>>, vector<32x32xf32>
    %cst_76 = arith.constant dense<0.000000e+00> : vector<80x32xf32>
    %137 = tpu.matmul %135, %136, %cst_76 {dimension_numbers = #tpu.dot_dimension_numbers<[1], [0], [0], [1], [0, 0, 1, 1], [], []>} : vector<80x32xf32>, vector<32x32xf32>, vector<80x32xf32> -> vector<80x32xf32>
    %138 = arith.addf %134, %137 : vector<80x32xf32>
    %c7 = arith.constant 7 : index
    %c0_77 = arith.constant 0 : index
    %139 = vector.load %arg44[%c7, %c0_77] : memref<96x32xf32, #tpu.memory_space<vmem>>, vector<80x32xf32>
    %c224 = arith.constant 224 : index
    %c0_78 = arith.constant 0 : index
    %140 = vector.load %arg11[%c224, %c0_78] : memref<512x32xf32, #tpu.memory_space<vmem>>, vector<32x32xf32>
    %cst_79 = arith.constant dense<0.000000e+00> : vector<80x32xf32>
    %141 = tpu.matmul %139, %140, %cst_79 {dimension_numbers = #tpu.dot_dimension_numbers<[1], [0], [0], [1], [0, 0, 1, 1], [], []>} : vector<80x32xf32>, vector<32x32xf32>, vector<80x32xf32> -> vector<80x32xf32>
    %142 = arith.addf %138, %141 : vector<80x32xf32>
    %c8_80 = arith.constant 8 : index
    %c0_81 = arith.constant 0 : index
    %143 = vector.load %arg44[%c8_80, %c0_81] : memref<96x32xf32, #tpu.memory_space<vmem>>, vector<80x32xf32>
    %c256 = arith.constant 256 : index
    %c0_82 = arith.constant 0 : index
    %144 = vector.load %arg11[%c256, %c0_82] : memref<512x32xf32, #tpu.memory_space<vmem>>, vector<32x32xf32>
    %cst_83 = arith.constant dense<0.000000e+00> : vector<80x32xf32>
    %145 = tpu.matmul %143, %144, %cst_83 {dimension_numbers = #tpu.dot_dimension_numbers<[1], [0], [0], [1], [0, 0, 1, 1], [], []>} : vector<80x32xf32>, vector<32x32xf32>, vector<80x32xf32> -> vector<80x32xf32>
    %146 = arith.addf %142, %145 : vector<80x32xf32>
    %c9 = arith.constant 9 : index
    %c0_84 = arith.constant 0 : index
    %147 = vector.load %arg44[%c9, %c0_84] : memref<96x32xf32, #tpu.memory_space<vmem>>, vector<80x32xf32>
    %c288 = arith.constant 288 : index
    %c0_85 = arith.constant 0 : index
    %148 = vector.load %arg11[%c288, %c0_85] : memref<512x32xf32, #tpu.memory_space<vmem>>, vector<32x32xf32>
    %cst_86 = arith.constant dense<0.000000e+00> : vector<80x32xf32>
    %149 = tpu.matmul %147, %148, %cst_86 {dimension_numbers = #tpu.dot_dimension_numbers<[1], [0], [0], [1], [0, 0, 1, 1], [], []>} : vector<80x32xf32>, vector<32x32xf32>, vector<80x32xf32> -> vector<80x32xf32>
    %150 = arith.addf %146, %149 : vector<80x32xf32>
    %c10 = arith.constant 10 : index
    %c0_87 = arith.constant 0 : index
    %151 = vector.load %arg44[%c10, %c0_87] : memref<96x32xf32, #tpu.memory_space<vmem>>, vector<80x32xf32>
    %c320 = arith.constant 320 : index
    %c0_88 = arith.constant 0 : index
    %152 = vector.load %arg11[%c320, %c0_88] : memref<512x32xf32, #tpu.memory_space<vmem>>, vector<32x32xf32>
    %cst_89 = arith.constant dense<0.000000e+00> : vector<80x32xf32>
    %153 = tpu.matmul %151, %152, %cst_89 {dimension_numbers = #tpu.dot_dimension_numbers<[1], [0], [0], [1], [0, 0, 1, 1], [], []>} : vector<80x32xf32>, vector<32x32xf32>, vector<80x32xf32> -> vector<80x32xf32>
    %154 = arith.addf %150, %153 : vector<80x32xf32>
    %c11 = arith.constant 11 : index
    %c0_90 = arith.constant 0 : index
    %155 = vector.load %arg44[%c11, %c0_90] : memref<96x32xf32, #tpu.memory_space<vmem>>, vector<80x32xf32>
    %c352 = arith.constant 352 : index
    %c0_91 = arith.constant 0 : index
    %156 = vector.load %arg11[%c352, %c0_91] : memref<512x32xf32, #tpu.memory_space<vmem>>, vector<32x32xf32>
    %cst_92 = arith.constant dense<0.000000e+00> : vector<80x32xf32>
    %157 = tpu.matmul %155, %156, %cst_92 {dimension_numbers = #tpu.dot_dimension_numbers<[1], [0], [0], [1], [0, 0, 1, 1], [], []>} : vector<80x32xf32>, vector<32x32xf32>, vector<80x32xf32> -> vector<80x32xf32>
    %158 = arith.addf %154, %157 : vector<80x32xf32>
    %c12 = arith.constant 12 : index
    %c0_93 = arith.constant 0 : index
    %159 = vector.load %arg44[%c12, %c0_93] : memref<96x32xf32, #tpu.memory_space<vmem>>, vector<80x32xf32>
    %c384 = arith.constant 384 : index
    %c0_94 = arith.constant 0 : index
    %160 = vector.load %arg11[%c384, %c0_94] : memref<512x32xf32, #tpu.memory_space<vmem>>, vector<32x32xf32>
    %cst_95 = arith.constant dense<0.000000e+00> : vector<80x32xf32>
    %161 = tpu.matmul %159, %160, %cst_95 {dimension_numbers = #tpu.dot_dimension_numbers<[1], [0], [0], [1], [0, 0, 1, 1], [], []>} : vector<80x32xf32>, vector<32x32xf32>, vector<80x32xf32> -> vector<80x32xf32>
    %162 = arith.addf %158, %161 : vector<80x32xf32>
    %c13 = arith.constant 13 : index
    %c0_96 = arith.constant 0 : index
    %163 = vector.load %arg44[%c13, %c0_96] : memref<96x32xf32, #tpu.memory_space<vmem>>, vector<80x32xf32>
    %c416 = arith.constant 416 : index
    %c0_97 = arith.constant 0 : index
    %164 = vector.load %arg11[%c416, %c0_97] : memref<512x32xf32, #tpu.memory_space<vmem>>, vector<32x32xf32>
    %cst_98 = arith.constant dense<0.000000e+00> : vector<80x32xf32>
    %165 = tpu.matmul %163, %164, %cst_98 {dimension_numbers = #tpu.dot_dimension_numbers<[1], [0], [0], [1], [0, 0, 1, 1], [], []>} : vector<80x32xf32>, vector<32x32xf32>, vector<80x32xf32> -> vector<80x32xf32>
    %166 = arith.addf %162, %165 : vector<80x32xf32>
    %c14 = arith.constant 14 : index
    %c0_99 = arith.constant 0 : index
    %167 = vector.load %arg44[%c14, %c0_99] : memref<96x32xf32, #tpu.memory_space<vmem>>, vector<80x32xf32>
    %c448 = arith.constant 448 : index
    %c0_100 = arith.constant 0 : index
    %168 = vector.load %arg11[%c448, %c0_100] : memref<512x32xf32, #tpu.memory_space<vmem>>, vector<32x32xf32>
    %cst_101 = arith.constant dense<0.000000e+00> : vector<80x32xf32>
    %169 = tpu.matmul %167, %168, %cst_101 {dimension_numbers = #tpu.dot_dimension_numbers<[1], [0], [0], [1], [0, 0, 1, 1], [], []>} : vector<80x32xf32>, vector<32x32xf32>, vector<80x32xf32> -> vector<80x32xf32>
    %170 = arith.addf %166, %169 : vector<80x32xf32>
    %c15 = arith.constant 15 : index
    %c0_102 = arith.constant 0 : index
    %171 = vector.load %arg44[%c15, %c0_102] : memref<96x32xf32, #tpu.memory_space<vmem>>, vector<80x32xf32>
    %c480 = arith.constant 480 : index
    %c0_103 = arith.constant 0 : index
    %172 = vector.load %arg11[%c480, %c0_103] : memref<512x32xf32, #tpu.memory_space<vmem>>, vector<32x32xf32>
    %cst_104 = arith.constant dense<0.000000e+00> : vector<80x32xf32>
    %173 = tpu.matmul %171, %172, %cst_104 {dimension_numbers = #tpu.dot_dimension_numbers<[1], [0], [0], [1], [0, 0, 1, 1], [], []>} : vector<80x32xf32>, vector<32x32xf32>, vector<80x32xf32> -> vector<80x32xf32>
    %174 = arith.addf %170, %173 : vector<80x32xf32>
    %c0_105 = arith.constant 0 : index
    %c0_106 = arith.constant 0 : index
    %175 = vector.load %arg12[%c0_105, %c0_106] : memref<1x32xf32, #tpu.memory_space<vmem>>, vector<1x32xf32>
    %176 = vector.broadcast %175 : vector<1x32xf32> to vector<80x32xf32>
    %177 = arith.addf %174, %176 : vector<80x32xf32>
    %cst_107 = arith.constant 5.000000e-01 : f32
    %178 = vector.broadcast %cst_107 : f32 to vector<80x32xf32>
    %179 = arith.mulf %178, %177 : vector<80x32xf32>
    %cst_108 = arith.constant 4.471500e-02 : f32
    %180 = vector.broadcast %cst_108 : f32 to vector<80x32xf32>
    %181 = arith.mulf %180, %177 : vector<80x32xf32>
    %182 = arith.mulf %181, %177 : vector<80x32xf32>
    %183 = arith.mulf %182, %177 : vector<80x32xf32>
    %184 = arith.addf %177, %183 : vector<80x32xf32>
    %cst_109 = arith.constant 0.797884583 : f32
    %185 = vector.broadcast %cst_109 : f32 to vector<80x32xf32>
    %186 = arith.mulf %185, %184 : vector<80x32xf32>
    %187 = math.tanh %186 : vector<80x32xf32>
    %cst_110 = arith.constant 1.000000e+00 : f32
    %188 = vector.broadcast %cst_110 : f32 to vector<80x32xf32>
    %189 = arith.addf %188, %187 : vector<80x32xf32>
    %190 = arith.mulf %179, %189 : vector<80x32xf32>
    %191 = arith.addf %97, %190 : vector<80x32xf32>
    %c0_111 = arith.constant 0 : index
    %c0_112 = arith.constant 0 : index
    %192 = vector.load %arg13[%c0_111, %c0_112] : memref<1x32xf32, #tpu.memory_space<vmem>>, vector<1x32xf32>
    %c0_113 = arith.constant 0 : index
    %c0_114 = arith.constant 0 : index
    %193 = vector.load %arg14[%c0_113, %c0_114] : memref<1x32xf32, #tpu.memory_space<vmem>>, vector<1x32xf32>
    %cst_115 = arith.constant dense<0.000000e+00> : vector<80xf32>
    %194 = vector.multi_reduction <add>, %191, %cst_115 [1] : vector<80x32xf32> to vector<80xf32>
    %195 = vector.shape_cast %194 : vector<80xf32> to vector<80x1xf32>
    %cst_116 = arith.constant 3.200000e+01 : f32
    %196 = vector.broadcast %cst_116 : f32 to vector<80x1xf32>
    %197 = arith.divf %195, %196 : vector<80x1xf32>
    %198 = vector.broadcast %197 : vector<80x1xf32> to vector<80x32xf32>
    %199 = arith.subf %191, %198 : vector<80x32xf32>
    %200 = arith.mulf %199, %199 : vector<80x32xf32>
    %cst_117 = arith.constant dense<0.000000e+00> : vector<80xf32>
    %201 = vector.multi_reduction <add>, %200, %cst_117 [1] : vector<80x32xf32> to vector<80xf32>
    %202 = vector.shape_cast %201 : vector<80xf32> to vector<80x1xf32>
    %cst_118 = arith.constant 3.200000e+01 : f32
    %203 = vector.broadcast %cst_118 : f32 to vector<80x1xf32>
    %204 = arith.divf %202, %203 : vector<80x1xf32>
    %205 = vector.broadcast %197 : vector<80x1xf32> to vector<80x32xf32>
    %206 = arith.subf %191, %205 : vector<80x32xf32>
    %cst_119 = arith.constant 9.99999974E-6 : f32
    %207 = vector.broadcast %cst_119 : f32 to vector<80x1xf32>
    %208 = arith.addf %204, %207 : vector<80x1xf32>
    %209 = math.rsqrt %208 : vector<80x1xf32>
    %210 = vector.broadcast %209 : vector<80x1xf32> to vector<80x32xf32>
    %211 = arith.mulf %206, %210 : vector<80x32xf32>
    %212 = vector.broadcast %192 : vector<1x32xf32> to vector<80x32xf32>
    %213 = arith.mulf %211, %212 : vector<80x32xf32>
    %214 = vector.broadcast %193 : vector<1x32xf32> to vector<80x32xf32>
    %215 = arith.addf %213, %214 : vector<80x32xf32>
    %216 = tpu.iota {dimensions = array<i32: 1>} : vector<1x80xi32>
    %c79_i32_120 = arith.constant 79 : i32
    %217 = vector.broadcast %c79_i32_120 : i32 to vector<1x80xi32>
    %218 = arith.cmpi slt, %216, %217 : vector<1x80xi32>
    %cst_121 = arith.constant 0.000000e+00 : f32
    %cst_122 = arith.constant -1.000000e+30 : f32
    %219 = vector.broadcast %cst_121 : f32 to vector<1x80xf32>
    %220 = vector.broadcast %cst_122 : f32 to vector<1x80xf32>
    %221 = arith.select %218, %219, %220 : vector<1x80xi1>, vector<1x80xf32>
    %cst_123 = arith.constant 0.000000e+00 : f32
    %222 = vector.broadcast %cst_123 : f32 to vector<80x32xf32>
    %c0_124 = arith.constant 0 : index
    %c0_125 = arith.constant 0 : index
    %223 = vector.load %arg15[%c0_124, %c0_125] : memref<96x32xf32, #tpu.memory_space<vmem>>, vector<8x32xf32>
    %cst_126 = arith.constant dense<0.000000e+00> : vector<80x8xf32>
    %224 = tpu.matmul %215, %223, %cst_126 {dimension_numbers = #tpu.dot_dimension_numbers<[1], [1], [0], [0], [0, 0, 1, 0], [], []>} : vector<80x32xf32>, vector<8x32xf32>, vector<80x8xf32> -> vector<80x8xf32>
    %c0_127 = arith.constant 0 : index
    %c0_128 = arith.constant 0 : index
    %225 = vector.load %arg16[%c0_127, %c0_128] : memref<12x8xf32, #tpu.memory_space<vmem>>, vector<1x8xf32>
    %226 = vector.broadcast %225 : vector<1x8xf32> to vector<80x8xf32>
    %227 = arith.addf %224, %226 : vector<80x8xf32>
    %c32_129 = arith.constant 32 : index
    %c0_130 = arith.constant 0 : index
    %228 = vector.load %arg15[%c32_129, %c0_130] : memref<96x32xf32, #tpu.memory_space<vmem>>, vector<8x32xf32>
    %cst_131 = arith.constant dense<0.000000e+00> : vector<80x8xf32>
    %229 = tpu.matmul %215, %228, %cst_131 {dimension_numbers = #tpu.dot_dimension_numbers<[1], [1], [0], [0], [0, 0, 1, 0], [], []>} : vector<80x32xf32>, vector<8x32xf32>, vector<80x8xf32> -> vector<80x8xf32>
    %c4_132 = arith.constant 4 : index
    %c0_133 = arith.constant 0 : index
    %230 = vector.load %arg16[%c4_132, %c0_133] : memref<12x8xf32, #tpu.memory_space<vmem>>, vector<1x8xf32>
    %231 = vector.broadcast %230 : vector<1x8xf32> to vector<80x8xf32>
    %232 = arith.addf %229, %231 : vector<80x8xf32>
    %c64_134 = arith.constant 64 : index
    %c0_135 = arith.constant 0 : index
    %233 = vector.load %arg15[%c64_134, %c0_135] : memref<96x32xf32, #tpu.memory_space<vmem>>, vector<8x32xf32>
    %cst_136 = arith.constant dense<0.000000e+00> : vector<80x8xf32>
    %234 = tpu.matmul %215, %233, %cst_136 {dimension_numbers = #tpu.dot_dimension_numbers<[1], [1], [0], [0], [0, 0, 1, 0], [], []>} : vector<80x32xf32>, vector<8x32xf32>, vector<80x8xf32> -> vector<80x8xf32>
    %c8_137 = arith.constant 8 : index
    %c0_138 = arith.constant 0 : index
    %235 = vector.load %arg16[%c8_137, %c0_138] : memref<12x8xf32, #tpu.memory_space<vmem>>, vector<1x8xf32>
    %236 = vector.broadcast %235 : vector<1x8xf32> to vector<80x8xf32>
    %237 = arith.addf %234, %236 : vector<80x8xf32>
    %cst_139 = arith.constant 0.353553385 : f32
    %238 = vector.broadcast %cst_139 : f32 to vector<80x8xf32>
    %239 = arith.mulf %227, %238 : vector<80x8xf32>
    %cst_140 = arith.constant dense<0.000000e+00> : vector<80x80xf32>
    %240 = tpu.matmul %239, %232, %cst_140 {dimension_numbers = #tpu.dot_dimension_numbers<[1], [1], [0], [0], [0, 0, 1, 0], [], []>} : vector<80x8xf32>, vector<80x8xf32>, vector<80x80xf32> -> vector<80x80xf32>
    %241 = vector.broadcast %221 : vector<1x80xf32> to vector<80x80xf32>
    %242 = arith.addf %240, %241 : vector<80x80xf32>
    %cst_141 = arith.constant dense<0xFF800000> : vector<80xf32>
    %243 = vector.multi_reduction <maximumf>, %242, %cst_141 [1] : vector<80x80xf32> to vector<80xf32>
    %244 = vector.shape_cast %243 : vector<80xf32> to vector<80x1xf32>
    %245 = vector.broadcast %244 : vector<80x1xf32> to vector<80x80xf32>
    %246 = arith.subf %242, %245 : vector<80x80xf32>
    %247 = math.exp %246 : vector<80x80xf32>
    %cst_142 = arith.constant dense<0.000000e+00> : vector<80xf32>
    %248 = vector.multi_reduction <add>, %247, %cst_142 [1] : vector<80x80xf32> to vector<80xf32>
    %249 = vector.shape_cast %248 : vector<80xf32> to vector<80x1xf32>
    %250 = tpu.reciprocal %249 {approx = true} : vector<80x1xf32> -> vector<80x1xf32>
    %251 = vector.broadcast %250 : vector<80x1xf32> to vector<80x80xf32>
    %252 = arith.mulf %247, %251 : vector<80x80xf32>
    %cst_143 = arith.constant dense<0.000000e+00> : vector<80x8xf32>
    %253 = tpu.matmul %252, %237, %cst_143 {dimension_numbers = #tpu.dot_dimension_numbers<[1], [0], [0], [1], [0, 0, 1, 1], [], []>} : vector<80x80xf32>, vector<80x8xf32>, vector<80x8xf32> -> vector<80x8xf32>
    %c0_144 = arith.constant 0 : index
    %c0_145 = arith.constant 0 : index
    %254 = vector.load %arg17[%c0_144, %c0_145] : memref<32x32xf32, #tpu.memory_space<vmem>>, vector<8x32xf32>
    %cst_146 = arith.constant dense<0.000000e+00> : vector<80x32xf32>
    %255 = tpu.matmul %253, %254, %cst_146 {dimension_numbers = #tpu.dot_dimension_numbers<[1], [0], [0], [1], [0, 0, 1, 1], [], []>} : vector<80x8xf32>, vector<8x32xf32>, vector<80x32xf32> -> vector<80x32xf32>
    %256 = arith.addf %222, %255 : vector<80x32xf32>
    %c8_147 = arith.constant 8 : index
    %c0_148 = arith.constant 0 : index
    %257 = vector.load %arg15[%c8_147, %c0_148] : memref<96x32xf32, #tpu.memory_space<vmem>>, vector<8x32xf32>
    %cst_149 = arith.constant dense<0.000000e+00> : vector<80x8xf32>
    %258 = tpu.matmul %215, %257, %cst_149 {dimension_numbers = #tpu.dot_dimension_numbers<[1], [1], [0], [0], [0, 0, 1, 0], [], []>} : vector<80x32xf32>, vector<8x32xf32>, vector<80x8xf32> -> vector<80x8xf32>
    %c1_150 = arith.constant 1 : index
    %c0_151 = arith.constant 0 : index
    %259 = vector.load %arg16[%c1_150, %c0_151] : memref<12x8xf32, #tpu.memory_space<vmem>>, vector<1x8xf32>
    %260 = vector.broadcast %259 : vector<1x8xf32> to vector<80x8xf32>
    %261 = arith.addf %258, %260 : vector<80x8xf32>
    %c40 = arith.constant 40 : index
    %c0_152 = arith.constant 0 : index
    %262 = vector.load %arg15[%c40, %c0_152] : memref<96x32xf32, #tpu.memory_space<vmem>>, vector<8x32xf32>
    %cst_153 = arith.constant dense<0.000000e+00> : vector<80x8xf32>
    %263 = tpu.matmul %215, %262, %cst_153 {dimension_numbers = #tpu.dot_dimension_numbers<[1], [1], [0], [0], [0, 0, 1, 0], [], []>} : vector<80x32xf32>, vector<8x32xf32>, vector<80x8xf32> -> vector<80x8xf32>
    %c5_154 = arith.constant 5 : index
    %c0_155 = arith.constant 0 : index
    %264 = vector.load %arg16[%c5_154, %c0_155] : memref<12x8xf32, #tpu.memory_space<vmem>>, vector<1x8xf32>
    %265 = vector.broadcast %264 : vector<1x8xf32> to vector<80x8xf32>
    %266 = arith.addf %263, %265 : vector<80x8xf32>
    %c72 = arith.constant 72 : index
    %c0_156 = arith.constant 0 : index
    %267 = vector.load %arg15[%c72, %c0_156] : memref<96x32xf32, #tpu.memory_space<vmem>>, vector<8x32xf32>
    %cst_157 = arith.constant dense<0.000000e+00> : vector<80x8xf32>
    %268 = tpu.matmul %215, %267, %cst_157 {dimension_numbers = #tpu.dot_dimension_numbers<[1], [1], [0], [0], [0, 0, 1, 0], [], []>} : vector<80x32xf32>, vector<8x32xf32>, vector<80x8xf32> -> vector<80x8xf32>
    %c9_158 = arith.constant 9 : index
    %c0_159 = arith.constant 0 : index
    %269 = vector.load %arg16[%c9_158, %c0_159] : memref<12x8xf32, #tpu.memory_space<vmem>>, vector<1x8xf32>
    %270 = vector.broadcast %269 : vector<1x8xf32> to vector<80x8xf32>
    %271 = arith.addf %268, %270 : vector<80x8xf32>
    %cst_160 = arith.constant 0.353553385 : f32
    %272 = vector.broadcast %cst_160 : f32 to vector<80x8xf32>
    %273 = arith.mulf %261, %272 : vector<80x8xf32>
    %cst_161 = arith.constant dense<0.000000e+00> : vector<80x80xf32>
    %274 = tpu.matmul %273, %266, %cst_161 {dimension_numbers = #tpu.dot_dimension_numbers<[1], [1], [0], [0], [0, 0, 1, 0], [], []>} : vector<80x8xf32>, vector<80x8xf32>, vector<80x80xf32> -> vector<80x80xf32>
    %275 = vector.broadcast %221 : vector<1x80xf32> to vector<80x80xf32>
    %276 = arith.addf %274, %275 : vector<80x80xf32>
    %cst_162 = arith.constant dense<0xFF800000> : vector<80xf32>
    %277 = vector.multi_reduction <maximumf>, %276, %cst_162 [1] : vector<80x80xf32> to vector<80xf32>
    %278 = vector.shape_cast %277 : vector<80xf32> to vector<80x1xf32>
    %279 = vector.broadcast %278 : vector<80x1xf32> to vector<80x80xf32>
    %280 = arith.subf %276, %279 : vector<80x80xf32>
    %281 = math.exp %280 : vector<80x80xf32>
    %cst_163 = arith.constant dense<0.000000e+00> : vector<80xf32>
    %282 = vector.multi_reduction <add>, %281, %cst_163 [1] : vector<80x80xf32> to vector<80xf32>
    %283 = vector.shape_cast %282 : vector<80xf32> to vector<80x1xf32>
    %284 = tpu.reciprocal %283 {approx = true} : vector<80x1xf32> -> vector<80x1xf32>
    %285 = vector.broadcast %284 : vector<80x1xf32> to vector<80x80xf32>
    %286 = arith.mulf %281, %285 : vector<80x80xf32>
    %cst_164 = arith.constant dense<0.000000e+00> : vector<80x8xf32>
    %287 = tpu.matmul %286, %271, %cst_164 {dimension_numbers = #tpu.dot_dimension_numbers<[1], [0], [0], [1], [0, 0, 1, 1], [], []>} : vector<80x80xf32>, vector<80x8xf32>, vector<80x8xf32> -> vector<80x8xf32>
    %c8_165 = arith.constant 8 : index
    %c0_166 = arith.constant 0 : index
    %288 = vector.load %arg17[%c8_165, %c0_166] : memref<32x32xf32, #tpu.memory_space<vmem>>, vector<8x32xf32>
    %cst_167 = arith.constant dense<0.000000e+00> : vector<80x32xf32>
    %289 = tpu.matmul %287, %288, %cst_167 {dimension_numbers = #tpu.dot_dimension_numbers<[1], [0], [0], [1], [0, 0, 1, 1], [], []>} : vector<80x8xf32>, vector<8x32xf32>, vector<80x32xf32> -> vector<80x32xf32>
    %290 = arith.addf %256, %289 : vector<80x32xf32>
    %c16 = arith.constant 16 : index
    %c0_168 = arith.constant 0 : index
    %291 = vector.load %arg15[%c16, %c0_168] : memref<96x32xf32, #tpu.memory_space<vmem>>, vector<8x32xf32>
    %cst_169 = arith.constant dense<0.000000e+00> : vector<80x8xf32>
    %292 = tpu.matmul %215, %291, %cst_169 {dimension_numbers = #tpu.dot_dimension_numbers<[1], [1], [0], [0], [0, 0, 1, 0], [], []>} : vector<80x32xf32>, vector<8x32xf32>, vector<80x8xf32> -> vector<80x8xf32>
    %c2_170 = arith.constant 2 : index
    %c0_171 = arith.constant 0 : index
    %293 = vector.load %arg16[%c2_170, %c0_171] : memref<12x8xf32, #tpu.memory_space<vmem>>, vector<1x8xf32>
    %294 = vector.broadcast %293 : vector<1x8xf32> to vector<80x8xf32>
    %295 = arith.addf %292, %294 : vector<80x8xf32>
    %c48 = arith.constant 48 : index
    %c0_172 = arith.constant 0 : index
    %296 = vector.load %arg15[%c48, %c0_172] : memref<96x32xf32, #tpu.memory_space<vmem>>, vector<8x32xf32>
    %cst_173 = arith.constant dense<0.000000e+00> : vector<80x8xf32>
    %297 = tpu.matmul %215, %296, %cst_173 {dimension_numbers = #tpu.dot_dimension_numbers<[1], [1], [0], [0], [0, 0, 1, 0], [], []>} : vector<80x32xf32>, vector<8x32xf32>, vector<80x8xf32> -> vector<80x8xf32>
    %c6_174 = arith.constant 6 : index
    %c0_175 = arith.constant 0 : index
    %298 = vector.load %arg16[%c6_174, %c0_175] : memref<12x8xf32, #tpu.memory_space<vmem>>, vector<1x8xf32>
    %299 = vector.broadcast %298 : vector<1x8xf32> to vector<80x8xf32>
    %300 = arith.addf %297, %299 : vector<80x8xf32>
    %c80 = arith.constant 80 : index
    %c0_176 = arith.constant 0 : index
    %301 = vector.load %arg15[%c80, %c0_176] : memref<96x32xf32, #tpu.memory_space<vmem>>, vector<8x32xf32>
    %cst_177 = arith.constant dense<0.000000e+00> : vector<80x8xf32>
    %302 = tpu.matmul %215, %301, %cst_177 {dimension_numbers = #tpu.dot_dimension_numbers<[1], [1], [0], [0], [0, 0, 1, 0], [], []>} : vector<80x32xf32>, vector<8x32xf32>, vector<80x8xf32> -> vector<80x8xf32>
    %c10_178 = arith.constant 10 : index
    %c0_179 = arith.constant 0 : index
    %303 = vector.load %arg16[%c10_178, %c0_179] : memref<12x8xf32, #tpu.memory_space<vmem>>, vector<1x8xf32>
    %304 = vector.broadcast %303 : vector<1x8xf32> to vector<80x8xf32>
    %305 = arith.addf %302, %304 : vector<80x8xf32>
    %cst_180 = arith.constant 0.353553385 : f32
    %306 = vector.broadcast %cst_180 : f32 to vector<80x8xf32>
    %307 = arith.mulf %295, %306 : vector<80x8xf32>
    %cst_181 = arith.constant dense<0.000000e+00> : vector<80x80xf32>
    %308 = tpu.matmul %307, %300, %cst_181 {dimension_numbers = #tpu.dot_dimension_numbers<[1], [1], [0], [0], [0, 0, 1, 0], [], []>} : vector<80x8xf32>, vector<80x8xf32>, vector<80x80xf32> -> vector<80x80xf32>
    %309 = vector.broadcast %221 : vector<1x80xf32> to vector<80x80xf32>
    %310 = arith.addf %308, %309 : vector<80x80xf32>
    %cst_182 = arith.constant dense<0xFF800000> : vector<80xf32>
    %311 = vector.multi_reduction <maximumf>, %310, %cst_182 [1] : vector<80x80xf32> to vector<80xf32>
    %312 = vector.shape_cast %311 : vector<80xf32> to vector<80x1xf32>
    %313 = vector.broadcast %312 : vector<80x1xf32> to vector<80x80xf32>
    %314 = arith.subf %310, %313 : vector<80x80xf32>
    %315 = math.exp %314 : vector<80x80xf32>
    %cst_183 = arith.constant dense<0.000000e+00> : vector<80xf32>
    %316 = vector.multi_reduction <add>, %315, %cst_183 [1] : vector<80x80xf32> to vector<80xf32>
    %317 = vector.shape_cast %316 : vector<80xf32> to vector<80x1xf32>
    %318 = tpu.reciprocal %317 {approx = true} : vector<80x1xf32> -> vector<80x1xf32>
    %319 = vector.broadcast %318 : vector<80x1xf32> to vector<80x80xf32>
    %320 = arith.mulf %315, %319 : vector<80x80xf32>
    %cst_184 = arith.constant dense<0.000000e+00> : vector<80x8xf32>
    %321 = tpu.matmul %320, %305, %cst_184 {dimension_numbers = #tpu.dot_dimension_numbers<[1], [0], [0], [1], [0, 0, 1, 1], [], []>} : vector<80x80xf32>, vector<80x8xf32>, vector<80x8xf32> -> vector<80x8xf32>
    %c16_185 = arith.constant 16 : index
    %c0_186 = arith.constant 0 : index
    %322 = vector.load %arg17[%c16_185, %c0_186] : memref<32x32xf32, #tpu.memory_space<vmem>>, vector<8x32xf32>
    %cst_187 = arith.constant dense<0.000000e+00> : vector<80x32xf32>
    %323 = tpu.matmul %321, %322, %cst_187 {dimension_numbers = #tpu.dot_dimension_numbers<[1], [0], [0], [1], [0, 0, 1, 1], [], []>} : vector<80x8xf32>, vector<8x32xf32>, vector<80x32xf32> -> vector<80x32xf32>
    %324 = arith.addf %290, %323 : vector<80x32xf32>
    %c24 = arith.constant 24 : index
    %c0_188 = arith.constant 0 : index
    %325 = vector.load %arg15[%c24, %c0_188] : memref<96x32xf32, #tpu.memory_space<vmem>>, vector<8x32xf32>
    %cst_189 = arith.constant dense<0.000000e+00> : vector<80x8xf32>
    %326 = tpu.matmul %215, %325, %cst_189 {dimension_numbers = #tpu.dot_dimension_numbers<[1], [1], [0], [0], [0, 0, 1, 0], [], []>} : vector<80x32xf32>, vector<8x32xf32>, vector<80x8xf32> -> vector<80x8xf32>
    %c3_190 = arith.constant 3 : index
    %c0_191 = arith.constant 0 : index
    %327 = vector.load %arg16[%c3_190, %c0_191] : memref<12x8xf32, #tpu.memory_space<vmem>>, vector<1x8xf32>
    %328 = vector.broadcast %327 : vector<1x8xf32> to vector<80x8xf32>
    %329 = arith.addf %326, %328 : vector<80x8xf32>
    %c56 = arith.constant 56 : index
    %c0_192 = arith.constant 0 : index
    %330 = vector.load %arg15[%c56, %c0_192] : memref<96x32xf32, #tpu.memory_space<vmem>>, vector<8x32xf32>
    %cst_193 = arith.constant dense<0.000000e+00> : vector<80x8xf32>
    %331 = tpu.matmul %215, %330, %cst_193 {dimension_numbers = #tpu.dot_dimension_numbers<[1], [1], [0], [0], [0, 0, 1, 0], [], []>} : vector<80x32xf32>, vector<8x32xf32>, vector<80x8xf32> -> vector<80x8xf32>
    %c7_194 = arith.constant 7 : index
    %c0_195 = arith.constant 0 : index
    %332 = vector.load %arg16[%c7_194, %c0_195] : memref<12x8xf32, #tpu.memory_space<vmem>>, vector<1x8xf32>
    %333 = vector.broadcast %332 : vector<1x8xf32> to vector<80x8xf32>
    %334 = arith.addf %331, %333 : vector<80x8xf32>
    %c88_196 = arith.constant 88 : index
    %c0_197 = arith.constant 0 : index
    %335 = vector.load %arg15[%c88_196, %c0_197] : memref<96x32xf32, #tpu.memory_space<vmem>>, vector<8x32xf32>
    %cst_198 = arith.constant dense<0.000000e+00> : vector<80x8xf32>
    %336 = tpu.matmul %215, %335, %cst_198 {dimension_numbers = #tpu.dot_dimension_numbers<[1], [1], [0], [0], [0, 0, 1, 0], [], []>} : vector<80x32xf32>, vector<8x32xf32>, vector<80x8xf32> -> vector<80x8xf32>
    %c11_199 = arith.constant 11 : index
    %c0_200 = arith.constant 0 : index
    %337 = vector.load %arg16[%c11_199, %c0_200] : memref<12x8xf32, #tpu.memory_space<vmem>>, vector<1x8xf32>
    %338 = vector.broadcast %337 : vector<1x8xf32> to vector<80x8xf32>
    %339 = arith.addf %336, %338 : vector<80x8xf32>
    %cst_201 = arith.constant 0.353553385 : f32
    %340 = vector.broadcast %cst_201 : f32 to vector<80x8xf32>
    %341 = arith.mulf %329, %340 : vector<80x8xf32>
    %cst_202 = arith.constant dense<0.000000e+00> : vector<80x80xf32>
    %342 = tpu.matmul %341, %334, %cst_202 {dimension_numbers = #tpu.dot_dimension_numbers<[1], [1], [0], [0], [0, 0, 1, 0], [], []>} : vector<80x8xf32>, vector<80x8xf32>, vector<80x80xf32> -> vector<80x80xf32>
    %343 = vector.broadcast %221 : vector<1x80xf32> to vector<80x80xf32>
    %344 = arith.addf %342, %343 : vector<80x80xf32>
    %cst_203 = arith.constant dense<0xFF800000> : vector<80xf32>
    %345 = vector.multi_reduction <maximumf>, %344, %cst_203 [1] : vector<80x80xf32> to vector<80xf32>
    %346 = vector.shape_cast %345 : vector<80xf32> to vector<80x1xf32>
    %347 = vector.broadcast %346 : vector<80x1xf32> to vector<80x80xf32>
    %348 = arith.subf %344, %347 : vector<80x80xf32>
    %349 = math.exp %348 : vector<80x80xf32>
    %cst_204 = arith.constant dense<0.000000e+00> : vector<80xf32>
    %350 = vector.multi_reduction <add>, %349, %cst_204 [1] : vector<80x80xf32> to vector<80xf32>
    %351 = vector.shape_cast %350 : vector<80xf32> to vector<80x1xf32>
    %352 = tpu.reciprocal %351 {approx = true} : vector<80x1xf32> -> vector<80x1xf32>
    %353 = vector.broadcast %352 : vector<80x1xf32> to vector<80x80xf32>
    %354 = arith.mulf %349, %353 : vector<80x80xf32>
    %cst_205 = arith.constant dense<0.000000e+00> : vector<80x8xf32>
    %355 = tpu.matmul %354, %339, %cst_205 {dimension_numbers = #tpu.dot_dimension_numbers<[1], [0], [0], [1], [0, 0, 1, 1], [], []>} : vector<80x80xf32>, vector<80x8xf32>, vector<80x8xf32> -> vector<80x8xf32>
    %c24_206 = arith.constant 24 : index
    %c0_207 = arith.constant 0 : index
    %356 = vector.load %arg17[%c24_206, %c0_207] : memref<32x32xf32, #tpu.memory_space<vmem>>, vector<8x32xf32>
    %cst_208 = arith.constant dense<0.000000e+00> : vector<80x32xf32>
    %357 = tpu.matmul %355, %356, %cst_208 {dimension_numbers = #tpu.dot_dimension_numbers<[1], [0], [0], [1], [0, 0, 1, 1], [], []>} : vector<80x8xf32>, vector<8x32xf32>, vector<80x32xf32> -> vector<80x32xf32>
    %358 = arith.addf %324, %357 : vector<80x32xf32>
    %c0_209 = arith.constant 0 : index
    %c0_210 = arith.constant 0 : index
    %359 = vector.load %arg18[%c0_209, %c0_210] : memref<1x32xf32, #tpu.memory_space<vmem>>, vector<1x32xf32>
    %360 = vector.broadcast %359 : vector<1x32xf32> to vector<80x32xf32>
    %361 = arith.addf %358, %360 : vector<80x32xf32>
    %362 = arith.addf %215, %361 : vector<80x32xf32>
    %c0_211 = arith.constant 0 : index
    %c0_212 = arith.constant 0 : index
    %363 = vector.load %arg19[%c0_211, %c0_212] : memref<1x32xf32, #tpu.memory_space<vmem>>, vector<1x32xf32>
    %c0_213 = arith.constant 0 : index
    %c0_214 = arith.constant 0 : index
    %364 = vector.load %arg20[%c0_213, %c0_214] : memref<1x32xf32, #tpu.memory_space<vmem>>, vector<1x32xf32>
    %cst_215 = arith.constant dense<0.000000e+00> : vector<80xf32>
    %365 = vector.multi_reduction <add>, %362, %cst_215 [1] : vector<80x32xf32> to vector<80xf32>
    %366 = vector.shape_cast %365 : vector<80xf32> to vector<80x1xf32>
    %cst_216 = arith.constant 3.200000e+01 : f32
    %367 = vector.broadcast %cst_216 : f32 to vector<80x1xf32>
    %368 = arith.divf %366, %367 : vector<80x1xf32>
    %369 = vector.broadcast %368 : vector<80x1xf32> to vector<80x32xf32>
    %370 = arith.subf %362, %369 : vector<80x32xf32>
    %371 = arith.mulf %370, %370 : vector<80x32xf32>
    %cst_217 = arith.constant dense<0.000000e+00> : vector<80xf32>
    %372 = vector.multi_reduction <add>, %371, %cst_217 [1] : vector<80x32xf32> to vector<80xf32>
    %373 = vector.shape_cast %372 : vector<80xf32> to vector<80x1xf32>
    %cst_218 = arith.constant 3.200000e+01 : f32
    %374 = vector.broadcast %cst_218 : f32 to vector<80x1xf32>
    %375 = arith.divf %373, %374 : vector<80x1xf32>
    %376 = vector.broadcast %368 : vector<80x1xf32> to vector<80x32xf32>
    %377 = arith.subf %362, %376 : vector<80x32xf32>
    %cst_219 = arith.constant 9.99999974E-6 : f32
    %378 = vector.broadcast %cst_219 : f32 to vector<80x1xf32>
    %379 = arith.addf %375, %378 : vector<80x1xf32>
    %380 = math.rsqrt %379 : vector<80x1xf32>
    %381 = vector.broadcast %380 : vector<80x1xf32> to vector<80x32xf32>
    %382 = arith.mulf %377, %381 : vector<80x32xf32>
    %383 = vector.broadcast %363 : vector<1x32xf32> to vector<80x32xf32>
    %384 = arith.mulf %382, %383 : vector<80x32xf32>
    %385 = vector.broadcast %364 : vector<1x32xf32> to vector<80x32xf32>
    %386 = arith.addf %384, %385 : vector<80x32xf32>
    %c0_220 = arith.constant 0 : index
    %c0_221 = arith.constant 0 : index
    %387 = vector.load %arg21[%c0_220, %c0_221] : memref<32x64xf32, #tpu.memory_space<vmem>>, vector<32x64xf32>
    %cst_222 = arith.constant dense<0.000000e+00> : vector<80x64xf32>
    %388 = tpu.matmul %386, %387, %cst_222 {dimension_numbers = #tpu.dot_dimension_numbers<[1], [0], [0], [1], [0, 0, 1, 1], [], []>} : vector<80x32xf32>, vector<32x64xf32>, vector<80x64xf32> -> vector<80x64xf32>
    %c0_223 = arith.constant 0 : index
    %c0_224 = arith.constant 0 : index
    %389 = vector.load %arg22[%c0_223, %c0_224] : memref<1x64xf32, #tpu.memory_space<vmem>>, vector<1x64xf32>
    %390 = vector.broadcast %389 : vector<1x64xf32> to vector<80x64xf32>
    %391 = arith.addf %388, %390 : vector<80x64xf32>
    %cst_225 = arith.constant 5.000000e-01 : f32
    %392 = vector.broadcast %cst_225 : f32 to vector<80x64xf32>
    %393 = arith.mulf %392, %391 : vector<80x64xf32>
    %cst_226 = arith.constant 4.471500e-02 : f32
    %394 = vector.broadcast %cst_226 : f32 to vector<80x64xf32>
    %395 = arith.mulf %394, %391 : vector<80x64xf32>
    %396 = arith.mulf %395, %391 : vector<80x64xf32>
    %397 = arith.mulf %396, %391 : vector<80x64xf32>
    %398 = arith.addf %391, %397 : vector<80x64xf32>
    %cst_227 = arith.constant 0.797884583 : f32
    %399 = vector.broadcast %cst_227 : f32 to vector<80x64xf32>
    %400 = arith.mulf %399, %398 : vector<80x64xf32>
    %401 = math.tanh %400 : vector<80x64xf32>
    %cst_228 = arith.constant 1.000000e+00 : f32
    %402 = vector.broadcast %cst_228 : f32 to vector<80x64xf32>
    %403 = arith.addf %402, %401 : vector<80x64xf32>
    %404 = arith.mulf %393, %403 : vector<80x64xf32>
    %c0_229 = arith.constant 0 : index
    %c0_230 = arith.constant 0 : index
    %405 = vector.load %arg23[%c0_229, %c0_230] : memref<64x32xf32, #tpu.memory_space<vmem>>, vector<64x32xf32>
    %cst_231 = arith.constant dense<0.000000e+00> : vector<80x32xf32>
    %406 = tpu.matmul %404, %405, %cst_231 {dimension_numbers = #tpu.dot_dimension_numbers<[1], [0], [0], [1], [0, 0, 1, 1], [], []>} : vector<80x64xf32>, vector<64x32xf32>, vector<80x32xf32> -> vector<80x32xf32>
    %c0_232 = arith.constant 0 : index
    %c0_233 = arith.constant 0 : index
    %407 = vector.load %arg24[%c0_232, %c0_233] : memref<1x32xf32, #tpu.memory_space<vmem>>, vector<1x32xf32>
    %408 = vector.broadcast %407 : vector<1x32xf32> to vector<80x32xf32>
    %409 = arith.addf %406, %408 : vector<80x32xf32>
    %410 = arith.addf %386, %409 : vector<80x32xf32>
    %c0_234 = arith.constant 0 : index
    %c0_235 = arith.constant 0 : index
    %411 = vector.load %arg25[%c0_234, %c0_235] : memref<1x32xf32, #tpu.memory_space<vmem>>, vector<1x32xf32>
    %c0_236 = arith.constant 0 : index
    %c0_237 = arith.constant 0 : index
    %412 = vector.load %arg26[%c0_236, %c0_237] : memref<1x32xf32, #tpu.memory_space<vmem>>, vector<1x32xf32>
    %cst_238 = arith.constant dense<0.000000e+00> : vector<80xf32>
    %413 = vector.multi_reduction <add>, %410, %cst_238 [1] : vector<80x32xf32> to vector<80xf32>
    %414 = vector.shape_cast %413 : vector<80xf32> to vector<80x1xf32>
    %cst_239 = arith.constant 3.200000e+01 : f32
    %415 = vector.broadcast %cst_239 : f32 to vector<80x1xf32>
    %416 = arith.divf %414, %415 : vector<80x1xf32>
    %417 = vector.broadcast %416 : vector<80x1xf32> to vector<80x32xf32>
    %418 = arith.subf %410, %417 : vector<80x32xf32>
    %419 = arith.mulf %418, %418 : vector<80x32xf32>
    %cst_240 = arith.constant dense<0.000000e+00> : vector<80xf32>
    %420 = vector.multi_reduction <add>, %419, %cst_240 [1] : vector<80x32xf32> to vector<80xf32>
    %421 = vector.shape_cast %420 : vector<80xf32> to vector<80x1xf32>
    %cst_241 = arith.constant 3.200000e+01 : f32
    %422 = vector.broadcast %cst_241 : f32 to vector<80x1xf32>
    %423 = arith.divf %421, %422 : vector<80x1xf32>
    %424 = vector.broadcast %416 : vector<80x1xf32> to vector<80x32xf32>
    %425 = arith.subf %410, %424 : vector<80x32xf32>
    %cst_242 = arith.constant 9.99999974E-6 : f32
    %426 = vector.broadcast %cst_242 : f32 to vector<80x1xf32>
    %427 = arith.addf %423, %426 : vector<80x1xf32>
    %428 = math.rsqrt %427 : vector<80x1xf32>
    %429 = vector.broadcast %428 : vector<80x1xf32> to vector<80x32xf32>
    %430 = arith.mulf %425, %429 : vector<80x32xf32>
    %431 = vector.broadcast %411 : vector<1x32xf32> to vector<80x32xf32>
    %432 = arith.mulf %430, %431 : vector<80x32xf32>
    %433 = vector.broadcast %412 : vector<1x32xf32> to vector<80x32xf32>
    %434 = arith.addf %432, %433 : vector<80x32xf32>
    %cst_243 = arith.constant 0.000000e+00 : f32
    %435 = vector.broadcast %cst_243 : f32 to vector<80x32xf32>
    %c0_244 = arith.constant 0 : index
    %c0_245 = arith.constant 0 : index
    %436 = vector.load %arg27[%c0_244, %c0_245] : memref<96x32xf32, #tpu.memory_space<vmem>>, vector<8x32xf32>
    %cst_246 = arith.constant dense<0.000000e+00> : vector<80x8xf32>
    %437 = tpu.matmul %434, %436, %cst_246 {dimension_numbers = #tpu.dot_dimension_numbers<[1], [1], [0], [0], [0, 0, 1, 0], [], []>} : vector<80x32xf32>, vector<8x32xf32>, vector<80x8xf32> -> vector<80x8xf32>
    %c0_247 = arith.constant 0 : index
    %c0_248 = arith.constant 0 : index
    %438 = vector.load %arg28[%c0_247, %c0_248] : memref<12x8xf32, #tpu.memory_space<vmem>>, vector<1x8xf32>
    %439 = vector.broadcast %438 : vector<1x8xf32> to vector<80x8xf32>
    %440 = arith.addf %437, %439 : vector<80x8xf32>
    %c32_249 = arith.constant 32 : index
    %c0_250 = arith.constant 0 : index
    %441 = vector.load %arg27[%c32_249, %c0_250] : memref<96x32xf32, #tpu.memory_space<vmem>>, vector<8x32xf32>
    %cst_251 = arith.constant dense<0.000000e+00> : vector<80x8xf32>
    %442 = tpu.matmul %434, %441, %cst_251 {dimension_numbers = #tpu.dot_dimension_numbers<[1], [1], [0], [0], [0, 0, 1, 0], [], []>} : vector<80x32xf32>, vector<8x32xf32>, vector<80x8xf32> -> vector<80x8xf32>
    %c4_252 = arith.constant 4 : index
    %c0_253 = arith.constant 0 : index
    %443 = vector.load %arg28[%c4_252, %c0_253] : memref<12x8xf32, #tpu.memory_space<vmem>>, vector<1x8xf32>
    %444 = vector.broadcast %443 : vector<1x8xf32> to vector<80x8xf32>
    %445 = arith.addf %442, %444 : vector<80x8xf32>
    %c64_254 = arith.constant 64 : index
    %c0_255 = arith.constant 0 : index
    %446 = vector.load %arg27[%c64_254, %c0_255] : memref<96x32xf32, #tpu.memory_space<vmem>>, vector<8x32xf32>
    %cst_256 = arith.constant dense<0.000000e+00> : vector<80x8xf32>
    %447 = tpu.matmul %434, %446, %cst_256 {dimension_numbers = #tpu.dot_dimension_numbers<[1], [1], [0], [0], [0, 0, 1, 0], [], []>} : vector<80x32xf32>, vector<8x32xf32>, vector<80x8xf32> -> vector<80x8xf32>
    %c8_257 = arith.constant 8 : index
    %c0_258 = arith.constant 0 : index
    %448 = vector.load %arg28[%c8_257, %c0_258] : memref<12x8xf32, #tpu.memory_space<vmem>>, vector<1x8xf32>
    %449 = vector.broadcast %448 : vector<1x8xf32> to vector<80x8xf32>
    %450 = arith.addf %447, %449 : vector<80x8xf32>
    %cst_259 = arith.constant 0.353553385 : f32
    %451 = vector.broadcast %cst_259 : f32 to vector<80x8xf32>
    %452 = arith.mulf %440, %451 : vector<80x8xf32>
    %cst_260 = arith.constant dense<0.000000e+00> : vector<80x80xf32>
    %453 = tpu.matmul %452, %445, %cst_260 {dimension_numbers = #tpu.dot_dimension_numbers<[1], [1], [0], [0], [0, 0, 1, 0], [], []>} : vector<80x8xf32>, vector<80x8xf32>, vector<80x80xf32> -> vector<80x80xf32>
    %454 = vector.broadcast %221 : vector<1x80xf32> to vector<80x80xf32>
    %455 = arith.addf %453, %454 : vector<80x80xf32>
    %cst_261 = arith.constant dense<0xFF800000> : vector<80xf32>
    %456 = vector.multi_reduction <maximumf>, %455, %cst_261 [1] : vector<80x80xf32> to vector<80xf32>
    %457 = vector.shape_cast %456 : vector<80xf32> to vector<80x1xf32>
    %458 = vector.broadcast %457 : vector<80x1xf32> to vector<80x80xf32>
    %459 = arith.subf %455, %458 : vector<80x80xf32>
    %460 = math.exp %459 : vector<80x80xf32>
    %cst_262 = arith.constant dense<0.000000e+00> : vector<80xf32>
    %461 = vector.multi_reduction <add>, %460, %cst_262 [1] : vector<80x80xf32> to vector<80xf32>
    %462 = vector.shape_cast %461 : vector<80xf32> to vector<80x1xf32>
    %463 = tpu.reciprocal %462 {approx = true} : vector<80x1xf32> -> vector<80x1xf32>
    %464 = vector.broadcast %463 : vector<80x1xf32> to vector<80x80xf32>
    %465 = arith.mulf %460, %464 : vector<80x80xf32>
    %cst_263 = arith.constant dense<0.000000e+00> : vector<80x8xf32>
    %466 = tpu.matmul %465, %450, %cst_263 {dimension_numbers = #tpu.dot_dimension_numbers<[1], [0], [0], [1], [0, 0, 1, 1], [], []>} : vector<80x80xf32>, vector<80x8xf32>, vector<80x8xf32> -> vector<80x8xf32>
    %c0_264 = arith.constant 0 : index
    %c0_265 = arith.constant 0 : index
    %467 = vector.load %arg29[%c0_264, %c0_265] : memref<32x32xf32, #tpu.memory_space<vmem>>, vector<8x32xf32>
    %cst_266 = arith.constant dense<0.000000e+00> : vector<80x32xf32>
    %468 = tpu.matmul %466, %467, %cst_266 {dimension_numbers = #tpu.dot_dimension_numbers<[1], [0], [0], [1], [0, 0, 1, 1], [], []>} : vector<80x8xf32>, vector<8x32xf32>, vector<80x32xf32> -> vector<80x32xf32>
    %469 = arith.addf %435, %468 : vector<80x32xf32>
    %c8_267 = arith.constant 8 : index
    %c0_268 = arith.constant 0 : index
    %470 = vector.load %arg27[%c8_267, %c0_268] : memref<96x32xf32, #tpu.memory_space<vmem>>, vector<8x32xf32>
    %cst_269 = arith.constant dense<0.000000e+00> : vector<80x8xf32>
    %471 = tpu.matmul %434, %470, %cst_269 {dimension_numbers = #tpu.dot_dimension_numbers<[1], [1], [0], [0], [0, 0, 1, 0], [], []>} : vector<80x32xf32>, vector<8x32xf32>, vector<80x8xf32> -> vector<80x8xf32>
    %c1_270 = arith.constant 1 : index
    %c0_271 = arith.constant 0 : index
    %472 = vector.load %arg28[%c1_270, %c0_271] : memref<12x8xf32, #tpu.memory_space<vmem>>, vector<1x8xf32>
    %473 = vector.broadcast %472 : vector<1x8xf32> to vector<80x8xf32>
    %474 = arith.addf %471, %473 : vector<80x8xf32>
    %c40_272 = arith.constant 40 : index
    %c0_273 = arith.constant 0 : index
    %475 = vector.load %arg27[%c40_272, %c0_273] : memref<96x32xf32, #tpu.memory_space<vmem>>, vector<8x32xf32>
    %cst_274 = arith.constant dense<0.000000e+00> : vector<80x8xf32>
    %476 = tpu.matmul %434, %475, %cst_274 {dimension_numbers = #tpu.dot_dimension_numbers<[1], [1], [0], [0], [0, 0, 1, 0], [], []>} : vector<80x32xf32>, vector<8x32xf32>, vector<80x8xf32> -> vector<80x8xf32>
    %c5_275 = arith.constant 5 : index
    %c0_276 = arith.constant 0 : index
    %477 = vector.load %arg28[%c5_275, %c0_276] : memref<12x8xf32, #tpu.memory_space<vmem>>, vector<1x8xf32>
    %478 = vector.broadcast %477 : vector<1x8xf32> to vector<80x8xf32>
    %479 = arith.addf %476, %478 : vector<80x8xf32>
    %c72_277 = arith.constant 72 : index
    %c0_278 = arith.constant 0 : index
    %480 = vector.load %arg27[%c72_277, %c0_278] : memref<96x32xf32, #tpu.memory_space<vmem>>, vector<8x32xf32>
    %cst_279 = arith.constant dense<0.000000e+00> : vector<80x8xf32>
    %481 = tpu.matmul %434, %480, %cst_279 {dimension_numbers = #tpu.dot_dimension_numbers<[1], [1], [0], [0], [0, 0, 1, 0], [], []>} : vector<80x32xf32>, vector<8x32xf32>, vector<80x8xf32> -> vector<80x8xf32>
    %c9_280 = arith.constant 9 : index
    %c0_281 = arith.constant 0 : index
    %482 = vector.load %arg28[%c9_280, %c0_281] : memref<12x8xf32, #tpu.memory_space<vmem>>, vector<1x8xf32>
    %483 = vector.broadcast %482 : vector<1x8xf32> to vector<80x8xf32>
    %484 = arith.addf %481, %483 : vector<80x8xf32>
    %cst_282 = arith.constant 0.353553385 : f32
    %485 = vector.broadcast %cst_282 : f32 to vector<80x8xf32>
    %486 = arith.mulf %474, %485 : vector<80x8xf32>
    %cst_283 = arith.constant dense<0.000000e+00> : vector<80x80xf32>
    %487 = tpu.matmul %486, %479, %cst_283 {dimension_numbers = #tpu.dot_dimension_numbers<[1], [1], [0], [0], [0, 0, 1, 0], [], []>} : vector<80x8xf32>, vector<80x8xf32>, vector<80x80xf32> -> vector<80x80xf32>
    %488 = vector.broadcast %221 : vector<1x80xf32> to vector<80x80xf32>
    %489 = arith.addf %487, %488 : vector<80x80xf32>
    %cst_284 = arith.constant dense<0xFF800000> : vector<80xf32>
    %490 = vector.multi_reduction <maximumf>, %489, %cst_284 [1] : vector<80x80xf32> to vector<80xf32>
    %491 = vector.shape_cast %490 : vector<80xf32> to vector<80x1xf32>
    %492 = vector.broadcast %491 : vector<80x1xf32> to vector<80x80xf32>
    %493 = arith.subf %489, %492 : vector<80x80xf32>
    %494 = math.exp %493 : vector<80x80xf32>
    %cst_285 = arith.constant dense<0.000000e+00> : vector<80xf32>
    %495 = vector.multi_reduction <add>, %494, %cst_285 [1] : vector<80x80xf32> to vector<80xf32>
    %496 = vector.shape_cast %495 : vector<80xf32> to vector<80x1xf32>
    %497 = tpu.reciprocal %496 {approx = true} : vector<80x1xf32> -> vector<80x1xf32>
    %498 = vector.broadcast %497 : vector<80x1xf32> to vector<80x80xf32>
    %499 = arith.mulf %494, %498 : vector<80x80xf32>
    %cst_286 = arith.constant dense<0.000000e+00> : vector<80x8xf32>
    %500 = tpu.matmul %499, %484, %cst_286 {dimension_numbers = #tpu.dot_dimension_numbers<[1], [0], [0], [1], [0, 0, 1, 1], [], []>} : vector<80x80xf32>, vector<80x8xf32>, vector<80x8xf32> -> vector<80x8xf32>
    %c8_287 = arith.constant 8 : index
    %c0_288 = arith.constant 0 : index
    %501 = vector.load %arg29[%c8_287, %c0_288] : memref<32x32xf32, #tpu.memory_space<vmem>>, vector<8x32xf32>
    %cst_289 = arith.constant dense<0.000000e+00> : vector<80x32xf32>
    %502 = tpu.matmul %500, %501, %cst_289 {dimension_numbers = #tpu.dot_dimension_numbers<[1], [0], [0], [1], [0, 0, 1, 1], [], []>} : vector<80x8xf32>, vector<8x32xf32>, vector<80x32xf32> -> vector<80x32xf32>
    %503 = arith.addf %469, %502 : vector<80x32xf32>
    %c16_290 = arith.constant 16 : index
    %c0_291 = arith.constant 0 : index
    %504 = vector.load %arg27[%c16_290, %c0_291] : memref<96x32xf32, #tpu.memory_space<vmem>>, vector<8x32xf32>
    %cst_292 = arith.constant dense<0.000000e+00> : vector<80x8xf32>
    %505 = tpu.matmul %434, %504, %cst_292 {dimension_numbers = #tpu.dot_dimension_numbers<[1], [1], [0], [0], [0, 0, 1, 0], [], []>} : vector<80x32xf32>, vector<8x32xf32>, vector<80x8xf32> -> vector<80x8xf32>
    %c2_293 = arith.constant 2 : index
    %c0_294 = arith.constant 0 : index
    %506 = vector.load %arg28[%c2_293, %c0_294] : memref<12x8xf32, #tpu.memory_space<vmem>>, vector<1x8xf32>
    %507 = vector.broadcast %506 : vector<1x8xf32> to vector<80x8xf32>
    %508 = arith.addf %505, %507 : vector<80x8xf32>
    %c48_295 = arith.constant 48 : index
    %c0_296 = arith.constant 0 : index
    %509 = vector.load %arg27[%c48_295, %c0_296] : memref<96x32xf32, #tpu.memory_space<vmem>>, vector<8x32xf32>
    %cst_297 = arith.constant dense<0.000000e+00> : vector<80x8xf32>
    %510 = tpu.matmul %434, %509, %cst_297 {dimension_numbers = #tpu.dot_dimension_numbers<[1], [1], [0], [0], [0, 0, 1, 0], [], []>} : vector<80x32xf32>, vector<8x32xf32>, vector<80x8xf32> -> vector<80x8xf32>
    %c6_298 = arith.constant 6 : index
    %c0_299 = arith.constant 0 : index
    %511 = vector.load %arg28[%c6_298, %c0_299] : memref<12x8xf32, #tpu.memory_space<vmem>>, vector<1x8xf32>
    %512 = vector.broadcast %511 : vector<1x8xf32> to vector<80x8xf32>
    %513 = arith.addf %510, %512 : vector<80x8xf32>
    %c80_300 = arith.constant 80 : index
    %c0_301 = arith.constant 0 : index
    %514 = vector.load %arg27[%c80_300, %c0_301] : memref<96x32xf32, #tpu.memory_space<vmem>>, vector<8x32xf32>
    %cst_302 = arith.constant dense<0.000000e+00> : vector<80x8xf32>
    %515 = tpu.matmul %434, %514, %cst_302 {dimension_numbers = #tpu.dot_dimension_numbers<[1], [1], [0], [0], [0, 0, 1, 0], [], []>} : vector<80x32xf32>, vector<8x32xf32>, vector<80x8xf32> -> vector<80x8xf32>
    %c10_303 = arith.constant 10 : index
    %c0_304 = arith.constant 0 : index
    %516 = vector.load %arg28[%c10_303, %c0_304] : memref<12x8xf32, #tpu.memory_space<vmem>>, vector<1x8xf32>
    %517 = vector.broadcast %516 : vector<1x8xf32> to vector<80x8xf32>
    %518 = arith.addf %515, %517 : vector<80x8xf32>
    %cst_305 = arith.constant 0.353553385 : f32
    %519 = vector.broadcast %cst_305 : f32 to vector<80x8xf32>
    %520 = arith.mulf %508, %519 : vector<80x8xf32>
    %cst_306 = arith.constant dense<0.000000e+00> : vector<80x80xf32>
    %521 = tpu.matmul %520, %513, %cst_306 {dimension_numbers = #tpu.dot_dimension_numbers<[1], [1], [0], [0], [0, 0, 1, 0], [], []>} : vector<80x8xf32>, vector<80x8xf32>, vector<80x80xf32> -> vector<80x80xf32>
    %522 = vector.broadcast %221 : vector<1x80xf32> to vector<80x80xf32>
    %523 = arith.addf %521, %522 : vector<80x80xf32>
    %cst_307 = arith.constant dense<0xFF800000> : vector<80xf32>
    %524 = vector.multi_reduction <maximumf>, %523, %cst_307 [1] : vector<80x80xf32> to vector<80xf32>
    %525 = vector.shape_cast %524 : vector<80xf32> to vector<80x1xf32>
    %526 = vector.broadcast %525 : vector<80x1xf32> to vector<80x80xf32>
    %527 = arith.subf %523, %526 : vector<80x80xf32>
    %528 = math.exp %527 : vector<80x80xf32>
    %cst_308 = arith.constant dense<0.000000e+00> : vector<80xf32>
    %529 = vector.multi_reduction <add>, %528, %cst_308 [1] : vector<80x80xf32> to vector<80xf32>
    %530 = vector.shape_cast %529 : vector<80xf32> to vector<80x1xf32>
    %531 = tpu.reciprocal %530 {approx = true} : vector<80x1xf32> -> vector<80x1xf32>
    %532 = vector.broadcast %531 : vector<80x1xf32> to vector<80x80xf32>
    %533 = arith.mulf %528, %532 : vector<80x80xf32>
    %cst_309 = arith.constant dense<0.000000e+00> : vector<80x8xf32>
    %534 = tpu.matmul %533, %518, %cst_309 {dimension_numbers = #tpu.dot_dimension_numbers<[1], [0], [0], [1], [0, 0, 1, 1], [], []>} : vector<80x80xf32>, vector<80x8xf32>, vector<80x8xf32> -> vector<80x8xf32>
    %c16_310 = arith.constant 16 : index
    %c0_311 = arith.constant 0 : index
    %535 = vector.load %arg29[%c16_310, %c0_311] : memref<32x32xf32, #tpu.memory_space<vmem>>, vector<8x32xf32>
    %cst_312 = arith.constant dense<0.000000e+00> : vector<80x32xf32>
    %536 = tpu.matmul %534, %535, %cst_312 {dimension_numbers = #tpu.dot_dimension_numbers<[1], [0], [0], [1], [0, 0, 1, 1], [], []>} : vector<80x8xf32>, vector<8x32xf32>, vector<80x32xf32> -> vector<80x32xf32>
    %537 = arith.addf %503, %536 : vector<80x32xf32>
    %c24_313 = arith.constant 24 : index
    %c0_314 = arith.constant 0 : index
    %538 = vector.load %arg27[%c24_313, %c0_314] : memref<96x32xf32, #tpu.memory_space<vmem>>, vector<8x32xf32>
    %cst_315 = arith.constant dense<0.000000e+00> : vector<80x8xf32>
    %539 = tpu.matmul %434, %538, %cst_315 {dimension_numbers = #tpu.dot_dimension_numbers<[1], [1], [0], [0], [0, 0, 1, 0], [], []>} : vector<80x32xf32>, vector<8x32xf32>, vector<80x8xf32> -> vector<80x8xf32>
    %c3_316 = arith.constant 3 : index
    %c0_317 = arith.constant 0 : index
    %540 = vector.load %arg28[%c3_316, %c0_317] : memref<12x8xf32, #tpu.memory_space<vmem>>, vector<1x8xf32>
    %541 = vector.broadcast %540 : vector<1x8xf32> to vector<80x8xf32>
    %542 = arith.addf %539, %541 : vector<80x8xf32>
    %c56_318 = arith.constant 56 : index
    %c0_319 = arith.constant 0 : index
    %543 = vector.load %arg27[%c56_318, %c0_319] : memref<96x32xf32, #tpu.memory_space<vmem>>, vector<8x32xf32>
    %cst_320 = arith.constant dense<0.000000e+00> : vector<80x8xf32>
    %544 = tpu.matmul %434, %543, %cst_320 {dimension_numbers = #tpu.dot_dimension_numbers<[1], [1], [0], [0], [0, 0, 1, 0], [], []>} : vector<80x32xf32>, vector<8x32xf32>, vector<80x8xf32> -> vector<80x8xf32>
    %c7_321 = arith.constant 7 : index
    %c0_322 = arith.constant 0 : index
    %545 = vector.load %arg28[%c7_321, %c0_322] : memref<12x8xf32, #tpu.memory_space<vmem>>, vector<1x8xf32>
    %546 = vector.broadcast %545 : vector<1x8xf32> to vector<80x8xf32>
    %547 = arith.addf %544, %546 : vector<80x8xf32>
    %c88_323 = arith.constant 88 : index
    %c0_324 = arith.constant 0 : index
    %548 = vector.load %arg27[%c88_323, %c0_324] : memref<96x32xf32, #tpu.memory_space<vmem>>, vector<8x32xf32>
    %cst_325 = arith.constant dense<0.000000e+00> : vector<80x8xf32>
    %549 = tpu.matmul %434, %548, %cst_325 {dimension_numbers = #tpu.dot_dimension_numbers<[1], [1], [0], [0], [0, 0, 1, 0], [], []>} : vector<80x32xf32>, vector<8x32xf32>, vector<80x8xf32> -> vector<80x8xf32>
    %c11_326 = arith.constant 11 : index
    %c0_327 = arith.constant 0 : index
    %550 = vector.load %arg28[%c11_326, %c0_327] : memref<12x8xf32, #tpu.memory_space<vmem>>, vector<1x8xf32>
    %551 = vector.broadcast %550 : vector<1x8xf32> to vector<80x8xf32>
    %552 = arith.addf %549, %551 : vector<80x8xf32>
    %cst_328 = arith.constant 0.353553385 : f32
    %553 = vector.broadcast %cst_328 : f32 to vector<80x8xf32>
    %554 = arith.mulf %542, %553 : vector<80x8xf32>
    %cst_329 = arith.constant dense<0.000000e+00> : vector<80x80xf32>
    %555 = tpu.matmul %554, %547, %cst_329 {dimension_numbers = #tpu.dot_dimension_numbers<[1], [1], [0], [0], [0, 0, 1, 0], [], []>} : vector<80x8xf32>, vector<80x8xf32>, vector<80x80xf32> -> vector<80x80xf32>
    %556 = vector.broadcast %221 : vector<1x80xf32> to vector<80x80xf32>
    %557 = arith.addf %555, %556 : vector<80x80xf32>
    %cst_330 = arith.constant dense<0xFF800000> : vector<80xf32>
    %558 = vector.multi_reduction <maximumf>, %557, %cst_330 [1] : vector<80x80xf32> to vector<80xf32>
    %559 = vector.shape_cast %558 : vector<80xf32> to vector<80x1xf32>
    %560 = vector.broadcast %559 : vector<80x1xf32> to vector<80x80xf32>
    %561 = arith.subf %557, %560 : vector<80x80xf32>
    %562 = math.exp %561 : vector<80x80xf32>
    %cst_331 = arith.constant dense<0.000000e+00> : vector<80xf32>
    %563 = vector.multi_reduction <add>, %562, %cst_331 [1] : vector<80x80xf32> to vector<80xf32>
    %564 = vector.shape_cast %563 : vector<80xf32> to vector<80x1xf32>
    %565 = tpu.reciprocal %564 {approx = true} : vector<80x1xf32> -> vector<80x1xf32>
    %566 = vector.broadcast %565 : vector<80x1xf32> to vector<80x80xf32>
    %567 = arith.mulf %562, %566 : vector<80x80xf32>
    %cst_332 = arith.constant dense<0.000000e+00> : vector<80x8xf32>
    %568 = tpu.matmul %567, %552, %cst_332 {dimension_numbers = #tpu.dot_dimension_numbers<[1], [0], [0], [1], [0, 0, 1, 1], [], []>} : vector<80x80xf32>, vector<80x8xf32>, vector<80x8xf32> -> vector<80x8xf32>
    %c24_333 = arith.constant 24 : index
    %c0_334 = arith.constant 0 : index
    %569 = vector.load %arg29[%c24_333, %c0_334] : memref<32x32xf32, #tpu.memory_space<vmem>>, vector<8x32xf32>
    %cst_335 = arith.constant dense<0.000000e+00> : vector<80x32xf32>
    %570 = tpu.matmul %568, %569, %cst_335 {dimension_numbers = #tpu.dot_dimension_numbers<[1], [0], [0], [1], [0, 0, 1, 1], [], []>} : vector<80x8xf32>, vector<8x32xf32>, vector<80x32xf32> -> vector<80x32xf32>
    %571 = arith.addf %537, %570 : vector<80x32xf32>
    %c0_336 = arith.constant 0 : index
    %c0_337 = arith.constant 0 : index
    %572 = vector.load %arg30[%c0_336, %c0_337] : memref<1x32xf32, #tpu.memory_space<vmem>>, vector<1x32xf32>
    %573 = vector.broadcast %572 : vector<1x32xf32> to vector<80x32xf32>
    %574 = arith.addf %571, %573 : vector<80x32xf32>
    %575 = arith.addf %434, %574 : vector<80x32xf32>
    %c0_338 = arith.constant 0 : index
    %c0_339 = arith.constant 0 : index
    %576 = vector.load %arg31[%c0_338, %c0_339] : memref<1x32xf32, #tpu.memory_space<vmem>>, vector<1x32xf32>
    %c0_340 = arith.constant 0 : index
    %c0_341 = arith.constant 0 : index
    %577 = vector.load %arg32[%c0_340, %c0_341] : memref<1x32xf32, #tpu.memory_space<vmem>>, vector<1x32xf32>
    %cst_342 = arith.constant dense<0.000000e+00> : vector<80xf32>
    %578 = vector.multi_reduction <add>, %575, %cst_342 [1] : vector<80x32xf32> to vector<80xf32>
    %579 = vector.shape_cast %578 : vector<80xf32> to vector<80x1xf32>
    %cst_343 = arith.constant 3.200000e+01 : f32
    %580 = vector.broadcast %cst_343 : f32 to vector<80x1xf32>
    %581 = arith.divf %579, %580 : vector<80x1xf32>
    %582 = vector.broadcast %581 : vector<80x1xf32> to vector<80x32xf32>
    %583 = arith.subf %575, %582 : vector<80x32xf32>
    %584 = arith.mulf %583, %583 : vector<80x32xf32>
    %cst_344 = arith.constant dense<0.000000e+00> : vector<80xf32>
    %585 = vector.multi_reduction <add>, %584, %cst_344 [1] : vector<80x32xf32> to vector<80xf32>
    %586 = vector.shape_cast %585 : vector<80xf32> to vector<80x1xf32>
    %cst_345 = arith.constant 3.200000e+01 : f32
    %587 = vector.broadcast %cst_345 : f32 to vector<80x1xf32>
    %588 = arith.divf %586, %587 : vector<80x1xf32>
    %589 = vector.broadcast %581 : vector<80x1xf32> to vector<80x32xf32>
    %590 = arith.subf %575, %589 : vector<80x32xf32>
    %cst_346 = arith.constant 9.99999974E-6 : f32
    %591 = vector.broadcast %cst_346 : f32 to vector<80x1xf32>
    %592 = arith.addf %588, %591 : vector<80x1xf32>
    %593 = math.rsqrt %592 : vector<80x1xf32>
    %594 = vector.broadcast %593 : vector<80x1xf32> to vector<80x32xf32>
    %595 = arith.mulf %590, %594 : vector<80x32xf32>
    %596 = vector.broadcast %576 : vector<1x32xf32> to vector<80x32xf32>
    %597 = arith.mulf %595, %596 : vector<80x32xf32>
    %598 = vector.broadcast %577 : vector<1x32xf32> to vector<80x32xf32>
    %599 = arith.addf %597, %598 : vector<80x32xf32>
    %c0_347 = arith.constant 0 : index
    %c0_348 = arith.constant 0 : index
    %600 = vector.load %arg33[%c0_347, %c0_348] : memref<32x64xf32, #tpu.memory_space<vmem>>, vector<32x64xf32>
    %cst_349 = arith.constant dense<0.000000e+00> : vector<80x64xf32>
    %601 = tpu.matmul %599, %600, %cst_349 {dimension_numbers = #tpu.dot_dimension_numbers<[1], [0], [0], [1], [0, 0, 1, 1], [], []>} : vector<80x32xf32>, vector<32x64xf32>, vector<80x64xf32> -> vector<80x64xf32>
    %c0_350 = arith.constant 0 : index
    %c0_351 = arith.constant 0 : index
    %602 = vector.load %arg34[%c0_350, %c0_351] : memref<1x64xf32, #tpu.memory_space<vmem>>, vector<1x64xf32>
    %603 = vector.broadcast %602 : vector<1x64xf32> to vector<80x64xf32>
    %604 = arith.addf %601, %603 : vector<80x64xf32>
    %cst_352 = arith.constant 5.000000e-01 : f32
    %605 = vector.broadcast %cst_352 : f32 to vector<80x64xf32>
    %606 = arith.mulf %605, %604 : vector<80x64xf32>
    %cst_353 = arith.constant 4.471500e-02 : f32
    %607 = vector.broadcast %cst_353 : f32 to vector<80x64xf32>
    %608 = arith.mulf %607, %604 : vector<80x64xf32>
    %609 = arith.mulf %608, %604 : vector<80x64xf32>
    %610 = arith.mulf %609, %604 : vector<80x64xf32>
    %611 = arith.addf %604, %610 : vector<80x64xf32>
    %cst_354 = arith.constant 0.797884583 : f32
    %612 = vector.broadcast %cst_354 : f32 to vector<80x64xf32>
    %613 = arith.mulf %612, %611 : vector<80x64xf32>
    %614 = math.tanh %613 : vector<80x64xf32>
    %cst_355 = arith.constant 1.000000e+00 : f32
    %615 = vector.broadcast %cst_355 : f32 to vector<80x64xf32>
    %616 = arith.addf %615, %614 : vector<80x64xf32>
    %617 = arith.mulf %606, %616 : vector<80x64xf32>
    %c0_356 = arith.constant 0 : index
    %c0_357 = arith.constant 0 : index
    %618 = vector.load %arg35[%c0_356, %c0_357] : memref<64x32xf32, #tpu.memory_space<vmem>>, vector<64x32xf32>
    %cst_358 = arith.constant dense<0.000000e+00> : vector<80x32xf32>
    %619 = tpu.matmul %617, %618, %cst_358 {dimension_numbers = #tpu.dot_dimension_numbers<[1], [0], [0], [1], [0, 0, 1, 1], [], []>} : vector<80x64xf32>, vector<64x32xf32>, vector<80x32xf32> -> vector<80x32xf32>
    %c0_359 = arith.constant 0 : index
    %c0_360 = arith.constant 0 : index
    %620 = vector.load %arg36[%c0_359, %c0_360] : memref<1x32xf32, #tpu.memory_space<vmem>>, vector<1x32xf32>
    %621 = vector.broadcast %620 : vector<1x32xf32> to vector<80x32xf32>
    %622 = arith.addf %619, %621 : vector<80x32xf32>
    %623 = arith.addf %599, %622 : vector<80x32xf32>
    %c0_361 = arith.constant 0 : index
    %c0_362 = arith.constant 0 : index
    %624 = vector.load %arg37[%c0_361, %c0_362] : memref<1x32xf32, #tpu.memory_space<vmem>>, vector<1x32xf32>
    %c0_363 = arith.constant 0 : index
    %c0_364 = arith.constant 0 : index
    %625 = vector.load %arg38[%c0_363, %c0_364] : memref<1x32xf32, #tpu.memory_space<vmem>>, vector<1x32xf32>
    %cst_365 = arith.constant dense<0.000000e+00> : vector<80xf32>
    %626 = vector.multi_reduction <add>, %623, %cst_365 [1] : vector<80x32xf32> to vector<80xf32>
    %627 = vector.shape_cast %626 : vector<80xf32> to vector<80x1xf32>
    %cst_366 = arith.constant 3.200000e+01 : f32
    %628 = vector.broadcast %cst_366 : f32 to vector<80x1xf32>
    %629 = arith.divf %627, %628 : vector<80x1xf32>
    %630 = vector.broadcast %629 : vector<80x1xf32> to vector<80x32xf32>
    %631 = arith.subf %623, %630 : vector<80x32xf32>
    %632 = arith.mulf %631, %631 : vector<80x32xf32>
    %cst_367 = arith.constant dense<0.000000e+00> : vector<80xf32>
    %633 = vector.multi_reduction <add>, %632, %cst_367 [1] : vector<80x32xf32> to vector<80xf32>
    %634 = vector.shape_cast %633 : vector<80xf32> to vector<80x1xf32>
    %cst_368 = arith.constant 3.200000e+01 : f32
    %635 = vector.broadcast %cst_368 : f32 to vector<80x1xf32>
    %636 = arith.divf %634, %635 : vector<80x1xf32>
    %637 = vector.broadcast %629 : vector<80x1xf32> to vector<80x32xf32>
    %638 = arith.subf %623, %637 : vector<80x32xf32>
    %cst_369 = arith.constant 9.99999974E-6 : f32
    %639 = vector.broadcast %cst_369 : f32 to vector<80x1xf32>
    %640 = arith.addf %636, %639 : vector<80x1xf32>
    %641 = math.rsqrt %640 : vector<80x1xf32>
    %642 = vector.broadcast %641 : vector<80x1xf32> to vector<80x32xf32>
    %643 = arith.mulf %638, %642 : vector<80x32xf32>
    %644 = vector.broadcast %624 : vector<1x32xf32> to vector<80x32xf32>
    %645 = arith.mulf %643, %644 : vector<80x32xf32>
    %646 = vector.broadcast %625 : vector<1x32xf32> to vector<80x32xf32>
    %647 = arith.addf %645, %646 : vector<80x32xf32>
    %c0_370 = arith.constant 0 : index
    %c0_371 = arith.constant 0 : index
    %648 = vector.load %arg39[%c0_370, %c0_371] : memref<32x32xf32, #tpu.memory_space<vmem>>, vector<32x32xf32>
    %cst_372 = arith.constant dense<0.000000e+00> : vector<80x32xf32>
    %649 = tpu.matmul %647, %648, %cst_372 {dimension_numbers = #tpu.dot_dimension_numbers<[1], [0], [0], [1], [0, 0, 1, 1], [], []>} : vector<80x32xf32>, vector<32x32xf32>, vector<80x32xf32> -> vector<80x32xf32>
    %c0_373 = arith.constant 0 : index
    %c0_374 = arith.constant 0 : index
    %650 = vector.load %arg40[%c0_373, %c0_374] : memref<1x32xf32, #tpu.memory_space<vmem>>, vector<1x32xf32>
    %651 = vector.broadcast %650 : vector<1x32xf32> to vector<80x32xf32>
    %652 = arith.addf %649, %651 : vector<80x32xf32>
    %653 = math.tanh %652 : vector<80x32xf32>
    %c0_375 = arith.constant 0 : index
    %c0_376 = arith.constant 0 : index
    %654 = vector.load %arg41[%c0_375, %c0_376] : memref<32x128xf32, #tpu.memory_space<vmem>>, vector<32x128xf32>
    %cst_377 = arith.constant dense<0.000000e+00> : vector<80x128xf32>
    %655 = tpu.matmul %653, %654, %cst_377 {dimension_numbers = #tpu.dot_dimension_numbers<[1], [0], [0], [1], [0, 0, 1, 1], [], []>} : vector<80x32xf32>, vector<32x128xf32>, vector<80x128xf32> -> vector<80x128xf32>
    %c0_378 = arith.constant 0 : index
    %c0_379 = arith.constant 0 : index
    %656 = vector.load %arg42[%c0_378, %c0_379] : memref<1x128xf32, #tpu.memory_space<vmem>>, vector<1x128xf32>
    %657 = vector.broadcast %656 : vector<1x128xf32> to vector<80x128xf32>
    %658 = arith.addf %655, %657 : vector<80x128xf32>
    %c0_380 = arith.constant 0 : index
    %c0_381 = arith.constant 0 : index
    %c0_382 = arith.constant 0 : index
    %659 = vector.load %arg43[%c0_380, %c0_381, %c0_382] : memref<1x80x128xf32, #tpu.memory_space<vmem>>, vector<1x80x128xf32>
    %660 = vector.shape_cast %659 : vector<1x80x128xf32> to vector<80x128xf32>
    %661 = vector.shape_cast %658 : vector<80x128xf32> to vector<1x80x128xf32>
    tpu.vector_store %arg43[%c0_380, %c0_381, %c0_382], %661 {strides = array<i32>} : memref<1x80x128xf32, #tpu.memory_space<vmem>>, vector<1x80x128xf32>,
    return
  }
  func.func @transform_0(%arg0: i32) -> (i32, i32, i32) {
    %c0_i32 = arith.constant 0 : i32
    %c0_i32_0 = arith.constant 0 : i32
    %c0_i32_1 = arith.constant 0 : i32
    return %arg0, %c0_i32, %c0_i32_0 : i32, i32, i32
  }
  func.func @transform_1(%arg0: i32) -> (i32, i32) {
    %c0_i32 = arith.constant 0 : i32
    %c0_i32_0 = arith.constant 0 : i32
    %c0_i32_1 = arith.constant 0 : i32
    return %c0_i32, %c0_i32_0 : i32, i32
  }
  func.func @transform_2(%arg0: i32) -> (i32, i32) {
    %c0_i32 = arith.constant 0 : i32
    %c0_i32_0 = arith.constant 0 : i32
    %c0_i32_1 = arith.constant 0 : i32
    return %c0_i32, %c0_i32_0 : i32, i32
  }
  func.func @transform_3(%arg0: i32) -> (i32, i32) {
    %c0_i32 = arith.constant 0 : i32
    %c0_i32_0 = arith.constant 0 : i32
    %c0_i32_1 = arith.constant 0 : i32
    return %c0_i32, %c0_i32_0 : i32, i32
  }
  func.func @transform_4(%arg0: i32) -> (i32, i32) {
    %c0_i32 = arith.constant 0 : i32
    %c0_i32_0 = arith.constant 0 : i32
    %c0_i32_1 = arith.constant 0 : i32
    return %c0_i32, %c0_i32_0 : i32, i32
  }
  func.func @transform_5(%arg0: i32) -> (i32, i32) {
    %c0_i32 = arith.constant 0 : i32
    %c0_i32_0 = arith.constant 0 : i32
    %c0_i32_1 = arith.constant 0 : i32
    return %c0_i32, %c0_i32_0 : i32, i32
  }
  func.func @transform_6(%arg0: i32) -> (i32, i32) {
    %c0_i32 = arith.constant 0 : i32
    %c0_i32_0 = arith.constant 0 : i32
    %c0_i32_1 = arith.constant 0 : i32
    return %c0_i32, %c0_i32_0 : i32, i32
  }
  func.func @transform_7(%arg0: i32) -> (i32, i32) {
    %c0_i32 = arith.constant 0 : i32
    %c0_i32_0 = arith.constant 0 : i32
    %c0_i32_1 = arith.constant 0 : i32
    return %c0_i32, %c0_i32_0 : i32, i32
  }
  func.func @transform_8(%arg0: i32) -> (i32, i32) {
    %c0_i32 = arith.constant 0 : i32
    %c0_i32_0 = arith.constant 0 : i32
    %c0_i32_1 = arith.constant 0 : i32
    return %c0_i32, %c0_i32_0 : i32, i32
  }
  func.func @transform_9(%arg0: i32) -> (i32, i32) {
    %c0_i32 = arith.constant 0 : i32
    %c0_i32_0 = arith.constant 0 : i32
    %c0_i32_1 = arith.constant 0 : i32
    return %c0_i32, %c0_i32_0 : i32, i32
  }
  func.func @transform_10(%arg0: i32) -> (i32, i32) {
    %c0_i32 = arith.constant 0 : i32
    %c0_i32_0 = arith.constant 0 : i32
    %c0_i32_1 = arith.constant 0 : i32
    return %c0_i32, %c0_i32_0 : i32, i32
  }
  func.func @transform_11(%arg0: i32) -> (i32, i32) {
    %c0_i32 = arith.constant 0 : i32
    %c0_i32_0 = arith.constant 0 : i32
    %c0_i32_1 = arith.constant 0 : i32
    return %c0_i32, %c0_i32_0 : i32, i32
  }
  func.func @transform_12(%arg0: i32) -> (i32, i32) {
    %c0_i32 = arith.constant 0 : i32
    %c0_i32_0 = arith.constant 0 : i32
    %c0_i32_1 = arith.constant 0 : i32
    return %c0_i32, %c0_i32_0 : i32, i32
  }
  func.func @transform_13(%arg0: i32) -> (i32, i32) {
    %c0_i32 = arith.constant 0 : i32
    %c0_i32_0 = arith.constant 0 : i32
    %c0_i32_1 = arith.constant 0 : i32
    return %c0_i32, %c0_i32_0 : i32, i32
  }
  func.func @transform_14(%arg0: i32) -> (i32, i32) {
    %c0_i32 = arith.constant 0 : i32
    %c0_i32_0 = arith.constant 0 : i32
    %c0_i32_1 = arith.constant 0 : i32
    return %c0_i32, %c0_i32_0 : i32, i32
  }
  func.func @transform_15(%arg0: i32) -> (i32, i32) {
    %c0_i32 = arith.constant 0 : i32
    %c0_i32_0 = arith.constant 0 : i32
    %c0_i32_1 = arith.constant 0 : i32
    return %c0_i32, %c0_i32_0 : i32, i32
  }
  func.func @transform_16(%arg0: i32) -> (i32, i32) {
    %c0_i32 = arith.constant 0 : i32
    %c0_i32_0 = arith.constant 0 : i32
    %c0_i32_1 = arith.constant 0 : i32
    return %c0_i32, %c0_i32_0 : i32, i32
  }
  func.func @transform_17(%arg0: i32) -> (i32, i32) {
    %c0_i32 = arith.constant 0 : i32
    %c0_i32_0 = arith.constant 0 : i32
    %c0_i32_1 = arith.constant 0 : i32
    return %c0_i32, %c0_i32_0 : i32, i32
  }
  func.func @transform_18(%arg0: i32) -> (i32, i32) {
    %c0_i32 = arith.constant 0 : i32
    %c0_i32_0 = arith.constant 0 : i32
    %c0_i32_1 = arith.constant 0 : i32
    return %c0_i32, %c0_i32_0 : i32, i32
  }
  func.func @transform_19(%arg0: i32) -> (i32, i32) {
    %c0_i32 = arith.constant 0 : i32
    %c0_i32_0 = arith.constant 0 : i32
    %c0_i32_1 = arith.constant 0 : i32
    return %c0_i32, %c0_i32_0 : i32, i32
  }
  func.func @transform_20(%arg0: i32) -> (i32, i32) {
    %c0_i32 = arith.constant 0 : i32
    %c0_i32_0 = arith.constant 0 : i32
    %c0_i32_1 = arith.constant 0 : i32
    return %c0_i32, %c0_i32_0 : i32, i32
  }
  func.func @transform_21(%arg0: i32) -> (i32, i32) {
    %c0_i32 = arith.constant 0 : i32
    %c0_i32_0 = arith.constant 0 : i32
    %c0_i32_1 = arith.constant 0 : i32
    return %c0_i32, %c0_i32_0 : i32, i32
  }
  func.func @transform_22(%arg0: i32) -> (i32, i32) {
    %c0_i32 = arith.constant 0 : i32
    %c0_i32_0 = arith.constant 0 : i32
    %c0_i32_1 = arith.constant 0 : i32
    return %c0_i32, %c0_i32_0 : i32, i32
  }
  func.func @transform_23(%arg0: i32) -> (i32, i32) {
    %c0_i32 = arith.constant 0 : i32
    %c0_i32_0 = arith.constant 0 : i32
    %c0_i32_1 = arith.constant 0 : i32
    return %c0_i32, %c0_i32_0 : i32, i32
  }
  func.func @transform_24(%arg0: i32) -> (i32, i32) {
    %c0_i32 = arith.constant 0 : i32
    %c0_i32_0 = arith.constant 0 : i32
    %c0_i32_1 = arith.constant 0 : i32
    return %c0_i32, %c0_i32_0 : i32, i32
  }
  func.func @transform_25(%arg0: i32) -> (i32, i32) {
    %c0_i32 = arith.constant 0 : i32
    %c0_i32_0 = arith.constant 0 : i32
    %c0_i32_1 = arith.constant 0 : i32
    return %c0_i32, %c0_i32_0 : i32, i32
  }
  func.func @transform_26(%arg0: i32) -> (i32, i32) {
    %c0_i32 = arith.constant 0 : i32
    %c0_i32_0 = arith.constant 0 : i32
    %c0_i32_1 = arith.constant 0 : i32
    return %c0_i32, %c0_i32_0 : i32, i32
  }
  func.func @transform_27(%arg0: i32) -> (i32, i32) {
    %c0_i32 = arith.constant 0 : i32
    %c0_i32_0 = arith.constant 0 : i32
    %c0_i32_1 = arith.constant 0 : i32
    return %c0_i32, %c0_i32_0 : i32, i32
  }
  func.func @transform_28(%arg0: i32) -> (i32, i32) {
    %c0_i32 = arith.constant 0 : i32
    %c0_i32_0 = arith.constant 0 : i32
    %c0_i32_1 = arith.constant 0 : i32
    return %c0_i32, %c0_i32_0 : i32, i32
  }
  func.func @transform_29(%arg0: i32) -> (i32, i32) {
    %c0_i32 = arith.constant 0 : i32
    %c0_i32_0 = arith.constant 0 : i32
    %c0_i32_1 = arith.constant 0 : i32
    return %c0_i32, %c0_i32_0 : i32, i32
  }
  func.func @transform_30(%arg0: i32) -> (i32, i32) {
    %c0_i32 = arith.constant 0 : i32
    %c0_i32_0 = arith.constant 0 : i32
    %c0_i32_1 = arith.constant 0 : i32
    return %c0_i32, %c0_i32_0 : i32, i32
  }
  func.func @transform_31(%arg0: i32) -> (i32, i32) {
    %c0_i32 = arith.constant 0 : i32
    %c0_i32_0 = arith.constant 0 : i32
    %c0_i32_1 = arith.constant 0 : i32
    return %c0_i32, %c0_i32_0 : i32, i32
  }
  func.func @transform_32(%arg0: i32) -> (i32, i32) {
    %c0_i32 = arith.constant 0 : i32
    %c0_i32_0 = arith.constant 0 : i32
    %c0_i32_1 = arith.constant 0 : i32
    return %c0_i32, %c0_i32_0 : i32, i32
  }
  func.func @transform_33(%arg0: i32) -> (i32, i32) {
    %c0_i32 = arith.constant 0 : i32
    %c0_i32_0 = arith.constant 0 : i32
    %c0_i32_1 = arith.constant 0 : i32
    return %c0_i32, %c0_i32_0 : i32, i32
  }
  func.func @transform_34(%arg0: i32) -> (i32, i32) {
    %c0_i32 = arith.constant 0 : i32
    %c0_i32_0 = arith.constant 0 : i32
    %c0_i32_1 = arith.constant 0 : i32
    return %c0_i32, %c0_i32_0 : i32, i32
  }
  func.func @transform_35(%arg0: i32) -> (i32, i32) {
    %c0_i32 = arith.constant 0 : i32
    %c0_i32_0 = arith.constant 0 : i32
    %c0_i32_1 = arith.constant 0 : i32
    return %c0_i32, %c0_i32_0 : i32, i32
  }
  func.func @transform_36(%arg0: i32) -> (i32, i32) {
    %c0_i32 = arith.constant 0 : i32
    %c0_i32_0 = arith.constant 0 : i32
    %c0_i32_1 = arith.constant 0 : i32
    return %c0_i32, %c0_i32_0 : i32, i32
  }
  func.func @transform_37(%arg0: i32) -> (i32, i32) {
    %c0_i32 = arith.constant 0 : i32
    %c0_i32_0 = arith.constant 0 : i32
    %c0_i32_1 = arith.constant 0 : i32
    return %c0_i32, %c0_i32_0 : i32, i32
  }
  func.func @transform_38(%arg0: i32) -> (i32, i32) {
    %c0_i32 = arith.constant 0 : i32
    %c0_i32_0 = arith.constant 0 : i32
    %c0_i32_1 = arith.constant 0 : i32
    return %c0_i32, %c0_i32_0 : i32, i32
  }
  func.func @transform_39(%arg0: i32) -> (i32, i32) {
    %c0_i32 = arith.constant 0 : i32
    %c0_i32_0 = arith.constant 0 : i32
    %c0_i32_1 = arith.constant 0 : i32
    return %c0_i32, %c0_i32_0 : i32, i32
  }
  func.func @transform_40(%arg0: i32) -> (i32, i32) {
    %c0_i32 = arith.constant 0 : i32
    %c0_i32_0 = arith.constant 0 : i32
    %c0_i32_1 = arith.constant 0 : i32
    return %c0_i32, %c0_i32_0 : i32, i32
  }
  func.func @transform_41(%arg0: i32) -> (i32, i32) {
    %c0_i32 = arith.constant 0 : i32
    %c0_i32_0 = arith.constant 0 : i32
    %c0_i32_1 = arith.constant 0 : i32
    return %c0_i32, %c0_i32_0 : i32, i32
  }
  func.func @transform_42(%arg0: i32) -> (i32, i32, i32) {
    %c0_i32 = arith.constant 0 : i32
    %c0_i32_0 = arith.constant 0 : i32
    %c0_i32_1 = arith.constant 0 : i32
    return %arg0, %c0_i32, %c0_i32_0 : i32, i32, i32
  }
}

</mosaic_0001>

<bundles_post_ra>
// kernel: forward.1
= control target key start
LH: loop header
LB: loop body
LE: loop exit
PB: predicated region body
PF: predicated region fallthrough
CT: control target
= control target key end

     0   :  { %s21348_s6 = smov 1   ;;  %s21349_s10 = smov 2   ;;  %s25757_s0 = inlined_call_operand.smem [shape: u32[43], index: -1, kind: input, shape index: {}] }
   0x1   :  { %s21403_s5 = sld [smem:[%s25757_s0]]   ;;  %s21350_s14 = smov 3  }
   0x2   :  { %s21408_s9 = sld [smem:[%s25757_s0 + %s21348_s6]]   ;;  %s21351_s18 = smov 4  }
   0x3   :  { %s21413_s13 = sld [smem:[%s25757_s0 + %s21349_s10]]   ;;  %s21352_s22 = smov 5  }
   0x4   :  { %s21418_s17 = sld [smem:[%s25757_s0 + %s21350_s14]]   ;;  %s21353_s26 = smov 6  }
   0x5   :  { %s21423_s21 = sld [smem:[%s25757_s0 + %s21351_s18]]   ;;  %s21354_s30 = smov 7  }
   0x6   :  { %s21428_s25 = sld [smem:[%s25757_s0 + %s21352_s22]]   ;;  %s21355_s4 = smov 8  }
   0x7   :  { %s21433_s29 = sld [smem:[%s25757_s0 + %s21353_s26]]   ;;  %s21356_s10 = smov 9  }
   0x8   :  { %s21438_s3 = sld [smem:[%s25757_s0 + %s21354_s30]]   ;;  %s21357_s15 = smov 10  }
   0x9   :  { %s21443_s8 = sld [smem:[%s25757_s0 + %s21355_s4]]   ;;  %s21358_s20 = smov 11  }
   0xa   :  { %s21448_s14 = sld [smem:[%s25757_s0 + %s21356_s10]]   ;;  %s21359_s26 = smov 12  }
   0xb   :  { %s21453_s19 = sld [smem:[%s25757_s0 + %s21357_s15]]   ;;  %s21360_s1 = smov 13  }
   0xc   :  { %s21458_s24 = sld [smem:[%s25757_s0 + %s21358_s20]]   ;;  %s21361_s7 = smov 14  }
   0xd   :  { %s21463_s30 = sld [smem:[%s25757_s0 + %s21359_s26]]   ;;  %s21362_s15 = smov 15  }
   0xe   :  { %s21468_s6 = sld [smem:[%s25757_s0 + %s21360_s1]]   ;;  %s21363_s22 = smov 16  }
   0xf   :  { %s21473_s12 = sld [smem:[%s25757_s0 + %s21361_s7]]   ;;  %s21364_s28 = smov 17  }
  0x10   :  { %s21478_s20 = sld [smem:[%s25757_s0 + %s21362_s15]]   ;;  %s21365_s7 = smov 18  }
  0x11   :  { %s21483_s27 = sld [smem:[%s25757_s0 + %s21363_s22]]   ;;  %s21366_s15 = smov 19  }
  0x12   :  { %s21488_s4 = sld [smem:[%s25757_s0 + %s21364_s28]]   ;;  %s21367_s22 = smov 20  }
  0x13   :  { %s21368_s28 = smov 21  }
  0x14   :  { %25795 = sst [smem:[#allocation3_spill]] %s21468_s6 }
  0x15   :  { %s21493_s6 = sld [smem:[%s25757_s0 + %s21365_s7]]   ;;  %s21369_s7 = smov 22  }
  0x16   :  { %25796 = sst [smem:[#allocation4_spill]] %s21478_s20 }
  0x17   :  { %25797 = sst [smem:[#allocation5_spill]] %s21483_s27 }
  0x18   :  { %25798 = sst [smem:[#allocation6_spill]] %s21488_s4 }
  0x19   :  { %s21498_s20 = sld [smem:[%s25757_s0 + %s21366_s15]]   ;;  %s21370_s15 = smov 23  }
  0x1a   :  { %s21503_s27 = sld [smem:[%s25757_s0 + %s21367_s22]]   ;;  %s21371_s22 = smov 24  }
  0x1b   :  { %25799 = sst [smem:[#allocation7_spill]] %s21493_s6 }
  0x1c   :  { %s21508_s4 = sld [smem:[%s25757_s0 + %s21368_s28]]   ;;  %s21372_s28 = smov 25  }
  0x1d   :  { %s21513_s6 = sld [smem:[%s25757_s0 + %s21369_s7]]   ;;  %s21373_s7 = smov 26  }
  0x1f   :  { %25800 = sst [smem:[#allocation8_spill]] %s21498_s20 }
  0x20   :  { %25801 = sst [smem:[#allocation9_spill]] %s21503_s27 }
  0x21   :  { %s21518_s20 = sld [smem:[%s25757_s0 + %s21370_s15]]   ;;  %s21374_s15 = smov 27  }
  0x22   :  { %25802 = sst [smem:[#allocation10_spill]] %s21508_s4 }
  0x23   :  { %25803 = sst [smem:[#allocation11_spill]] %s21513_s6 }
  0x24   :  { %s21523_s27 = sld [smem:[%s25757_s0 + %s21371_s22]]   ;;  %s21375_s22 = smov 28  }
  0x25   :  { %s21528_s4 = sld [smem:[%s25757_s0 + %s21372_s28]]   ;;  %s21376_s28 = smov 29  }
  0x26   :  { %s21533_s6 = sld [smem:[%s25757_s0 + %s21373_s7]]   ;;  %s21377_s7 = smov 30  }
  0x27   :  { %25804 = sst [smem:[#allocation12_spill]] %s21518_s20 }
  0x28   :  { %s21538_s20 = sld [smem:[%s25757_s0 + %s21374_s15]]   ;;  %s21378_s15 = smov 31  }
  0x2a   :  { %25805 = sst [smem:[#allocation13_spill]] %s21523_s27 }
  0x2b   :  { %25806 = sst [smem:[#allocation14_spill]] %s21528_s4 }
  0x2c   :  { %25807 = sst [smem:[#allocation15_spill]] %s21533_s6 }
  0x2d   :  { %s21543_s27 = sld [smem:[%s25757_s0 + %s21375_s22]]   ;;  %s21379_s22 = smov 32  }
  0x2e   :  { %25808 = sst [smem:[#allocation16_spill]] %s21538_s20 }
  0x2f   :  { %s21548_s4 = sld [smem:[%s25757_s0 + %s21376_s28]]   ;;  %s21380_s28 = smov 33  }
  0x30   :  { %s21553_s6 = sld [smem:[%s25757_s0 + %s21377_s7]]   ;;  %s21381_s7 = smov 34  }
  0x31   :  { %s21558_s20 = sld [smem:[%s25757_s0 + %s21378_s15]]   ;;  %s21382_s15 = smov 35  }
  0x33   :  { %25809 = sst [smem:[#allocation17_spill]] %s21543_s27 }
  0x34   :  { %s21563_s27 = sld [smem:[%s25757_s0 + %s21379_s22]]   ;;  %s21383_s22 = smov 36  }
  0x35   :  { %25810 = sst [smem:[#allocation18_spill]] %s21548_s4 }
  0x36   :  { %25811 = sst [smem:[#allocation19_spill]] %s21553_s6 }
  0x37   :  { %25812 = sst [smem:[#allocation20_spill]] %s21558_s20 }
  0x38   :  { %s21568_s4 = sld [smem:[%s25757_s0 + %s21380_s28]]   ;;  %s21384_s28 = smov 37  }
  0x39   :  { %s21573_s6 = sld [smem:[%s25757_s0 + %s21381_s7]]   ;;  %s21385_s7 = smov 38  }
  0x3a   :  { %25813 = sst [smem:[#allocation21_spill]] %s21563_s27 }
  0x3b   :  { %s21578_s20 = sld [smem:[%s25757_s0 + %s21382_s15]]   ;;  %s21386_s15 = smov 39  }
  0x3c   :  { %s21583_s27 = sld [smem:[%s25757_s0 + %s21383_s22]]   ;;  %s21387_s22 = smov 40  }
  0x3e   :  { %25814 = sst [smem:[#allocation22_spill]] %s21568_s4 }
  0x3f   :  { %25815 = sst [smem:[#allocation23_spill]] %s21573_s6 }
  0x40   :  { %s21588_s4 = sld [smem:[%s25757_s0 + %s21384_s28]]   ;;  %s21388_s28 = smov 41  }
  0x41   :  { %25816 = sst [smem:[#allocation24_spill]] %s21578_s20 }
  0x42   :  { %25817 = sst [smem:[#allocation25_spill]] %s21583_s27 }
  0x43   :  { %s21593_s6 = sld [smem:[%s25757_s0 + %s21385_s7]]   ;;  %s21389_s7 = smov 42  }
  0x44   :  { %s21598_s20 = sld [smem:[%s25757_s0 + %s21386_s15]]   ;;  %s21615_s15 = smov 0  }
  0x45   :  { %s21603_s27 = sld [smem:[%s25757_s0 + %s21387_s22]]  }
  0x46   :  { %25818 = sst [smem:[#allocation26_spill]] %s21588_s4 }
  0x47   :  { %s21608_s4 = sld [smem:[%s25757_s0 + %s21388_s28]]  }
  0x49   :  { %25819 = sst [smem:[#allocation27_spill]] %s21593_s6 }
  0x4a   :  { %s21613_s6 = sld [smem:[%s25757_s0 + %s21389_s7]]  }
  0x4b LB: > { %s15977_s16 = sadd.s32 4294967295, %s21346_s15   ;;  %p15981_p0 = scmp.ge.s32.totalorder %s21346_s15, 1  ;;  %s21346_s15 = sphi %s21615_s15, %s95_s15  }
  0x4c   : > { %p1155_p1 = scmp.lt.s32.totalorder %s21346_s15, 3 }
  0x4e   : > { %p1156_p2 = pnand %p15981_p0, %p1155_p1 }
  0x50   : > { %1159 = sbr.rel (%p1156_p2) target bundleno = 12315 (0x301b), region = 188 }
  0x57   : > { %v1287_v0 = vld [vmem:[%s21408_s9] sm:$0xff]  ;;  %v1288_v1 = vld [vmem:[%s21408_s9 + $0x8] sm:$0x3]  ;;  %vm1350_vm0 = vcmask 1041408   ;;  %p1257_p3 = scmp.lt.s32.totalorder %s15977_s16, 1  ;;  %vm21390_vm1 = vmmov 1   ;;  %v1519_v24 = vlaneseq }
  0x58   : > { %v19750_v2 = vpack.c.bf16 %v1288_v1, %v1287_v0  ;;  %vm19751_vm2 = vmpackc.low %vm1350_vm0, %vm21390_vm1  ;;  %vm1289_vm3 = vcmask 80896   ;;  %v21391_v23 = vmov 0.0|0.0   ;;  %vm1526_vm5 = vcmask 261120   ;;  %s25871_s22 = sld [smem:[#allocation3_spill]]  ;;  %s25872_s23 = sld [smem:[#allocation4_spill]] }
  0x59   : > { %s25916_s16 = smov (!%p1257_p3, %s15977_s16), 1  ;;  %19786 = vmatprep.subr.bf16.mxu0 %v21391_v23  ;;  %v21674_v25 = vand.u32 127, %v1519_v24  ;;  %v21392_v27 = vmov 0.0   ;;  %vm6651_vm7 = vcmask 64512   ;;  %vm6827_vm10 = vcmask 654336   ;;  %s25884_s26 = sld [smem:[#allocation5_spill]] }
  0x5a   : > { %19752 = vmatprep.subr.msk.bf16.mxu1 %vm19751_vm2, %v19750_v2  ;;  %s20700_s0 = smul.u32 160, %s25916_s16  ;;  %3250 = vst.msk [vmem:[#allocation2] sm:$0xff] %vm1526_vm5, %v21392_v27  ;;  %3271 = vst.msk [vmem:[#allocation2 + $0x58] sm:$0xff] %vm1526_vm5, %v21392_v27  ;;  %s25893_s28 = sld [smem:[#allocation6_spill]]  ;;  %vm10575_vm11 = vcmask 523264  }
  0x5b   : > { %19755 = vmatpush3.bf16.msk.msra.mxu1 %vm19751_vm2, %v19750_v2  ;;  %25820 = vst [vmem:[#allocation28_spill] sm:$0xff] %v21674_v25  ;;  %v1521_v26 = vadd.s32 128, %v21674_v25  ;;  %vm23331_vm8 = vmpackc.low %vm6651_vm7, %vm6651_vm7  ;;  %s25894_s1 = sld [smem:[#allocation9_spill]]  ;;  %s25895_s2 = sld [smem:[#allocation7_spill]] }
  0x5c   : > { %s21629_s18 = scalar_lea.vmem %s21403_s5, %s20700_s0  ;;  %19756 = vmatprep.subr.bf16.mxu1 %v21391_v23  ;;  %s25896_s7 = sld [smem:[#allocation8_spill]] }
  0x5d   : > { %v1267_v3 = vld [vmem:[%s21629_s18] sm:$0xff]  ;;  %v1268_v4 = vld [vmem:[%s21629_s18 + $0x8] sm:$0xff]  ;;  %v1269_v5 = vld [vmem:[%s21629_s18 + $0x10] sm:$0xff]  ;;  %vm1523_vm4 = vcmp.lt.s32.totalorder %v1521_v26, 159  ;;  %s25897_s10 = sld [smem:[#allocation11_spill]]  ;;  %s25898_s11 = sld [smem:[#allocation10_spill]] }
  0x5e   : > { %18002 = vmatprep.mubr.msk.f32.mxu1 %vm1289_vm3, %v1267_v3  ;;  %v1270_v6 = vld [vmem:[%s21629_s18 + $0x18] sm:$0xff]  ;;  %v1271_v7 = vld [vmem:[%s21629_s18 + $0x20] sm:$0xff]  ;;  %v1272_v8 = vld [vmem:[%s21629_s18 + $0x28] sm:$0xff]  ;;  %v1525_v28 = vsel %vm1523_vm4, 0.006289308, %v21392_v27  ;;  %s25899_s0 = sld [smem:[#allocation12_spill]] }
  0x5f   : > { %18003 = vmatmul.mubr.msk.f32.vlgmr.msra.gmra.mrb[0].mxu1 %vm1289_vm3, %v1268_v4  ;;  %v1273_v9 = vld [vmem:[%s21629_s18 + $0x30] sm:$0xff]  ;;  %v1274_v10 = vld [vmem:[%s21629_s18 + $0x38] sm:$0xff]  ;;  %v1275_v11 = vld [vmem:[%s21629_s18 + $0x40] sm:$0xff]  ;;  %16006 = vmatprep.mubr.msk.f32.mxu0 %vm1526_vm5, %v1525_v28 }
  0x60   : > { %18005 = vmatprep.mubr.msk.f32.mxu1 %vm1289_vm3, %v1269_v5  ;;  %v1276_v12 = vld [vmem:[%s21629_s18 + $0x48] sm:$0xff]  ;;  %v1277_v13 = vld [vmem:[%s21629_s18 + $0x50] sm:$0xff]  ;;  %v1278_v14 = vld [vmem:[%s21629_s18 + $0x58] sm:$0xff] }
  0x61   : > { %v1279_v15 = vld [vmem:[%s21629_s18 + $0x60] sm:$0xff]  ;;  %v1280_v16 = vld [vmem:[%s21629_s18 + $0x68] sm:$0xff]  ;;  %v1281_v17 = vld [vmem:[%s21629_s18 + $0x70] sm:$0xff] }
  0x62   : > { %v1282_v18 = vld [vmem:[%s21629_s18 + $0x78] sm:$0xff]  ;;  %v1283_v19 = vld [vmem:[%s21629_s18 + $0x80] sm:$0xff]  ;;  %v1284_v20 = vld [vmem:[%s21629_s18 + $0x88] sm:$0xff] }
  0x63   : > { %18006 = vmatmul.mubr.msk.f32.gmra.mrb[2].mxu1 %vm1289_vm3, %v1270_v6  ;;  %v1285_v21 = vld [vmem:[%s21629_s18 + $0x90] sm:$0xff]  ;;  %v1286_v22 = vld [vmem:[%s21629_s18 + $0x98] sm:$0xff]  ;;  %s25900_s18 = sld [smem:[#allocation15_spill]] }
  0x64   : > { %18008 = vmatprep.mubr.msk.f32.mxu1 %vm1289_vm3, %v1271_v7 }
  0x67   : > { %18009 = vmatmul.mubr.msk.f32.gmra.mrb[4].mxu1 %vm1289_vm3, %v1272_v8 }
  0x68   : > { %18011 = vmatprep.mubr.msk.f32.mxu1 %vm1289_vm3, %v1273_v9 }
  0x6b   : > { %18012 = vmatmul.mubr.msk.f32.gmra.mrb[6].mxu1 %vm1289_vm3, %v1274_v10 }
  0x6c   : > { %18014 = vmatprep.mubr.msk.f32.mxu1 %vm1289_vm3, %v1275_v11 }
  0x6f   : > { %18015 = vmatmul.mubr.msk.f32.gmra.mrb[8].mxu1 %vm1289_vm3, %v1276_v12 }
  0x70   : > { %18017 = vmatprep.mubr.msk.f32.mxu1 %vm1289_vm3, %v1277_v13 }
  0x73   : > { %18018 = vmatmul.mubr.msk.f32.gmra.mrb[10].mxu1 %vm1289_vm3, %v1278_v14 }
  0x74   : > { %18020 = vmatprep.mubr.msk.f32.mxu1 %vm1289_vm3, %v1279_v15 }
  0x77   : > { %18021 = vmatmul.mubr.msk.f32.gmra.mrb[12].mxu1 %vm1289_vm3, %v1280_v16 }
  0x78   : > { %18023 = vmatprep.mubr.msk.f32.mxu1 %vm1289_vm3, %v1281_v17 }
  0x7b   : > { %18024 = vmatmul.mubr.msk.f32.gmra.mrb[14].mxu1 %vm1289_vm3, %v1282_v18 }
  0x7c   : > { %18026 = vmatprep.mubr.msk.f32.mxu1 %vm1289_vm3, %v1283_v19 }
  0x7f   : > { %18027 = vmatmul.mubr.msk.f32.gmra.mrb[16].mxu1 %vm1289_vm3, %v1284_v20 }
  0x80   : > { %18029 = vmatprep.mubr.msk.f32.mxu1 %vm1289_vm3, %v1285_v21 }
  0x83   : > { %18030 = vmatmul.mubr.msk.f32.gmra.mrb[18].mxu1 %vm1289_vm3, %v1286_v22 }
  0x84   : > { %16005 = vmatprep.mubr.msk.f32.mxu1 %vm1526_vm5, %v1525_v28 }
 0x132   : > { %v21684_v29 = vpop.f32.mrb[0].mxu1 }
 0x133   : > { %v21686_v30 = vpop.f32.mrb[1].mxu1  ;;  %v1601_v31 = vmul.f32 %v21684_v29, %v21684_v29 }
 0x134   : > { %v19757_v32 = vpack.c.bf16 %v21684_v29, %v21686_v30  ;;  %v1600_v33 = vmul.f32 %v21686_v30, %v21686_v30 }
 0x136   : > { %v21694_v34 = vpop.f32.mrb[2].mxu1  ;;  %19758 = vmatpush1.bf16.msra.mxu1 %v19757_v32  ;;  %v19787_v35 = vpack.c.bf16 %v1601_v31, %v1600_v33  ;;  %v21393_v31 = vmov 0.006289308   ;;  %v1977_v32 = vld [vmem:[%s21423_s21 + $0x8] sm:$0xff]  ;;  %v21806_v33 = vshrl.u32 %v1519_v24, 7 }
 0x137   : > { %v21696_v36 = vpop.f32.mrb[3].mxu1  ;;  %19759 = vmatprep.subr.bf16.mxu1 %v21391_v23  ;;  %v1603_v37 = vmul.f32 %v21694_v34, %v21694_v34 }
 0x138   : > { %19788 = vmatpush1.bf16.msra.mxu0 %v19787_v35  ;;  %v19760_v38 = vpack.c.bf16 %v21694_v34, %v21696_v36  ;;  %v1602_v39 = vmul.f32 %v21696_v36, %v21696_v36  ;;  %v1694_v35 = vsub.s32 0, %v21806_v33 }
 0x139   : > { %19789 = vmatprep.subr.bf16.mxu0 %v21391_v23 }
 0x13a   : > { %v21706_v40 = vpop.f32.mrb[4].mxu1  ;;  %19761 = vmatpush1.bf16.msra.mxu1 %v19760_v38  ;;  %v19790_v41 = vpack.c.bf16 %v1603_v37, %v1602_v39 }
 0x13b   : > { %v21708_v42 = vpop.f32.mrb[5].mxu1  ;;  %19762 = vmatprep.subr.bf16.mxu1 %v21391_v23  ;;  %v1605_v43 = vmul.f32 %v21706_v40, %v21706_v40 }
 0x13c   : > { %19791 = vmatpush1.bf16.msra.mxu0 %v19790_v41  ;;  %v19763_v44 = vpack.c.bf16 %v21706_v40, %v21708_v42  ;;  %v1604_v45 = vmul.f32 %v21708_v42, %v21708_v42 }
 0x13d   : > { %19792 = vmatprep.subr.bf16.mxu0 %v21391_v23 }
 0x13e   : > { %v21718_v46 = vpop.f32.mrb[6].mxu1  ;;  %19764 = vmatpush1.bf16.msra.mxu1 %v19763_v44  ;;  %v19793_v47 = vpack.c.bf16 %v1605_v43, %v1604_v45 }
 0x13f   : > { %v21720_v48 = vpop.f32.mrb[7].mxu1  ;;  %19765 = vmatprep.subr.bf16.mxu1 %v21391_v23  ;;  %v1607_v49 = vmul.f32 %v21718_v46, %v21718_v46 }
 0x140   : > { %19794 = vmatpush1.bf16.msra.mxu0 %v19793_v47  ;;  %v19766_v50 = vpack.c.bf16 %v21718_v46, %v21720_v48  ;;  %v1606_v51 = vmul.f32 %v21720_v48, %v21720_v48 }
 0x141   : > { %19795 = vmatprep.subr.bf16.mxu0 %v21391_v23 }
 0x142   : > { %v21730_v52 = vpop.f32.mrb[8].mxu1  ;;  %19767 = vmatpush1.bf16.msra.mxu1 %v19766_v50  ;;  %v19796_v53 = vpack.c.bf16 %v1607_v49, %v1606_v51 }
 0x143   : > { %v21732_v54 = vpop.f32.mrb[9].mxu1  ;;  %19768 = vmatprep.subr.bf16.mxu1 %v21391_v23  ;;  %v1609_v55 = vmul.f32 %v21730_v52, %v21730_v52 }
 0x144   : > { %19797 = vmatpush1.bf16.msra.mxu0 %v19796_v53  ;;  %v19769_v56 = vpack.c.bf16 %v21730_v52, %v21732_v54  ;;  %v1608_v57 = vmul.f32 %v21732_v54, %v21732_v54 }
 0x145   : > { %19798 = vmatprep.subr.bf16.mxu0 %v21391_v23 }
 0x146   : > { %v21742_v58 = vpop.f32.mrb[10].mxu1  ;;  %19770 = vmatpush1.bf16.msra.mxu1 %v19769_v56  ;;  %v19799_v59 = vpack.c.bf16 %v1609_v55, %v1608_v57 }
 0x147   : > { %v21744_v60 = vpop.f32.mrb[11].mxu1  ;;  %19771 = vmatprep.subr.bf16.mxu1 %v21391_v23  ;;  %v1611_v61 = vmul.f32 %v21742_v58, %v21742_v58 }
 0x148   : > { %19800 = vmatpush1.bf16.msra.mxu0 %v19799_v59  ;;  %v19772_v62 = vpack.c.bf16 %v21742_v58, %v21744_v60  ;;  %v1610_v63 = vmul.f32 %v21744_v60, %v21744_v60 }
 0x149   : > { %19801 = vmatprep.subr.bf16.mxu0 %v21391_v23 }
 0x14a   : > { %v21754_v0 = vpop.f32.mrb[12].mxu1  ;;  %19773 = vmatpush1.bf16.msra.mxu1 %v19772_v62  ;;  %v19802_v1 = vpack.c.bf16 %v1611_v61, %v1610_v63 }
 0x14b   : > { %v21756_v2 = vpop.f32.mrb[13].mxu1  ;;  %19774 = vmatprep.subr.bf16.mxu1 %v21391_v23  ;;  %v1613_v3 = vmul.f32 %v21754_v0, %v21754_v0 }
 0x14c   : > { %19803 = vmatpush1.bf16.msra.mxu0 %v19802_v1  ;;  %v19775_v4 = vpack.c.bf16 %v21754_v0, %v21756_v2  ;;  %v1612_v5 = vmul.f32 %v21756_v2, %v21756_v2 }
 0x14d   : > { %19804 = vmatprep.subr.bf16.mxu0 %v21391_v23 }
 0x14e   : > { %v21766_v6 = vpop.f32.mrb[14].mxu1  ;;  %19776 = vmatpush1.bf16.msra.mxu1 %v19775_v4  ;;  %v19805_v7 = vpack.c.bf16 %v1613_v3, %v1612_v5  ;;  %v21854_v4 = vld [vmem:[%s21413_s13] ss:$0 sm:$0xff] }
 0x14f   : > { %v21768_v8 = vpop.f32.mrb[15].mxu1  ;;  %19777 = vmatprep.subr.bf16.mxu1 %v21391_v23  ;;  %v1615_v9 = vmul.f32 %v21766_v6, %v21766_v6 }
 0x150   : > { %19806 = vmatpush1.bf16.msra.mxu0 %v19805_v7  ;;  %v19778_v10 = vpack.c.bf16 %v21766_v6, %v21768_v8  ;;  %v1614_v11 = vmul.f32 %v21768_v8, %v21768_v8 }
 0x151   : > { %19807 = vmatprep.subr.bf16.mxu0 %v21391_v23 }
 0x152   : > { %v21778_v12 = vpop.f32.mrb[16].mxu1  ;;  %19779 = vmatpush1.bf16.msra.mxu1 %v19778_v10  ;;  %v19808_v13 = vpack.c.bf16 %v1615_v9, %v1614_v11  ;;  %v21861_v11 = vld [vmem:[%s21418_s17] ss:$0 sm:$0xff] }
 0x153   : > { %v21780_v14 = vpop.f32.mrb[17].mxu1  ;;  %19780 = vmatprep.subr.bf16.mxu1 %v21391_v23  ;;  %v1617_v15 = vmul.f32 %v21778_v12, %v21778_v12 }
 0x154   : > { %19809 = vmatpush1.bf16.msra.mxu0 %v19808_v13  ;;  %v19781_v16 = vpack.c.bf16 %v21778_v12, %v21780_v14  ;;  %v1616_v17 = vmul.f32 %v21780_v14, %v21780_v14 }
 0x155   : > { %19810 = vmatprep.subr.bf16.mxu0 %v21391_v23 }
 0x156   : > { %v21790_v18 = vpop.f32.mrb[18].mxu1  ;;  %19782 = vmatpush1.bf16.msra.mxu1 %v19781_v16  ;;  %v19811_v19 = vpack.c.bf16 %v1617_v15, %v1616_v17 }
 0x157   : > { %v21792_v20 = vpop.f32.mrb[19].mxu1  ;;  %19783 = vmatprep.subr.bf16.mxu1 %v21391_v23  ;;  %v1619_v21 = vmul.f32 %v21790_v18, %v21790_v18 }
 0x158   : > { %19812 = vmatpush1.bf16.msra.mxu0 %v19811_v19  ;;  %v19784_v22 = vpack.c.bf16 %v21790_v18, %v21792_v20  ;;  %v1618_v26 = vmul.f32 %v21792_v20, %v21792_v20 }
 0x159   : > { %19813 = vmatprep.subr.bf16.mxu0 %v21391_v23 }
 0x15a   : > { %19785 = vmatpush1.bf16.msra.mxu1 %v19784_v22  ;;  %v19814_v28 = vpack.c.bf16 %v1619_v21, %v1618_v26 }
 0x15b   : > { %19816 = vmatprep.subr.bf16.mxu1 %v21391_v23 }
 0x15c   : > { %19815 = vmatpush1.bf16.msra.mxu0 %v19814_v28 }
 0x15d   : > { %1595 = vmatmul.mubr.f32.vlgmr.msra.gmra.mrb[20].mxu1 %v21393_v31 }
 0x15e   : > { %16009 = vmatprep.mubr.msk.f32.mxu1 %vm1526_vm5, %v1977_v32 }
 0x15f   : > { %1685 = vmatmul.mubr.f32.vlgmr.msra.gmra.mrb[0].mxu0 %v21393_v31 }
 0x230   : > { %v1596_v37 = vpop.f32.mrb[20].mxu1 }
 0x231   : > { %v21809_v38 = vrot.slane %v1596_v37, %v1694_v35  ;;  %v1598_v39 = vpop.f32.mrb[21].mxu1  ;;  %v1690_v41 = vmul.f32 %v1596_v37, %v1596_v37 }
 0x232   : > { %v1686_v43 = vpop.f32.mrb[0].mxu0 }
 0x233   : > { %v1691_v44 = vsub.f32 %v1686_v43, %v1690_v41  ;;  %v1688_v45 = vpop.f32.mrb[1].mxu0  ;;  %v1696_v47 = vsub.f32 %v21686_v30, %v21809_v38  ;;  %v1697_v49 = vsub.f32 %v21684_v29, %v21809_v38  ;;  %v1698_v24 = vsub.f32 %v21696_v36, %v21809_v38 }
 0x234   : > { %v1699_v50 = vsub.f32 %v21694_v34, %v21809_v38  ;;  %v1700_v51 = vsub.f32 %v21708_v42, %v21809_v38  ;;  %v1701_v53 = vsub.f32 %v21706_v40, %v21809_v38  ;;  %v1702_v55 = vsub.f32 %v21720_v48, %v21809_v38 }
 0x235   : > { %v1716_v56 = vadd.f32 1e-05, %v1691_v44  ;;  %v1703_v30 = vsub.f32 %v21718_v46, %v21809_v38  ;;  %v1704_v29 = vsub.f32 %v21732_v54, %v21809_v38  ;;  %v1705_v34 = vsub.f32 %v21730_v52, %v21809_v38 }
 0x236   : > { %v1706_v36 = vsub.f32 %v21744_v60, %v21809_v38  ;;  %v1707_v40 = vsub.f32 %v21742_v58, %v21809_v38  ;;  %v1708_v42 = vsub.f32 %v21756_v2, %v21809_v38  ;;  %v1709_v46 = vsub.f32 %v21754_v0, %v21809_v38 }
 0x237   : > { %20757 = vrsqrt.f32 %v1716_v56  ;;  %v1710_v48 = vsub.f32 %v21768_v8, %v21809_v38  ;;  %v1711_v57 = vsub.f32 %v21766_v6, %v21809_v38  ;;  %v1712_v59 = vsub.f32 %v21780_v14, %v21809_v38 }
 0x238   : > { %v1713_v61 = vsub.f32 %v21778_v12, %v21809_v38  ;;  %v1714_v62 = vsub.f32 %v21792_v20, %v21809_v38  ;;  %v1715_v63 = vsub.f32 %v21790_v18, %v21809_v38 }
 0x241   : > { %v20758_v1 = vpop.eup %20757 }
 0x242   : > { %v21851_v3 = vrot.slane %v20758_v1, %v1694_v35 }
 0x244   : > { %v1722_v5 = vmul.f32 %v21851_v3, %v1696_v47  ;;  %v1723_v7 = vmul.f32 %v21851_v3, %v1697_v49  ;;  %v1724_v9 = vmul.f32 %v21851_v3, %v1698_v24  ;;  %v1725_v10 = vmul.f32 %v21851_v3, %v1699_v50 }
 0x245   : > { %v1726_v13 = vmul.f32 %v21851_v3, %v1700_v51  ;;  %v1727_v15 = vmul.f32 %v21851_v3, %v1701_v53  ;;  %v1728_v16 = vmul.f32 %v21851_v3, %v1702_v55  ;;  %v1729_v17 = vmul.f32 %v21851_v3, %v1703_v30 }
 0x246   : > { %v1749_v19 = vmul.f32 %v21854_v4, %v1722_v5  ;;  %v1750_v21 = vmul.f32 %v21854_v4, %v1723_v7  ;;  %v1751_v22 = vmul.f32 %v21854_v4, %v1724_v9  ;;  %v1752_v26 = vmul.f32 %v21854_v4, %v1725_v10 }
 0x247   : > { %v1753_v28 = vmul.f32 %v21854_v4, %v1726_v13  ;;  %v1754_v31 = vmul.f32 %v21854_v4, %v1727_v15  ;;  %v1755_v32 = vmul.f32 %v21854_v4, %v1728_v16  ;;  %v1756_v35 = vmul.f32 %v21854_v4, %v1729_v17 }
 0x248   : > { %v1776_v37 = vadd.f32 %v21861_v11, %v1749_v19  ;;  %v1777_v39 = vadd.f32 %v21861_v11, %v1750_v21  ;;  %v1778_v41 = vadd.f32 %v21861_v11, %v1751_v22  ;;  %v1779_v43 = vadd.f32 %v21861_v11, %v1752_v26 }
 0x249   : > { %v21880_v44 = vadd.f32 %v21861_v11, %v1753_v28  ;;  %v21883_v45 = vadd.f32 %v21861_v11, %v1754_v31  ;;  %v21886_v51 = vadd.f32 %v21861_v11, %v1755_v32  ;;  %v21889_v53 = vadd.f32 %v21861_v11, %v1756_v35 }
 0x24a   : > { %v1816_v47 = vmul.f32 0.044715, %v1776_v37  ;;  %v1817_v49 = vmul.f32 0.044715, %v1777_v39  ;;  %v1818_v24 = vmul.f32 0.044715, %v1778_v41  ;;  %v1733_v52 = vmul.f32 %v21851_v3, %v1707_v40 }
 0x24b   : > { %v1819_v50 = vmul.f32 0.044715, %v1779_v43  ;;  %v21891_v55 = vmul.f32 0.5, %v1776_v37  ;;  %v21893_v56 = vmul.f32 0.5, %v1777_v39  ;;  %v1820_v9 = vmul.f32 0.044715, %v21880_v44 }
 0x24c   : > { %v1836_v30 = vmul.f32 %v1816_v47, %v1776_v37  ;;  %v1837_v1 = vmul.f32 %v1817_v49, %v1777_v39  ;;  %v1838_v5 = vmul.f32 %v1818_v24, %v1778_v41  ;;  %v1821_v10 = vmul.f32 0.044715, %v21883_v45 }
 0x24d   : > { %v1839_v7 = vmul.f32 %v1819_v50, %v1779_v43  ;;  %v21897_v16 = vmul.f32 0.5, %v1778_v41  ;;  %v21899_v17 = vmul.f32 0.5, %v1779_v43  ;;  %v1840_v22 = vmul.f32 %v1820_v9, %v21880_v44 }
 0x24e   : > { %v1856_v13 = vmul.f32 %v1836_v30, %v1776_v37  ;;  %v1857_v15 = vmul.f32 %v1837_v1, %v1777_v39  ;;  %v1858_v19 = vmul.f32 %v1838_v5, %v1778_v41  ;;  %v1841_v26 = vmul.f32 %v1821_v10, %v21883_v45 }
 0x24f   : > { %v1859_v21 = vmul.f32 %v1839_v7, %v1779_v43  ;;  %v1822_v32 = vmul.f32 0.044715, %v21886_v51  ;;  %v1823_v35 = vmul.f32 0.044715, %v21889_v53  ;;  %v1860_v24 = vmul.f32 %v1840_v22, %v21880_v44 }
 0x250   : > { %v1876_v28 = vadd.f32 %v1856_v13, %v1776_v37  ;;  %v1877_v31 = vadd.f32 %v1857_v15, %v1777_v39  ;;  %v1878_v47 = vadd.f32 %v1858_v19, %v1778_v41  ;;  %v1861_v50 = vmul.f32 %v1841_v26, %v21883_v45 }
 0x251   : > { %v1879_v49 = vadd.f32 %v1859_v21, %v1779_v43  ;;  %v1842_v5 = vmul.f32 %v1822_v32, %v21886_v51  ;;  %v1843_v7 = vmul.f32 %v1823_v35, %v21889_v53  ;;  %v1880_v37 = vadd.f32 %v1860_v24, %v21880_v44 }
 0x252   : > { %v1896_v30 = vmul.f32 0.7978846, %v1876_v28  ;;  %v1897_v1 = vmul.f32 0.7978846, %v1877_v31  ;;  %v1898_v9 = vmul.f32 0.7978846, %v1878_v47  ;;  %v1881_v39 = vadd.f32 %v1861_v50, %v21883_v45 }
 0x253   : > { %v1899_v10 = vmul.f32 0.7978846, %v1879_v49  ;;  %v1862_v41 = vmul.f32 %v1842_v5, %v21886_v51  ;;  %v1863_v43 = vmul.f32 %v1843_v7, %v21889_v53  ;;  %v1730_v13 = vmul.f32 %v21851_v3, %v1704_v29 }
 0x254   : > { %20759 = vtanh.f32 %v1896_v30  ;;  %v1900_v15 = vmul.f32 0.7978846, %v1880_v37  ;;  %v1901_v19 = vmul.f32 0.7978846, %v1881_v39  ;;  %v1731_v21 = vmul.f32 %v21851_v3, %v1705_v34 }
 0x255   : > { %20761 = vtanh.f32 %v1897_v1  ;;  %v1882_v22 = vadd.f32 %v1862_v41, %v21886_v51  ;;  %v1883_v26 = vadd.f32 %v1863_v43, %v21889_v53  ;;  %v1757_v28 = vmul.f32 %v21854_v4, %v1730_v13 }
 0x256   : > { %20763 = vtanh.f32 %v1898_v9  ;;  %v1758_v54 = vmul.f32 %v21854_v4, %v1731_v21  ;;  %v1732_v29 = vmul.f32 %v21851_v3, %v1706_v36  ;;  %v1760_v60 = vmul.f32 %v21854_v4, %v1733_v52 }
 0x257   : > { %20765 = vtanh.f32 %v1899_v10  ;;  %v1902_v34 = vmul.f32 0.7978846, %v1882_v22  ;;  %v1903_v31 = vmul.f32 0.7978846, %v1883_v26  ;;  %v21934_v32 = vadd.f32 %v21861_v11, %v1757_v28 }
 0x258   : > { %20767 = vtanh.f32 %v1900_v15  ;;  %v21937_v35 = vadd.f32 %v21861_v11, %v1758_v54  ;;  %v1759_v47 = vmul.f32 %v21854_v4, %v1732_v29  ;;  %v1800_v36 = vmul.f32 0.5, %v21880_v44 }
 0x259   : > { %20769 = vtanh.f32 %v1901_v19  ;;  %v1824_v58 = vmul.f32 0.044715, %v21934_v32  ;;  %v1734_v40 = vmul.f32 %v21851_v3, %v1708_v42  ;;  %v1801_v49 = vmul.f32 0.5, %v21883_v45 }
 0x25a   : > { %20771 = vtanh.f32 %v1902_v34  ;;  %v1825_v24 = vmul.f32 0.044715, %v21937_v35  ;;  %v21950_v50 = vadd.f32 %v21861_v11, %v1759_v47  ;;  %v21954_v44 = vadd.f32 %v21861_v11, %v1760_v60 }
 0x25b   : > { %20773 = vtanh.f32 %v1903_v31  ;;  %v1844_v30 = vmul.f32 %v1824_v58, %v21934_v32  ;;  %v1735_v2 = vmul.f32 %v21851_v3, %v1709_v46  ;;  %v1761_v42 = vmul.f32 %v21854_v4, %v1734_v40 }
 0x25c   : > { %v1802_v45 = vmul.f32 0.5, %v21886_v51  ;;  %v1845_v1 = vmul.f32 %v1825_v24, %v21937_v35  ;;  %v1826_v5 = vmul.f32 0.044715, %v21950_v50  ;;  %v1736_v7 = vmul.f32 %v21851_v3, %v1710_v48 }
 0x25d   : > { %v1803_v10 = vmul.f32 0.5, %v21889_v53  ;;  %v1864_v0 = vmul.f32 %v1844_v30, %v21934_v32  ;;  %v1827_v46 = vmul.f32 0.044715, %v21954_v44  ;;  %v1762_v37 = vmul.f32 %v21854_v4, %v1735_v2 }
 0x25e   : > { %v20760_v9 = vpop.eup %20759  ;;  %v1865_v41 = vmul.f32 %v1845_v1, %v21937_v35  ;;  %v1846_v43 = vmul.f32 %v1826_v5, %v21950_v50  ;;  %v21975_v13 = vadd.f32 %v21861_v11, %v1761_v42  ;;  %v1740_v14 = vmul.f32 %v21851_v3, %v1714_v62 }
 0x25f   : > { %v20762_v39 = vpop.eup %20761  ;;  %v1936_v51 = vadd.f32 1.0, %v20760_v9  ;;  %v1884_v15 = vadd.f32 %v1864_v0, %v21934_v32  ;;  %v1847_v53 = vmul.f32 %v1827_v46, %v21954_v44  ;;  %v21980_v19 = vadd.f32 %v21861_v11, %v1762_v37 }
 0x260   : > { %v20764_v8 = vpop.eup %20763  ;;  %v1937_v48 = vadd.f32 1.0, %v20762_v39  ;;  %v1885_v28 = vadd.f32 %v1865_v41, %v21937_v35  ;;  %v1866_v54 = vmul.f32 %v1846_v43, %v21950_v50 }
 0x261   : > { %v20766_v21 = vpop.eup %20765  ;;  %v1956_v22 = vmul.f32 %v1936_v51, %v21891_v55  ;;  %v1938_v26 = vadd.f32 1.0, %v20764_v8  ;;  %v1904_v31 = vmul.f32 0.7978846, %v1884_v15  ;;  %v1867_v47 = vmul.f32 %v1847_v53, %v21954_v44 }
 0x262   : > { %v20768_v29 = vpop.eup %20767  ;;  %v1957_v52 = vmul.f32 %v1937_v48, %v21893_v56  ;;  %v1939_v34 = vadd.f32 1.0, %v20766_v21  ;;  %v1905_v24 = vmul.f32 0.7978846, %v1885_v28  ;;  %v1886_v30 = vadd.f32 %v1866_v54, %v21950_v50 }
 0x263   : > { %v20770_v60 = vpop.eup %20769  ;;  %v1958_v58 = vmul.f32 %v1938_v26, %v21897_v16  ;;  %v1940_v40 = vadd.f32 1.0, %v20768_v29  ;;  %20775 = vtanh.f32 %v1904_v31  ;;  %v1887_v0 = vadd.f32 %v1867_v47, %v21954_v44 }
 0x264   : > { %v20772_v55 = vpop.eup %20771  ;;  %v19817_v2 = vpack.c.bf16 %v1957_v52, %v1956_v22  ;;  %v1959_v42 = vmul.f32 %v1939_v34, %v21899_v17  ;;  %v1941_v1 = vadd.f32 1.0, %v20770_v60  ;;  %20777 = vtanh.f32 %v1905_v24 }
 0x265   : > { %v20774_v5 = vpop.eup %20773  ;;  %v1960_v9 = vmul.f32 %v1940_v40, %v1800_v36  ;;  %v1942_v56 = vadd.f32 1.0, %v20772_v55  ;;  %v1906_v39 = vmul.f32 0.7978846, %v1886_v30  ;;  %v1907_v41 = vmul.f32 0.7978846, %v1887_v0 }
 0x266   : > { %19818 = vmatpush1.bf16.msra.mxu1 %v19817_v2  ;;  %v19820_v46 = vpack.c.bf16 %v1959_v42, %v1958_v58  ;;  %v1961_v37 = vmul.f32 %v1941_v1, %v1801_v49  ;;  %v1943_v16 = vadd.f32 1.0, %v20774_v5  ;;  %v1828_v17 = vmul.f32 0.044715, %v21975_v13 }
 0x267   : > { %19819 = vmatprep.subr.bf16.mxu1 %v21391_v23  ;;  %v1962_v51 = vmul.f32 %v1942_v56, %v1802_v45  ;;  %20779 = vtanh.f32 %v1906_v39  ;;  %v1829_v36 = vmul.f32 0.044715, %v21980_v19  ;;  %v1737_v48 = vmul.f32 %v21851_v3, %v1711_v57 }
 0x268   : > { %v19823_v43 = vpack.c.bf16 %v1961_v37, %v1960_v9  ;;  %v1963_v8 = vmul.f32 %v1943_v16, %v1803_v10  ;;  %20781 = vtanh.f32 %v1907_v41  ;;  %v1763_v49 = vmul.f32 %v21854_v4, %v1736_v7 }
 0x269   : > { %v1848_v45 = vmul.f32 %v1828_v17, %v21975_v13  ;;  %v1738_v10 = vmul.f32 %v21851_v3, %v1712_v59  ;;  %v1739_v53 = vmul.f32 %v21851_v3, %v1713_v61  ;;  %v1849_v6 = vmul.f32 %v1829_v36, %v21980_v19 }
 0x26a   : > { %19821 = vmatpush1.bf16.msra.mxu1 %v19820_v46  ;;  %v19826_v15 = vpack.c.bf16 %v1963_v8, %v1962_v51  ;;  %v1764_v57 = vmul.f32 %v21854_v4, %v1737_v48  ;;  %v22012_v7 = vadd.f32 %v21861_v11, %v1763_v49  ;;  %v1741_v21 = vmul.f32 %v21851_v3, %v1715_v63 }
 0x26b   : > { %19822 = vmatprep.subr.bf16.mxu1 %v21391_v23  ;;  %v1868_v59 = vmul.f32 %v1848_v45, %v21975_v13  ;;  %v1765_v12 = vmul.f32 %v21854_v4, %v1738_v10  ;;  %v1766_v61 = vmul.f32 %v21854_v4, %v1739_v53  ;;  %v1804_v22 = vmul.f32 0.5, %v21934_v32 }
 0x26c   : > { %v1869_v26 = vmul.f32 %v1849_v6, %v21980_v19  ;;  %v22028_v28 = vadd.f32 %v21861_v11, %v1764_v57  ;;  %v1830_v20 = vmul.f32 0.044715, %v22012_v7  ;;  %v1805_v54 = vmul.f32 0.5, %v21937_v35 }
 0x26d   : > { %v20776_v62 = vpop.eup %20775  ;;  %v1806_v29 = vmul.f32 0.5, %v21950_v50  ;;  %v1888_v52 = vadd.f32 %v1868_v59, %v21975_v13  ;;  %v22035_v18 = vadd.f32 %v21861_v11, %v1765_v12  ;;  %v22041_v34 = vadd.f32 %v21861_v11, %v1766_v61 }
 0x26e   : > { %19824 = vmatpush1.bf16.msra.mxu1 %v19823_v43  ;;  %v20778_v38 = vpop.eup %20777  ;;  %v1944_v63 = vadd.f32 1.0, %v20776_v62  ;;  %v1889_v3 = vadd.f32 %v1869_v26, %v21980_v19  ;;  %v1831_v32 = vmul.f32 0.044715, %v22028_v28  ;;  %v1807_v35 = vmul.f32 0.5, %v21954_v44 }
 0x26f   : > { %19825 = vmatprep.subr.bf16.mxu1 %v21391_v23  ;;  %v1945_v31 = vadd.f32 1.0, %v20778_v38  ;;  %v1908_v50 = vmul.f32 0.7978846, %v1888_v52  ;;  %v1850_v47 = vmul.f32 %v1830_v20, %v22012_v7  ;;  %v1767_v24 = vmul.f32 %v21854_v4, %v1740_v14 }
 0x270   : > { %v1964_v60 = vmul.f32 %v1944_v63, %v1804_v22  ;;  %v1909_v58 = vmul.f32 0.7978846, %v1889_v3  ;;  %v1851_v40 = vmul.f32 %v1831_v32, %v22028_v28  ;;  %v1832_v42 = vmul.f32 0.044715, %v22035_v18 }
 0x271   : > { %v20780_v30 = vpop.eup %20779  ;;  %v1965_v55 = vmul.f32 %v1945_v31, %v1805_v54  ;;  %20783 = vtanh.f32 %v1908_v50  ;;  %v1870_v2 = vmul.f32 %v1850_v47, %v22012_v7  ;;  %v1833_v9 = vmul.f32 0.044715, %v22041_v34 }
 0x272   : > { %19827 = vmatpush1.bf16.msra.mxu1 %v19826_v15  ;;  %v20782_v1 = vpop.eup %20781  ;;  %v1946_v44 = vadd.f32 1.0, %v20780_v30  ;;  %20785 = vtanh.f32 %v1909_v58  ;;  %v1871_v5 = vmul.f32 %v1851_v40, %v22028_v28  ;;  %v1852_v37 = vmul.f32 %v1832_v42, %v22035_v18 }
 0x273   : > { %19828 = vmatprep.subr.bf16.mxu1 %v21391_v23  ;;  %v19829_v56 = vpack.c.bf16 %v1965_v55, %v1964_v60  ;;  %v1947_v0 = vadd.f32 1.0, %v20782_v1  ;;  %v1890_v46 = vadd.f32 %v1870_v2, %v22012_v7  ;;  %v1853_v51 = vmul.f32 %v1833_v9, %v22041_v34 }
 0x274   : > { %v1966_v16 = vmul.f32 %v1946_v44, %v1806_v29  ;;  %v1891_v39 = vadd.f32 %v1871_v5, %v22028_v28  ;;  %v1768_v41 = vmul.f32 %v21854_v4, %v1741_v21  ;;  %v1872_v17 = vmul.f32 %v1852_v37, %v22035_v18 }
 0x275   : > { %v1967_v43 = vmul.f32 %v1947_v0, %v1807_v35  ;;  %v1910_v8 = vmul.f32 0.7978846, %v1890_v46  ;;  %v1794_v36 = vadd.f32 %v21861_v11, %v1767_v24  ;;  %v1873_v49 = vmul.f32 %v1853_v51, %v22041_v34  ;;  %v1976_v51 = vld [vmem:[%s21423_s21] sm:$0xff] }
 0x276   : > { %19830 = vmatpush1.bf16.msra.mxu1 %v19829_v56  ;;  %v1911_v48 = vmul.f32 0.7978846, %v1891_v39  ;;  %v1795_v15 = vadd.f32 %v21861_v11, %v1768_v41  ;;  %v1892_v10 = vadd.f32 %v1872_v17, %v22035_v18  ;;  %v1808_v11 = vmul.f32 0.5, %v21975_v13  ;;  %v1979_v41 = vld [vmem:[%s21423_s21 + $0x18] sm:$0xff] }
 0x277   : > { %19831 = vmatprep.subr.bf16.mxu1 %v21391_v23  ;;  %v19832_v45 = vpack.c.bf16 %v1967_v43, %v1966_v16  ;;  %20787 = vtanh.f32 %v1910_v8  ;;  %v1893_v4 = vadd.f32 %v1873_v49, %v22041_v34  ;;  %v1834_v53 = vmul.f32 0.044715, %v1794_v36  ;;  %v1978_v43 = vld [vmem:[%s21423_s21 + $0x10] sm:$0xff]  ;;  %v1981_v8 = vld [vmem:[%s21423_s21 + $0x28] sm:$0xff]  ;;  %v1983_v17 = vld [vmem:[%s21423_s21 + $0x38] sm:$0xff] }
 0x278   : > { %20789 = vtanh.f32 %v1911_v48  ;;  %v1912_v6 = vmul.f32 0.7978846, %v1892_v10  ;;  %v1835_v57 = vmul.f32 0.044715, %v1795_v15  ;;  %v1809_v20 = vmul.f32 0.5, %v21980_v19  ;;  %v1985_v48 = vld [vmem:[%s21423_s21 + $0x48] sm:$0xff] }
 0x279   : > { %v1913_v14 = vmul.f32 0.7978846, %v1893_v4  ;;  %v1854_v59 = vmul.f32 %v1834_v53, %v1794_v36  ;;  %v1810_v47 = vmul.f32 0.5, %v22012_v7  ;;  %v1811_v13 = vmul.f32 0.5, %v22028_v28  ;;  %v1984_v49 = vld [vmem:[%s21423_s21 + $0x40] sm:$0xff]  ;;  %v1989_v10 = vld [vmem:[%s21423_s21 + $0x68] sm:$0xff] }
 0x27a   : > { %19833 = vmatpush1.bf16.msra.mxu1 %v19832_v45  ;;  %20791 = vtanh.f32 %v1912_v6  ;;  %v1855_v61 = vmul.f32 %v1835_v57, %v1795_v15  ;;  %v1812_v55 = vmul.f32 0.5, %v22035_v18  ;;  %v1813_v1 = vmul.f32 0.5, %v22041_v34  ;;  %v1986_v45 = vld [vmem:[%s21423_s21 + $0x50] sm:$0xff]  ;;  %v1988_v4 = vld [vmem:[%s21423_s21 + $0x60] sm:$0xff]  ;;  %v1991_v53 = vld [vmem:[%s21423_s21 + $0x78] sm:$0xff] }
 0x27b   : > { %19834 = vmatprep.subr.bf16.mxu1 %v21391_v23  ;;  %v20784_v12 = vpop.eup %20783  ;;  %20793 = vtanh.f32 %v1913_v14  ;;  %v1874_v26 = vmul.f32 %v1854_v59, %v1794_v36  ;;  %v1814_v0 = vmul.f32 0.5, %v1794_v36  ;;  %v1815_v34 = vmul.f32 0.5, %v1795_v15  ;;  %v1990_v6 = vld [vmem:[%s21423_s21 + $0x70] sm:$0xff]  ;;  %v1993_v57 = vld [vmem:[%s21423_s21 + $0x88] sm:$0xff]  ;;  %v1992_v14 = vld [vmem:[%s21423_s21 + $0x80] sm:$0xff] }
 0x27c   : > { %v20786_v21 = vpop.eup %20785  ;;  %v1948_v22 = vadd.f32 1.0, %v20784_v12  ;;  %v1875_v54 = vmul.f32 %v1855_v61, %v1795_v15  ;;  %v1995_v59 = vld [vmem:[%s21423_s21 + $0x98] sm:$0xff]  ;;  %v1994_v12 = vld [vmem:[%s21423_s21 + $0x90] sm:$0xff]  ;;  %v1997_v61 = vld [vmem:[%s21423_s21 + $0xa8] sm:$0xff] }
 0x27d   : > { %v1949_v62 = vadd.f32 1.0, %v20786_v21  ;;  %v1894_v52 = vadd.f32 %v1874_v26, %v1794_v36  ;;  %v1982_v36 = vld [vmem:[%s21423_s21 + $0x30] sm:$0xff]  ;;  %v1996_v21 = vld [vmem:[%s21423_s21 + $0xa0] sm:$0xff]  ;;  %v2001_v26 = vld [vmem:[%s21423_s21 + $0xc8] sm:$0xff] }
 0x27e   : > { %v1968_v29 = vmul.f32 %v1948_v22, %v1808_v11  ;;  %v1895_v63 = vadd.f32 %v1875_v54, %v1795_v15  ;;  %v1987_v15 = vld [vmem:[%s21423_s21 + $0x58] sm:$0xff]  ;;  %v1998_v22 = vld [vmem:[%s21423_s21 + $0xb0] sm:$0xff] }
 0x27f   : > { %v1969_v38 = vmul.f32 %v1949_v62, %v1809_v20  ;;  %v1914_v3 = vmul.f32 0.7978846, %v1894_v52  ;;  %v1999_v11 = vld [vmem:[%s21423_s21 + $0xb8] sm:$0xff]  ;;  %v2000_v20 = vld [vmem:[%s21423_s21 + $0xc0] sm:$0xff]  ;;  %v2002_v54 = vld [vmem:[%s21423_s21 + $0xd0] sm:$0xff] }
 0x280   : > { %v1915_v35 = vmul.f32 0.7978846, %v1895_v63  ;;  %v2003_v62 = vld [vmem:[%s21423_s21 + $0xd8] sm:$0xff]  ;;  %v2004_v52 = vld [vmem:[%s21423_s21 + $0xe0] sm:$0xff]  ;;  %v2006_v63 = vld [vmem:[%s21423_s21 + $0xf0] sm:$0xff] }
 0x281   : > { %v20788_v32 = vpop.eup %20787  ;;  %v19835_v31 = vpack.c.bf16 %v1969_v38, %v1968_v29  ;;  %20795 = vtanh.f32 %v1914_v3  ;;  %v2005_v29 = vld [vmem:[%s21423_s21 + $0xe8] sm:$0xff]  ;;  %v2007_v38 = vld [vmem:[%s21423_s21 + $0xf8] sm:$0xff] }
 0x282   : > { %v20790_v50 = vpop.eup %20789  ;;  %v1950_v60 = vadd.f32 1.0, %v20788_v32  ;;  %20797 = vtanh.f32 %v1915_v35  ;;  %v2009_v3 = vld [vmem:[%s21423_s21 + $0x108] sm:$0xff]  ;;  %v2008_v32 = vld [vmem:[%s21423_s21 + $0x100] sm:$0xff]  ;;  %v2010_v35 = vld [vmem:[%s21423_s21 + $0x110] sm:$0xff] }
 0x283   : > { %19836 = vmatpush1.bf16.msra.mxu1 %v19835_v31  ;;  %v1951_v58 = vadd.f32 1.0, %v20790_v50  ;;  %v2011_v31 = vld [vmem:[%s21423_s21 + $0x118] sm:$0xff]  ;;  %v2013_v50 = vld [vmem:[%s21423_s21 + $0x128] sm:$0xff] }
 0x284   : > { %19837 = vmatprep.subr.bf16.mxu1 %v21391_v23  ;;  %v1970_v19 = vmul.f32 %v1950_v60, %v1810_v47  ;;  %v20792_v40 = vpop.eup %20791  ;;  %v2012_v47 = vld [vmem:[%s21423_s21 + $0x120] sm:$0xff]  ;;  %v2015_v60 = vld [vmem:[%s21423_s21 + $0x138] sm:$0xff] }
 0x285   : > { %v1971_v24 = vmul.f32 %v1951_v58, %v1811_v13  ;;  %v20794_v30 = vpop.eup %20793  ;;  %v1952_v2 = vadd.f32 1.0, %v20792_v40  ;;  %v2014_v13 = vld [vmem:[%s21423_s21 + $0x130] sm:$0xff]  ;;  %v2017_v58 = vld [vmem:[%s21423_s21 + $0x148] sm:$0xff]  ;;  %v2019_v40 = vld [vmem:[%s21423_s21 + $0x158] sm:$0xff] }
 0x286   : > { %v1953_v7 = vadd.f32 1.0, %v20794_v30  ;;  %v2021_v30 = vld [vmem:[%s21423_s21 + $0x168] sm:$0xff] }
 0x287   : > { %v19838_v42 = vpack.c.bf16 %v1971_v24, %v1970_v19  ;;  %v1972_v44 = vmul.f32 %v1952_v2, %v1812_v55  ;;  %v2016_v19 = vld [vmem:[%s21423_s21 + $0x140] sm:$0xff]  ;;  %v2018_v24 = vld [vmem:[%s21423_s21 + $0x150] sm:$0xff]  ;;  %v2023_v2 = vld [vmem:[%s21423_s21 + $0x178] sm:$0xff] }
 0x288   : > { %v1973_v5 = vmul.f32 %v1953_v7, %v1813_v1  ;;  %v2020_v55 = vld [vmem:[%s21423_s21 + $0x160] sm:$0xff]  ;;  %v2025_v1 = vld [vmem:[%s21423_s21 + $0x188] sm:$0xff] }
 0x289   : > { %19839 = vmatpush1.bf16.msra.mxu1 %v19838_v42  ;;  %v2022_v42 = vld [vmem:[%s21423_s21 + $0x170] sm:$0xff]  ;;  %v2024_v7 = vld [vmem:[%s21423_s21 + $0x180] sm:$0xff] }
 0x28a   : > { %19840 = vmatprep.subr.bf16.mxu1 %v21391_v23  ;;  %v19841_v28 = vpack.c.bf16 %v1973_v5, %v1972_v44  ;;  %v2027_v44 = vld [vmem:[%s21423_s21 + $0x198] sm:$0xff]  ;;  %v2026_v5 = vld [vmem:[%s21423_s21 + $0x190] sm:$0xff] }
 0x28b   : > { %v20796_v9 = vpop.eup %20795 }
 0x28c   : > { %v20798_v56 = vpop.eup %20797  ;;  %v1954_v18 = vadd.f32 1.0, %v20796_v9  ;;  %v2028_v9 = vld [vmem:[%s21423_s21 + $0x1a0] sm:$0xff] }
 0x28d   : > { %19842 = vmatpush1.bf16.msra.mxu1 %v19841_v28  ;;  %v1955_v46 = vadd.f32 1.0, %v20798_v56  ;;  %v2029_v28 = vld [vmem:[%s21423_s21 + $0x1a8] sm:$0xff]  ;;  %v2031_v56 = vld [vmem:[%s21423_s21 + $0x1b8] sm:$0xff] }
 0x28e   : > { %19843 = vmatprep.subr.bf16.mxu1 %v21391_v23  ;;  %v1974_v37 = vmul.f32 %v1954_v18, %v1814_v0  ;;  %v1980_v23 = vld [vmem:[%s21423_s21 + $0x20] sm:$0xff]  ;;  %v2030_v0 = vld [vmem:[%s21423_s21 + $0x1b0] sm:$0xff]  ;;  %v2033_v18 = vld [vmem:[%s21423_s21 + $0x1c8] sm:$0xff] }
 0x28f   : > { %v1975_v16 = vmul.f32 %v1955_v46, %v1815_v34  ;;  %v2032_v34 = vld [vmem:[%s21423_s21 + $0x1c0] sm:$0xff]  ;;  %v2035_v46 = vld [vmem:[%s21423_s21 + $0x1d8] sm:$0xff] }
 0x291   : > { %v19844_v39 = vpack.c.bf16 %v1975_v16, %v1974_v37  ;;  %v2034_v37 = vld [vmem:[%s21423_s21 + $0x1d0] sm:$0xff]  ;;  %v2345_v16 = vld [vmem:[%s21428_s25 + $0x20] sm:$0xff] }
 0x293   : > { %19845 = vmatpush1.bf16.msra.mxu1 %v19844_v39  ;;  %v2346_v39 = vld [vmem:[%s21428_s25 + $0x28] sm:$0xff] }
 0x296   : > { %2191 = vmatmul.mubr.f32.vlgmr.msra.gmra.mrb[22].mxu1 %v1976_v51  ;;  %v19846_v51 = vpack.c.bf16 %v2346_v39, %v2345_v16 }
 0x297   : > { %16010 = vmatprep.mubr.msk.f32.mxu1 %vm1526_vm5, %v1979_v41  ;;  %v2347_v41 = vld [vmem:[%s21428_s25 + $0x30] sm:$0xff] }
 0x298   : > { %19847 = vmatprep.subr.bf16.mxu0 %v19846_v51 }
 0x299   : > { %19849 = vmatpush3.bf16.msra.mxu0 %v19846_v51 }
 0x29a   : > { %2196 = vmatmul.mubr.f32.gmra.mrb[24].mxu1 %v1978_v43  ;;  %v2348_v43 = vld [vmem:[%s21428_s25 + $0x38] sm:$0xff] }
 0x29b   : > { %16011 = vmatprep.mubr.msk.f32.mxu1 %vm1526_vm5, %v1981_v8  ;;  %v19850_v8 = vpack.c.bf16 %v2348_v43, %v2347_v41 }
 0x29d   : > { %19851 = vmatprep.subr.bf16.mxu0 %v19850_v8 }
 0x29e   : > { %2201 = vmatmul.mubr.f32.gmra.mrb[26].mxu1 %v1980_v23  ;;  %19853 = vmatpush3.bf16.msra.mxu0 %v19850_v8  ;;  %v2341_v23 = vld [vmem:[%s21428_s25] sm:$0xff] }
 0x29f   : > { %16012 = vmatprep.mubr.msk.f32.mxu1 %vm1526_vm5, %v1983_v17  ;;  %v2342_v17 = vld [vmem:[%s21428_s25 + $0x8] sm:$0xff] }
 0x2a2   : > { %2206 = vmatmul.mubr.f32.gmra.mrb[28].mxu1 %v1982_v36  ;;  %v19854_v36 = vpack.c.bf16 %v2342_v17, %v2341_v23 }
 0x2a3   : > { %16013 = vmatprep.mubr.msk.f32.mxu1 %vm1526_vm5, %v1985_v48 }
 0x2a4   : > { %19855 = vmatprep.subr.bf16.mxu0 %v19854_v36 }
 0x2a6   : > { %2211 = vmatmul.mubr.f32.gmra.mrb[30].mxu1 %v1984_v49 }
 0x2a7   : > { %16014 = vmatprep.mubr.msk.f32.mxu1 %vm1526_vm5, %v1987_v15 }
 0x2aa   : > { %2216 = vmatmul.mubr.f32.gmra.mrb[32].mxu1 %v1986_v45 }
 0x2ab   : > { %16015 = vmatprep.mubr.msk.f32.mxu1 %vm1526_vm5, %v1989_v10 }
 0x2ae   : > { %2221 = vmatmul.mubr.f32.gmra.mrb[34].mxu1 %v1988_v4 }
 0x2af   : > { %16016 = vmatprep.mubr.msk.f32.mxu1 %vm1526_vm5, %v1991_v53 }
 0x2b2   : > { %2226 = vmatmul.mubr.f32.gmra.mrb[36].mxu1 %v1990_v6 }
 0x2b3   : > { %16017 = vmatprep.mubr.msk.f32.mxu1 %vm1526_vm5, %v1993_v57 }
 0x2b6   : > { %2231 = vmatmul.mubr.f32.gmra.mrb[38].mxu1 %v1992_v14 }
 0x2b7   : > { %16018 = vmatprep.mubr.msk.f32.mxu1 %vm1526_vm5, %v1995_v59 }
 0x2ba   : > { %2236 = vmatmul.mubr.f32.gmra.mrb[40].mxu1 %v1994_v12 }
 0x2bb   : > { %16019 = vmatprep.mubr.msk.f32.mxu1 %vm1526_vm5, %v1997_v61 }
 0x2be   : > { %2241 = vmatmul.mubr.f32.gmra.mrb[42].mxu1 %v1996_v21 }
 0x2bf   : > { %16020 = vmatprep.mubr.msk.f32.mxu1 %vm1526_vm5, %v1999_v11 }
 0x2c2   : > { %2246 = vmatmul.mubr.f32.gmra.mrb[44].mxu1 %v1998_v22 }
 0x2c3   : > { %16021 = vmatprep.mubr.msk.f32.mxu1 %vm1526_vm5, %v2001_v26 }
 0x2c6   : > { %2251 = vmatmul.mubr.f32.gmra.mrb[46].mxu1 %v2000_v20 }
 0x2c7   : > { %16022 = vmatprep.mubr.msk.f32.mxu1 %vm1526_vm5, %v2003_v62 }
 0x2ca   : > { %2256 = vmatmul.mubr.f32.gmra.mrb[48].mxu1 %v2002_v54 }
 0x2cb   : > { %16023 = vmatprep.mubr.msk.f32.mxu1 %vm1526_vm5, %v2005_v29 }
 0x2ce   : > { %2261 = vmatmul.mubr.f32.gmra.mrb[50].mxu1 %v2004_v52  ;;  %v2343_v52 = vld [vmem:[%s21428_s25 + $0x10] sm:$0xff] }
 0x2cf   : > { %16024 = vmatprep.mubr.msk.f32.mxu1 %vm1526_vm5, %v2007_v38  ;;  %v2344_v38 = vld [vmem:[%s21428_s25 + $0x18] sm:$0xff] }
 0x2d2   : > { %2266 = vmatmul.mubr.f32.gmra.mrb[52].mxu1 %v2006_v63 }
 0x2d3   : > { %16025 = vmatprep.mubr.msk.f32.mxu1 %vm1526_vm5, %v2009_v3  ;;  %v19858_v3 = vpack.c.bf16 %v2344_v38, %v2343_v52 }
 0x2d6   : > { %2271 = vmatmul.mubr.f32.gmra.mrb[54].mxu1 %v2008_v32 }
 0x2d7   : > { %16026 = vmatprep.mubr.msk.f32.mxu1 %vm1526_vm5, %v2011_v31  ;;  %v2639_v31 = vld [vmem:[%s21428_s25 + $0x40] sm:$0xff] }
 0x2da   : > { %2276 = vmatmul.mubr.f32.gmra.mrb[56].mxu1 %v2010_v35  ;;  %v2640_v35 = vld [vmem:[%s21428_s25 + $0x48] sm:$0xff] }
 0x2db   : > { %16027 = vmatprep.mubr.msk.f32.mxu1 %vm1526_vm5, %v2013_v50 }
 0x2de   : > { %2281 = vmatmul.mubr.f32.gmra.mrb[58].mxu1 %v2012_v47  ;;  %v19862_v47 = vpack.c.bf16 %v2640_v35, %v2639_v31 }
 0x2df   : > { %16028 = vmatprep.mubr.msk.f32.mxu1 %vm1526_vm5, %v2015_v60 }
 0x2e2   : > { %2286 = vmatmul.mubr.f32.gmra.mrb[60].mxu1 %v2014_v13 }
 0x2e3   : > { %16029 = vmatprep.mubr.msk.f32.mxu1 %vm1526_vm5, %v2017_v58 }
 0x2e6   : > { %2291 = vmatmul.mubr.f32.gmra.mrb[62].mxu1 %v2016_v19 }
 0x2e7   : > { %16030 = vmatprep.mubr.msk.f32.mxu1 %vm1526_vm5, %v2019_v40 }
 0x2ea   : > { %2296 = vmatmul.mubr.f32.gmra.mrb[64].mxu1 %v2018_v24 }
 0x2eb   : > { %16031 = vmatprep.mubr.msk.f32.mxu1 %vm1526_vm5, %v2021_v30 }
 0x2ee   : > { %2301 = vmatmul.mubr.f32.gmra.mrb[66].mxu1 %v2020_v55 }
 0x2ef   : > { %16032 = vmatprep.mubr.msk.f32.mxu1 %vm1526_vm5, %v2023_v2 }
 0x2f2   : > { %2306 = vmatmul.mubr.f32.gmra.mrb[68].mxu1 %v2022_v42 }
 0x2f3   : > { %16033 = vmatprep.mubr.msk.f32.mxu1 %vm1526_vm5, %v2025_v1 }
 0x2f6   : > { %2311 = vmatmul.mubr.f32.gmra.mrb[70].mxu1 %v2024_v7 }
 0x2f7   : > { %16034 = vmatprep.mubr.msk.f32.mxu1 %vm1526_vm5, %v2027_v44 }
 0x2fa   : > { %2316 = vmatmul.mubr.f32.gmra.mrb[72].mxu1 %v2026_v5 }
 0x2fb   : > { %16035 = vmatprep.mubr.msk.f32.mxu1 %vm1526_vm5, %v2029_v28 }
 0x2fe   : > { %2321 = vmatmul.mubr.f32.gmra.mrb[74].mxu1 %v2028_v9  ;;  %v2641_v9 = vld [vmem:[%s21428_s25 + $0x50] sm:$0xff] }
 0x2ff   : > { %16036 = vmatprep.mubr.msk.f32.mxu1 %vm1526_vm5, %v2031_v56  ;;  %v2642_v56 = vld [vmem:[%s21428_s25 + $0x58] sm:$0xff] }
 0x302   : > { %2326 = vmatmul.mubr.f32.gmra.mrb[76].mxu1 %v2030_v0 }
 0x303   : > { %16037 = vmatprep.mubr.msk.f32.mxu1 %vm1526_vm5, %v2033_v18  ;;  %v19866_v18 = vpack.c.bf16 %v2642_v56, %v2641_v9 }
 0x306   : > { %2331 = vmatmul.mubr.f32.gmra.mrb[78].mxu1 %v2032_v34 }
 0x307   : > { %16038 = vmatprep.mubr.msk.f32.mxu1 %vm1526_vm5, %v2035_v46 }
 0x30a   : > { %2336 = vmatmul.mubr.f32.gmra.mrb[80].mxu1 %v2034_v37 }
 0x369   : > { %v2192_v48 = vpop.f32.mrb[22].mxu1 }
 0x36a   : > { %v2194_v49 = vpop.f32.mrb[23].mxu1 }
 0x36d   : > { %v22168_v15 = vpop.f32.mrb[24].mxu1 }
 0x36e   : > { %v2199_v45 = vpop.f32.mrb[25].mxu1 }
 0x371   : > { %v22170_v10 = vpop.f32.mrb[26].mxu1 }
 0x372   : > { %v2204_v4 = vpop.f32.mrb[27].mxu1 }
 0x375   : > { %v22172_v53 = vpop.f32.mrb[28].mxu1 }
 0x376   : > { %v2209_v6 = vpop.f32.mrb[29].mxu1 }
 0x379   : > { %v22174_v57 = vpop.f32.mrb[30].mxu1 }
 0x37a   : > { %v2214_v14 = vpop.f32.mrb[31].mxu1 }
 0x37d   : > { %v22176_v59 = vpop.f32.mrb[32].mxu1 }
 0x37e   : > { %v2219_v12 = vpop.f32.mrb[33].mxu1 }
 0x381   : > { %v22178_v61 = vpop.f32.mrb[34].mxu1 }
 0x382   : > { %v2224_v21 = vpop.f32.mrb[35].mxu1 }
 0x385   : > { %v22180_v11 = vpop.f32.mrb[36].mxu1 }
 0x386   : > { %v2229_v22 = vpop.f32.mrb[37].mxu1 }
 0x389   : > { %v22182_v26 = vpop.f32.mrb[38].mxu1 }
 0x38a   : > { %v2234_v20 = vpop.f32.mrb[39].mxu1 }
 0x38d   : > { %v22184_v62 = vpop.f32.mrb[40].mxu1 }
 0x38e   : > { %v2239_v54 = vpop.f32.mrb[41].mxu1 }
 0x391   : > { %v2242_v29 = vpop.f32.mrb[42].mxu1 }
 0x392   : > { %v2244_v63 = vpop.f32.mrb[43].mxu1  ;;  %18040 = vmatprep.mubr.msk.f32.mxu0 %vm1526_vm5, %v2242_v29 }
 0x395   : > { %v2247_v32 = vpop.f32.mrb[44].mxu1 }
 0x396   : > { %v2249_v50 = vpop.f32.mrb[45].mxu1  ;;  %18041 = vmatmul.mubr.msk.f32.vlgmr.msra.gmra.mrb[2].mxu0 %vm1526_vm5, %v2247_v32 }
 0x397   : > { %19857 = vmatpush3.bf16.msra.mxu0 %v19854_v36 }
 0x398   : > { %19859 = vmatprep.subr.bf16.mxu0 %v19858_v3 }
 0x399   : > { %v2252_v60 = vpop.f32.mrb[46].mxu1 }
 0x39a   : > { %v2254_v13 = vpop.f32.mrb[47].mxu1  ;;  %18043 = vmatprep.mubr.msk.f32.mxu0 %vm1526_vm5, %v2252_v60 }
 0x39b   : > { %19861 = vmatpush3.bf16.msra.mxu0 %v19858_v3 }
 0x39c   : > { %19863 = vmatprep.subr.bf16.mxu0 %v19862_v47 }
 0x39d   : > { %v2257_v58 = vpop.f32.mrb[48].mxu1 }
 0x39e   : > { %v2259_v19 = vpop.f32.mrb[49].mxu1  ;;  %18044 = vmatmul.mubr.msk.f32.gmra.mrb[4].mxu0 %vm1526_vm5, %v2257_v58 }
 0x3a1   : > { %v2262_v40 = vpop.f32.mrb[50].mxu1 }
 0x3a2   : > { %v2264_v24 = vpop.f32.mrb[51].mxu1  ;;  %18046 = vmatprep.mubr.msk.f32.mxu0 %vm1526_vm5, %v2262_v40 }
 0x3a5   : > { %v2267_v30 = vpop.f32.mrb[52].mxu1 }
 0x3a6   : > { %v2269_v55 = vpop.f32.mrb[53].mxu1  ;;  %18047 = vmatmul.mubr.msk.f32.gmra.mrb[6].mxu0 %vm1526_vm5, %v2267_v30 }
 0x3a9   : > { %v2272_v2 = vpop.f32.mrb[54].mxu1 }
 0x3aa   : > { %v2274_v42 = vpop.f32.mrb[55].mxu1  ;;  %18049 = vmatprep.mubr.msk.f32.mxu0 %vm1526_vm5, %v2272_v2 }
 0x3ad   : > { %v2277_v1 = vpop.f32.mrb[56].mxu1 }
 0x3ae   : > { %v2279_v7 = vpop.f32.mrb[57].mxu1  ;;  %18050 = vmatmul.mubr.msk.f32.gmra.mrb[8].mxu0 %vm1526_vm5, %v2277_v1 }
 0x3b1   : > { %v2282_v44 = vpop.f32.mrb[58].mxu1 }
 0x3b2   : > { %v2284_v5 = vpop.f32.mrb[59].mxu1  ;;  %18052 = vmatprep.mubr.msk.f32.mxu0 %vm1526_vm5, %v2282_v44 }
 0x3b5   : > { %v2287_v28 = vpop.f32.mrb[60].mxu1 }
 0x3b6   : > { %v2289_v0 = vpop.f32.mrb[61].mxu1  ;;  %18053 = vmatmul.mubr.msk.f32.gmra.mrb[10].mxu0 %vm1526_vm5, %v2287_v28 }
 0x3b7   : > { %18063 = vmatprep.mubr.msk.f32.mxu0 %vm1526_vm5, %v2192_v48 }
 0x3b9   : > { %v2292_v34 = vpop.f32.mrb[62].mxu1 }
 0x3ba   : > { %18064 = vmatmul.mubr.msk.f32.vlgmr.msra.gmra.mrb[2].mxu0 %vm1526_vm5, %v22168_v15  ;;  %v2294_v46 = vpop.f32.mrb[63].mxu1 }
 0x3bb   : > { %18066 = vmatprep.mubr.msk.f32.mxu0 %vm1526_vm5, %v22170_v10  ;;  %19865 = vmatpush3.bf16.msra.mxu0 %v19862_v47 }
 0x3bc   : > { %19867 = vmatprep.subr.bf16.mxu0 %v19866_v18 }
 0x3bd   : > { %v2297_v37 = vpop.f32.mrb[64].mxu1 }
 0x3be   : > { %18067 = vmatmul.mubr.msk.f32.gmra.mrb[4].mxu0 %vm1526_vm5, %v22172_v53  ;;  %v2299_v16 = vpop.f32.mrb[65].mxu1 }
 0x3bf   : > { %18069 = vmatprep.mubr.msk.f32.mxu0 %vm1526_vm5, %v22174_v57  ;;  %19869 = vmatpush3.bf16.msra.mxu0 %v19866_v18 }
 0x3c1   : > { %v2302_v39 = vpop.f32.mrb[66].mxu1 }
 0x3c2   : > { %18070 = vmatmul.mubr.msk.f32.gmra.mrb[6].mxu0 %vm1526_vm5, %v22176_v59  ;;  %v2304_v51 = vpop.f32.mrb[67].mxu1 }
 0x3c3   : > { %18072 = vmatprep.mubr.msk.f32.mxu0 %vm1526_vm5, %v22178_v61 }
 0x3c5   : > { %v2307_v41 = vpop.f32.mrb[68].mxu1 }
 0x3c6   : > { %18073 = vmatmul.mubr.msk.f32.gmra.mrb[8].mxu0 %vm1526_vm5, %v22180_v11  ;;  %v2309_v43 = vpop.f32.mrb[69].mxu1 }
 0x3c7   : > { %18075 = vmatprep.mubr.msk.f32.mxu0 %vm1526_vm5, %v22182_v26 }
 0x3c9   : > { %v2312_v8 = vpop.f32.mrb[70].mxu1 }
 0x3ca   : > { %18076 = vmatmul.mubr.msk.f32.gmra.mrb[10].mxu0 %vm1526_vm5, %v22184_v62  ;;  %v2314_v23 = vpop.f32.mrb[71].mxu1 }
 0x3cb   : > { %18086 = vmatprep.mubr.msk.f32.mxu0 %vm1526_vm5, %v2292_v34 }
 0x3cd   : > { %v2317_v17 = vpop.f32.mrb[72].mxu1 }
 0x3ce   : > { %18087 = vmatmul.mubr.msk.f32.vlgmr.msra.gmra.mrb[2].mxu0 %vm1526_vm5, %v2297_v37  ;;  %v2319_v36 = vpop.f32.mrb[73].mxu1 }
 0x3cf   : > { %18089 = vmatprep.mubr.msk.f32.mxu0 %vm1526_vm5, %v2302_v39 }
 0x3d1   : > { %v2322_v48 = vpop.f32.mrb[74].mxu1 }
 0x3d2   : > { %18090 = vmatmul.mubr.msk.f32.gmra.mrb[4].mxu0 %vm1526_vm5, %v2307_v41  ;;  %v2324_v49 = vpop.f32.mrb[75].mxu1 }
 0x3d3   : > { %18092 = vmatprep.mubr.msk.f32.mxu0 %vm1526_vm5, %v2312_v8 }
 0x3d5   : > { %v2327_v15 = vpop.f32.mrb[76].mxu1 }
 0x3d6   : > { %18093 = vmatmul.mubr.msk.f32.gmra.mrb[6].mxu0 %vm1526_vm5, %v2317_v17  ;;  %v2329_v45 = vpop.f32.mrb[77].mxu1 }
 0x3d7   : > { %18095 = vmatprep.mubr.msk.f32.mxu0 %vm1526_vm5, %v2322_v48 }
 0x3d9   : > { %v2332_v10 = vpop.f32.mrb[78].mxu1 }
 0x3da   : > { %18096 = vmatmul.mubr.msk.f32.gmra.mrb[8].mxu0 %vm1526_vm5, %v2327_v15  ;;  %v2334_v4 = vpop.f32.mrb[79].mxu1 }
 0x3db   : > { %18098 = vmatprep.mubr.msk.f32.mxu0 %vm1526_vm5, %v2332_v10 }
 0x3dd   : > { %v2337_v53 = vpop.f32.mrb[80].mxu1 }
 0x3de   : > { %18099 = vmatmul.mubr.msk.f32.gmra.mrb[10].mxu0 %vm1526_vm5, %v2337_v53  ;;  %v2339_v6 = vpop.f32.mrb[81].mxu1 }
 0x4a1   : > { %v22231_v57 = vpop.f32.mrb[2].mxu0 }
 0x4a2   : > { %v2809_v14 = vmul.f32 0.044715, %v22231_v57  ;;  %v2739_v59 = vpop.f32.mrb[3].mxu0 }
 0x4a3   : > { %v2808_v12 = vmul.f32 0.044715, %v2739_v59  ;;  %v2798_v53 = vmul.f32 0.5, %v2739_v59 }
 0x4a4   : > { %v2819_v61 = vmul.f32 %v22231_v57, %v2809_v14 }
 0x4a5   : > { %v2818_v21 = vmul.f32 %v2808_v12, %v2739_v59  ;;  %v22235_v11 = vpop.f32.mrb[4].mxu0  ;;  %v2799_v12 = vmul.f32 0.5, %v22231_v57 }
 0x4a6   : > { %v2829_v22 = vmul.f32 %v22231_v57, %v2819_v61  ;;  %v2811_v26 = vmul.f32 0.044715, %v22235_v11  ;;  %v22239_v20 = vpop.f32.mrb[5].mxu0 }
 0x4a7   : > { %v2828_v62 = vmul.f32 %v2818_v21, %v2739_v59  ;;  %v2810_v54 = vmul.f32 0.044715, %v22239_v20 }
 0x4a8   : > { %v2821_v29 = vmul.f32 %v22235_v11, %v2811_v26  ;;  %v2839_v52 = vadd.f32 %v22231_v57, %v2829_v22 }
 0x4a9   : > { %v2820_v38 = vmul.f32 %v2810_v54, %v22239_v20  ;;  %v22245_v63 = vpop.f32.mrb[6].mxu0  ;;  %v2838_v3 = vadd.f32 %v2828_v62, %v2739_v59 }
 0x4aa   : > { %v2831_v32 = vmul.f32 %v22235_v11, %v2821_v29  ;;  %v2813_v31 = vmul.f32 0.044715, %v22245_v63  ;;  %v22249_v35 = vpop.f32.mrb[7].mxu0  ;;  %v2849_v50 = vmul.f32 0.7978846, %v2839_v52  ;;  %v2800_v29 = vmul.f32 0.5, %v22239_v20 }
 0x4ab   : > { %v2830_v47 = vmul.f32 %v2820_v38, %v22239_v20  ;;  %v2812_v60 = vmul.f32 0.044715, %v22249_v35  ;;  %v2848_v13 = vmul.f32 0.7978846, %v2838_v3 }
 0x4ac   : > { %v2823_v58 = vmul.f32 %v22245_v63, %v2813_v31  ;;  %20799 = vtanh.f32 %v2849_v50  ;;  %v2841_v19 = vadd.f32 %v22235_v11, %v2831_v32  ;;  %v2801_v31 = vmul.f32 0.5, %v22235_v11 }
 0x4ad   : > { %v2822_v40 = vmul.f32 %v2812_v60, %v22249_v35  ;;  %v22256_v24 = vpop.f32.mrb[8].mxu0  ;;  %20801 = vtanh.f32 %v2848_v13  ;;  %v2840_v30 = vadd.f32 %v2830_v47, %v22239_v20  ;;  %v2802_v47 = vmul.f32 0.5, %v22249_v35 }
 0x4ae   : > { %v2833_v55 = vmul.f32 %v22245_v63, %v2823_v58  ;;  %v2815_v2 = vmul.f32 0.044715, %v22256_v24  ;;  %v22261_v42 = vpop.f32.mrb[9].mxu0  ;;  %v2851_v1 = vmul.f32 0.7978846, %v2841_v19 }
 0x4af   : > { %v2832_v7 = vmul.f32 %v2822_v40, %v22249_v35  ;;  %v2814_v44 = vmul.f32 0.044715, %v22261_v42  ;;  %v2850_v5 = vmul.f32 0.7978846, %v2840_v30  ;;  %v2803_v40 = vmul.f32 0.5, %v22245_v63 }
 0x4b0   : > { %v2825_v28 = vmul.f32 %v22256_v24, %v2815_v2  ;;  %20803 = vtanh.f32 %v2851_v1  ;;  %v2843_v9 = vadd.f32 %v22245_v63, %v2833_v55  ;;  %v2804_v11 = vmul.f32 0.5, %v22261_v42 }
 0x4b1   : > { %v2824_v56 = vmul.f32 %v2814_v44, %v22261_v42  ;;  %v22268_v0 = vpop.f32.mrb[10].mxu0  ;;  %20805 = vtanh.f32 %v2850_v5  ;;  %v2842_v18 = vadd.f32 %v2832_v7, %v22249_v35 }
 0x4b2   : > { %v2835_v34 = vmul.f32 %v22256_v24, %v2825_v28  ;;  %v2817_v46 = vmul.f32 0.044715, %v22268_v0  ;;  %v22273_v37 = vpop.f32.mrb[11].mxu0  ;;  %v2853_v16 = vmul.f32 0.7978846, %v2843_v9 }
 0x4b3   : > { %v2834_v39 = vmul.f32 %v2824_v56, %v22261_v42  ;;  %v2816_v51 = vmul.f32 0.044715, %v22273_v37  ;;  %v2852_v41 = vmul.f32 0.7978846, %v2842_v18  ;;  %v2805_v56 = vmul.f32 0.5, %v22256_v24 }
 0x4b4   : > { %v2827_v43 = vmul.f32 %v22268_v0, %v2817_v46  ;;  %20807 = vtanh.f32 %v2853_v16  ;;  %v2845_v8 = vadd.f32 %v22256_v24, %v2835_v34  ;;  %v2806_v34 = vmul.f32 0.5, %v22273_v37 }
 0x4b5   : > { %v2826_v23 = vmul.f32 %v2816_v51, %v22273_v37  ;;  %20809 = vtanh.f32 %v2852_v41  ;;  %v2844_v17 = vadd.f32 %v2834_v39, %v22261_v42  ;;  %v2807_v41 = vmul.f32 0.5, %v22268_v0 }
 0x4b6   : > { %v20800_v36 = vpop.eup %20799  ;;  %v2837_v48 = vmul.f32 %v22268_v0, %v2827_v43  ;;  %v2855_v49 = vmul.f32 0.7978846, %v2845_v8 }
 0x4b7   : > { %v20802_v15 = vpop.eup %20801  ;;  %v2836_v45 = vmul.f32 %v2826_v23, %v22273_v37  ;;  %v2869_v10 = vadd.f32 1.0, %v20800_v36  ;;  %v2854_v4 = vmul.f32 0.7978846, %v2844_v17 }
 0x4b8   : > { %v2868_v6 = vadd.f32 1.0, %v20802_v15  ;;  %20811 = vtanh.f32 %v2855_v49  ;;  %v2847_v14 = vadd.f32 %v22268_v0, %v2837_v48 }
 0x4b9   : > { %20813 = vtanh.f32 %v2854_v4  ;;  %v2846_v61 = vadd.f32 %v2836_v45, %v22273_v37  ;;  %v2879_v54 = vmul.f32 %v2869_v10, %v2799_v12 }
 0x4ba   : > { %v20804_v21 = vpop.eup %20803  ;;  %v2878_v22 = vmul.f32 %v2868_v6, %v2798_v53  ;;  %v2857_v26 = vmul.f32 0.7978846, %v2847_v14 }
 0x4bb   : > { %v20806_v62 = vpop.eup %20805  ;;  %v2856_v52 = vmul.f32 0.7978846, %v2846_v61  ;;  %v2871_v3 = vadd.f32 1.0, %v20804_v21  ;;  %v2893_v13 = vsel %vm1526_vm5, %v2879_v54, 0.0 }
 0x4bc   : > { %v2890_v38 = vsel %vm1526_vm5, %v2878_v22, 0.0  ;;  %v2870_v59 = vadd.f32 1.0, %v20806_v62  ;;  %20815 = vtanh.f32 %v2857_v26 }
 0x4bd   : > { %2891 = vadd.xlane.f32.xlu0 %v2890_v38  ;;  %20817 = vtanh.f32 %v2856_v52  ;;  %v2881_v58 = vmul.f32 %v2871_v3, %v2801_v31 }
 0x4be   : > { %v20808_v32 = vpop.eup %20807  ;;  %v2880_v57 = vmul.f32 %v2870_v59, %v2800_v29 }
 0x4bf   : > { %v20810_v50 = vpop.eup %20809  ;;  %v2873_v60 = vadd.f32 1.0, %v20808_v32  ;;  %v2899_v7 = vsel %vm1526_vm5, %v2881_v58, 0.0 }
 0x4c0   : > { %v2896_v20 = vsel %vm1526_vm5, %v2880_v57, 0.0  ;;  %v2872_v19 = vadd.f32 1.0, %v20810_v50 }
 0x4c1   : > { %2894 = vadd.xlane.f32.xlu0 %v2893_v13  ;;  %2897 = vadd.xlane.f32.xlu1 %v2896_v20  ;;  %v2883_v1 = vmul.f32 %v2873_v60, %v2803_v40 }
 0x4c2   : > { %v20812_v30 = vpop.eup %20811  ;;  %v2882_v55 = vmul.f32 %v2872_v19, %v2802_v47 }
 0x4c3   : > { %v20814_v2 = vpop.eup %20813  ;;  %v2875_v5 = vadd.f32 1.0, %v20812_v30  ;;  %v2905_v63 = vsel %vm1526_vm5, %v2883_v1, 0.0 }
 0x4c4   : > { %v2902_v35 = vsel %vm1526_vm5, %v2882_v55, 0.0  ;;  %v2874_v44 = vadd.f32 1.0, %v20814_v2 }
 0x4c5   : > { %2900 = vadd.xlane.f32.xlu1 %v2899_v7  ;;  %2903 = vadd.xlane.f32.xlu0 %v2902_v35  ;;  %v2885_v42 = vmul.f32 %v2875_v5, %v2805_v56 }
 0x4c6   : > { %v20816_v28 = vpop.eup %20815  ;;  %v2884_v9 = vmul.f32 %v2874_v44, %v2804_v11 }
 0x4c7   : > { %v20818_v18 = vpop.eup %20817  ;;  %v2877_v39 = vadd.f32 1.0, %v20816_v28  ;;  %v2911_v43 = vsel %vm1526_vm5, %v2885_v42, 0.0 }
 0x4c8   : > { %v2908_v46 = vsel %vm1526_vm5, %v2884_v9, 0.0  ;;  %v2876_v16 = vadd.f32 1.0, %v20818_v18 }
 0x4c9   : > { %2906 = vadd.xlane.f32.xlu1 %v2905_v63  ;;  %2909 = vadd.xlane.f32.xlu0 %v2908_v46  ;;  %v2887_v24 = vmul.f32 %v2877_v39, %v2807_v41  ;;  %v3054_v46 = vld [vmem:[%s21443_s8 + $0x8] sm:$0xff]  ;;  %v3056_v39 = vld [vmem:[%s21443_s8 + $0x18] sm:$0xff]  ;;  %v3296_v41 = vld [vmem:[%s21453_s19 + $0x20] sm:$0xff] }
 0x4ca   : > { %v2886_v51 = vmul.f32 %v2876_v16, %v2806_v34  ;;  %v3053_v34 = vld [vmem:[%s21443_s8] sm:$0xff] }
 0x4cb   : > { %v2917_v23 = vsel %vm1526_vm5, %v2887_v24, 0.0  ;;  %v19870_v16 = vpack.c.bf16 %v3054_v46, %v3053_v34 }
 0x4cc   : > { %v2914_v8 = vsel %vm1526_vm5, %v2886_v51, 0.0 }
 0x4cd   : > { %2912 = vadd.xlane.f32.xlu1 %v2911_v43  ;;  %2915 = vadd.xlane.f32.xlu0 %v2914_v8  ;;  %v3297_v43 = vld [vmem:[%s21453_s19 + $0x28] sm:$0xff] }
 0x4ce   : > { %19871 = vmatprep.subr.bf16.mxu0 %v19870_v16  ;;  %v22360_v8 = vpack.c.bf16 %v3297_v43, %v3296_v41 }
 0x4cf   : > { %19873 = vmatpush3.bf16.msra.mxu0 %v19870_v16 }
 0x4d1   : > { %2918 = vadd.xlane.f32.xlu1 %v2917_v23 }
 0x54a   : > { %v2892_v37 = vpop.xlane.xlu0 %2891 }
 0x54b   : > { %v2921_v17 = vmul.f32 0.03125, %v2892_v37 }
 0x54d   : > { %v22304_v36 = vsub.f32 %v2878_v22, %v2921_v17 }
 0x54e   : > { %v2895_v48 = vpop.xlane.xlu0 %2894  ;;  %v2898_v49 = vpop.xlane.xlu1 %2897 }
 0x54f   : > { %v2922_v15 = vmul.f32 0.03125, %v2895_v48  ;;  %v2923_v45 = vmul.f32 0.03125, %v2898_v49  ;;  %v2941_v0 = vmul.f32 %v22304_v36, %v22304_v36 }
 0x551   : > { %v22308_v10 = vsub.f32 %v2879_v54, %v2922_v15  ;;  %v22310_v4 = vsub.f32 %v2880_v57, %v2923_v45  ;;  %v2951_v53 = vsel %vm1526_vm5, %v2941_v0, 0.0 }
 0x552   : > { %v2901_v6 = vpop.xlane.xlu1 %2900  ;;  %v2904_v14 = vpop.xlane.xlu0 %2903  ;;  %2952 = vadd.xlane.f32.xlu0 %v2951_v53 }
 0x553   : > { %v2924_v12 = vmul.f32 0.03125, %v2901_v6  ;;  %v2925_v61 = vmul.f32 0.03125, %v2904_v14  ;;  %v2942_v21 = vmul.f32 %v22308_v10, %v22308_v10  ;;  %v2943_v22 = vmul.f32 %v22310_v4, %v22310_v4 }
 0x555   : > { %v22317_v26 = vsub.f32 %v2881_v58, %v2924_v12  ;;  %v22319_v62 = vsub.f32 %v2882_v55, %v2925_v61  ;;  %v2954_v54 = vsel %vm1526_vm5, %v2942_v21, 0.0  ;;  %v2957_v29 = vsel %vm1526_vm5, %v2943_v22, 0.0 }
 0x556   : > { %v2907_v52 = vpop.xlane.xlu1 %2906  ;;  %v2910_v38 = vpop.xlane.xlu0 %2909  ;;  %2955 = vadd.xlane.f32.xlu1 %v2954_v54  ;;  %2958 = vadd.xlane.f32.xlu0 %v2957_v29 }
 0x557   : > { %v2926_v59 = vmul.f32 0.03125, %v2907_v52  ;;  %v2927_v3 = vmul.f32 0.03125, %v2910_v38  ;;  %v2944_v32 = vmul.f32 %v22317_v26, %v22317_v26  ;;  %v2945_v57 = vmul.f32 %v22319_v62, %v22319_v62 }
 0x559   : > { %v22327_v31 = vsub.f32 %v2883_v1, %v2926_v59  ;;  %v22329_v50 = vsub.f32 %v2884_v9, %v2927_v3  ;;  %v2960_v47 = vsel %vm1526_vm5, %v2944_v32, 0.0  ;;  %v2963_v60 = vsel %vm1526_vm5, %v2945_v57, 0.0  ;;  %v22364_v59 = vld [vmem:[%s21433_s29] ss:$0 sm:$0xff] }
 0x55a   : > { %v2913_v13 = vpop.xlane.xlu1 %2912  ;;  %2961 = vadd.xlane.f32.xlu1 %v2960_v47  ;;  %2964 = vadd.xlane.f32.xlu0 %v2963_v60  ;;  %v2916_v20 = vpop.xlane.xlu0 %2915 }
 0x55b   : > { %v2928_v58 = vmul.f32 0.03125, %v2913_v13  ;;  %v2929_v19 = vmul.f32 0.03125, %v2916_v20  ;;  %v2946_v40 = vmul.f32 %v22327_v31, %v22327_v31  ;;  %v2947_v30 = vmul.f32 %v22329_v50, %v22329_v50 }
 0x55d   : > { %v22337_v55 = vsub.f32 %v2885_v42, %v2928_v58  ;;  %v22339_v2 = vsub.f32 %v2886_v51, %v2929_v19  ;;  %v2966_v1 = vsel %vm1526_vm5, %v2946_v40, 0.0  ;;  %v2969_v11 = vsel %vm1526_vm5, %v2947_v30, 0.0  ;;  %v3055_v42 = vld [vmem:[%s21443_s8 + $0x10] sm:$0xff]  ;;  %v16070_v58 = vld [vmem:[%s21438_s3] ss:$0 sm:$0xff] }
 0x55e   : > { %2967 = vadd.xlane.f32.xlu1 %v2966_v1  ;;  %v2919_v7 = vpop.xlane.xlu1 %2918  ;;  %2970 = vadd.xlane.f32.xlu0 %v2969_v11  ;;  %v19874_v51 = vpack.c.bf16 %v3056_v39, %v3055_v42 }
 0x55f   : > { %v2930_v35 = vmul.f32 0.03125, %v2919_v7  ;;  %v2948_v44 = vmul.f32 %v22337_v55, %v22337_v55  ;;  %v2949_v5 = vmul.f32 %v22339_v2, %v22339_v2 }
 0x560   : > { %19875 = vmatprep.subr.bf16.mxu0 %v19874_v51 }
 0x561   : > { %v22347_v28 = vsub.f32 %v2887_v24, %v2930_v35  ;;  %v2972_v9 = vsel %vm1526_vm5, %v2948_v44, 0.0  ;;  %v2975_v56 = vsel %vm1526_vm5, %v2949_v5, 0.0  ;;  %19877 = vmatpush3.bf16.msra.mxu0 %v19874_v51 }
 0x562   : > { %2973 = vadd.xlane.f32.xlu1 %v2972_v9  ;;  %2976 = vadd.xlane.f32.xlu0 %v2975_v56 }
 0x563   : > { %v2950_v18 = vmul.f32 %v22347_v28, %v22347_v28  ;;  %19879 = vmatprep.subr.bf16.mxu0 %v22360_v8 }
 0x565   : > { %v2978_v63 = vsel %vm1526_vm5, %v2950_v18, 0.0 }
 0x566   : > { %2979 = vadd.xlane.f32.xlu1 %v2978_v63 }
 0x5df   : > { %v2953_v24 = vpop.xlane.xlu0 %2952 }
 0x5e0   : > { %v2981_v23 = vmul.f32 0.03125, %v2953_v24 }
 0x5e2   : > { %v2991_v37 = vadd.f32 1e-05, %v2981_v23 }
 0x5e3   : > { %v2956_v17 = vpop.xlane.xlu1 %2955  ;;  %v2959_v48 = vpop.xlane.xlu0 %2958 }
 0x5e4   : > { %20819 = vrsqrt.f32 %v2991_v37  ;;  %v2982_v49 = vmul.f32 0.03125, %v2956_v17  ;;  %v2983_v15 = vmul.f32 0.03125, %v2959_v48 }
 0x5e6   : > { %v2992_v45 = vadd.f32 1e-05, %v2982_v49  ;;  %v2993_v0 = vadd.f32 1e-05, %v2983_v15 }
 0x5e7   : > { %v2962_v53 = vpop.xlane.xlu1 %2961  ;;  %v2965_v6 = vpop.xlane.xlu0 %2964 }
 0x5e8   : > { %20821 = vrsqrt.f32 %v2992_v45  ;;  %v2984_v14 = vmul.f32 0.03125, %v2962_v53  ;;  %v2985_v12 = vmul.f32 0.03125, %v2965_v6 }
 0x5e9   : > { %20823 = vrsqrt.f32 %v2993_v0 }
 0x5ea   : > { %v2994_v61 = vadd.f32 1e-05, %v2984_v14  ;;  %v2995_v21 = vadd.f32 1e-05, %v2985_v12  ;;  %v3298_v12 = vld [vmem:[%s21453_s19 + $0x30] sm:$0xff] }
 0x5eb   : > { %v2968_v22 = vpop.xlane.xlu1 %2967  ;;  %v2971_v54 = vpop.xlane.xlu0 %2970 }
 0x5ec   : > { %20825 = vrsqrt.f32 %v2994_v61  ;;  %v2986_v29 = vmul.f32 0.03125, %v2968_v22  ;;  %v2987_v52 = vmul.f32 0.03125, %v2971_v54  ;;  %v3299_v61 = vld [vmem:[%s21453_s19 + $0x38] sm:$0xff]  ;;  %v3282_v22 = vld [vmem:[%s21453_s19] sm:$0xff]  ;;  %v3283_v54 = vld [vmem:[%s21453_s19 + $0x8] sm:$0xff] }
 0x5ed   : > { %20827 = vrsqrt.f32 %v2995_v21  ;;  %v19882_v21 = vpack.c.bf16 %v3299_v61, %v3298_v12  ;;  %v3772_v12 = vld [vmem:[%s21453_s19 + $0x78] sm:$0xff] }
 0x5ee   : > { %v20820_v38 = vpop.eup %20819  ;;  %v2996_v3 = vadd.f32 1e-05, %v2986_v29  ;;  %v2997_v32 = vadd.f32 1e-05, %v2987_v52  ;;  %v19886_v29 = vpack.c.bf16 %v3283_v54, %v3282_v22  ;;  %v3938_v54 = vld [vmem:[%s21453_s19 + $0x80] sm:$0xff] }
 0x5ef   : > { %v2974_v57 = vpop.xlane.xlu1 %2973  ;;  %v2977_v47 = vpop.xlane.xlu0 %2976  ;;  %v3011_v60 = vmul.f32 %v20820_v38, %v22304_v36 }
 0x5f0   : > { %20829 = vrsqrt.f32 %v2996_v3  ;;  %v2988_v13 = vmul.f32 0.03125, %v2974_v57  ;;  %v2989_v20 = vmul.f32 0.03125, %v2977_v47 }
 0x5f1   : > { %20831 = vrsqrt.f32 %v2997_v32  ;;  %v3027_v19 = vmul.f32 %v22364_v59, %v3011_v60 }
 0x5f2   : > { %v20822_v40 = vpop.eup %20821  ;;  %v2998_v30 = vadd.f32 1e-05, %v2988_v13  ;;  %v2999_v1 = vadd.f32 1e-05, %v2989_v20  ;;  %v3284_v20 = vld [vmem:[%s21453_s19 + $0x10] sm:$0xff] }
 0x5f3   : > { %v20824_v11 = vpop.eup %20823  ;;  %v3012_v7 = vmul.f32 %v20822_v40, %v22308_v10  ;;  %v2980_v35 = vpop.xlane.xlu1 %2979  ;;  %v3043_v44 = vadd.f32 %v16070_v58, %v3027_v19 }
 0x5f4   : > { %20833 = vrsqrt.f32 %v2998_v30  ;;  %v2990_v5 = vmul.f32 0.03125, %v2980_v35  ;;  %v3013_v9 = vmul.f32 %v20824_v11, %v22310_v4  ;;  %v3219_v30 = vadd.s32 72, %v21806_v33 }
 0x5f5   : > { %v3028_v36 = vmul.f32 %v22364_v59, %v3012_v7  ;;  %20835 = vrsqrt.f32 %v2999_v1  ;;  %18109 = vmatprep.mubr.msk.f32.mxu0 %vm1526_vm5, %v3043_v44 }
 0x5f6   : > { %v20826_v56 = vpop.eup %20825  ;;  %v3000_v18 = vadd.f32 1e-05, %v2990_v5  ;;  %v3029_v63 = vmul.f32 %v22364_v59, %v3013_v9  ;;  %v3600_v5 = vld [vmem:[%s21453_s19 + $0x40] sm:$0xff]  ;;  %v3601_v9 = vld [vmem:[%s21453_s19 + $0x48] sm:$0xff]  ;;  %vm3229_vm6 = vcmp.lt.s32.totalorder %v3219_v30, 79  ;;  %v3940_v30 = vld [vmem:[%s21453_s19 + $0x90] sm:$0xff] }
 0x5f7   : > { %v20828_v34 = vpop.eup %20827  ;;  %v3044_v46 = vadd.f32 %v16070_v58, %v3028_v36  ;;  %v3014_v42 = vmul.f32 %v20826_v56, %v22317_v26 }
 0x5f8   : > { %20837 = vrsqrt.f32 %v3000_v18  ;;  %v3045_v10 = vadd.f32 %v16070_v58, %v3029_v63  ;;  %v3015_v16 = vmul.f32 %v20828_v34, %v22319_v62  ;;  %v19894_v34 = vpack.c.bf16 %v3601_v9, %v3600_v5  ;;  %v4107_v9 = vld [vmem:[%s21453_s19 + $0xa0] sm:$0xff] }
 0x5f9   : > { %18110 = vmatmul.mubr.msk.f32.vlgmr.msra.gmra.mrb[12].mxu0 %vm1526_vm5, %v3044_v46  ;;  %v3030_v4 = vmul.f32 %v22364_v59, %v3014_v42  ;;  %v16082_v42 = vsel %vm3229_vm6, 1.0, %v21392_v27 }
 0x5fa   : > { %v20830_v39 = vpop.eup %20829  ;;  %18112 = vmatprep.mubr.msk.f32.mxu0 %vm1526_vm5, %v3045_v10  ;;  %v3031_v51 = vmul.f32 %v22364_v59, %v3015_v16  ;;  %19881 = vmatpush3.bf16.msra.mxu0 %v22360_v8 }
 0x5fb   : > { %v20832_v41 = vpop.eup %20831  ;;  %v3046_v43 = vadd.f32 %v16070_v58, %v3030_v4  ;;  %v3016_v24 = vmul.f32 %v20830_v39, %v22327_v31  ;;  %19883 = vmatprep.subr.bf16.mxu0 %v19882_v21 }
 0x5fc   : > { %v3047_v26 = vadd.f32 %v16070_v58, %v3031_v51  ;;  %v3017_v23 = vmul.f32 %v20832_v41, %v22329_v50 }
 0x5fd   : > { %18113 = vmatmul.mubr.msk.f32.gmra.mrb[14].mxu0 %vm1526_vm5, %v3046_v43  ;;  %v3032_v62 = vmul.f32 %v22364_v59, %v3016_v24 }
 0x5fe   : > { %v20834_v37 = vpop.eup %20833  ;;  %18115 = vmatprep.mubr.msk.f32.mxu0 %vm1526_vm5, %v3047_v26  ;;  %v3033_v17 = vmul.f32 %v22364_v59, %v3017_v23  ;;  %19885 = vmatpush3.bf16.msra.mxu0 %v19882_v21  ;;  %v3272_v26 = vld [vmem:[#allocation2] sm:$0xff] }
 0x5ff   : > { %v20836_v48 = vpop.eup %20835  ;;  %v3048_v49 = vadd.f32 %v16070_v58, %v3032_v62  ;;  %v3018_v8 = vmul.f32 %v20834_v37, %v22337_v55  ;;  %19887 = vmatprep.subr.bf16.mxu0 %v19886_v29  ;;  %v3602_v62 = vld [vmem:[%s21453_s19 + $0x50] sm:$0xff]  ;;  %v3603_v37 = vld [vmem:[%s21453_s19 + $0x58] sm:$0xff] }
 0x600   : > { %v3049_v15 = vadd.f32 %v16070_v58, %v3033_v17  ;;  %v3019_v31 = vmul.f32 %v20836_v48, %v22339_v2  ;;  %v19898_v17 = vpack.c.bf16 %v3603_v37, %v3602_v62 }
 0x601   : > { %18116 = vmatmul.mubr.msk.f32.gmra.mrb[16].mxu0 %vm1526_vm5, %v3048_v49  ;;  %v3034_v50 = vmul.f32 %v22364_v59, %v3018_v8  ;;  %v3769_v49 = vld [vmem:[%s21453_s19 + $0x60] sm:$0xff]  ;;  %v3770_v8 = vld [vmem:[%s21453_s19 + $0x68] sm:$0xff] }
 0x602   : > { %v20838_v45 = vpop.eup %20837  ;;  %18118 = vmatprep.mubr.msk.f32.mxu0 %vm1526_vm5, %v3049_v15  ;;  %v3035_v0 = vmul.f32 %v22364_v59, %v3019_v31  ;;  %v19902_v31 = vpack.c.bf16 %v3770_v8, %v3769_v49  ;;  %v4109_v49 = vld [vmem:[%s21453_s19 + $0xb0] sm:$0xff]  ;;  %v4110_v8 = vld [vmem:[%s21453_s19 + $0xb8] sm:$0xff] }
 0x603   : > { %v3050_v53 = vadd.f32 %v16070_v58, %v3034_v50  ;;  %v3020_v6 = vmul.f32 %v20838_v45, %v22347_v28  ;;  %v16071_v28 = vld [vmem:[%s21448_s14] ss:$0 sm:$0xff] }
 0x604   : > { %v3051_v55 = vadd.f32 %v16070_v58, %v3035_v0 }
 0x605   : > { %18119 = vmatmul.mubr.msk.f32.gmra.mrb[18].mxu0 %vm1526_vm5, %v3050_v53  ;;  %v3036_v2 = vmul.f32 %v22364_v59, %v3020_v6 }
 0x606   : > { %18121 = vmatprep.mubr.msk.f32.mxu0 %vm1526_vm5, %v3051_v55 }
 0x607   : > { %v3052_v14 = vadd.f32 %v16070_v58, %v3036_v2  ;;  %v3285_v58 = vld [vmem:[%s21453_s19 + $0x18] sm:$0xff] }
 0x608   : > { %v19890_v35 = vpack.c.bf16 %v3285_v58, %v3284_v20 }
 0x609   : > { %18122 = vmatmul.mubr.msk.f32.gmra.mrb[20].mxu0 %vm1526_vm5, %v3052_v14  ;;  %v3771_v14 = vld [vmem:[%s21453_s19 + $0x70] sm:$0xff] }
 0x60a   : > { %v19906_v21 = vpack.c.bf16 %v3772_v12, %v3771_v14  ;;  %v19922_v14 = vpack.c.bf16 %v4110_v8, %v4109_v49  ;;  %v4279_v49 = vld [vmem:[%s21453_s19 + $0xd8] sm:$0xff] }
 0x6cc   : > { %v18111_v52 = vpop.f32.mrb[12].mxu0 }
 0x6cd   : > { %v22403_v38 = vadd.f32 %v18111_v52, %v16071_v28  ;;  %v3160_v59 = vpop.f32.mrb[13].mxu0 }
 0x6ce   : > { %v22405_v3 = vadd.f32 %v16071_v28, %v3160_v59 }
 0x6cf   : > { %25821 = vst [vmem:[#allocation29_spill] sm:$0xff] %v22403_v38  ;;  %3262 = vst.msk [vmem:[#allocation2 + $0x10] sm:$0xff] %vm1526_vm5, %v22403_v38 }
 0x6d0   : > { %25822 = vst [vmem:[#allocation30_spill] sm:$0xff] %v22405_v3  ;;  %3261 = vst.msk [vmem:[#allocation2 + $0x8] sm:$0xff] %vm1526_vm5, %v22405_v3  ;;  %v18114_v32 = vpop.f32.mrb[14].mxu0 }
 0x6d1   : > { %v22411_v57 = vadd.f32 %v18114_v32, %v16071_v28  ;;  %v3170_v47 = vpop.f32.mrb[15].mxu0 }
 0x6d2   : > { %v22413_v60 = vadd.f32 %v16071_v28, %v3170_v47 }
 0x6d3   : > { %25823 = vst [vmem:[#allocation31_spill] sm:$0xff] %v22411_v57  ;;  %3264 = vst.msk [vmem:[#allocation2 + $0x20] sm:$0xff] %vm1526_vm5, %v22411_v57  ;;  %v4615_v57 = vld [vmem:[%s21453_s19 + $0x108] sm:$0xff] }
 0x6d4   : > { %25824 = vst [vmem:[#allocation32_spill] sm:$0xff] %v22413_v60  ;;  %3263 = vst.msk [vmem:[#allocation2 + $0x18] sm:$0xff] %vm1526_vm5, %v22413_v60  ;;  %v18117_v13 = vpop.f32.mrb[16].mxu0  ;;  %v4614_v60 = vld [vmem:[%s21453_s19 + $0x100] sm:$0xff] }
 0x6d5   : > { %v22421_v19 = vadd.f32 %v18117_v13, %v16071_v28  ;;  %v3180_v40 = vpop.f32.mrb[17].mxu0  ;;  %v19942_v38 = vpack.c.bf16 %v4615_v57, %v4614_v60 }
 0x6d6   : > { %v22424_v1 = vadd.f32 %v16071_v28, %v3180_v40  ;;  %v22495_v15 = vld [vmem:[#allocation2 + $0x10] sm:$0xff] }
 0x6d7   : > { %25825 = vst [vmem:[#allocation33_spill] sm:$0xff] %v22421_v19  ;;  %3266 = vst.msk [vmem:[#allocation2 + $0x30] sm:$0xff] %vm1526_vm5, %v22421_v19  ;;  %v3286_v11 = vld [vmem:[#allocation2 + $0x1] sm:$0xff]  ;;  %v22428_v7 = vld [vmem:[#allocation2 + $0x9] sm:$0xff] }
 0x6d8   : > { %25826 = vst [vmem:[#allocation34_spill] sm:$0xff] %v22424_v1  ;;  %3265 = vst.msk [vmem:[#allocation2 + $0x28] sm:$0xff] %vm1526_vm5, %v22424_v1  ;;  %v18120_v44 = vpop.f32.mrb[18].mxu0  ;;  %18132 = vmatprep.mubr.msk.f32.mxu0 %vm1526_vm5, %v3286_v11  ;;  %v22489_v48 = vld [vmem:[#allocation2 + $0x8] sm:$0xff]  ;;  %v3941_v11 = vld [vmem:[%s21453_s19 + $0x98] sm:$0xff] }
 0x6d9   : > { %v22435_v36 = vadd.f32 %v18120_v44, %v16071_v28  ;;  %v3190_v33 = vpop.f32.mrb[19].mxu0  ;;  %18133 = vmatmul.mubr.msk.f32.vlgmr.msra.gmra.mrb[22].mxu0 %vm1526_vm5, %v22428_v7  ;;  %v3590_v61 = vld [vmem:[#allocation2 + $0x2] sm:$0xff]  ;;  %v22530_v22 = vld [vmem:[#allocation2 + $0xa] sm:$0xff]  ;;  %v19914_v44 = vpack.c.bf16 %v3941_v11, %v3940_v30 }
 0x6da   : > { %v22439_v56 = vadd.f32 %v16071_v28, %v3190_v33  ;;  %19889 = vmatpush3.bf16.msra.mxu0 %v19886_v29  ;;  %v22503_v45 = vld [vmem:[#allocation2 + $0x20] sm:$0xff]  ;;  %v3939_v29 = vld [vmem:[%s21453_s19 + $0x88] sm:$0xff] }
 0x6db   : > { %25827 = vst [vmem:[#allocation35_spill] sm:$0xff] %v22435_v36  ;;  %3268 = vst.msk [vmem:[#allocation2 + $0x40] sm:$0xff] %vm1526_vm5, %v22435_v36  ;;  %v22443_v18 = vld [vmem:[#allocation2 + $0x11] sm:$0xff]  ;;  %v22445_v63 = vld [vmem:[#allocation2 + $0x19] sm:$0xff]  ;;  %19891 = vmatprep.subr.bf16.mxu0 %v19890_v35  ;;  %v19910_v52 = vpack.c.bf16 %v3939_v29, %v3938_v54 }
 0x6dc   : > { %25828 = vst [vmem:[#allocation36_spill] sm:$0xff] %v22439_v56  ;;  %3267 = vst.msk [vmem:[#allocation2 + $0x38] sm:$0xff] %vm1526_vm5, %v22439_v56  ;;  %v18123_v46 = vpop.f32.mrb[20].mxu0  ;;  %18135 = vmatprep.mubr.msk.f32.mxu0 %vm1526_vm5, %v22443_v18  ;;  %v22499_v50 = vld [vmem:[#allocation2 + $0x18] sm:$0xff]  ;;  %v22571_v5 = vld [vmem:[#allocation2 + $0xb] sm:$0xff] }
 0x6dd   : > { %v22452_v10 = vadd.f32 %v18123_v46, %v16071_v28  ;;  %v3200_v16 = vpop.f32.mrb[21].mxu0  ;;  %18136 = vmatmul.mubr.msk.f32.gmra.mrb[24].mxu0 %vm1526_vm5, %v22445_v63  ;;  %v22540_v59 = vld [vmem:[#allocation2 + $0x1a] sm:$0xff]  ;;  %v4108_v33 = vld [vmem:[%s21453_s19 + $0xa8] sm:$0xff] }
 0x6de   : > { %v22456_v4 = vadd.f32 %v16071_v28, %v3200_v16  ;;  %19893 = vmatpush3.bf16.msra.mxu0 %v19890_v35  ;;  %v22511_v53 = vld [vmem:[#allocation2 + $0x30] sm:$0xff]  ;;  %v3759_v35 = vld [vmem:[#allocation2 + $0x3] sm:$0xff]  ;;  %v19918_v46 = vpack.c.bf16 %v4108_v33, %v4107_v9  ;;  %v4448_v56 = vld [vmem:[%s21453_s19 + $0xf8] sm:$0xff] }
 0x6df   : > { %25829 = vst [vmem:[#allocation37_spill] sm:$0xff] %v22452_v10  ;;  %v3260_v39 = vmul.f32 %v16082_v42, %v22452_v10  ;;  %v22459_v51 = vld [vmem:[#allocation2 + $0x21] sm:$0xff]  ;;  %v22461_v41 = vld [vmem:[#allocation2 + $0x29] sm:$0xff]  ;;  %19895 = vmatprep.subr.bf16.mxu0 %v19894_v34  ;;  %v22536_v28 = vld [vmem:[#allocation2 + $0x12] sm:$0xff] }
 0x6e0   : > { %25830 = vst [vmem:[#allocation38_spill] sm:$0xff] %v22456_v4  ;;  %3269 = vst.msk [vmem:[#allocation2 + $0x48] sm:$0xff] %vm1526_vm5, %v22456_v4  ;;  %18138 = vmatprep.mubr.msk.f32.mxu0 %vm1526_vm5, %v22459_v51  ;;  %v22507_v0 = vld [vmem:[#allocation2 + $0x28] sm:$0xff]  ;;  %v22581_v42 = vld [vmem:[#allocation2 + $0x1b] sm:$0xff] }
 0x6e1   : > { %3270 = vst.msk [vmem:[#allocation2 + $0x50] sm:$0xff] %vm1526_vm5, %v3260_v39  ;;  %18139 = vmatmul.mubr.msk.f32.gmra.mrb[26].mxu0 %vm1526_vm5, %v22461_v41  ;;  %v22544_v32 = vld [vmem:[#allocation2 + $0x22] sm:$0xff]  ;;  %v22548_v47 = vld [vmem:[#allocation2 + $0x2a] sm:$0xff]  ;;  %v22618_v54 = vld [vmem:[#allocation2 + $0x14] sm:$0xff] }
 0x6e2   : > { %v22519_v55 = vld [vmem:[#allocation2 + $0x40] sm:$0xff]  ;;  %v22589_v39 = vld [vmem:[#allocation2 + $0x2b] sm:$0xff]  ;;  %v22659_v25 = vld [vmem:[#allocation2 + $0x15] sm:$0xff] }
 0x6e3   : > { %v22470_v27 = vld [vmem:[#allocation2 + $0x31] sm:$0xff]  ;;  %v22472_v43 = vld [vmem:[#allocation2 + $0x39] sm:$0xff]  ;;  %v22585_v16 = vld [vmem:[#allocation2 + $0x23] sm:$0xff] }
 0x6e4   : > { %18141 = vmatprep.mubr.msk.f32.mxu0 %vm1526_vm5, %v22470_v27  ;;  %v22515_v6 = vld [vmem:[#allocation2 + $0x38] sm:$0xff]  ;;  %v22612_v12 = vld [vmem:[#allocation2 + $0xc] sm:$0xff]  ;;  %v22626_v30 = vld [vmem:[#allocation2 + $0x24] sm:$0xff] }
 0x6e5   : > { %18142 = vmatmul.mubr.msk.f32.gmra.mrb[28].mxu0 %vm1526_vm5, %v22472_v43  ;;  %v22552_v13 = vld [vmem:[#allocation2 + $0x32] sm:$0xff]  ;;  %v22556_v20 = vld [vmem:[#allocation2 + $0x3a] sm:$0xff]  ;;  %v4097_v8 = vld [vmem:[#allocation2 + $0x5] sm:$0xff] }
 0x6e6   : > { %v22597_v62 = vld [vmem:[#allocation2 + $0x3b] sm:$0xff]  ;;  %v22630_v11 = vld [vmem:[#allocation2 + $0x2c] sm:$0xff] }
 0x6e7   : > { %v22478_v24 = vld [vmem:[#allocation2 + $0x41] sm:$0xff]  ;;  %v22694_v19 = vld [vmem:[#allocation2 + $0xe] sm:$0xff]  ;;  %v22700_v3 = vld [vmem:[#allocation2 + $0x16] sm:$0xff] }
 0x6e8   : > { %18144 = vmatprep.mubr.msk.f32.mxu0 %vm1526_vm5, %v22478_v24  ;;  %v22482_v23 = vld [vmem:[#allocation2 + $0x49] sm:$0xff]  ;;  %v22663_v10 = vld [vmem:[#allocation2 + $0x1d] sm:$0xff]  ;;  %25832 = vst [vmem:[#allocation40_spill] sm:$0xff] %v22694_v19  ;;  %25833 = vst [vmem:[#allocation41_spill] sm:$0xff] %v22700_v3 }
 0x6e9   : > { %18145 = vmatmul.mubr.msk.f32.gmra.mrb[30].mxu0 %vm1526_vm5, %v22482_v23  ;;  %v22523_v2 = vld [vmem:[#allocation2 + $0x48] sm:$0xff]  ;;  %v22716_v57 = vld [vmem:[#allocation2 + $0x36] sm:$0xff]  ;;  %v22720_v60 = vld [vmem:[#allocation2 + $0x3e] sm:$0xff] }
 0x6ea   : > { %18155 = vmatprep.mubr.msk.f32.mxu0 %vm1526_vm5, %v3272_v26  ;;  %v22560_v58 = vld [vmem:[#allocation2 + $0x42] sm:$0xff]  ;;  %v22564_v40 = vld [vmem:[#allocation2 + $0x4a] sm:$0xff]  ;;  %v22593_v26 = vld [vmem:[#allocation2 + $0x33] sm:$0xff]  ;;  %25837 = vst [vmem:[#allocation45_spill] sm:$0xff] %v22716_v57 }
 0x6eb   : > { %v22601_v37 = vld [vmem:[#allocation2 + $0x43] sm:$0xff]  ;;  %v22646_v33 = vld [vmem:[#allocation2 + $0x4c] sm:$0xff]  ;;  %25838 = vst [vmem:[#allocation46_spill] sm:$0xff] %v22720_v60 }
 0x6ec   : > { %v22642_v9 = vld [vmem:[#allocation2 + $0x44] sm:$0xff] }
 0x6ed   : > { %18156 = vmatmul.mubr.msk.f32.vlgmr.msra.gmra.mrb[22].mxu0 %vm1526_vm5, %v22489_v48  ;;  %v4266_v36 = vld [vmem:[#allocation2 + $0x6] sm:$0xff] }
 0x6ee   : > { %18158 = vmatprep.mubr.msk.f32.mxu0 %vm1526_vm5, %v22495_v15  ;;  %19897 = vmatpush3.bf16.msra.mxu0 %v19894_v34  ;;  %v22577_v34 = vld [vmem:[#allocation2 + $0x13] sm:$0xff] }
 0x6ef   : > { %19899 = vmatprep.subr.bf16.mxu0 %v19898_v17 }
 0x6f1   : > { %18159 = vmatmul.mubr.msk.f32.gmra.mrb[24].mxu0 %vm1526_vm5, %v22499_v50 }
 0x6f2   : > { %18161 = vmatprep.mubr.msk.f32.mxu0 %vm1526_vm5, %v22503_v45  ;;  %19901 = vmatpush3.bf16.msra.mxu0 %v19898_v17  ;;  %v22605_v17 = vld [vmem:[#allocation2 + $0x4b] sm:$0xff] }
 0x6f3   : > { %19903 = vmatprep.subr.bf16.mxu0 %v19902_v31 }
 0x6f5   : > { %18162 = vmatmul.mubr.msk.f32.gmra.mrb[26].mxu0 %vm1526_vm5, %v22507_v0 }
 0x6f6   : > { %18164 = vmatprep.mubr.msk.f32.mxu0 %vm1526_vm5, %v22511_v53 }
 0x6f9   : > { %18165 = vmatmul.mubr.msk.f32.gmra.mrb[28].mxu0 %vm1526_vm5, %v22515_v6 }
 0x6fa   : > { %18167 = vmatprep.mubr.msk.f32.mxu0 %vm1526_vm5, %v22519_v55 }
 0x6fd   : > { %18168 = vmatmul.mubr.msk.f32.gmra.mrb[30].mxu0 %vm1526_vm5, %v22523_v2 }
 0x6fe   : > { %18178 = vmatprep.mubr.msk.f32.mxu0 %vm1526_vm5, %v3590_v61  ;;  %v4276_v61 = vld [vmem:[%s21453_s19 + $0xc0] sm:$0xff] }
 0x701   : > { %18179 = vmatmul.mubr.msk.f32.vlgmr.msra.gmra.mrb[22].mxu0 %vm1526_vm5, %v22530_v22 }
 0x702   : > { %18181 = vmatprep.mubr.msk.f32.mxu0 %vm1526_vm5, %v22536_v28  ;;  %19905 = vmatpush3.bf16.msra.mxu0 %v19902_v31  ;;  %v3928_v31 = vld [vmem:[#allocation2 + $0x4] sm:$0xff] }
 0x703   : > { %19907 = vmatprep.subr.bf16.mxu0 %v19906_v21 }
 0x705   : > { %18182 = vmatmul.mubr.msk.f32.gmra.mrb[24].mxu0 %vm1526_vm5, %v22540_v59 }
 0x706   : > { %18184 = vmatprep.mubr.msk.f32.mxu0 %vm1526_vm5, %v22544_v32  ;;  %19909 = vmatpush3.bf16.msra.mxu0 %v19906_v21  ;;  %v4277_v21 = vld [vmem:[%s21453_s19 + $0xc8] sm:$0xff] }
 0x707   : > { %19911 = vmatprep.subr.bf16.mxu0 %v19910_v52  ;;  %v19926_v29 = vpack.c.bf16 %v4277_v21, %v4276_v61  ;;  %v4445_v61 = vld [vmem:[%s21453_s19 + $0xe0] sm:$0xff]  ;;  %v4446_v21 = vld [vmem:[%s21453_s19 + $0xe8] sm:$0xff] }
 0x708   : > { %v19934_v4 = vpack.c.bf16 %v4446_v21, %v4445_v61  ;;  %v22683_v61 = vld [vmem:[#allocation2 + $0x45] sm:$0xff]  ;;  %v4447_v21 = vld [vmem:[%s21453_s19 + $0xf0] sm:$0xff] }
 0x709   : > { %18185 = vmatmul.mubr.msk.f32.gmra.mrb[26].mxu0 %vm1526_vm5, %v22548_v47  ;;  %v19938_v1 = vpack.c.bf16 %v4448_v56, %v4447_v21  ;;  %v22712_v56 = vld [vmem:[#allocation2 + $0x2e] sm:$0xff] }
 0x70a   : > { %18187 = vmatprep.mubr.msk.f32.mxu0 %vm1526_vm5, %v22552_v13  ;;  %25836 = vst [vmem:[#allocation44_spill] sm:$0xff] %v22712_v56  ;;  %v4616_v21 = vld [vmem:[%s21453_s19 + $0x110] sm:$0xff] }
 0x70d   : > { %18188 = vmatmul.mubr.msk.f32.gmra.mrb[28].mxu0 %vm1526_vm5, %v22556_v20 }
 0x70e   : > { %18190 = vmatprep.mubr.msk.f32.mxu0 %vm1526_vm5, %v22560_v58 }
 0x711   : > { %18191 = vmatmul.mubr.msk.f32.gmra.mrb[30].mxu0 %vm1526_vm5, %v22564_v40 }
 0x712   : > { %18201 = vmatprep.mubr.msk.f32.mxu0 %vm1526_vm5, %v3759_v35  ;;  %v22634_v35 = vld [vmem:[#allocation2 + $0x34] sm:$0xff] }
 0x715   : > { %18202 = vmatmul.mubr.msk.f32.vlgmr.msra.gmra.mrb[22].mxu0 %vm1526_vm5, %v22571_v5 }
 0x716   : > { %18204 = vmatprep.mubr.msk.f32.mxu0 %vm1526_vm5, %v22577_v34  ;;  %19913 = vmatpush3.bf16.msra.mxu0 %v19910_v52  ;;  %v22622_v52 = vld [vmem:[#allocation2 + $0x1c] sm:$0xff] }
 0x717   : > { %19915 = vmatprep.subr.bf16.mxu0 %v19914_v44 }
 0x719   : > { %18205 = vmatmul.mubr.msk.f32.gmra.mrb[24].mxu0 %vm1526_vm5, %v22581_v42 }
 0x71a   : > { %18207 = vmatprep.mubr.msk.f32.mxu0 %vm1526_vm5, %v22585_v16  ;;  %19917 = vmatpush3.bf16.msra.mxu0 %v19914_v44  ;;  %v22638_v44 = vld [vmem:[#allocation2 + $0x3c] sm:$0xff] }
 0x71b   : > { %19919 = vmatprep.subr.bf16.mxu0 %v19918_v46 }
 0x71d   : > { %18208 = vmatmul.mubr.msk.f32.gmra.mrb[26].mxu0 %vm1526_vm5, %v22589_v39 }
 0x71e   : > { %18210 = vmatprep.mubr.msk.f32.mxu0 %vm1526_vm5, %v22593_v26 }
 0x721   : > { %18211 = vmatmul.mubr.msk.f32.gmra.mrb[28].mxu0 %vm1526_vm5, %v22597_v62 }
 0x722   : > { %18213 = vmatprep.mubr.msk.f32.mxu0 %vm1526_vm5, %v22601_v37 }
 0x725   : > { %18214 = vmatmul.mubr.msk.f32.gmra.mrb[30].mxu0 %vm1526_vm5, %v22605_v17 }
 0x726   : > { %18224 = vmatprep.mubr.msk.f32.mxu0 %vm1526_vm5, %v3928_v31 }
 0x729   : > { %18225 = vmatmul.mubr.msk.f32.vlgmr.msra.gmra.mrb[22].mxu0 %vm1526_vm5, %v22612_v12 }
 0x72a   : > { %18227 = vmatprep.mubr.msk.f32.mxu0 %vm1526_vm5, %v22618_v54  ;;  %19921 = vmatpush3.bf16.msra.mxu0 %v19918_v46  ;;  %v4278_v46 = vld [vmem:[%s21453_s19 + $0xd0] sm:$0xff] }
 0x72b   : > { %19923 = vmatprep.subr.bf16.mxu0 %v19922_v14  ;;  %v19930_v31 = vpack.c.bf16 %v4279_v49, %v4278_v46  ;;  %v22667_v46 = vld [vmem:[#allocation2 + $0x25] sm:$0xff]  ;;  %v22671_v49 = vld [vmem:[#allocation2 + $0x2d] sm:$0xff] }
 0x72d   : > { %18228 = vmatmul.mubr.msk.f32.gmra.mrb[24].mxu0 %vm1526_vm5, %v22622_v52 }
 0x72e   : > { %18230 = vmatprep.mubr.msk.f32.mxu0 %vm1526_vm5, %v22626_v30  ;;  %19925 = vmatpush3.bf16.msra.mxu0 %v19922_v14  ;;  %v22653_v14 = vld [vmem:[#allocation2 + $0xd] sm:$0xff] }
 0x72f   : > { %19927 = vmatprep.subr.bf16.mxu0 %v19926_v29 }
 0x731   : > { %18231 = vmatmul.mubr.msk.f32.gmra.mrb[26].mxu0 %vm1526_vm5, %v22630_v11 }
 0x732   : > { %18233 = vmatprep.mubr.msk.f32.mxu0 %vm1526_vm5, %v22634_v35 }
 0x735   : > { %18234 = vmatmul.mubr.msk.f32.gmra.mrb[28].mxu0 %vm1526_vm5, %v22638_v44 }
 0x736   : > { %18236 = vmatprep.mubr.msk.f32.mxu0 %vm1526_vm5, %v22642_v9 }
 0x739   : > { %18237 = vmatmul.mubr.msk.f32.gmra.mrb[30].mxu0 %vm1526_vm5, %v22646_v33 }
 0x73a   : > { %18247 = vmatprep.mubr.msk.f32.mxu0 %vm1526_vm5, %v4097_v8  ;;  %v22679_v8 = vld [vmem:[#allocation2 + $0x3d] sm:$0xff] }
 0x73d   : > { %18248 = vmatmul.mubr.msk.f32.vlgmr.msra.gmra.mrb[22].mxu0 %vm1526_vm5, %v22653_v14 }
 0x73e   : > { %18250 = vmatprep.mubr.msk.f32.mxu0 %vm1526_vm5, %v22659_v25  ;;  %19929 = vmatpush3.bf16.msra.mxu0 %v19926_v29  ;;  %v22675_v29 = vld [vmem:[#allocation2 + $0x35] sm:$0xff] }
 0x73f   : > { %19931 = vmatprep.subr.bf16.mxu0 %v19930_v31 }
 0x741   : > { %18251 = vmatmul.mubr.msk.f32.gmra.mrb[24].mxu0 %vm1526_vm5, %v22663_v10 }
 0x742   : > { %18253 = vmatprep.mubr.msk.f32.mxu0 %vm1526_vm5, %v22667_v46  ;;  %19933 = vmatpush3.bf16.msra.mxu0 %v19930_v31  ;;  %v22687_v31 = vld [vmem:[#allocation2 + $0x4d] sm:$0xff] }
 0x743   : > { %19935 = vmatprep.subr.bf16.mxu0 %v19934_v4  ;;  %25831 = vst [vmem:[#allocation39_spill] sm:$0xff] %v22687_v31 }
 0x745   : > { %18254 = vmatmul.mubr.msk.f32.gmra.mrb[26].mxu0 %vm1526_vm5, %v22671_v49 }
 0x746   : > { %18256 = vmatprep.mubr.msk.f32.mxu0 %vm1526_vm5, %v22675_v29 }
 0x749   : > { %18257 = vmatmul.mubr.msk.f32.gmra.mrb[28].mxu0 %vm1526_vm5, %v22679_v8 }
 0x74a   : > { %18259 = vmatprep.mubr.msk.f32.mxu0 %vm1526_vm5, %v22683_v61 }
 0x74d   : > { %18260 = vmatmul.mubr.msk.f32.gmra.mrb[30].mxu0 %vm1526_vm5, %v22687_v31  ;;  %v22704_v31 = vld [vmem:[#allocation2 + $0x1e] sm:$0xff] }
 0x74e   : > { %18270 = vmatprep.mubr.msk.f32.mxu0 %vm1526_vm5, %v4266_v36  ;;  %25834 = vst [vmem:[#allocation42_spill] sm:$0xff] %v22704_v31  ;;  %v22708_v36 = vld [vmem:[#allocation2 + $0x26] sm:$0xff] }
 0x74f   : > { %25835 = vst [vmem:[#allocation43_spill] sm:$0xff] %v22708_v36 }
 0x751   : > { %18271 = vmatmul.mubr.msk.f32.vlgmr.msra.gmra.mrb[22].mxu0 %vm1526_vm5, %v22694_v19  ;;  %v22741_v19 = vld [vmem:[#allocation2 + $0x17] sm:$0xff] }
 0x752   : > { %18273 = vmatprep.mubr.msk.f32.mxu0 %vm1526_vm5, %v22700_v3  ;;  %19937 = vmatpush3.bf16.msra.mxu0 %v19934_v4  ;;  %v22724_v4 = vld [vmem:[#allocation2 + $0x46] sm:$0xff] }
 0x753   : > { %19939 = vmatprep.subr.bf16.mxu0 %v19938_v1  ;;  %25839 = vst [vmem:[#allocation47_spill] sm:$0xff] %v22724_v4  ;;  %v4783_v3 = vld [vmem:[%s21453_s19 + $0x120] sm:$0xff] }
 0x755   : > { %18274 = vmatmul.mubr.msk.f32.gmra.mrb[24].mxu0 %vm1526_vm5, %v22704_v31  ;;  %v22735_v31 = vld [vmem:[#allocation2 + $0xf] sm:$0xff] }
 0x756   : > { %18276 = vmatprep.mubr.msk.f32.mxu0 %vm1526_vm5, %v22708_v36  ;;  %19941 = vmatpush3.bf16.msra.mxu0 %v19938_v1  ;;  %v22728_v1 = vld [vmem:[#allocation2 + $0x4e] sm:$0xff] }
 0x757   : > { %19943 = vmatprep.subr.bf16.mxu0 %v19942_v38  ;;  %25840 = vst [vmem:[#allocation48_spill] sm:$0xff] %v22728_v1  ;;  %v4435_v36 = vld [vmem:[#allocation2 + $0x7] sm:$0xff] }
 0x759   : > { %18277 = vmatmul.mubr.msk.f32.gmra.mrb[26].mxu0 %vm1526_vm5, %v22712_v56  ;;  %v4617_v56 = vld [vmem:[%s21453_s19 + $0x118] sm:$0xff] }
 0x75a   : > { %18279 = vmatprep.mubr.msk.f32.mxu0 %vm1526_vm5, %v22716_v57  ;;  %v19946_v57 = vpack.c.bf16 %v4617_v56, %v4616_v21  ;;  %v22753_v56 = vld [vmem:[#allocation2 + $0x2f] sm:$0xff] }
 0x75b   : > { %25843 = vst [vmem:[#allocation51_spill] sm:$0xff] %v22753_v56  ;;  %v4785_v21 = vld [vmem:[%s21453_s19 + $0x130] sm:$0xff] }
 0x75d   : > { %18280 = vmatmul.mubr.msk.f32.gmra.mrb[28].mxu0 %vm1526_vm5, %v22720_v60  ;;  %v4784_v60 = vld [vmem:[%s21453_s19 + $0x128] sm:$0xff] }
 0x75e   : > { %18282 = vmatprep.mubr.msk.f32.mxu0 %vm1526_vm5, %v22724_v4  ;;  %v19950_v4 = vpack.c.bf16 %v4784_v60, %v4783_v3  ;;  %v22761_v3 = vld [vmem:[#allocation2 + $0x3f] sm:$0xff]  ;;  %v22765_v60 = vld [vmem:[#allocation2 + $0x47] sm:$0xff] }
 0x75f   : > { %25845 = vst [vmem:[#allocation53_spill] sm:$0xff] %v22765_v60 }
 0x761   : > { %18283 = vmatmul.mubr.msk.f32.gmra.mrb[30].mxu0 %vm1526_vm5, %v22728_v1  ;;  %v22745_v1 = vld [vmem:[#allocation2 + $0x1f] sm:$0xff] }
 0x762   : > { %18293 = vmatprep.mubr.msk.f32.mxu0 %vm1526_vm5, %v4435_v36  ;;  %25841 = vst [vmem:[#allocation49_spill] sm:$0xff] %v22745_v1  ;;  %v22749_v36 = vld [vmem:[#allocation2 + $0x27] sm:$0xff] }
 0x763   : > { %25842 = vst [vmem:[#allocation50_spill] sm:$0xff] %v22749_v36 }
 0x765   : > { %18294 = vmatmul.mubr.msk.f32.vlgmr.msra.gmra.mrb[22].mxu0 %vm1526_vm5, %v22735_v31 }
 0x766   : > { %18296 = vmatprep.mubr.msk.f32.mxu0 %vm1526_vm5, %v22741_v19  ;;  %19945 = vmatpush3.bf16.msra.mxu0 %v19942_v38  ;;  %v22757_v38 = vld [vmem:[#allocation2 + $0x37] sm:$0xff] }
 0x767   : > { %19947 = vmatprep.subr.bf16.mxu0 %v19946_v57  ;;  %25844 = vst [vmem:[#allocation52_spill] sm:$0xff] %v22757_v38 }
 0x769   : > { %18297 = vmatmul.mubr.msk.f32.gmra.mrb[24].mxu0 %vm1526_vm5, %v22745_v1  ;;  %v4953_v1 = vld [vmem:[%s21453_s19 + $0x148] sm:$0xff] }
 0x76a   : > { %18299 = vmatprep.mubr.msk.f32.mxu0 %vm1526_vm5, %v22749_v36  ;;  %19949 = vmatpush3.bf16.msra.mxu0 %v19946_v57  ;;  %v22769_v57 = vld [vmem:[#allocation2 + $0x4f] sm:$0xff]  ;;  %v4786_v36 = vld [vmem:[%s21453_s19 + $0x138] sm:$0xff] }
 0x76b   : > { %19951 = vmatprep.subr.bf16.mxu0 %v19950_v4 }
 0x76d   : > { %18300 = vmatmul.mubr.msk.f32.gmra.mrb[26].mxu0 %vm1526_vm5, %v22753_v56  ;;  %v4952_v56 = vld [vmem:[%s21453_s19 + $0x140] sm:$0xff] }
 0x76e   : > { %18302 = vmatprep.mubr.msk.f32.mxu0 %vm1526_vm5, %v22757_v38  ;;  %v19954_v38 = vpack.c.bf16 %v4786_v36, %v4785_v21 }
 0x771   : > { %18303 = vmatmul.mubr.msk.f32.gmra.mrb[28].mxu0 %vm1526_vm5, %v22761_v3 }
 0x772   : > { %18305 = vmatprep.mubr.msk.f32.mxu0 %vm1526_vm5, %v22765_v60  ;;  %v19958_v60 = vpack.c.bf16 %v4953_v1, %v4952_v56  ;;  %v25860_v1 = vld [vmem:[#allocation53_spill] sm:$0xff] }
 0x775   : > { %18306 = vmatmul.mubr.msk.f32.gmra.mrb[30].mxu0 %vm1526_vm5, %v22769_v57 }
 0x776   : > { %18316 = vmatprep.mubr.msk.f32.mxu0 %vm1526_vm5, %v22489_v48  ;;  %v4613_v48 = vld [vmem:[#allocation2 + $0x50] sm:$0xff] }
 0x779   : > { %18317 = vmatmul.mubr.msk.f32.vlgmr.msra.gmra.mrb[22].mxu0 %vm1526_vm5, %v22495_v15  ;;  %v4954_v15 = vld [vmem:[%s21453_s19 + $0x150] sm:$0xff] }
 0x77a   : > { %18319 = vmatprep.mubr.msk.f32.mxu0 %vm1526_vm5, %v22499_v50  ;;  %19953 = vmatpush3.bf16.msra.mxu0 %v19950_v4  ;;  %v4955_v50 = vld [vmem:[%s21453_s19 + $0x158] sm:$0xff]  ;;  %v25859_v4 = vld [vmem:[#allocation52_spill] sm:$0xff] }
 0x77b   : > { %19955 = vmatprep.subr.bf16.mxu0 %v19954_v38 }
 0x77d   : > { %18320 = vmatmul.mubr.msk.f32.gmra.mrb[24].mxu0 %vm1526_vm5, %v22503_v45  ;;  %v19962_v45 = vpack.c.bf16 %v4955_v50, %v4954_v15 }
 0x77e   : > { %18322 = vmatprep.mubr.msk.f32.mxu0 %vm1526_vm5, %v22507_v0  ;;  %19957 = vmatpush3.bf16.msra.mxu0 %v19954_v38  ;;  %v5121_v0 = vld [vmem:[%s21453_s19 + $0x160] sm:$0xff] }
 0x77f   : > { %19959 = vmatprep.subr.bf16.mxu0 %v19958_v60 }
 0x781   : > { %18323 = vmatmul.mubr.msk.f32.gmra.mrb[26].mxu0 %vm1526_vm5, %v22511_v53  ;;  %v5122_v53 = vld [vmem:[%s21453_s19 + $0x168] sm:$0xff] }
 0x782   : > { %18325 = vmatprep.mubr.msk.f32.mxu0 %vm1526_vm5, %v22515_v6  ;;  %v19966_v6 = vpack.c.bf16 %v5122_v53, %v5121_v0 }
 0x785   : > { %18326 = vmatmul.mubr.msk.f32.gmra.mrb[28].mxu0 %vm1526_vm5, %v22519_v55  ;;  %v5293_v55 = vld [vmem:[%s21453_s19 + $0x198] sm:$0xff] }
 0x786   : > { %18328 = vmatprep.mubr.msk.f32.mxu0 %vm1526_vm5, %v22523_v2 }
 0x789   : > { %18329 = vmatmul.mubr.msk.f32.gmra.mrb[30].mxu0 %vm1526_vm5, %v4613_v48 }
 0x78a   : > { %18339 = vmatprep.mubr.msk.f32.mxu0 %vm1526_vm5, %v22428_v7  ;;  %v4782_v7 = vld [vmem:[#allocation2 + $0x51] sm:$0xff] }
 0x78d   : > { %18340 = vmatmul.mubr.msk.f32.vlgmr.msra.gmra.mrb[22].mxu0 %vm1526_vm5, %v22443_v18  ;;  %v5123_v18 = vld [vmem:[%s21453_s19 + $0x170] sm:$0xff] }
 0x78e   : > { %18342 = vmatprep.mubr.msk.f32.mxu0 %vm1526_vm5, %v22445_v63  ;;  %19961 = vmatpush3.bf16.msra.mxu0 %v19958_v60  ;;  %v5124_v63 = vld [vmem:[%s21453_s19 + $0x178] sm:$0xff] }
 0x78f   : > { %19963 = vmatprep.subr.bf16.mxu0 %v19962_v45 }
 0x791   : > { %18343 = vmatmul.mubr.msk.f32.gmra.mrb[24].mxu0 %vm1526_vm5, %v22459_v51  ;;  %v19970_v51 = vpack.c.bf16 %v5124_v63, %v5123_v18 }
 0x792   : > { %18345 = vmatprep.mubr.msk.f32.mxu0 %vm1526_vm5, %v22461_v41  ;;  %19965 = vmatpush3.bf16.msra.mxu0 %v19962_v45  ;;  %v5290_v41 = vld [vmem:[%s21453_s19 + $0x180] sm:$0xff] }
 0x793   : > { %19967 = vmatprep.subr.bf16.mxu0 %v19966_v6 }
 0x795   : > { %18346 = vmatmul.mubr.msk.f32.gmra.mrb[26].mxu0 %vm1526_vm5, %v22470_v27  ;;  %v5291_v27 = vld [vmem:[%s21453_s19 + $0x188] sm:$0xff] }
 0x796   : > { %18348 = vmatprep.mubr.msk.f32.mxu0 %vm1526_vm5, %v22472_v43  ;;  %v19974_v43 = vpack.c.bf16 %v5291_v27, %v5290_v41 }
 0x799   : > { %18349 = vmatmul.mubr.msk.f32.gmra.mrb[28].mxu0 %vm1526_vm5, %v22478_v24  ;;  %v4951_v24 = vld [vmem:[#allocation2 + $0x52] sm:$0xff] }
 0x79a   : > { %18351 = vmatprep.mubr.msk.f32.mxu0 %vm1526_vm5, %v22482_v23  ;;  %v5292_v23 = vld [vmem:[%s21453_s19 + $0x190] sm:$0xff] }
 0x79b   : > { %v19978_v2 = vpack.c.bf16 %v5293_v55, %v5292_v23 }
 0x79d   : > { %18352 = vmatmul.mubr.msk.f32.gmra.mrb[30].mxu0 %vm1526_vm5, %v4782_v7 }
 0x79e   : > { %18362 = vmatprep.mubr.msk.f32.mxu0 %vm1526_vm5, %v22530_v22  ;;  %v5459_v22 = vld [vmem:[%s21453_s19 + $0x1a0] sm:$0xff] }
 0x7a1   : > { %18363 = vmatmul.mubr.msk.f32.vlgmr.msra.gmra.mrb[22].mxu0 %vm1526_vm5, %v22536_v28  ;;  %v5460_v28 = vld [vmem:[%s21453_s19 + $0x1a8] sm:$0xff] }
 0x7a2   : > { %18365 = vmatprep.mubr.msk.f32.mxu0 %vm1526_vm5, %v22540_v59  ;;  %19969 = vmatpush3.bf16.msra.mxu0 %v19966_v6  ;;  %v19982_v59 = vpack.c.bf16 %v5460_v28, %v5459_v22 }
 0x7a3   : > { %19971 = vmatprep.subr.bf16.mxu0 %v19970_v51 }
 0x7a5   : > { %18366 = vmatmul.mubr.msk.f32.gmra.mrb[24].mxu0 %vm1526_vm5, %v22544_v32  ;;  %v5120_v32 = vld [vmem:[#allocation2 + $0x53] sm:$0xff] }
 0x7a6   : > { %18368 = vmatprep.mubr.msk.f32.mxu0 %vm1526_vm5, %v22548_v47  ;;  %19973 = vmatpush3.bf16.msra.mxu0 %v19970_v51  ;;  %v5461_v47 = vld [vmem:[%s21453_s19 + $0x1b0] sm:$0xff] }
 0x7a7   : > { %19975 = vmatprep.subr.bf16.mxu0 %v19974_v43 }
 0x7a9   : > { %18369 = vmatmul.mubr.msk.f32.gmra.mrb[26].mxu0 %vm1526_vm5, %v22552_v13  ;;  %v5462_v13 = vld [vmem:[%s21453_s19 + $0x1b8] sm:$0xff] }
 0x7aa   : > { %18371 = vmatprep.mubr.msk.f32.mxu0 %vm1526_vm5, %v22556_v20  ;;  %v19986_v20 = vpack.c.bf16 %v5462_v13, %v5461_v47 }
 0x7ad   : > { %18372 = vmatmul.mubr.msk.f32.gmra.mrb[28].mxu0 %vm1526_vm5, %v22560_v58  ;;  %v5628_v58 = vld [vmem:[%s21453_s19 + $0x1c0] sm:$0xff] }
 0x7ae   : > { %18374 = vmatprep.mubr.msk.f32.mxu0 %vm1526_vm5, %v22564_v40  ;;  %v5629_v40 = vld [vmem:[%s21453_s19 + $0x1c8] sm:$0xff] }
 0x7b1   : > { %18375 = vmatmul.mubr.msk.f32.gmra.mrb[30].mxu0 %vm1526_vm5, %v4951_v24 }
 0x7b2   : > { %18385 = vmatprep.mubr.msk.f32.mxu0 %vm1526_vm5, %v22571_v5  ;;  %v19990_v5 = vpack.c.bf16 %v5629_v40, %v5628_v58 }
 0x7b5   : > { %18386 = vmatmul.mubr.msk.f32.vlgmr.msra.gmra.mrb[22].mxu0 %vm1526_vm5, %v22577_v34  ;;  %v5289_v34 = vld [vmem:[#allocation2 + $0x54] sm:$0xff] }
 0x7b6   : > { %18388 = vmatprep.mubr.msk.f32.mxu0 %vm1526_vm5, %v22581_v42  ;;  %19977 = vmatpush3.bf16.msra.mxu0 %v19974_v43  ;;  %v5630_v42 = vld [vmem:[%s21453_s19 + $0x1d0] sm:$0xff] }
 0x7b7   : > { %19979 = vmatprep.subr.bf16.mxu0 %v19978_v2 }
 0x7b9   : > { %18389 = vmatmul.mubr.msk.f32.gmra.mrb[24].mxu0 %vm1526_vm5, %v22585_v16  ;;  %v5631_v16 = vld [vmem:[%s21453_s19 + $0x1d8] sm:$0xff] }
 0x7ba   : > { %18391 = vmatprep.mubr.msk.f32.mxu0 %vm1526_vm5, %v22589_v39  ;;  %19981 = vmatpush3.bf16.msra.mxu0 %v19978_v2  ;;  %v19994_v39 = vpack.c.bf16 %v5631_v16, %v5630_v42 }
 0x7bb   : > { %19983 = vmatprep.subr.bf16.mxu0 %v19982_v59 }
 0x7bd   : > { %18392 = vmatmul.mubr.msk.f32.gmra.mrb[26].mxu0 %vm1526_vm5, %v22593_v26  ;;  %v5797_v26 = vld [vmem:[%s21453_s19 + $0x1e0] sm:$0xff] }
 0x7be   : > { %18394 = vmatprep.mubr.msk.f32.mxu0 %vm1526_vm5, %v22597_v62  ;;  %v5798_v62 = vld [vmem:[%s21453_s19 + $0x1e8] sm:$0xff] }
 0x7c1   : > { %18395 = vmatmul.mubr.msk.f32.gmra.mrb[28].mxu0 %vm1526_vm5, %v22601_v37  ;;  %v19998_v37 = vpack.c.bf16 %v5798_v62, %v5797_v26 }
 0x7c2   : > { %18397 = vmatprep.mubr.msk.f32.mxu0 %vm1526_vm5, %v22605_v17  ;;  %v5799_v17 = vld [vmem:[%s21453_s19 + $0x1f0] sm:$0xff] }
 0x7c5   : > { %18398 = vmatmul.mubr.msk.f32.gmra.mrb[30].mxu0 %vm1526_vm5, %v5120_v32 }
 0x7c6   : > { %18408 = vmatprep.mubr.msk.f32.mxu0 %vm1526_vm5, %v22612_v12  ;;  %v5800_v12 = vld [vmem:[%s21453_s19 + $0x1f8] sm:$0xff] }
 0x7c9   : > { %18409 = vmatmul.mubr.msk.f32.vlgmr.msra.gmra.mrb[22].mxu0 %vm1526_vm5, %v22618_v54  ;;  %v25847_v54 = vld [vmem:[#allocation40_spill] sm:$0xff] }
 0x7ca   : > { %18411 = vmatprep.mubr.msk.f32.mxu0 %vm1526_vm5, %v22622_v52  ;;  %19985 = vmatpush3.bf16.msra.mxu0 %v19982_v59  ;;  %v20002_v52 = vpack.c.bf16 %v5800_v12, %v5799_v17 }
 0x7cb   : > { %19987 = vmatprep.subr.bf16.mxu0 %v19986_v20 }
 0x7cd   : > { %18412 = vmatmul.mubr.msk.f32.gmra.mrb[24].mxu0 %vm1526_vm5, %v22626_v30  ;;  %v25848_v30 = vld [vmem:[#allocation41_spill] sm:$0xff] }
 0x7ce   : > { %18414 = vmatprep.mubr.msk.f32.mxu0 %vm1526_vm5, %v22630_v11  ;;  %19989 = vmatpush3.bf16.msra.mxu0 %v19986_v20  ;;  %v25849_v11 = vld [vmem:[#allocation42_spill] sm:$0xff] }
 0x7cf   : > { %19991 = vmatprep.subr.bf16.mxu0 %v19990_v5 }
 0x7d1   : > { %18415 = vmatmul.mubr.msk.f32.gmra.mrb[26].mxu0 %vm1526_vm5, %v22634_v35  ;;  %v25850_v35 = vld [vmem:[#allocation43_spill] sm:$0xff] }
 0x7d2   : > { %18417 = vmatprep.mubr.msk.f32.mxu0 %vm1526_vm5, %v22638_v44  ;;  %v25851_v44 = vld [vmem:[#allocation44_spill] sm:$0xff] }
 0x7d5   : > { %18418 = vmatmul.mubr.msk.f32.gmra.mrb[28].mxu0 %vm1526_vm5, %v22642_v9  ;;  %v25852_v9 = vld [vmem:[#allocation45_spill] sm:$0xff] }
 0x7d6   : > { %18420 = vmatprep.mubr.msk.f32.mxu0 %vm1526_vm5, %v22646_v33  ;;  %v25853_v33 = vld [vmem:[#allocation46_spill] sm:$0xff] }
 0x7d9   : > { %18421 = vmatmul.mubr.msk.f32.gmra.mrb[30].mxu0 %vm1526_vm5, %v5289_v34 }
 0x7da   : > { %18431 = vmatprep.mubr.msk.f32.mxu0 %vm1526_vm5, %v22653_v14  ;;  %v25854_v14 = vld [vmem:[#allocation47_spill] sm:$0xff] }
 0x7dd   : > { %18432 = vmatmul.mubr.msk.f32.vlgmr.msra.gmra.mrb[22].mxu0 %vm1526_vm5, %v22659_v25  ;;  %v25846_v25 = vld [vmem:[#allocation39_spill] sm:$0xff] }
 0x7de   : > { %18434 = vmatprep.mubr.msk.f32.mxu0 %vm1526_vm5, %v22663_v10  ;;  %19993 = vmatpush3.bf16.msra.mxu0 %v19990_v5  ;;  %v5458_v10 = vld [vmem:[#allocation2 + $0x55] sm:$0xff] }
 0x7df   : > { %19995 = vmatprep.subr.bf16.mxu0 %v19994_v39 }
 0x7e1   : > { %18435 = vmatmul.mubr.msk.f32.gmra.mrb[24].mxu0 %vm1526_vm5, %v22667_v46  ;;  %v25855_v46 = vld [vmem:[#allocation48_spill] sm:$0xff] }
 0x7e2   : > { %18437 = vmatprep.mubr.msk.f32.mxu0 %vm1526_vm5, %v22671_v49  ;;  %19997 = vmatpush3.bf16.msra.mxu0 %v19994_v39  ;;  %v5627_v49 = vld [vmem:[#allocation2 + $0x56] sm:$0xff] }
 0x7e3   : > { %19999 = vmatprep.subr.bf16.mxu0 %v19998_v37 }
 0x7e5   : > { %18438 = vmatmul.mubr.msk.f32.gmra.mrb[26].mxu0 %vm1526_vm5, %v22675_v29  ;;  %v25856_v29 = vld [vmem:[#allocation49_spill] sm:$0xff] }
 0x7e6   : > { %18440 = vmatprep.mubr.msk.f32.mxu0 %vm1526_vm5, %v22679_v8  ;;  %v25857_v8 = vld [vmem:[#allocation50_spill] sm:$0xff] }
 0x7e9   : > { %18441 = vmatmul.mubr.msk.f32.gmra.mrb[28].mxu0 %vm1526_vm5, %v22683_v61  ;;  %v25858_v61 = vld [vmem:[#allocation51_spill] sm:$0xff] }
 0x7ea   : > { %18443 = vmatprep.mubr.msk.f32.mxu0 %vm1526_vm5, %v25846_v25 }
 0x7ed   : > { %18444 = vmatmul.mubr.msk.f32.gmra.mrb[30].mxu0 %vm1526_vm5, %v5458_v10 }
 0x7ee   : > { %18454 = vmatprep.mubr.msk.f32.mxu0 %vm1526_vm5, %v25847_v54 }
 0x7f1   : > { %18455 = vmatmul.mubr.msk.f32.vlgmr.msra.gmra.mrb[22].mxu0 %vm1526_vm5, %v25848_v30 }
 0x7f2   : > { %18457 = vmatprep.mubr.msk.f32.mxu0 %vm1526_vm5, %v25849_v11  ;;  %20001 = vmatpush3.bf16.msra.mxu0 %v19998_v37 }
 0x7f3   : > { %20003 = vmatprep.subr.bf16.mxu0 %v20002_v52 }
 0x7f5   : > { %18458 = vmatmul.mubr.msk.f32.gmra.mrb[24].mxu0 %vm1526_vm5, %v25850_v35 }
 0x7f6   : > { %18460 = vmatprep.mubr.msk.f32.mxu0 %vm1526_vm5, %v25851_v44  ;;  %20005 = vmatpush3.bf16.msra.mxu0 %v20002_v52 }
 0x7f9   : > { %18461 = vmatmul.mubr.msk.f32.gmra.mrb[26].mxu0 %vm1526_vm5, %v25852_v9 }
 0x7fa   : > { %18463 = vmatprep.mubr.msk.f32.mxu0 %vm1526_vm5, %v25853_v33 }
 0x7fd   : > { %18464 = vmatmul.mubr.msk.f32.gmra.mrb[28].mxu0 %vm1526_vm5, %v25854_v14 }
 0x7fe   : > { %18466 = vmatprep.mubr.msk.f32.mxu0 %vm1526_vm5, %v25855_v46 }
 0x801   : > { %18467 = vmatmul.mubr.msk.f32.gmra.mrb[30].mxu0 %vm1526_vm5, %v5627_v49 }
 0x802   : > { %18477 = vmatprep.mubr.msk.f32.mxu0 %vm1526_vm5, %v22735_v31  ;;  %v16243_v31 = vld [vmem:[%s21458_s24] ss:$0 sm:$0xff] }
 0x805   : > { %18478 = vmatmul.mubr.msk.f32.vlgmr.msra.gmra.mrb[22].mxu0 %vm1526_vm5, %v22741_v19  ;;  %v5796_v19 = vld [vmem:[#allocation2 + $0x57] sm:$0xff] }
 0x806   : > { %18480 = vmatprep.mubr.msk.f32.mxu0 %vm1526_vm5, %v25856_v29 }
 0x809   : > { %18481 = vmatmul.mubr.msk.f32.gmra.mrb[24].mxu0 %vm1526_vm5, %v25857_v8 }
 0x80a   : > { %18483 = vmatprep.mubr.msk.f32.mxu0 %vm1526_vm5, %v25858_v61 }
 0x80d   : > { %18484 = vmatmul.mubr.msk.f32.gmra.mrb[26].mxu0 %vm1526_vm5, %v25859_v4 }
 0x80e   : > { %18486 = vmatprep.mubr.msk.f32.mxu0 %vm1526_vm5, %v22761_v3 }
 0x811   : > { %18487 = vmatmul.mubr.msk.f32.gmra.mrb[28].mxu0 %vm1526_vm5, %v25860_v1 }
 0x812   : > { %18489 = vmatprep.mubr.msk.f32.mxu0 %vm1526_vm5, %v22769_v57 }
 0x815   : > { %18490 = vmatmul.mubr.msk.f32.gmra.mrb[30].mxu0 %vm1526_vm5, %v5796_v19 }
 0x8d8   : > { %v18479_v36 = vpop.f32.mrb[22].mxu0 }
 0x8d9   : > { %v22952_v56 = vadd.f32 %v18479_v36, %v16243_v31  ;;  %v5897_v38 = vpop.f32.mrb[23].mxu0 }
 0x8da   : > { %v22954_v60 = vadd.f32 %v16243_v31, %v5897_v38 }
 0x8db   : > { %v5984_v21 = vmul.f32 0.044715, %v22952_v56 }
 0x8dc   : > { %v5983_v3 = vmul.f32 0.044715, %v22954_v60  ;;  %v18482_v48 = vpop.f32.mrb[24].mxu0 }
 0x8dd   : > { %v5994_v15 = vmul.f32 %v5984_v21, %v22952_v56  ;;  %v22959_v50 = vadd.f32 %v18482_v48, %v16243_v31  ;;  %v5907_v57 = vpop.f32.mrb[25].mxu0  ;;  %v5974_v21 = vmul.f32 0.5, %v22952_v56 }
 0x8de   : > { %v5993_v45 = vmul.f32 %v5983_v3, %v22954_v60  ;;  %v22962_v0 = vadd.f32 %v16243_v31, %v5907_v57  ;;  %v5973_v57 = vmul.f32 0.5, %v22954_v60 }
 0x8df   : > { %v5986_v53 = vmul.f32 0.044715, %v22959_v50  ;;  %v6004_v6 = vmul.f32 %v5994_v15, %v22952_v56 }
 0x8e0   : > { %v5985_v7 = vmul.f32 0.044715, %v22962_v0  ;;  %v18485_v18 = vpop.f32.mrb[26].mxu0  ;;  %v6003_v63 = vmul.f32 %v5993_v45, %v22954_v60 }
 0x8e1   : > { %v5996_v51 = vmul.f32 %v5986_v53, %v22959_v50  ;;  %v22969_v41 = vadd.f32 %v18485_v18, %v16243_v31  ;;  %v5917_v27 = vpop.f32.mrb[27].mxu0  ;;  %v6014_v43 = vadd.f32 %v6004_v6, %v22952_v56 }
 0x8e2   : > { %v5995_v24 = vmul.f32 %v5985_v7, %v22962_v0  ;;  %v22973_v23 = vadd.f32 %v16243_v31, %v5917_v27  ;;  %v6013_v55 = vadd.f32 %v6003_v63, %v22954_v60  ;;  %v25862_v60 = vld [vmem:[#allocation30_spill] sm:$0xff] }
 0x8e3   : > { %v5988_v2 = vmul.f32 0.044715, %v22969_v41  ;;  %v6024_v22 = vmul.f32 0.7978846, %v6014_v43  ;;  %v6006_v28 = vmul.f32 %v5996_v51, %v22959_v50  ;;  %v25861_v43 = vld [vmem:[#allocation29_spill] sm:$0xff] }
 0x8e4   : > { %v5987_v59 = vmul.f32 0.044715, %v22973_v23  ;;  %v18488_v32 = vpop.f32.mrb[28].mxu0  ;;  %v6023_v47 = vmul.f32 0.7978846, %v6013_v55  ;;  %v6005_v13 = vmul.f32 %v5995_v24, %v22962_v0  ;;  %v5976_v24 = vmul.f32 0.5, %v22959_v50 }
 0x8e5   : > { %v5998_v20 = vmul.f32 %v5988_v2, %v22969_v41  ;;  %v22981_v58 = vadd.f32 %v18488_v32, %v16243_v31  ;;  %v5927_v40 = vpop.f32.mrb[29].mxu0  ;;  %20839 = vtanh.f32 %v6024_v22  ;;  %v6016_v5 = vadd.f32 %v6006_v28, %v22959_v50 }
 0x8e6   : > { %v5997_v34 = vmul.f32 %v5987_v59, %v22973_v23  ;;  %v22985_v42 = vadd.f32 %v16243_v31, %v5927_v40  ;;  %20841 = vtanh.f32 %v6023_v47  ;;  %v6015_v16 = vadd.f32 %v6005_v13, %v22962_v0 }
 0x8e7   : > { %v5990_v39 = vmul.f32 0.044715, %v22981_v58  ;;  %v6026_v26 = vmul.f32 0.7978846, %v6016_v5  ;;  %v6008_v62 = vmul.f32 %v5998_v20, %v22969_v41  ;;  %v5975_v28 = vmul.f32 0.5, %v22962_v0  ;;  %v25863_v5 = vld [vmem:[#allocation31_spill] sm:$0xff] }
 0x8e8   : > { %v5989_v37 = vmul.f32 0.044715, %v22985_v42  ;;  %v18491_v25 = vpop.f32.mrb[30].mxu0  ;;  %v6025_v10 = vmul.f32 0.7978846, %v6015_v16  ;;  %v6007_v17 = vmul.f32 %v5997_v34, %v22973_v23  ;;  %v5978_v16 = vmul.f32 0.5, %v22969_v41 }
 0x8e9   : > { %v6000_v12 = vmul.f32 %v5990_v39, %v22981_v58  ;;  %v22993_v54 = vadd.f32 %v18491_v25, %v16243_v31  ;;  %v5937_v52 = vpop.f32.mrb[31].mxu0  ;;  %20843 = vtanh.f32 %v6026_v26  ;;  %v6018_v30 = vadd.f32 %v6008_v62, %v22969_v41  ;;  %v25864_v39 = vld [vmem:[#allocation32_spill] sm:$0xff] }
 0x8ea   : > { %v5999_v11 = vmul.f32 %v5989_v37, %v22985_v42  ;;  %v22997_v35 = vadd.f32 %v16243_v31, %v5937_v52  ;;  %20845 = vtanh.f32 %v6025_v10  ;;  %v6017_v44 = vadd.f32 %v6007_v17, %v22973_v23 }
 0x8eb   : > { %v5992_v9 = vmul.f32 0.044715, %v22993_v54  ;;  %v6028_v33 = vmul.f32 0.7978846, %v6018_v30  ;;  %v6010_v14 = vmul.f32 %v6000_v12, %v22981_v58  ;;  %v5977_v62 = vmul.f32 0.5, %v22973_v23 }
 0x8ec   : > { %v5991_v46 = vmul.f32 0.044715, %v22997_v35  ;;  %v6027_v49 = vmul.f32 0.7978846, %v6017_v44  ;;  %v6009_v29 = vmul.f32 %v5999_v11, %v22985_v42  ;;  %v25865_v11 = vld [vmem:[#allocation33_spill] sm:$0xff]  ;;  %v5980_v41 = vmul.f32 0.5, %v22981_v58 }
 0x8ed   : > { %v6002_v8 = vmul.f32 %v5992_v9, %v22993_v54  ;;  %20847 = vtanh.f32 %v6028_v33  ;;  %v6020_v61 = vadd.f32 %v6010_v14, %v22981_v58  ;;  %v25866_v33 = vld [vmem:[#allocation34_spill] sm:$0xff]  ;;  %v5979_v23 = vmul.f32 0.5, %v22985_v42 }
 0x8ee   : > { %v6001_v4 = vmul.f32 %v5991_v46, %v22997_v35  ;;  %20849 = vtanh.f32 %v6027_v49  ;;  %v6019_v1 = vadd.f32 %v6009_v29, %v22985_v42  ;;  %v5982_v58 = vmul.f32 0.5, %v22993_v54 }
 0x8ef   : > { %v20840_v19 = vpop.eup %20839  ;;  %v6030_v31 = vmul.f32 0.7978846, %v6020_v61  ;;  %v6012_v36 = vmul.f32 %v6002_v8, %v22993_v54  ;;  %v5981_v42 = vmul.f32 0.5, %v22997_v35 }
 0x8f0   : > { %v20842_v38 = vpop.eup %20841  ;;  %v6044_v3 = vadd.f32 1.0, %v20840_v19  ;;  %v6029_v48 = vmul.f32 0.7978846, %v6019_v1  ;;  %v6011_v15 = vmul.f32 %v6001_v4, %v22997_v35  ;;  %v25867_v19 = vld [vmem:[#allocation35_spill] sm:$0xff] }
 0x8f1   : > { %v6043_v45 = vadd.f32 1.0, %v20842_v38  ;;  %20851 = vtanh.f32 %v6030_v31  ;;  %v6022_v53 = vadd.f32 %v6012_v36, %v22993_v54  ;;  %v25868_v38 = vld [vmem:[#allocation36_spill] sm:$0xff] }
 0x8f2   : > { %v6054_v6 = vmul.f32 %v6044_v3, %v5974_v21  ;;  %20853 = vtanh.f32 %v6029_v48  ;;  %v6021_v7 = vadd.f32 %v6011_v15, %v22997_v35  ;;  %v6239_v35 = vld [vmem:[%s21473_s12] sm:$0xff] }
 0x8f3   : > { %v20844_v18 = vpop.eup %20843  ;;  %v6053_v63 = vmul.f32 %v6043_v45, %v5973_v57  ;;  %v6032_v51 = vmul.f32 0.7978846, %v6022_v53  ;;  %v25869_v53 = vld [vmem:[#allocation37_spill] sm:$0xff]  ;;  %18492 = vmatprep.subr.msk.mxu1 %vm1526_vm5, %v6239_v35 }
 0x8f4   : > { %v20846_v27 = vpop.eup %20845  ;;  %v23015_v56 = vadd.f32 %v6054_v6, %v25861_v43  ;;  %v6046_v55 = vadd.f32 1.0, %v20844_v18  ;;  %v6031_v2 = vmul.f32 0.7978846, %v6021_v7  ;;  %v25870_v7 = vld [vmem:[#allocation38_spill] sm:$0xff]  ;;  %18493 = vmatpush3.xpose.msk.msra.mxu1 %vm1526_vm5, %v6239_v35 }
 0x8f5   : > { %v23019_v22 = vadd.f32 %v6053_v63, %v25862_v60  ;;  %v6045_v59 = vadd.f32 1.0, %v20846_v27  ;;  %20855 = vtanh.f32 %v6032_v51 }
 0x8f6   : > { %v6078_v32 = vsel %vm1526_vm5, %v23015_v56, 0.0  ;;  %v6056_v47 = vmul.f32 %v6046_v55, %v5976_v24  ;;  %20857 = vtanh.f32 %v6031_v2 }
 0x8f7   : > { %v20848_v13 = vpop.eup %20847  ;;  %6079 = vadd.xlane.f32.xlu1 %v6078_v32  ;;  %v6075_v20 = vsel %vm1526_vm5, %v23019_v22, 0.0  ;;  %v6055_v50 = vmul.f32 %v6045_v59, %v5975_v28 }
 0x8f8   : > { %v20850_v40 = vpop.eup %20849  ;;  %6076 = vadd.xlane.f32.xlu0 %v6075_v20  ;;  %v6066_v34 = vadd.f32 %v6056_v47, %v25863_v5  ;;  %v6048_v0 = vadd.f32 1.0, %v20848_v13 }
 0x8f9   : > { %v6065_v26 = vadd.f32 %v6055_v50, %v25864_v39  ;;  %v6047_v37 = vadd.f32 1.0, %v20850_v40 }
 0x8fa   : > { %v6084_v25 = vsel %vm1526_vm5, %v6066_v34, 0.0  ;;  %v6058_v10 = vmul.f32 %v6048_v0, %v5978_v16 }
 0x8fb   : > { %v20852_v17 = vpop.eup %20851  ;;  %6085 = vadd.xlane.f32.xlu1 %v6084_v25  ;;  %v6081_v12 = vsel %vm1526_vm5, %v6065_v26, 0.0  ;;  %v6057_v52 = vmul.f32 %v6047_v37, %v5977_v62 }
 0x8fc   : > { %v20854_v30 = vpop.eup %20853  ;;  %6082 = vadd.xlane.f32.xlu0 %v6081_v12  ;;  %v6068_v44 = vadd.f32 %v6058_v10, %v25865_v11  ;;  %v6050_v9 = vadd.f32 1.0, %v20852_v17 }
 0x8fd   : > { %v6067_v14 = vadd.f32 %v6057_v52, %v25866_v33  ;;  %v6049_v46 = vadd.f32 1.0, %v20854_v30 }
 0x8fe   : > { %v6090_v49 = vsel %vm1526_vm5, %v6068_v44, 0.0  ;;  %v6060_v29 = vmul.f32 %v6050_v9, %v5980_v41 }
 0x8ff   : > { %v20856_v8 = vpop.eup %20855  ;;  %6091 = vadd.xlane.f32.xlu1 %v6090_v49  ;;  %v6087_v61 = vsel %vm1526_vm5, %v6067_v14, 0.0  ;;  %v6059_v4 = vmul.f32 %v6049_v46, %v5979_v23 }
 0x900   : > { %v20858_v1 = vpop.eup %20857  ;;  %6088 = vadd.xlane.f32.xlu0 %v6087_v61  ;;  %v6070_v31 = vadd.f32 %v6060_v29, %v25867_v19  ;;  %v6052_v36 = vadd.f32 1.0, %v20856_v8 }
 0x901   : > { %v6069_v21 = vadd.f32 %v6059_v4, %v25868_v38  ;;  %v6051_v3 = vadd.f32 1.0, %v20858_v1 }
 0x902   : > { %v6096_v48 = vsel %vm1526_vm5, %v6070_v31, 0.0  ;;  %v6062_v15 = vmul.f32 %v6052_v36, %v5982_v58 }
 0x903   : > { %6097 = vadd.xlane.f32.xlu1 %v6096_v48  ;;  %v6093_v57 = vsel %vm1526_vm5, %v6069_v21, 0.0  ;;  %v6061_v45 = vmul.f32 %v6051_v3, %v5981_v42  ;;  %v23105_v42 = vld [vmem:[%s21473_s12 + $0x20] sm:$0xff]  ;;  %v23112_v3 = vld [vmem:[%s21473_s12 + $0x30] sm:$0xff] }
 0x904   : > { %6094 = vadd.xlane.f32.xlu0 %v6093_v57  ;;  %v6072_v6 = vadd.f32 %v6062_v15, %v25869_v53  ;;  %18509 = vmatprep.subr.msk.mxu1 %vm1526_vm5, %v23105_v42 }
 0x905   : > { %v6071_v18 = vadd.f32 %v6061_v45, %v25870_v7 }
 0x906   : > { %v6102_v54 = vsel %vm1526_vm5, %v6072_v6, 0.0 }
 0x907   : > { %6103 = vadd.xlane.f32.xlu1 %v6102_v54  ;;  %v6099_v63 = vsel %vm1526_vm5, %v6071_v18, 0.0 }
 0x908   : > { %6100 = vadd.xlane.f32.xlu0 %v6099_v63 }
 0x984   : > { %v6080_v51 = vpop.xlane.xlu1 %6079 }
 0x985   : > { %v6106_v27 = vmul.f32 0.03125, %v6080_v51  ;;  %v6077_v43 = vpop.xlane.xlu0 %6076 }
 0x986   : > { %v6105_v24 = vmul.f32 0.03125, %v6077_v43 }
 0x987   : > { %v23052_v55 = vsub.f32 %v23015_v56, %v6106_v27 }
 0x988   : > { %v23055_v2 = vsub.f32 %v23019_v22, %v6105_v24  ;;  %v6086_v60 = vpop.xlane.xlu1 %6085 }
 0x989   : > { %v6108_v28 = vmul.f32 0.03125, %v6086_v60  ;;  %v6083_v59 = vpop.xlane.xlu0 %6082  ;;  %v6126_v32 = vmul.f32 %v23052_v55, %v23052_v55 }
 0x98a   : > { %v6107_v47 = vmul.f32 0.03125, %v6083_v59  ;;  %v6125_v13 = vmul.f32 %v23055_v2, %v23055_v2 }
 0x98b   : > { %v23061_v20 = vsub.f32 %v6066_v34, %v6108_v28  ;;  %v6138_v50 = vsel %vm1526_vm5, %v6126_v32, 0.0 }
 0x98c   : > { %v23064_v40 = vsub.f32 %v6065_v26, %v6107_v47  ;;  %v6092_v56 = vpop.xlane.xlu1 %6091  ;;  %6139 = vadd.xlane.f32.xlu1 %v6138_v50  ;;  %v6135_v22 = vsel %vm1526_vm5, %v6125_v13, 0.0 }
 0x98d   : > { %v6110_v5 = vmul.f32 0.03125, %v6092_v56  ;;  %v6089_v16 = vpop.xlane.xlu0 %6088  ;;  %6136 = vadd.xlane.f32.xlu0 %v6135_v22  ;;  %v6128_v0 = vmul.f32 %v23061_v20, %v23061_v20  ;;  %v23117_v22 = vld [vmem:[%s21463_s30] ss:$0 sm:$0xff] }
 0x98e   : > { %v6109_v39 = vmul.f32 0.03125, %v6089_v16  ;;  %v6127_v62 = vmul.f32 %v23064_v40, %v23064_v40 }
 0x98f   : > { %v23071_v34 = vsub.f32 %v6068_v44, %v6110_v5  ;;  %v6144_v37 = vsel %vm1526_vm5, %v6128_v0, 0.0 }
 0x990   : > { %v23074_v26 = vsub.f32 %v6067_v14, %v6109_v39  ;;  %v6098_v25 = vpop.xlane.xlu1 %6097  ;;  %6145 = vadd.xlane.f32.xlu1 %v6144_v37  ;;  %v6141_v10 = vsel %vm1526_vm5, %v6127_v62, 0.0 }
 0x991   : > { %v6112_v17 = vmul.f32 0.03125, %v6098_v25  ;;  %v6095_v12 = vpop.xlane.xlu0 %6094  ;;  %6142 = vadd.xlane.f32.xlu0 %v6141_v10  ;;  %v6130_v52 = vmul.f32 %v23071_v34, %v23071_v34 }
 0x992   : > { %v6111_v30 = vmul.f32 0.03125, %v6095_v12  ;;  %v6129_v11 = vmul.f32 %v23074_v26, %v23074_v26 }
 0x993   : > { %v23081_v44 = vsub.f32 %v6070_v31, %v6112_v17  ;;  %v6150_v41 = vsel %vm1526_vm5, %v6130_v52, 0.0  ;;  %v16245_v17 = vld [vmem:[%s25871_s22] ss:$0 sm:$0xff]  ;;  %s25901_s22 = sld [smem:[#allocation13_spill]] }
 0x994   : > { %v23084_v9 = vsub.f32 %v6069_v21, %v6111_v30  ;;  %6151 = vadd.xlane.f32.xlu1 %v6150_v41  ;;  %v6104_v33 = vpop.xlane.xlu1 %6103  ;;  %v6147_v14 = vsel %vm1526_vm5, %v6129_v11, 0.0  ;;  %v8187_v21 = vld [vmem:[%s21473_s12 + $0x10] sm:$0xff] }
 0x995   : > { %v6114_v23 = vmul.f32 0.03125, %v6104_v33  ;;  %6148 = vadd.xlane.f32.xlu0 %v6147_v14  ;;  %v6101_v46 = vpop.xlane.xlu0 %6100  ;;  %v6132_v49 = vmul.f32 %v23081_v44, %v23081_v44  ;;  %18768 = vmatprep.subr.msk.mxu0 %vm1526_vm5, %v8187_v21 }
 0x996   : > { %v6113_v29 = vmul.f32 0.03125, %v6101_v46  ;;  %v6131_v8 = vmul.f32 %v23084_v9, %v23084_v9  ;;  %18769 = vmatpush3.xpose.msk.msra.mxu0 %vm1526_vm5, %v8187_v21 }
 0x997   : > { %v23091_v61 = vsub.f32 %v6072_v6, %v6114_v23  ;;  %v6156_v4 = vsel %vm1526_vm5, %v6132_v49, 0.0  ;;  %18785 = vmatprep.subr.msk.mxu0 %vm1526_vm5, %v23112_v3 }
 0x998   : > { %v23094_v1 = vsub.f32 %v6071_v18, %v6113_v29  ;;  %6157 = vadd.xlane.f32.xlu1 %v6156_v4  ;;  %v6153_v19 = vsel %vm1526_vm5, %v6131_v8, 0.0 }
 0x999   : > { %6154 = vadd.xlane.f32.xlu0 %v6153_v19  ;;  %v6134_v31 = vmul.f32 %v23091_v61, %v23091_v61 }
 0x99a   : > { %v6133_v58 = vmul.f32 %v23094_v1, %v23094_v1 }
 0x99b   : > { %v6162_v36 = vsel %vm1526_vm5, %v6134_v31, 0.0 }
 0x99c   : > { %6163 = vadd.xlane.f32.xlu1 %v6162_v36  ;;  %v6159_v38 = vsel %vm1526_vm5, %v6133_v58, 0.0 }
 0x99d   : > { %6160 = vadd.xlane.f32.xlu0 %v6159_v38 }
 0xa19   : > { %v6140_v48 = vpop.xlane.xlu1 %6139 }
 0xa1a   : > { %v6166_v15 = vmul.f32 0.03125, %v6140_v48  ;;  %v6137_v57 = vpop.xlane.xlu0 %6136 }
 0xa1b   : > { %v6165_v45 = vmul.f32 0.03125, %v6137_v57 }
 0xa1c   : > { %v6176_v53 = vadd.f32 1e-05, %v6166_v15 }
 0xa1d   : > { %v6175_v6 = vadd.f32 1e-05, %v6165_v45  ;;  %v6146_v7 = vpop.xlane.xlu1 %6145 }
 0xa1e   : > { %20859 = vrsqrt.f32 %v6176_v53  ;;  %v6168_v18 = vmul.f32 0.03125, %v6146_v7  ;;  %v6143_v54 = vpop.xlane.xlu0 %6142 }
 0xa1f   : > { %20861 = vrsqrt.f32 %v6175_v6  ;;  %v6167_v63 = vmul.f32 0.03125, %v6143_v54 }
 0xa20   : > { %v6178_v35 = vadd.f32 1e-05, %v6168_v18 }
 0xa21   : > { %v6177_v51 = vadd.f32 1e-05, %v6167_v63  ;;  %v6152_v27 = vpop.xlane.xlu1 %6151  ;;  %v23268_v63 = vld [vmem:[%s25872_s23] ss:$0 sm:$0xff] }
 0xa22   : > { %20863 = vrsqrt.f32 %v6178_v35  ;;  %v6170_v43 = vmul.f32 0.03125, %v6152_v27  ;;  %v6149_v24 = vpop.xlane.xlu0 %6148  ;;  %v23271_v35 = vld [vmem:[%s25872_s23 + $0x2] ss:$0 sm:$0xff] }
 0xa23   : > { %20865 = vrsqrt.f32 %v6177_v51  ;;  %v6169_v60 = vmul.f32 0.03125, %v6149_v24 }
 0xa24   : > { %v6180_v28 = vadd.f32 1e-05, %v6170_v43 }
 0xa25   : > { %v6179_v59 = vadd.f32 1e-05, %v6169_v60  ;;  %v6158_v32 = vpop.xlane.xlu1 %6157 }
 0xa26   : > { %20867 = vrsqrt.f32 %v6180_v28  ;;  %v6172_v47 = vmul.f32 0.03125, %v6158_v32  ;;  %v6155_v13 = vpop.xlane.xlu0 %6154 }
 0xa27   : > { %20869 = vrsqrt.f32 %v6179_v59  ;;  %v6171_v50 = vmul.f32 0.03125, %v6155_v13 }
 0xa28   : > { %v20860_v56 = vpop.eup %20859  ;;  %v6182_v5 = vadd.f32 1e-05, %v6172_v47 }
 0xa29   : > { %v20862_v16 = vpop.eup %20861  ;;  %v6196_v0 = vmul.f32 %v20860_v56, %v23052_v55  ;;  %v6181_v39 = vadd.f32 1e-05, %v6171_v50  ;;  %v6164_v62 = vpop.xlane.xlu1 %6163 }
 0xa2a   : > { %v6195_v37 = vmul.f32 %v20862_v16, %v23055_v2  ;;  %20871 = vrsqrt.f32 %v6182_v5  ;;  %v6174_v25 = vmul.f32 0.03125, %v6164_v62  ;;  %v6161_v10 = vpop.xlane.xlu0 %6160 }
 0xa2b   : > { %v6212_v12 = vmul.f32 %v23117_v22, %v6196_v0  ;;  %20873 = vrsqrt.f32 %v6181_v39  ;;  %v6173_v52 = vmul.f32 0.03125, %v6161_v10 }
 0xa2c   : > { %v20864_v30 = vpop.eup %20863  ;;  %v6211_v11 = vmul.f32 %v23117_v22, %v6195_v37  ;;  %v6184_v41 = vadd.f32 1e-05, %v6174_v25 }
 0xa2d   : > { %v20866_v33 = vpop.eup %20865  ;;  %v6198_v55 = vmul.f32 %v20864_v30, %v23061_v20  ;;  %v6183_v14 = vadd.f32 1e-05, %v6173_v52  ;;  %v23128_v46 = vadd.f32 %v16245_v17, %v6212_v12  ;;  %v6517_v20 = vld [vmem:[%s21473_s12 + $0x40] sm:$0xff] }
 0xa2e   : > { %v23125_v23 = vadd.f32 %v16245_v17, %v6211_v11  ;;  %v6197_v2 = vmul.f32 %v20866_v33, %v23064_v40  ;;  %20875 = vrsqrt.f32 %v6184_v41 }
 0xa2f   : > { %v6214_v49 = vmul.f32 %v23117_v22, %v6198_v55  ;;  %20877 = vrsqrt.f32 %v6183_v14 }
 0xa30   : > { %v20868_v29 = vpop.eup %20867  ;;  %v6213_v8 = vmul.f32 %v23117_v22, %v6197_v2  ;;  %18494 = vmatprep.mubr.msk.f32.mxu1 %vm1526_vm5, %v23125_v23  ;;  %18770 = vmatprep.mubr.msk.f32.mxu0 %vm1526_vm5, %v23125_v23 }
 0xa31   : > { %v20870_v4 = vpop.eup %20869  ;;  %v6200_v19 = vmul.f32 %v20868_v29, %v23071_v34  ;;  %18495 = vmatmul.mubr.msk.f32.vlgmr.msra.gmra.mrb[82].mxu1 %vm1526_vm5, %v23128_v46  ;;  %18771 = vmatmul.mubr.msk.f32.vlgmr.msra.gmra.mrb[32].mxu0 %vm1526_vm5, %v23128_v46  ;;  %v23149_v58 = vadd.f32 %v16245_v17, %v6214_v49 }
 0xa32   : > { %v23142_v40 = vadd.f32 %v16245_v17, %v6213_v8  ;;  %v6199_v31 = vmul.f32 %v20870_v4, %v23074_v26  ;;  %18510 = vmatpush3.xpose.msk.msra.mxu1 %vm1526_vm5, %v23105_v42  ;;  %18786 = vmatpush3.xpose.msk.msra.mxu0 %vm1526_vm5, %v23112_v3 }
 0xa33   : > { %v6216_v34 = vmul.f32 %v23117_v22, %v6200_v19  ;;  %18526 = vmatprep.subr.msk.mxu1 %vm1526_vm5, %v6517_v20 }
 0xa34   : > { %v20872_v36 = vpop.eup %20871  ;;  %v6215_v38 = vmul.f32 %v23117_v22, %v6199_v31  ;;  %18497 = vmatprep.mubr.msk.f32.mxu1 %vm1526_vm5, %v23142_v40  ;;  %18773 = vmatprep.mubr.msk.f32.mxu0 %vm1526_vm5, %v23142_v40 }
 0xa35   : > { %v20874_v26 = vpop.eup %20873  ;;  %v6202_v21 = vmul.f32 %v20872_v36, %v23081_v44  ;;  %18498 = vmatmul.mubr.msk.f32.gmra.mrb[84].mxu1 %vm1526_vm5, %v23149_v58  ;;  %18774 = vmatmul.mubr.msk.f32.gmra.mrb[34].mxu0 %vm1526_vm5, %v23149_v58  ;;  %v23166_v48 = vadd.f32 %v16245_v17, %v6216_v34  ;;  %v16258_v34 = vld [vmem:[%s25872_s23 + $0x4] ss:$0 sm:$0xff]  ;;  %v16410_v36 = vld [vmem:[%s25872_s23 + $0x6] ss:$0 sm:$0xff] }
 0xa36   : > { %v23163_v42 = vadd.f32 %v16245_v17, %v6215_v38  ;;  %v6201_v3 = vmul.f32 %v20874_v26, %v23084_v9 }
 0xa37   : > { %v6218_v15 = vmul.f32 %v23117_v22, %v6202_v21 }
 0xa38   : > { %v20876_v57 = vpop.eup %20875  ;;  %v6217_v45 = vmul.f32 %v23117_v22, %v6201_v3  ;;  %18500 = vmatprep.mubr.msk.f32.mxu1 %vm1526_vm5, %v23163_v42  ;;  %18776 = vmatprep.mubr.msk.f32.mxu0 %vm1526_vm5, %v23163_v42 }
 0xa39   : > { %v20878_v44 = vpop.eup %20877  ;;  %v6204_v53 = vmul.f32 %v20876_v57, %v23091_v61  ;;  %18501 = vmatmul.mubr.msk.f32.gmra.mrb[86].mxu1 %vm1526_vm5, %v23166_v48  ;;  %18777 = vmatmul.mubr.msk.f32.gmra.mrb[36].mxu0 %vm1526_vm5, %v23166_v48  ;;  %v23182_v7 = vadd.f32 %v16245_v17, %v6218_v15 }
 0xa3a   : > { %v23179_v9 = vadd.f32 %v16245_v17, %v6217_v45  ;;  %v6203_v6 = vmul.f32 %v20878_v44, %v23094_v1 }
 0xa3b   : > { %v6220_v18 = vmul.f32 %v23117_v22, %v6204_v53 }
 0xa3c   : > { %v6219_v54 = vmul.f32 %v23117_v22, %v6203_v6  ;;  %18503 = vmatprep.mubr.msk.f32.mxu1 %vm1526_vm5, %v23179_v9  ;;  %18779 = vmatprep.mubr.msk.f32.mxu0 %vm1526_vm5, %v23179_v9 }
 0xa3d   : > { %18504 = vmatmul.mubr.msk.f32.gmra.mrb[88].mxu1 %vm1526_vm5, %v23182_v7  ;;  %18780 = vmatmul.mubr.msk.f32.gmra.mrb[38].mxu0 %vm1526_vm5, %v23182_v7  ;;  %v23196_v1 = vadd.f32 %v16245_v17, %v6220_v18 }
 0xa3e   : > { %v23194_v61 = vadd.f32 %v16245_v17, %v6219_v54 }
 0xa40   : > { %18506 = vmatprep.mubr.msk.f32.mxu1 %vm1526_vm5, %v23194_v61  ;;  %18782 = vmatprep.mubr.msk.f32.mxu0 %vm1526_vm5, %v23194_v61 }
 0xa41   : > { %18507 = vmatmul.mubr.msk.f32.gmra.mrb[90].mxu1 %vm1526_vm5, %v23196_v1  ;;  %18783 = vmatmul.mubr.msk.f32.gmra.mrb[40].mxu0 %vm1526_vm5, %v23196_v1 }
 0xa42   : > { %18511 = vmatprep.mubr.msk.f32.mxu1 %vm1526_vm5, %v23125_v23  ;;  %18787 = vmatprep.mubr.msk.f32.mxu0 %vm1526_vm5, %v23125_v23 }
 0xa45   : > { %18512 = vmatmul.mubr.msk.f32.vlgmr.msra.gmra.mrb[92].mxu1 %vm1526_vm5, %v23128_v46  ;;  %18788 = vmatmul.mubr.msk.f32.vlgmr.msra.gmra.mrb[42].mxu0 %vm1526_vm5, %v23128_v46 }
 0xa46   : > { %18514 = vmatprep.mubr.msk.f32.mxu1 %vm1526_vm5, %v23142_v40  ;;  %18790 = vmatprep.mubr.msk.f32.mxu0 %vm1526_vm5, %v23142_v40 }
 0xa47   : > { %18527 = vmatpush3.xpose.msk.msra.mxu1 %vm1526_vm5, %v6517_v20 }
 0xa49   : > { %18515 = vmatmul.mubr.msk.f32.gmra.mrb[94].mxu1 %vm1526_vm5, %v23149_v58  ;;  %18791 = vmatmul.mubr.msk.f32.gmra.mrb[44].mxu0 %vm1526_vm5, %v23149_v58 }
 0xa4a   : > { %18517 = vmatprep.mubr.msk.f32.mxu1 %vm1526_vm5, %v23163_v42  ;;  %18793 = vmatprep.mubr.msk.f32.mxu0 %vm1526_vm5, %v23163_v42 }
 0xa4d   : > { %18518 = vmatmul.mubr.msk.f32.gmra.mrb[96].mxu1 %vm1526_vm5, %v23166_v48  ;;  %18794 = vmatmul.mubr.msk.f32.gmra.mrb[46].mxu0 %vm1526_vm5, %v23166_v48 }
 0xa4e   : > { %18520 = vmatprep.mubr.msk.f32.mxu1 %vm1526_vm5, %v23179_v9  ;;  %18796 = vmatprep.mubr.msk.f32.mxu0 %vm1526_vm5, %v23179_v9 }
 0xa51   : > { %18521 = vmatmul.mubr.msk.f32.gmra.mrb[98].mxu1 %vm1526_vm5, %v23182_v7  ;;  %18797 = vmatmul.mubr.msk.f32.gmra.mrb[48].mxu0 %vm1526_vm5, %v23182_v7 }
 0xa52   : > { %18523 = vmatprep.mubr.msk.f32.mxu1 %vm1526_vm5, %v23194_v61  ;;  %18799 = vmatprep.mubr.msk.f32.mxu0 %vm1526_vm5, %v23194_v61 }
 0xa55   : > { %18524 = vmatmul.mubr.msk.f32.gmra.mrb[100].mxu1 %vm1526_vm5, %v23196_v1  ;;  %18800 = vmatmul.mubr.msk.f32.gmra.mrb[50].mxu0 %vm1526_vm5, %v23196_v1 }
 0xa56   : > { %18528 = vmatprep.mubr.msk.f32.mxu1 %vm1526_vm5, %v23125_v23 }
 0xa59   : > { %18529 = vmatmul.mubr.msk.f32.vlgmr.msra.gmra.mrb[102].mxu1 %vm1526_vm5, %v23128_v46 }
 0xa5a   : > { %18531 = vmatprep.mubr.msk.f32.mxu1 %vm1526_vm5, %v23142_v40 }
 0xa5d   : > { %18532 = vmatmul.mubr.msk.f32.gmra.mrb[104].mxu1 %vm1526_vm5, %v23149_v58 }
 0xa5e   : > { %18534 = vmatprep.mubr.msk.f32.mxu1 %vm1526_vm5, %v23163_v42 }
 0xa61   : > { %18535 = vmatmul.mubr.msk.f32.gmra.mrb[106].mxu1 %vm1526_vm5, %v23166_v48 }
 0xa62   : > { %18537 = vmatprep.mubr.msk.f32.mxu1 %vm1526_vm5, %v23179_v9 }
 0xa65   : > { %18538 = vmatmul.mubr.msk.f32.gmra.mrb[108].mxu1 %vm1526_vm5, %v23182_v7 }
 0xa66   : > { %18540 = vmatprep.mubr.msk.f32.mxu1 %vm1526_vm5, %v23194_v61 }
 0xa69   : > { %18541 = vmatmul.mubr.msk.f32.gmra.mrb[110].mxu1 %vm1526_vm5, %v23196_v1 }
 0xb04   : > { %v23273_v51 = vpop.f32.mrb[82].mxu1  ;;  %v23275_v27 = vpop.f32.mrb[32].mxu0 }
 0xb05   : > { %v6344_v43 = vpop.f32.mrb[83].mxu1  ;;  %v8262_v24 = vpop.f32.mrb[33].mxu0 }
 0xb06   : > { %v6345_v60 = vadd.f32 %v23268_v63, %v6344_v43  ;;  %v8263_v28 = vadd.f32 %v23271_v35, %v8262_v24 }
 0xb08   : > { %v6641_v59 = vmul.f32 0.35355338, %v6345_v60  ;;  %v8559_v32 = vmul.f32 0.35355338, %v8263_v28  ;;  %v18499_v47 = vpop.f32.mrb[84].mxu1  ;;  %v18775_v13 = vpop.f32.mrb[34].mxu0 }
 0xb09   : > { %v23280_v50 = vadd.f32 %v18499_v47, %v23268_v63  ;;  %v23283_v56 = vadd.f32 %v18775_v13, %v23271_v35  ;;  %v23285_v22 = vpop.f32.mrb[85].mxu1  ;;  %v23287_v5 = vpop.f32.mrb[35].mxu0 }
 0xb0a   : > { %18563 = vmatprep.mubr.msk.f32.mxu1 %vm6651_vm7, %v6641_v59  ;;  %18839 = vmatprep.mubr.msk.f32.mxu0 %vm6651_vm7, %v8559_v32 }
 0xb0c   : > { %v18502_v16 = vpop.f32.mrb[86].mxu1  ;;  %v18778_v0 = vpop.f32.mrb[36].mxu0 }
 0xb0d   : > { %v23292_v39 = vadd.f32 %v18502_v16, %v23268_v63  ;;  %v23295_v62 = vadd.f32 %v18778_v0, %v23271_v35  ;;  %v6364_v37 = vpop.f32.mrb[87].mxu1  ;;  %v8282_v25 = vpop.f32.mrb[37].mxu0 }
 0xb0e   : > { %v23298_v10 = vadd.f32 %v23268_v63, %v6364_v37  ;;  %v23301_v17 = vadd.f32 %v23271_v35, %v8282_v25 }
 0xb10   : > { %v18505_v12 = vpop.f32.mrb[88].mxu1  ;;  %v18781_v52 = vpop.f32.mrb[38].mxu0 }
 0xb11   : > { %v23304_v30 = vadd.f32 %v18505_v12, %v23268_v63  ;;  %v23307_v11 = vadd.f32 %v18781_v52, %v23271_v35  ;;  %v6374_v41 = vpop.f32.mrb[89].mxu1  ;;  %v8292_v33 = vpop.f32.mrb[39].mxu0 }
 0xb12   : > { %v23310_v55 = vadd.f32 %v23268_v63, %v6374_v41  ;;  %v23313_v14 = vadd.f32 %v23271_v35, %v8292_v33 }
 0xb14   : > { %v18508_v2 = vpop.f32.mrb[90].mxu1  ;;  %v18784_v49 = vpop.f32.mrb[40].mxu0 }
 0xb15   : > { %v23316_v29 = vadd.f32 %v18508_v2, %v23268_v63  ;;  %v23319_v8 = vadd.f32 %v18784_v49, %v23271_v35  ;;  %v6384_v20 = vpop.f32.mrb[91].mxu1  ;;  %v8302_v4 = vpop.f32.mrb[41].mxu0 }
 0xb16   : > { %v23322_v19 = vadd.f32 %v23268_v63, %v6384_v20  ;;  %v23325_v31 = vadd.f32 %v23271_v35, %v8302_v4 }
 0xb18   : > { %v18513_v38 = vpop.f32.mrb[92].mxu1  ;;  %v18789_v26 = vpop.f32.mrb[42].mxu0 }
 0xb19   : > { %v6474_v21 = vadd.f32 %v18513_v38, %v16258_v34  ;;  %v8392_v3 = vadd.f32 %v18789_v26, %v16410_v36  ;;  %v6468_v15 = vpop.f32.mrb[93].mxu1  ;;  %v8386_v57 = vpop.f32.mrb[43].mxu0 }
 0xb1a   : > { %v6469_v45 = vadd.f32 %v16258_v34, %v6468_v15  ;;  %v8387_v44 = vadd.f32 %v16410_v36, %v8386_v57 }
 0xb1c   : > { %v20006_v6 = vpack.c.bf16 %v6474_v21, %v6469_v45  ;;  %v20106_v18 = vpack.c.bf16 %v8392_v3, %v8387_v44  ;;  %v18516_v54 = vpop.f32.mrb[94].mxu1  ;;  %v18792_v43 = vpop.f32.mrb[44].mxu0 }
 0xb1d   : > { %v6484_v24 = vadd.f32 %v18516_v54, %v16258_v34  ;;  %v8402_v60 = vadd.f32 %v18792_v43, %v16410_v36  ;;  %v6478_v28 = vpop.f32.mrb[95].mxu1  ;;  %v8396_v59 = vpop.f32.mrb[45].mxu0 }
 0xb1e   : > { %v6479_v32 = vadd.f32 %v16258_v34, %v6478_v28  ;;  %v8397_v47 = vadd.f32 %v16410_v36, %v8396_v59  ;;  %20008 = vmatprep.subr.msk.bf16.mxu1 %vm23331_vm8, %v20006_v6  ;;  %20108 = vmatprep.subr.msk.bf16.mxu0 %vm23331_vm8, %v20106_v18 }
 0xb1f   : > { %20011 = vmatpush3.bf16.xpose.msk.msra.mxu1 %vm23331_vm8, %v20006_v6  ;;  %20111 = vmatpush3.bf16.xpose.msk.msra.mxu0 %vm23331_vm8, %v20106_v18 }
 0xb20   : > { %v20012_v13 = vpack.c.bf16 %v6484_v24, %v6479_v32  ;;  %v20112_v16 = vpack.c.bf16 %v8402_v60, %v8397_v47  ;;  %v18519_v0 = vpop.f32.mrb[96].mxu1  ;;  %v18795_v37 = vpop.f32.mrb[46].mxu0  ;;  %v16270_v47 = vld [vmem:[%s25872_s23 + $0x8] ss:$0 sm:$0xff] }
 0xb21   : > { %v6494_v25 = vadd.f32 %v18519_v0, %v16258_v34  ;;  %v8412_v12 = vadd.f32 %v18795_v37, %v16410_v36  ;;  %v6488_v52 = vpop.f32.mrb[97].mxu1  ;;  %v8406_v41 = vpop.f32.mrb[47].mxu0 }
 0xb22   : > { %v6489_v33 = vadd.f32 %v16258_v34, %v6488_v52  ;;  %v8407_v2 = vadd.f32 %v16410_v36, %v8406_v41  ;;  %20014 = vmatprep.subr.msk.bf16.mxu1 %vm23331_vm8, %v20012_v13  ;;  %20114 = vmatprep.subr.msk.bf16.mxu0 %vm23331_vm8, %v20112_v16 }
 0xb24   : > { %v20018_v49 = vpack.c.bf16 %v6494_v25, %v6489_v33  ;;  %v20118_v20 = vpack.c.bf16 %v8412_v12, %v8407_v2  ;;  %v18522_v4 = vpop.f32.mrb[98].mxu1  ;;  %v18798_v38 = vpop.f32.mrb[48].mxu0 }
 0xb25   : > { %v6504_v26 = vadd.f32 %v18522_v4, %v16258_v34  ;;  %v8422_v21 = vadd.f32 %v18798_v38, %v16410_v36  ;;  %v6498_v3 = vpop.f32.mrb[99].mxu1  ;;  %v8416_v15 = vpop.f32.mrb[49].mxu0 }
 0xb26   : > { %v6499_v57 = vadd.f32 %v16258_v34, %v6498_v3  ;;  %v8417_v45 = vadd.f32 %v16410_v36, %v8416_v15 }
 0xb27   : > { %20017 = vmatpush3.bf16.xpose.msk.msra.mxu1 %vm23331_vm8, %v20012_v13  ;;  %20117 = vmatpush3.bf16.xpose.msk.msra.mxu0 %vm23331_vm8, %v20112_v16 }
 0xb28   : > { %v20024_v44 = vpack.c.bf16 %v6504_v26, %v6499_v57  ;;  %v20124_v6 = vpack.c.bf16 %v8422_v21, %v8417_v45  ;;  %v18525_v18 = vpop.f32.mrb[100].mxu1  ;;  %20020 = vmatprep.subr.msk.bf16.mxu1 %vm23331_vm8, %v20018_v49  ;;  %v18801_v54 = vpop.f32.mrb[50].mxu0  ;;  %20120 = vmatprep.subr.msk.bf16.mxu0 %vm23331_vm8, %v20118_v20 }
 0xb29   : > { %v6514_v43 = vadd.f32 %v18525_v18, %v16258_v34  ;;  %v8432_v24 = vadd.f32 %v18801_v54, %v16410_v36  ;;  %v6508_v60 = vpop.f32.mrb[101].mxu1  ;;  %v8426_v28 = vpop.f32.mrb[51].mxu0 }
 0xb2a   : > { %v6509_v59 = vadd.f32 %v16258_v34, %v6508_v60  ;;  %v8427_v32 = vadd.f32 %v16410_v36, %v8426_v28  ;;  %v8268_v60 = vadd.f32 %v23275_v27, %v23271_v35  ;;  %v8562_v27 = vmul.f32 0.35355338, %v23283_v56 }
 0xb2b   : > { %v8564_v56 = vmul.f32 0.35355338, %v23295_v62  ;;  %v8566_v62 = vmul.f32 0.35355338, %v23307_v11  ;;  %v25875_v11 = vld [vmem:[#allocation28_spill] sm:$0xff] }
 0xb2c   : > { %v20030_v13 = vpack.c.bf16 %v6514_v43, %v6509_v59  ;;  %v20130_v0 = vpack.c.bf16 %v8432_v24, %v8427_v32  ;;  %v18530_v16 = vpop.f32.mrb[102].mxu1  ;;  %v9155_v24 = vld [vmem:[%s21473_s12 + $0x18] sm:$0xff]  ;;  %v6355_v59 = vadd.f32 %v23268_v63, %v23285_v22  ;;  %v8273_v32 = vadd.f32 %v23271_v35, %v23287_v5 }
 0xb2d   : > { %v6598_v37 = vadd.f32 %v18530_v16, %v16270_v47  ;;  %v6592_v25 = vpop.f32.mrb[103].mxu1  ;;  %v8563_v35 = vmul.f32 0.35355338, %v23301_v17  ;;  %v9403_v22 = vld [vmem:[%s21473_s12 + $0x58] sm:$0xff]  ;;  %v6647_v5 = vmul.f32 0.35355338, %v23310_v55 }
 0xb2e   : > { %v6593_v12 = vadd.f32 %v16270_v47, %v6592_v25  ;;  %v8561_v16 = vmul.f32 0.35355338, %v8273_v32  ;;  %v6649_v17 = vmul.f32 0.35355338, %v23322_v19  ;;  %v8567_v55 = vmul.f32 0.35355338, %v23325_v31 }
 0xb2f   : > { %20023 = vmatpush3.bf16.xpose.msk.msra.mxu1 %vm23331_vm8, %v20018_v49  ;;  %20123 = vmatpush3.bf16.xpose.msk.msra.mxu0 %vm23331_vm8, %v20118_v20  ;;  %vm6237_vm9 = vcmp.lt.s32.totalorder %v25875_v11, 79 }
 0xb30   : > { %v20036_v52 = vpack.c.bf16 %v6598_v37, %v6593_v12  ;;  %v18533_v41 = vpop.f32.mrb[104].mxu1  ;;  %20026 = vmatprep.subr.msk.bf16.mxu1 %vm23331_vm8, %v20024_v44  ;;  %20126 = vmatprep.subr.msk.bf16.mxu0 %vm23331_vm8, %v20124_v6 }
 0xb31   : > { %v6608_v34 = vadd.f32 %v18533_v41, %v16270_v47  ;;  %v6602_v36 = vpop.f32.mrb[105].mxu1 }
 0xb32   : > { %v6603_v33 = vadd.f32 %v16270_v47, %v6602_v36 }
 0xb34   : > { %v20040_v2 = vpack.c.bf16 %v6608_v34, %v6603_v33  ;;  %v18536_v4 = vpop.f32.mrb[106].mxu1 }
 0xb35   : > { %v6618_v38 = vadd.f32 %v18536_v4, %v16270_v47  ;;  %v6612_v26 = vpop.f32.mrb[107].mxu1 }
 0xb36   : > { %v6613_v49 = vadd.f32 %v16270_v47, %v6612_v26 }
 0xb37   : > { %20029 = vmatpush3.bf16.xpose.msk.msra.mxu1 %vm23331_vm8, %v20024_v44  ;;  %20129 = vmatpush3.bf16.xpose.msk.msra.mxu0 %vm23331_vm8, %v20124_v6  ;;  %v6350_v6 = vadd.f32 %v23273_v51, %v23268_v63  ;;  %v6644_v51 = vmul.f32 0.35355338, %v23280_v50  ;;  %v6645_v63 = vmul.f32 0.35355338, %v23298_v10  ;;  %v6646_v50 = vmul.f32 0.35355338, %v23292_v39 }
 0xb38   : > { %v20044_v20 = vpack.c.bf16 %v6618_v38, %v6613_v49  ;;  %v18539_v21 = vpop.f32.mrb[108].mxu1  ;;  %20032 = vmatprep.subr.msk.bf16.mxu1 %vm23331_vm8, %v20030_v13  ;;  %20132 = vmatprep.subr.msk.bf16.mxu0 %vm23331_vm8, %v20130_v0  ;;  %v8565_v10 = vmul.f32 0.35355338, %v23313_v14  ;;  %v6648_v39 = vmul.f32 0.35355338, %v23304_v30 }
 0xb39   : > { %v6628_v3 = vadd.f32 %v18539_v21, %v16270_v47  ;;  %v6622_v15 = vpop.f32.mrb[109].mxu1  ;;  %v6650_v14 = vmul.f32 0.35355338, %v23316_v29  ;;  %v8568_v30 = vmul.f32 0.35355338, %v23319_v8 }
 0xb3a   : > { %v6623_v57 = vadd.f32 %v16270_v47, %v6622_v15  ;;  %v21394_v29 = vmov -1e+30  }
 0xb3b   : > { %v23463_v8 = vsel %vm6237_vm9, 0.0, %v21394_v29 }
 0xb3c   : > { %v20048_v45 = vpack.c.bf16 %v6628_v3, %v6623_v57  ;;  %v18542_v18 = vpop.f32.mrb[110].mxu1 }
 0xb3d   : > { %v6638_v54 = vadd.f32 %v18542_v18, %v16270_v47  ;;  %v6632_v43 = vpop.f32.mrb[111].mxu1 }
 0xb3e   : > { %v6633_v44 = vadd.f32 %v16270_v47, %v6632_v43  ;;  %v6642_v47 = vmul.f32 0.35355338, %v6350_v6 }
 0xb3f   : > { %20035 = vmatpush3.bf16.xpose.msk.msra.mxu1 %vm23331_vm8, %v20030_v13  ;;  %20135 = vmatpush3.bf16.xpose.msk.msra.mxu0 %vm23331_vm8, %v20130_v0  ;;  %v8560_v13 = vmul.f32 0.35355338, %v8268_v60  ;;  %v6643_v0 = vmul.f32 0.35355338, %v6355_v59 }
 0xb40   : > { %v20052_v28 = vpack.c.bf16 %v6638_v54, %v6633_v44  ;;  %20037 = vmatprep.subr.bf16.mxu1 %v20036_v52  ;;  %18906 = vmatprep.subr.msk.mxu0 %vm1526_vm5, %v9155_v24 }
 0xb46   : > { %18564 = vmatmul.mubr.msk.f32.vlgmr.msra.gmra.mrb[112].mxu1 %vm6651_vm7, %v6642_v47  ;;  %18840 = vmatmul.mubr.msk.f32.vlgmr.msra.gmra.mrb[52].mxu0 %vm6651_vm7, %v8560_v13 }
 0xb47   : > { %18566 = vmatprep.mubr.msk.f32.mxu1 %vm6651_vm7, %v6643_v0  ;;  %20039 = vmatpush3.bf16.msra.mxu1 %v20036_v52 }
 0xb48   : > { %18842 = vmatprep.mubr.msk.f32.mxu0 %vm6651_vm7, %v8561_v16  ;;  %20041 = vmatprep.subr.bf16.mxu1 %v20040_v2 }
 0xb49   : > { %18907 = vmatpush3.xpose.msk.msra.mxu0 %vm1526_vm5, %v9155_v24 }
 0xb4a   : > { %18567 = vmatmul.mubr.msk.f32.gmra.mrb[114].mxu1 %vm6651_vm7, %v6644_v51  ;;  %18843 = vmatmul.mubr.msk.f32.gmra.mrb[54].mxu0 %vm6651_vm7, %v8562_v27 }
 0xb4b   : > { %18569 = vmatprep.mubr.msk.f32.mxu1 %vm6651_vm7, %v6645_v63  ;;  %20043 = vmatpush3.bf16.msra.mxu1 %v20040_v2 }
 0xb4c   : > { %18845 = vmatprep.mubr.msk.f32.mxu0 %vm6651_vm7, %v8563_v35  ;;  %20045 = vmatprep.subr.bf16.mxu1 %v20044_v20  ;;  %v16474_v35 = vld [vmem:[%s25872_s23 + $0x3] ss:$0 sm:$0xff] }
 0xb4d   : > { %18940 = vmatprep.subr.msk.mxu0 %vm1526_vm5, %v9403_v22 }
 0xb4e   : > { %18570 = vmatmul.mubr.msk.f32.gmra.mrb[116].mxu1 %vm6651_vm7, %v6646_v50  ;;  %18846 = vmatmul.mubr.msk.f32.gmra.mrb[56].mxu0 %vm6651_vm7, %v8564_v56 }
 0xb4f   : > { %18572 = vmatprep.mubr.msk.f32.mxu1 %vm6651_vm7, %v6647_v5  ;;  %20047 = vmatpush3.bf16.msra.mxu1 %v20044_v20 }
 0xb50   : > { %18848 = vmatprep.mubr.msk.f32.mxu0 %vm6651_vm7, %v8565_v10  ;;  %20049 = vmatprep.subr.bf16.mxu1 %v20048_v45 }
 0xb52   : > { %18573 = vmatmul.mubr.msk.f32.gmra.mrb[118].mxu1 %vm6651_vm7, %v6648_v39  ;;  %18849 = vmatmul.mubr.msk.f32.gmra.mrb[58].mxu0 %vm6651_vm7, %v8566_v62 }
 0xb53   : > { %18575 = vmatprep.mubr.msk.f32.mxu1 %vm6651_vm7, %v6649_v17  ;;  %20051 = vmatpush3.bf16.msra.mxu1 %v20048_v45 }
 0xb54   : > { %18851 = vmatprep.mubr.msk.f32.mxu0 %vm6651_vm7, %v8567_v55  ;;  %20053 = vmatprep.subr.bf16.mxu1 %v20052_v28 }
 0xb56   : > { %18576 = vmatmul.mubr.msk.f32.gmra.mrb[120].mxu1 %vm6651_vm7, %v6650_v14  ;;  %18852 = vmatmul.mubr.msk.f32.gmra.mrb[60].mxu0 %vm6651_vm7, %v8568_v30 }
 0xb57   : > { %20055 = vmatpush3.bf16.msra.mxu1 %v20052_v28  ;;  %18908 = vmatprep.mubr.msk.f32.mxu0 %vm1526_vm5, %v23125_v23 }
 0xb5a   : > { %18909 = vmatmul.mubr.msk.f32.vlgmr.msra.gmra.mrb[62].mxu0 %vm1526_vm5, %v23128_v46 }
 0xb5b   : > { %18911 = vmatprep.mubr.msk.f32.mxu0 %vm1526_vm5, %v23142_v40  ;;  %18941 = vmatpush3.xpose.msk.msra.mxu0 %vm1526_vm5, %v9403_v22 }
 0xb5e   : > { %18912 = vmatmul.mubr.msk.f32.gmra.mrb[64].mxu0 %vm1526_vm5, %v23149_v58 }
 0xb5f   : > { %18914 = vmatprep.mubr.msk.f32.mxu0 %vm1526_vm5, %v23163_v42 }
 0xb62   : > { %18915 = vmatmul.mubr.msk.f32.gmra.mrb[66].mxu0 %vm1526_vm5, %v23166_v48 }
 0xb63   : > { %18917 = vmatprep.mubr.msk.f32.mxu0 %vm1526_vm5, %v23179_v9 }
 0xb66   : > { %18918 = vmatmul.mubr.msk.f32.gmra.mrb[68].mxu0 %vm1526_vm5, %v23182_v7 }
 0xb67   : > { %18920 = vmatprep.mubr.msk.f32.mxu0 %vm1526_vm5, %v23194_v61 }
 0xb6a   : > { %18921 = vmatmul.mubr.msk.f32.gmra.mrb[70].mxu0 %vm1526_vm5, %v23196_v1 }
 0xb6b   : > { %18942 = vmatprep.mubr.msk.f32.mxu0 %vm1526_vm5, %v23125_v23 }
 0xb6e   : > { %18943 = vmatmul.mubr.msk.f32.vlgmr.msra.gmra.mrb[72].mxu0 %vm1526_vm5, %v23128_v46 }
 0xb6f   : > { %18945 = vmatprep.mubr.msk.f32.mxu0 %vm1526_vm5, %v23142_v40 }
 0xb72   : > { %18946 = vmatmul.mubr.msk.f32.gmra.mrb[74].mxu0 %vm1526_vm5, %v23149_v58 }
 0xb73   : > { %18948 = vmatprep.mubr.msk.f32.mxu0 %vm1526_vm5, %v23163_v42 }
 0xb76   : > { %18949 = vmatmul.mubr.msk.f32.gmra.mrb[76].mxu0 %vm1526_vm5, %v23166_v48 }
 0xb77   : > { %18951 = vmatprep.mubr.msk.f32.mxu0 %vm1526_vm5, %v23179_v9 }
 0xb7a   : > { %18952 = vmatmul.mubr.msk.f32.gmra.mrb[78].mxu0 %vm1526_vm5, %v23182_v7 }
 0xb7b   : > { %18954 = vmatprep.mubr.msk.f32.mxu0 %vm1526_vm5, %v23194_v61 }
 0xb7e   : > { %18955 = vmatmul.mubr.msk.f32.gmra.mrb[80].mxu0 %vm1526_vm5, %v23196_v1 }
 0xc19   : > { %v18565_v19 = vpop.f32.mrb[112].mxu1  ;;  %v23465_v31 = vpop.f32.mrb[52].mxu0 }
 0xc1a   : > { %v23468_v37 = vadd.f32 %v18565_v19, %v23463_v8  ;;  %v6778_v25 = vpop.f32.mrb[113].mxu1  ;;  %v23470_v12 = vpop.f32.mrb[53].mxu0 }
 0xc1b   : > { %v23473_v52 = vadd.f32 %v6778_v25, %v23463_v8 }
 0xc1c   : > { %v6831_v41 = vsel %vm6827_vm10, %v23468_v37, -inf }
 0xc1d   : > { %v23477_v34 = vpop.f32.mrb[54].mxu0  ;;  %6832 = vmax.xlane.f32.xlu1 %v6831_v41  ;;  %v18568_v36 = vpop.f32.mrb[114].mxu1  ;;  %v6828_v33 = vsel %vm6827_vm10, %v23473_v52, -inf }
 0xc1e   : > { %v23482_v2 = vadd.f32 %v18568_v36, %v23463_v8  ;;  %v6788_v4 = vpop.f32.mrb[115].mxu1  ;;  %v23484_v38 = vpop.f32.mrb[55].mxu0  ;;  %6829 = vmax.xlane.f32.xlu0 %v6828_v33 }
 0xc1f   : > { %v23487_v26 = vadd.f32 %v6788_v4, %v23463_v8 }
 0xc20   : > { %v6837_v49 = vsel %vm6827_vm10, %v23482_v2, -inf }
 0xc21   : > { %v23491_v20 = vpop.f32.mrb[56].mxu0  ;;  %6838 = vmax.xlane.f32.xlu1 %v6837_v49  ;;  %v18571_v21 = vpop.f32.mrb[116].mxu1  ;;  %v6834_v3 = vsel %vm6827_vm10, %v23487_v26, -inf }
 0xc22   : > { %v23496_v15 = vadd.f32 %v18571_v21, %v23463_v8  ;;  %v6798_v57 = vpop.f32.mrb[117].mxu1  ;;  %v23498_v45 = vpop.f32.mrb[57].mxu0  ;;  %6835 = vmax.xlane.f32.xlu0 %v6834_v3  ;;  %v16498_v3 = vld [vmem:[%s25872_s23 + $0xb] ss:$0 sm:$0xff] }
 0xc23   : > { %v23501_v18 = vadd.f32 %v6798_v57, %v23463_v8 }
 0xc24   : > { %v6843_v54 = vsel %vm6827_vm10, %v23496_v15, -inf }
 0xc25   : > { %v23505_v43 = vpop.f32.mrb[58].mxu0  ;;  %6844 = vmax.xlane.f32.xlu1 %v6843_v54  ;;  %v18574_v24 = vpop.f32.mrb[118].mxu1  ;;  %v6840_v44 = vsel %vm6827_vm10, %v23501_v18, -inf }
 0xc26   : > { %v23510_v6 = vadd.f32 %v18574_v24, %v23463_v8  ;;  %v6808_v60 = vpop.f32.mrb[119].mxu1  ;;  %v23512_v28 = vpop.f32.mrb[59].mxu0  ;;  %6841 = vmax.xlane.f32.xlu0 %v6840_v44 }
 0xc27   : > { %v23515_v59 = vadd.f32 %v6808_v60, %v23463_v8 }
 0xc28   : > { %v6849_v32 = vsel %vm6827_vm10, %v23510_v6, -inf }
 0xc29   : > { %v23519_v47 = vpop.f32.mrb[60].mxu0  ;;  %6850 = vmax.xlane.f32.xlu1 %v6849_v32  ;;  %v18577_v13 = vpop.f32.mrb[120].mxu1  ;;  %v6846_v0 = vsel %vm6827_vm10, %v23515_v59, -inf }
 0xc2a   : > { %v23524_v16 = vadd.f32 %v18577_v13, %v23463_v8  ;;  %v6818_v51 = vpop.f32.mrb[121].mxu1  ;;  %v23526_v27 = vpop.f32.mrb[61].mxu0  ;;  %6847 = vmax.xlane.f32.xlu0 %v6846_v0 }
 0xc2b   : > { %v23529_v63 = vadd.f32 %v6818_v51, %v23463_v8 }
 0xc2c   : > { %v6855_v22 = vsel %vm6827_vm10, %v23524_v16, -inf }
 0xc2d   : > { %v18910_v50 = vpop.f32.mrb[62].mxu0  ;;  %6856 = vmax.xlane.f32.xlu1 %v6855_v22  ;;  %v6852_v56 = vsel %vm6827_vm10, %v23529_v63, -inf }
 0xc2e   : > { %v23536_v5 = vadd.f32 %v18910_v50, %v16474_v35  ;;  %v23538_v10 = vpop.f32.mrb[63].mxu0  ;;  %6853 = vmax.xlane.f32.xlu0 %v6852_v56 }
 0xc31   : > { %v18913_v39 = vpop.f32.mrb[64].mxu0 }
 0xc32   : > { %v23540_v62 = vadd.f32 %v18913_v39, %v16474_v35  ;;  %v9240_v17 = vpop.f32.mrb[65].mxu0 }
 0xc33   : > { %v23542_v55 = vadd.f32 %v16474_v35, %v9240_v17 }
 0xc34   : > { %25876 = vst [vmem:[#allocation39_spill] sm:$0xff] %v23540_v62 }
 0xc35   : > { %25877 = vst [vmem:[#allocation40_spill] sm:$0xff] %v23542_v55  ;;  %v18916_v14 = vpop.f32.mrb[66].mxu0 }
 0xc36   : > { %v23544_v30 = vadd.f32 %v18916_v14, %v16474_v35  ;;  %v9250_v11 = vpop.f32.mrb[67].mxu0 }
 0xc37   : > { %v23546_v29 = vadd.f32 %v16474_v35, %v9250_v11 }
 0xc38   : > { %25878 = vst [vmem:[#allocation41_spill] sm:$0xff] %v23544_v30 }
 0xc39   : > { %25879 = vst [vmem:[#allocation42_spill] sm:$0xff] %v23546_v29  ;;  %v18919_v19 = vpop.f32.mrb[68].mxu0 }
 0xc3a   : > { %v23548_v25 = vadd.f32 %v18919_v19, %v16474_v35  ;;  %v9260_v41 = vpop.f32.mrb[69].mxu0 }
 0xc3b   : > { %v23550_v36 = vadd.f32 %v16474_v35, %v9260_v41 }
 0xc3c   : > { %25880 = vst [vmem:[#allocation43_spill] sm:$0xff] %v23548_v25 }
 0xc3d   : > { %25881 = vst [vmem:[#allocation44_spill] sm:$0xff] %v23550_v36  ;;  %v18922_v33 = vpop.f32.mrb[70].mxu0 }
 0xc3e   : > { %v23552_v4 = vadd.f32 %v18922_v33, %v16474_v35  ;;  %v9270_v49 = vpop.f32.mrb[71].mxu0 }
 0xc3f   : > { %v23554_v21 = vadd.f32 %v16474_v35, %v9270_v49 }
 0xc40   : > { %25882 = vst [vmem:[#allocation45_spill] sm:$0xff] %v23552_v4 }
 0xc41   : > { %25883 = vst [vmem:[#allocation46_spill] sm:$0xff] %v23554_v21  ;;  %v18944_v57 = vpop.f32.mrb[72].mxu0 }
 0xc42   : > { %v9484_v54 = vadd.f32 %v18944_v57, %v16498_v3  ;;  %v9478_v24 = vpop.f32.mrb[73].mxu0 }
 0xc43   : > { %v9479_v44 = vadd.f32 %v16498_v3, %v9478_v24 }
 0xc45   : > { %v20186_v60 = vpack.c.bf16 %v9484_v54, %v9479_v44  ;;  %v18947_v32 = vpop.f32.mrb[74].mxu0 }
 0xc46   : > { %v9494_v13 = vadd.f32 %v18947_v32, %v16498_v3  ;;  %v9488_v0 = vpop.f32.mrb[75].mxu0 }
 0xc47   : > { %v9489_v51 = vadd.f32 %v16498_v3, %v9488_v0  ;;  %20187 = vmatprep.subr.bf16.mxu0 %v20186_v60 }
 0xc48   : > { %20189 = vmatpush3.bf16.msra.mxu0 %v20186_v60 }
 0xc49   : > { %v20190_v22 = vpack.c.bf16 %v9494_v13, %v9489_v51  ;;  %v18950_v50 = vpop.f32.mrb[76].mxu0 }
 0xc4a   : > { %v9504_v56 = vadd.f32 %v18950_v50, %v16498_v3  ;;  %v9498_v39 = vpop.f32.mrb[77].mxu0 }
 0xc4b   : > { %v9499_v17 = vadd.f32 %v16498_v3, %v9498_v39  ;;  %20191 = vmatprep.subr.bf16.mxu0 %v20190_v22 }
 0xc4c   : > { %20193 = vmatpush3.bf16.msra.mxu0 %v20190_v22 }
 0xc4d   : > { %v20194_v35 = vpack.c.bf16 %v9504_v56, %v9499_v17  ;;  %v18953_v14 = vpop.f32.mrb[78].mxu0 }
 0xc4e   : > { %v9514_v11 = vadd.f32 %v18953_v14, %v16498_v3  ;;  %v9508_v19 = vpop.f32.mrb[79].mxu0 }
 0xc4f   : > { %v9509_v41 = vadd.f32 %v16498_v3, %v9508_v19  ;;  %20195 = vmatprep.subr.bf16.mxu0 %v20194_v35 }
 0xc50   : > { %20197 = vmatpush3.bf16.msra.mxu0 %v20194_v35 }
 0xc51   : > { %v20198_v33 = vpack.c.bf16 %v9514_v11, %v9509_v41  ;;  %v18956_v49 = vpop.f32.mrb[80].mxu0 }
 0xc52   : > { %v9524_v57 = vadd.f32 %v18956_v49, %v16498_v3  ;;  %v9518_v54 = vpop.f32.mrb[81].mxu0 }
 0xc53   : > { %v9519_v24 = vadd.f32 %v16498_v3, %v9518_v54  ;;  %20199 = vmatprep.subr.bf16.mxu0 %v20198_v33 }
 0xc54   : > { %20201 = vmatpush3.bf16.msra.mxu0 %v20198_v33 }
 0xc55   : > { %v20202_v44 = vpack.c.bf16 %v9524_v57, %v9519_v24 }
 0xc57   : > { %20203 = vmatprep.subr.bf16.mxu0 %v20202_v44 }
 0xc58   : > { %20205 = vmatpush3.bf16.msra.mxu0 %v20202_v44 }
 0xcaa   : > { %v6833_v60 = vpop.xlane.xlu1 %6832 }
 0xcab   : > { %v6859_v32 = vsub.f32 %v23468_v37, %v6833_v60  ;;  %v6830_v13 = vpop.xlane.xlu0 %6829 }
 0xcac   : > { %v6858_v0 = vsub.f32 %v23473_v52, %v6830_v13 }
 0xcad   : > { %v6870_v51 = vmul.f32 1.442695, %v6859_v32 }
 0xcae   : > { %v6868_v22 = vmul.f32 1.442695, %v6858_v0  ;;  %v6839_v50 = vpop.xlane.xlu1 %6838 }
 0xcaf   : > { %20879 = vpow2.f32 %v6870_v51  ;;  %v6861_v56 = vsub.f32 %v23482_v2, %v6839_v50  ;;  %v6836_v39 = vpop.xlane.xlu0 %6835 }
 0xcb0   : > { %20881 = vpow2.f32 %v6868_v22  ;;  %v6860_v3 = vsub.f32 %v23487_v26, %v6836_v39 }
 0xcb1   : > { %v6874_v17 = vmul.f32 1.442695, %v6861_v56 }
 0xcb2   : > { %v6872_v35 = vmul.f32 1.442695, %v6860_v3  ;;  %v6845_v14 = vpop.xlane.xlu1 %6844 }
 0xcb3   : > { %20883 = vpow2.f32 %v6874_v17  ;;  %v6863_v11 = vsub.f32 %v23496_v15, %v6845_v14  ;;  %v6842_v37 = vpop.xlane.xlu0 %6841 }
 0xcb4   : > { %20885 = vpow2.f32 %v6872_v35  ;;  %v6862_v52 = vsub.f32 %v23501_v18, %v6842_v37 }
 0xcb5   : > { %v6878_v19 = vmul.f32 1.442695, %v6863_v11 }
 0xcb6   : > { %v6876_v41 = vmul.f32 1.442695, %v6862_v52  ;;  %v6851_v33 = vpop.xlane.xlu1 %6850 }
 0xcb7   : > { %20887 = vpow2.f32 %v6878_v19  ;;  %v6865_v2 = vsub.f32 %v23510_v6, %v6851_v33  ;;  %v6848_v49 = vpop.xlane.xlu0 %6847  ;;  %v7084_v33 = vld [vmem:[%s21473_s12 + $0x8] sm:$0xff] }
 0xcb8   : > { %20889 = vpow2.f32 %v6876_v41  ;;  %v6864_v26 = vsub.f32 %v23515_v59, %v6848_v49  ;;  %18613 = vmatprep.subr.msk.mxu1 %vm1526_vm5, %v7084_v33 }
 0xcb9   : > { %v20880_v57 = vpop.eup %20879  ;;  %v6882_v54 = vmul.f32 1.442695, %v6865_v2 }
 0xcba   : > { %v20882_v24 = vpop.eup %20881  ;;  %v6880_v44 = vmul.f32 1.442695, %v6864_v26  ;;  %v6857_v60 = vpop.xlane.xlu1 %6856  ;;  %v6891_v15 = vsel %vm6827_vm10, %v20880_v57, 0.0 }
 0xcbb   : > { %20891 = vpow2.f32 %v6882_v54  ;;  %v6867_v18 = vsub.f32 %v23524_v16, %v6857_v60  ;;  %6892 = vadd.xlane.f32.xlu1 %v6891_v15  ;;  %v6854_v32 = vpop.xlane.xlu0 %6853  ;;  %v6888_v13 = vsel %vm6827_vm10, %v20882_v24, 0.0 }
 0xcbc   : > { %20893 = vpow2.f32 %v6880_v44  ;;  %v6866_v6 = vsub.f32 %v23529_v63, %v6854_v32  ;;  %6889 = vadd.xlane.f32.xlu0 %v6888_v13 }
 0xcbd   : > { %v20884_v0 = vpop.eup %20883  ;;  %v6886_v59 = vmul.f32 1.442695, %v6867_v18 }
 0xcbe   : > { %v20886_v51 = vpop.eup %20885  ;;  %v6884_v22 = vmul.f32 1.442695, %v6866_v6  ;;  %v6897_v50 = vsel %vm6827_vm10, %v20884_v0, 0.0 }
 0xcbf   : > { %20895 = vpow2.f32 %v6886_v59  ;;  %6898 = vadd.xlane.f32.xlu1 %v6897_v50  ;;  %v6894_v56 = vsel %vm6827_vm10, %v20886_v51, 0.0  ;;  %v7208_v50 = vld [vmem:[%s21473_s12 + $0x28] sm:$0xff] }
 0xcc0   : > { %20897 = vpow2.f32 %v6884_v22  ;;  %6895 = vadd.xlane.f32.xlu0 %v6894_v56 }
 0xcc1   : > { %v20888_v16 = vpop.eup %20887 }
 0xcc2   : > { %v20890_v39 = vpop.eup %20889  ;;  %v6903_v3 = vsel %vm6827_vm10, %v20888_v16, 0.0 }
 0xcc3   : > { %6904 = vadd.xlane.f32.xlu1 %v6903_v3  ;;  %v6900_v63 = vsel %vm6827_vm10, %v20890_v39, 0.0 }
 0xcc4   : > { %6901 = vadd.xlane.f32.xlu0 %v6900_v63 }
 0xcc5   : > { %v20892_v17 = vpop.eup %20891 }
 0xcc6   : > { %v20894_v35 = vpop.eup %20893  ;;  %v6909_v14 = vsel %vm6827_vm10, %v20892_v17, 0.0 }
 0xcc7   : > { %6910 = vadd.xlane.f32.xlu1 %v6909_v14  ;;  %v6906_v11 = vsel %vm6827_vm10, %v20894_v35, 0.0 }
 0xcc8   : > { %6907 = vadd.xlane.f32.xlu0 %v6906_v11 }
 0xcc9   : > { %v20896_v37 = vpop.eup %20895 }
 0xcca   : > { %v20898_v52 = vpop.eup %20897  ;;  %v6915_v19 = vsel %vm6827_vm10, %v20896_v37, 0.0 }
 0xccb   : > { %6916 = vadd.xlane.f32.xlu1 %v6915_v19  ;;  %v6912_v41 = vsel %vm6827_vm10, %v20898_v52, 0.0 }
 0xccc   : > { %6913 = vadd.xlane.f32.xlu0 %v6912_v41 }
 0xd48   : > { %v6893_v2 = vpop.xlane.xlu1 %6892 }
 0xd49   : > { %20899 = vrcp.f32 %v6893_v2  ;;  %v6890_v49 = vpop.xlane.xlu0 %6889 }
 0xd4a   : > { %20901 = vrcp.f32 %v6890_v49 }
 0xd4c   : > { %v6899_v26 = vpop.xlane.xlu1 %6898 }
 0xd4d   : > { %20903 = vrcp.f32 %v6899_v26  ;;  %v6896_v54 = vpop.xlane.xlu0 %6895 }
 0xd4e   : > { %20905 = vrcp.f32 %v6896_v54 }
 0xd50   : > { %v6905_v44 = vpop.xlane.xlu1 %6904 }
 0xd51   : > { %20907 = vrcp.f32 %v6905_v44  ;;  %v6902_v60 = vpop.xlane.xlu0 %6901 }
 0xd52   : > { %20909 = vrcp.f32 %v6902_v60 }
 0xd53   : > { %v20900_v15 = vpop.eup %20899 }
 0xd54   : > { %v20902_v18 = vpop.eup %20901  ;;  %v6911_v32 = vpop.xlane.xlu1 %6910  ;;  %v6929_v59 = vmul.f32 %v20900_v15, %v20880_v57 }
 0xd55   : > { %20911 = vrcp.f32 %v6911_v32  ;;  %v6908_v13 = vpop.xlane.xlu0 %6907  ;;  %v6928_v6 = vmul.f32 %v20902_v18, %v20882_v24 }
 0xd56   : > { %20913 = vrcp.f32 %v6908_v13 }
 0xd57   : > { %v20904_v22 = vpop.eup %20903  ;;  %18598 = vmatprep.mubr.msk.f32.mxu1 %vm6827_vm10, %v6928_v6  ;;  %v23677_v6 = vld [vmem:[%s25872_s23 + $0x1] ss:$0 sm:$0xff] }
 0xd58   : > { %v20906_v56 = vpop.eup %20905  ;;  %v6917_v3 = vpop.xlane.xlu1 %6916  ;;  %18599 = vmatmul.mubr.msk.f32.vlgmr.msra.gmra.mrb[122].mxu1 %vm6827_vm10, %v6929_v59  ;;  %v6931_v11 = vmul.f32 %v20904_v22, %v20884_v0 }
 0xd59   : > { %20915 = vrcp.f32 %v6917_v3  ;;  %18614 = vmatpush3.xpose.msk.msra.mxu1 %vm1526_vm5, %v7084_v33  ;;  %v6914_v63 = vpop.xlane.xlu0 %6913  ;;  %v6930_v14 = vmul.f32 %v20906_v56, %v20886_v51 }
 0xd5a   : > { %20917 = vrcp.f32 %v6914_v63  ;;  %18630 = vmatprep.subr.msk.mxu1 %vm1526_vm5, %v7208_v50 }
 0xd5b   : > { %v20908_v24 = vpop.eup %20907  ;;  %18601 = vmatprep.mubr.msk.f32.mxu1 %vm6827_vm10, %v6930_v14 }
 0xd5c   : > { %v20910_v57 = vpop.eup %20909  ;;  %18602 = vmatmul.mubr.msk.f32.gmra.mrb[124].mxu1 %vm6827_vm10, %v6931_v11  ;;  %v6933_v41 = vmul.f32 %v20908_v24, %v20888_v16  ;;  %v7332_v16 = vld [vmem:[%s21473_s12 + $0x48] sm:$0xff] }
 0xd5d   : > { %v6932_v19 = vmul.f32 %v20910_v57, %v20890_v39 }
 0xd5f   : > { %v20912_v2 = vpop.eup %20911  ;;  %18604 = vmatprep.mubr.msk.f32.mxu1 %vm6827_vm10, %v6932_v19 }
 0xd60   : > { %v20914_v49 = vpop.eup %20913  ;;  %18605 = vmatmul.mubr.msk.f32.gmra.mrb[126].mxu1 %vm6827_vm10, %v6933_v41  ;;  %v6935_v33 = vmul.f32 %v20912_v2, %v20892_v17 }
 0xd61   : > { %v6934_v51 = vmul.f32 %v20914_v49, %v20894_v35 }
 0xd63   : > { %v20916_v0 = vpop.eup %20915  ;;  %18607 = vmatprep.mubr.msk.f32.mxu1 %vm6827_vm10, %v6934_v51 }
 0xd64   : > { %v20918_v26 = vpop.eup %20917  ;;  %18608 = vmatmul.mubr.msk.f32.gmra.mrb[128].mxu1 %vm6827_vm10, %v6935_v33  ;;  %v6937_v44 = vmul.f32 %v20916_v0, %v20896_v37 }
 0xd65   : > { %v6936_v54 = vmul.f32 %v20918_v26, %v20898_v52 }
 0xd67   : > { %18610 = vmatprep.mubr.msk.f32.mxu1 %vm6827_vm10, %v6936_v54 }
 0xd68   : > { %18611 = vmatmul.mubr.msk.f32.gmra.mrb[130].mxu1 %vm6827_vm10, %v6937_v44  ;;  %v16324_v44 = vld [vmem:[%s25872_s23 + $0x5] ss:$0 sm:$0xff] }
 0xd69   : > { %18615 = vmatprep.mubr.msk.f32.mxu1 %vm1526_vm5, %v23125_v23 }
 0xd6c   : > { %18616 = vmatmul.mubr.msk.f32.vlgmr.msra.gmra.mrb[132].mxu1 %vm1526_vm5, %v23128_v46 }
 0xd6d   : > { %18618 = vmatprep.mubr.msk.f32.mxu1 %vm1526_vm5, %v23142_v40  ;;  %18631 = vmatpush3.xpose.msk.msra.mxu1 %vm1526_vm5, %v7208_v50 }
 0xd6e   : > { %18647 = vmatprep.subr.msk.mxu1 %vm1526_vm5, %v7332_v16 }
 0xd70   : > { %18619 = vmatmul.mubr.msk.f32.gmra.mrb[134].mxu1 %vm1526_vm5, %v23149_v58 }
 0xd71   : > { %18621 = vmatprep.mubr.msk.f32.mxu1 %vm1526_vm5, %v23163_v42 }
 0xd74   : > { %18622 = vmatmul.mubr.msk.f32.gmra.mrb[136].mxu1 %vm1526_vm5, %v23166_v48 }
 0xd75   : > { %18624 = vmatprep.mubr.msk.f32.mxu1 %vm1526_vm5, %v23179_v9 }
 0xd78   : > { %18625 = vmatmul.mubr.msk.f32.gmra.mrb[138].mxu1 %vm1526_vm5, %v23182_v7 }
 0xd79   : > { %18627 = vmatprep.mubr.msk.f32.mxu1 %vm1526_vm5, %v23194_v61 }
 0xd7c   : > { %18628 = vmatmul.mubr.msk.f32.gmra.mrb[140].mxu1 %vm1526_vm5, %v23196_v1 }
 0xd7d   : > { %18632 = vmatprep.mubr.msk.f32.mxu1 %vm1526_vm5, %v23125_v23 }
 0xd80   : > { %18633 = vmatmul.mubr.msk.f32.vlgmr.msra.gmra.mrb[142].mxu1 %vm1526_vm5, %v23128_v46 }
 0xd81   : > { %18635 = vmatprep.mubr.msk.f32.mxu1 %vm1526_vm5, %v23142_v40  ;;  %18648 = vmatpush3.xpose.msk.msra.mxu1 %vm1526_vm5, %v7332_v16 }
 0xd84   : > { %18636 = vmatmul.mubr.msk.f32.gmra.mrb[144].mxu1 %vm1526_vm5, %v23149_v58 }
 0xd85   : > { %18638 = vmatprep.mubr.msk.f32.mxu1 %vm1526_vm5, %v23163_v42 }
 0xd88   : > { %18639 = vmatmul.mubr.msk.f32.gmra.mrb[146].mxu1 %vm1526_vm5, %v23166_v48 }
 0xd89   : > { %18641 = vmatprep.mubr.msk.f32.mxu1 %vm1526_vm5, %v23179_v9 }
 0xd8c   : > { %18642 = vmatmul.mubr.msk.f32.gmra.mrb[148].mxu1 %vm1526_vm5, %v23182_v7 }
 0xd8d   : > { %18644 = vmatprep.mubr.msk.f32.mxu1 %vm1526_vm5, %v23194_v61 }
 0xd90   : > { %18645 = vmatmul.mubr.msk.f32.gmra.mrb[150].mxu1 %vm1526_vm5, %v23196_v1 }
 0xd91   : > { %18649 = vmatprep.mubr.msk.f32.mxu1 %vm1526_vm5, %v23125_v23 }
 0xd94   : > { %18650 = vmatmul.mubr.msk.f32.vlgmr.msra.gmra.mrb[152].mxu1 %vm1526_vm5, %v23128_v46 }
 0xd95   : > { %18652 = vmatprep.mubr.msk.f32.mxu1 %vm1526_vm5, %v23142_v40 }
 0xd98   : > { %18653 = vmatmul.mubr.msk.f32.gmra.mrb[154].mxu1 %vm1526_vm5, %v23149_v58 }
 0xd99   : > { %18655 = vmatprep.mubr.msk.f32.mxu1 %vm1526_vm5, %v23163_v42 }
 0xd9c   : > { %18656 = vmatmul.mubr.msk.f32.gmra.mrb[156].mxu1 %vm1526_vm5, %v23166_v48 }
 0xd9d   : > { %18658 = vmatprep.mubr.msk.f32.mxu1 %vm1526_vm5, %v23179_v9 }
 0xda0   : > { %18659 = vmatmul.mubr.msk.f32.gmra.mrb[158].mxu1 %vm1526_vm5, %v23182_v7 }
 0xda1   : > { %18661 = vmatprep.mubr.msk.f32.mxu1 %vm1526_vm5, %v23194_v61 }
 0xda4   : > { %18662 = vmatmul.mubr.msk.f32.gmra.mrb[160].mxu1 %vm1526_vm5, %v23196_v1 }
 0xe2b   : > { %v23656_v39 = vpop.f32.mrb[122].mxu1 }
 0xe2c   : > { %v23658_v17 = vpop.f32.mrb[123].mxu1 }
 0xe2f   : > { %v23660_v35 = vpop.f32.mrb[124].mxu1 }
 0xe30   : > { %v23662_v37 = vpop.f32.mrb[125].mxu1 }
 0xe33   : > { %v23664_v52 = vpop.f32.mrb[126].mxu1 }
 0xe34   : > { %v23666_v60 = vpop.f32.mrb[127].mxu1 }
 0xe37   : > { %v23668_v15 = vpop.f32.mrb[128].mxu1 }
 0xe38   : > { %v23670_v18 = vpop.f32.mrb[129].mxu1 }
 0xe3b   : > { %v23672_v32 = vpop.f32.mrb[130].mxu1 }
 0xe3c   : > { %v23674_v13 = vpop.f32.mrb[131].mxu1 }
 0xe3f   : > { %v23679_v59 = vpop.f32.mrb[132].mxu1 }
 0xe40   : > { %v7159_v22 = vpop.f32.mrb[133].mxu1 }
 0xe41   : > { %v7160_v50 = vadd.f32 %v23677_v6, %v7159_v22 }
 0xe43   : > { %v7456_v56 = vmul.f32 0.35355338, %v7160_v50  ;;  %v18620_v3 = vpop.f32.mrb[134].mxu1 }
 0xe44   : > { %v23683_v63 = vadd.f32 %v18620_v3, %v23677_v6  ;;  %v23685_v14 = vpop.f32.mrb[135].mxu1 }
 0xe45   : > { %18684 = vmatprep.mubr.msk.f32.mxu1 %vm6651_vm7, %v7456_v56 }
 0xe47   : > { %v18623_v11 = vpop.f32.mrb[136].mxu1 }
 0xe48   : > { %v23689_v24 = vadd.f32 %v18623_v11, %v23677_v6  ;;  %v7179_v57 = vpop.f32.mrb[137].mxu1 }
 0xe49   : > { %v23692_v19 = vadd.f32 %v23677_v6, %v7179_v57 }
 0xe4b   : > { %v18626_v41 = vpop.f32.mrb[138].mxu1 }
 0xe4c   : > { %v23695_v2 = vadd.f32 %v18626_v41, %v23677_v6  ;;  %v7189_v49 = vpop.f32.mrb[139].mxu1 }
 0xe4d   : > { %v23698_v51 = vadd.f32 %v23677_v6, %v7189_v49 }
 0xe4f   : > { %v18629_v33 = vpop.f32.mrb[140].mxu1 }
 0xe50   : > { %v23701_v0 = vadd.f32 %v18629_v33, %v23677_v6  ;;  %v7199_v26 = vpop.f32.mrb[141].mxu1 }
 0xe51   : > { %v23704_v54 = vadd.f32 %v23677_v6, %v7199_v26 }
 0xe53   : > { %v18634_v16 = vpop.f32.mrb[142].mxu1 }
 0xe54   : > { %v7289_v22 = vadd.f32 %v18634_v16, %v16324_v44  ;;  %v7283_v50 = vpop.f32.mrb[143].mxu1 }
 0xe55   : > { %v7284_v56 = vadd.f32 %v16324_v44, %v7283_v50 }
 0xe57   : > { %v20056_v3 = vpack.c.bf16 %v7289_v22, %v7284_v56  ;;  %v18637_v11 = vpop.f32.mrb[144].mxu1 }
 0xe58   : > { %v7299_v57 = vadd.f32 %v18637_v11, %v16324_v44  ;;  %v7293_v41 = vpop.f32.mrb[145].mxu1 }
 0xe59   : > { %v7294_v4 = vadd.f32 %v16324_v44, %v7293_v41  ;;  %20058 = vmatprep.subr.msk.bf16.mxu1 %vm23331_vm8, %v20056_v3 }
 0xe5a   : > { %20061 = vmatpush3.bf16.xpose.msk.msra.mxu1 %vm23331_vm8, %v20056_v3 }
 0xe5b   : > { %v20062_v49 = vpack.c.bf16 %v7299_v57, %v7294_v4  ;;  %v18640_v33 = vpop.f32.mrb[146].mxu1 }
 0xe5c   : > { %v7309_v26 = vadd.f32 %v18640_v33, %v16324_v44  ;;  %v7303_v21 = vpop.f32.mrb[147].mxu1 }
 0xe5d   : > { %v7304_v25 = vadd.f32 %v16324_v44, %v7303_v21  ;;  %20064 = vmatprep.subr.msk.bf16.mxu1 %vm23331_vm8, %v20062_v49  ;;  %v16336_v21 = vld [vmem:[%s25872_s23 + $0x9] ss:$0 sm:$0xff] }
 0xe5f   : > { %v20068_v16 = vpack.c.bf16 %v7309_v26, %v7304_v25  ;;  %v18643_v22 = vpop.f32.mrb[148].mxu1 }
 0xe60   : > { %v7319_v50 = vadd.f32 %v18643_v22, %v16324_v44  ;;  %v7313_v56 = vpop.f32.mrb[149].mxu1 }
 0xe61   : > { %v7314_v11 = vadd.f32 %v16324_v44, %v7313_v56 }
 0xe62   : > { %20067 = vmatpush3.bf16.xpose.msk.msra.mxu1 %vm23331_vm8, %v20062_v49 }
 0xe63   : > { %v20074_v41 = vpack.c.bf16 %v7319_v50, %v7314_v11  ;;  %v18646_v36 = vpop.f32.mrb[150].mxu1  ;;  %20070 = vmatprep.subr.msk.bf16.mxu1 %vm23331_vm8, %v20068_v16 }
 0xe64   : > { %v7329_v4 = vadd.f32 %v18646_v36, %v16324_v44  ;;  %v7323_v3 = vpop.f32.mrb[151].mxu1 }
 0xe65   : > { %v7324_v57 = vadd.f32 %v16324_v44, %v7323_v3 }
 0xe67   : > { %v20080_v33 = vpack.c.bf16 %v7329_v4, %v7324_v57  ;;  %v18651_v30 = vpop.f32.mrb[152].mxu1 }
 0xe68   : > { %v7413_v29 = vadd.f32 %v18651_v30, %v16336_v21  ;;  %v7407_v25 = vpop.f32.mrb[153].mxu1 }
 0xe69   : > { %v7408_v26 = vadd.f32 %v16336_v21, %v7407_v25 }
 0xe6a   : > { %20073 = vmatpush3.bf16.xpose.msk.msra.mxu1 %vm23331_vm8, %v20068_v16 }
 0xe6b   : > { %v20086_v22 = vpack.c.bf16 %v7413_v29, %v7408_v26  ;;  %v18654_v56 = vpop.f32.mrb[154].mxu1  ;;  %20076 = vmatprep.subr.msk.bf16.mxu1 %vm23331_vm8, %v20074_v41 }
 0xe6c   : > { %v7423_v49 = vadd.f32 %v18654_v56, %v16336_v21  ;;  %v7417_v50 = vpop.f32.mrb[155].mxu1 }
 0xe6d   : > { %v7418_v11 = vadd.f32 %v16336_v21, %v7417_v50 }
 0xe6f   : > { %v20090_v36 = vpack.c.bf16 %v7423_v49, %v7418_v11  ;;  %v18657_v62 = vpop.f32.mrb[156].mxu1  ;;  %v7170_v11 = vadd.f32 %v23677_v6, %v23685_v14  ;;  %v7465_v14 = vmul.f32 0.35355338, %v23701_v0 }
 0xe70   : > { %v7433_v44 = vadd.f32 %v18657_v62, %v16336_v21  ;;  %v7427_v3 = vpop.f32.mrb[157].mxu1  ;;  %v7165_v62 = vadd.f32 %v23679_v59, %v23677_v6  ;;  %v7462_v6 = vmul.f32 0.35355338, %v23698_v51  ;;  %v7463_v59 = vmul.f32 0.35355338, %v23695_v2 }
 0xe71   : > { %v7428_v4 = vadd.f32 %v16336_v21, %v7427_v3  ;;  %v7458_v3 = vmul.f32 0.35355338, %v7170_v11 }
 0xe72   : > { %20079 = vmatpush3.bf16.xpose.msk.msra.mxu1 %vm23331_vm8, %v20074_v41 }
 0xe73   : > { %v20094_v30 = vpack.c.bf16 %v7433_v44, %v7428_v4  ;;  %v18660_v57 = vpop.f32.mrb[158].mxu1  ;;  %20082 = vmatprep.subr.msk.bf16.mxu1 %vm23331_vm8, %v20080_v33  ;;  %v7457_v44 = vmul.f32 0.35355338, %v7165_v62 }
 0xe74   : > { %v7443_v29 = vadd.f32 %v18660_v57, %v16336_v21  ;;  %v7437_v16 = vpop.f32.mrb[159].mxu1 }
 0xe75   : > { %v7438_v25 = vadd.f32 %v16336_v21, %v7437_v16 }
 0xe77   : > { %v20098_v26 = vpack.c.bf16 %v7443_v29, %v7438_v25  ;;  %v18663_v56 = vpop.f32.mrb[160].mxu1 }
 0xe78   : > { %v7453_v55 = vadd.f32 %v18663_v56, %v16336_v21  ;;  %v7447_v50 = vpop.f32.mrb[161].mxu1 }
 0xe79   : > { %v7448_v49 = vadd.f32 %v16336_v21, %v7447_v50  ;;  %v7459_v21 = vmul.f32 0.35355338, %v23683_v63  ;;  %v7464_v63 = vmul.f32 0.35355338, %v23704_v54 }
 0xe7a   : > { %20085 = vmatpush3.bf16.xpose.msk.msra.mxu1 %vm23331_vm8, %v20080_v33  ;;  %v7460_v33 = vmul.f32 0.35355338, %v23692_v19 }
 0xe7b   : > { %v20102_v41 = vpack.c.bf16 %v7453_v55, %v7448_v49  ;;  %20087 = vmatprep.subr.bf16.mxu1 %v20086_v22  ;;  %v7461_v55 = vmul.f32 0.35355338, %v23689_v24 }
 0xe81   : > { %18685 = vmatmul.mubr.msk.f32.vlgmr.msra.gmra.mrb[162].mxu1 %vm6651_vm7, %v7457_v44 }
 0xe82   : > { %18687 = vmatprep.mubr.msk.f32.mxu1 %vm6651_vm7, %v7458_v3  ;;  %20089 = vmatpush3.bf16.msra.mxu1 %v20086_v22 }
 0xe83   : > { %20091 = vmatprep.subr.bf16.mxu1 %v20090_v36 }
 0xe85   : > { %18688 = vmatmul.mubr.msk.f32.gmra.mrb[164].mxu1 %vm6651_vm7, %v7459_v21 }
 0xe86   : > { %18690 = vmatprep.mubr.msk.f32.mxu1 %vm6651_vm7, %v7460_v33  ;;  %20093 = vmatpush3.bf16.msra.mxu1 %v20090_v36 }
 0xe87   : > { %20095 = vmatprep.subr.bf16.mxu1 %v20094_v30 }
 0xe89   : > { %18691 = vmatmul.mubr.msk.f32.gmra.mrb[166].mxu1 %vm6651_vm7, %v7461_v55 }
 0xe8a   : > { %18693 = vmatprep.mubr.msk.f32.mxu1 %vm6651_vm7, %v7462_v6  ;;  %20097 = vmatpush3.bf16.msra.mxu1 %v20094_v30 }
 0xe8b   : > { %20099 = vmatprep.subr.bf16.mxu1 %v20098_v26 }
 0xe8d   : > { %18694 = vmatmul.mubr.msk.f32.gmra.mrb[168].mxu1 %vm6651_vm7, %v7463_v59 }
 0xe8e   : > { %18696 = vmatprep.mubr.msk.f32.mxu1 %vm6651_vm7, %v7464_v63  ;;  %20101 = vmatpush3.bf16.msra.mxu1 %v20098_v26 }
 0xe8f   : > { %20103 = vmatprep.subr.bf16.mxu1 %v20102_v41 }
 0xe91   : > { %18697 = vmatmul.mubr.msk.f32.gmra.mrb[170].mxu1 %vm6651_vm7, %v7465_v14 }
 0xe92   : > { %20105 = vmatpush3.bf16.msra.mxu1 %v20102_v41 }
 0xf54   : > { %v18686_v24 = vpop.f32.mrb[162].mxu1 }
 0xf55   : > { %v7598_v19 = vadd.f32 %v18686_v24, %v23463_v8  ;;  %v7592_v51 = vpop.f32.mrb[163].mxu1 }
 0xf56   : > { %v7593_v2 = vadd.f32 %v7592_v51, %v23463_v8 }
 0xf57   : > { %v7644_v22 = vsel %vm6827_vm10, %v7598_v19, -inf }
 0xf58   : > { %7645 = vmax.xlane.f32.xlu1 %v7644_v22  ;;  %v18689_v54 = vpop.f32.mrb[164].mxu1  ;;  %v7641_v36 = vsel %vm6827_vm10, %v7593_v2, -inf }
 0xf59   : > { %v7608_v4 = vadd.f32 %v18689_v54, %v23463_v8  ;;  %v7602_v30 = vpop.f32.mrb[165].mxu1  ;;  %7642 = vmax.xlane.f32.xlu0 %v7641_v36 }
 0xf5a   : > { %v7603_v0 = vadd.f32 %v7602_v30, %v23463_v8 }
 0xf5b   : > { %v7650_v57 = vsel %vm6827_vm10, %v7608_v4, -inf }
 0xf5c   : > { %7651 = vmax.xlane.f32.xlu1 %v7650_v57  ;;  %v18692_v29 = vpop.f32.mrb[166].mxu1  ;;  %v7647_v16 = vsel %vm6827_vm10, %v7603_v0, -inf }
 0xf5d   : > { %v7618_v25 = vadd.f32 %v18692_v29, %v23463_v8  ;;  %v7612_v26 = vpop.f32.mrb[167].mxu1  ;;  %7648 = vmax.xlane.f32.xlu0 %v7647_v16 }
 0xf5e   : > { %v7613_v56 = vadd.f32 %v7612_v26, %v23463_v8 }
 0xf5f   : > { %v7656_v50 = vsel %vm6827_vm10, %v7618_v25, -inf }
 0xf60   : > { %7657 = vmax.xlane.f32.xlu1 %v7656_v50  ;;  %v18695_v49 = vpop.f32.mrb[168].mxu1  ;;  %v7653_v62 = vsel %vm6827_vm10, %v7613_v56, -inf }
 0xf61   : > { %v7628_v41 = vadd.f32 %v18695_v49, %v23463_v8  ;;  %v7622_v11 = vpop.f32.mrb[169].mxu1  ;;  %7654 = vmax.xlane.f32.xlu0 %v7653_v62 }
 0xf62   : > { %v7623_v44 = vadd.f32 %v7622_v11, %v23463_v8 }
 0xf63   : > { %v7662_v3 = vsel %vm6827_vm10, %v7628_v41, -inf }
 0xf64   : > { %7663 = vmax.xlane.f32.xlu1 %v7662_v3  ;;  %v18698_v21 = vpop.f32.mrb[170].mxu1  ;;  %v7659_v33 = vsel %vm6827_vm10, %v7623_v44, -inf }
 0xf65   : > { %v7638_v55 = vadd.f32 %v18698_v21, %v23463_v8  ;;  %v7632_v6 = vpop.f32.mrb[171].mxu1  ;;  %7660 = vmax.xlane.f32.xlu0 %v7659_v33 }
 0xf66   : > { %v7633_v59 = vadd.f32 %v7632_v6, %v23463_v8 }
 0xf67   : > { %v7668_v63 = vsel %vm6827_vm10, %v7638_v55, -inf }
 0xf68   : > { %7669 = vmax.xlane.f32.xlu1 %v7668_v63  ;;  %v7665_v14 = vsel %vm6827_vm10, %v7633_v59, -inf }
 0xf69   : > { %7666 = vmax.xlane.f32.xlu0 %v7665_v14 }
 0xfe5   : > { %v7646_v24 = vpop.xlane.xlu1 %7645 }
 0xfe6   : > { %v7672_v51 = vsub.f32 %v7598_v19, %v7646_v24  ;;  %v7643_v22 = vpop.xlane.xlu0 %7642 }
 0xfe7   : > { %v7671_v54 = vsub.f32 %v7593_v2, %v7643_v22 }
 0xfe8   : > { %v7683_v36 = vmul.f32 1.442695, %v7672_v51 }
 0xfe9   : > { %v7681_v30 = vmul.f32 1.442695, %v7671_v54  ;;  %v7652_v57 = vpop.xlane.xlu1 %7651 }
 0xfea   : > { %20919 = vpow2.f32 %v7683_v36  ;;  %v7674_v29 = vsub.f32 %v7608_v4, %v7652_v57  ;;  %v7649_v16 = vpop.xlane.xlu0 %7648 }
 0xfeb   : > { %20921 = vpow2.f32 %v7681_v30  ;;  %v7673_v26 = vsub.f32 %v7603_v0, %v7649_v16 }
 0xfec   : > { %v7687_v50 = vmul.f32 1.442695, %v7674_v29 }
 0xfed   : > { %v7685_v49 = vmul.f32 1.442695, %v7673_v26  ;;  %v7658_v62 = vpop.xlane.xlu1 %7657 }
 0xfee   : > { %20923 = vpow2.f32 %v7687_v50  ;;  %v7676_v11 = vsub.f32 %v7618_v25, %v7658_v62  ;;  %v7655_v3 = vpop.xlane.xlu0 %7654 }
 0xfef   : > { %20925 = vpow2.f32 %v7685_v49  ;;  %v7675_v21 = vsub.f32 %v7613_v56, %v7655_v3 }
 0xff0   : > { %v7691_v33 = vmul.f32 1.442695, %v7676_v11 }
 0xff1   : > { %v7689_v19 = vmul.f32 1.442695, %v7675_v21  ;;  %v7664_v6 = vpop.xlane.xlu1 %7663 }
 0xff2   : > { %20927 = vpow2.f32 %v7691_v33  ;;  %v7678_v2 = vsub.f32 %v7628_v41, %v7664_v6  ;;  %v7661_v63 = vpop.xlane.xlu0 %7660  ;;  %v23806_v6 = vadd.f32 %v23465_v31, %v23463_v8 }
 0xff3   : > { %20929 = vpow2.f32 %v7689_v19  ;;  %v7677_v14 = vsub.f32 %v7623_v44, %v7661_v63  ;;  %v23812_v63 = vadd.f32 %v23470_v12, %v23463_v8 }
 0xff4   : > { %v23768_v4 = vpop.eup %20919  ;;  %v7695_v24 = vmul.f32 1.442695, %v7678_v2  ;;  %v8747_v31 = vsel %vm6827_vm10, %v23806_v6, -inf }
 0xff5   : > { %v23770_v0 = vpop.eup %20921  ;;  %v7693_v51 = vmul.f32 1.442695, %v7677_v14  ;;  %v7670_v22 = vpop.xlane.xlu1 %7669  ;;  %v7704_v25 = vsel %vm6827_vm10, %v23768_v4, 0.0  ;;  %v8744_v12 = vsel %vm6827_vm10, %v23812_v63, -inf }
 0xff6   : > { %20931 = vpow2.f32 %v7695_v24  ;;  %v7680_v56 = vsub.f32 %v7638_v55, %v7670_v22  ;;  %7705 = vadd.xlane.f32.xlu1 %v7704_v25  ;;  %v7667_v54 = vpop.xlane.xlu0 %7666  ;;  %v7701_v41 = vsel %vm6827_vm10, %v23770_v0, 0.0  ;;  %v23818_v24 = vadd.f32 %v23477_v34, %v23463_v8 }
 0xff7   : > { %20933 = vpow2.f32 %v7693_v51  ;;  %v7679_v36 = vsub.f32 %v7633_v59, %v7667_v54  ;;  %7702 = vadd.xlane.f32.xlu0 %v7701_v41  ;;  %v23824_v51 = vadd.f32 %v23484_v38, %v23463_v8  ;;  %v23830_v22 = vadd.f32 %v23491_v20, %v23463_v8 }
 0xff8   : > { %v23776_v44 = vpop.eup %20923  ;;  %v7699_v30 = vmul.f32 1.442695, %v7680_v56  ;;  %v8753_v34 = vsel %vm6827_vm10, %v23818_v24, -inf  ;;  %v23836_v25 = vadd.f32 %v23498_v45, %v23463_v8  ;;  %v23842_v56 = vadd.f32 %v23505_v43, %v23463_v8 }
 0xff9   : > { %v23778_v57 = vpop.eup %20925  ;;  %v7697_v29 = vmul.f32 1.442695, %v7679_v36  ;;  %v7710_v16 = vsel %vm6827_vm10, %v23776_v44, 0.0  ;;  %v8750_v38 = vsel %vm6827_vm10, %v23824_v51, -inf  ;;  %v8759_v20 = vsel %vm6827_vm10, %v23830_v22, -inf }
 0xffa   : > { %20935 = vpow2.f32 %v7699_v30  ;;  %7711 = vadd.xlane.f32.xlu1 %v7710_v16  ;;  %v7707_v55 = vsel %vm6827_vm10, %v23778_v57, 0.0  ;;  %v23848_v54 = vadd.f32 %v23512_v28, %v23463_v8  ;;  %v8756_v45 = vsel %vm6827_vm10, %v23836_v25, -inf }
 0xffb   : > { %20937 = vpow2.f32 %v7697_v29  ;;  %7708 = vadd.xlane.f32.xlu0 %v7707_v55  ;;  %v23854_v41 = vadd.f32 %v23519_v47, %v23463_v8  ;;  %v8765_v43 = vsel %vm6827_vm10, %v23842_v56, -inf  ;;  %v23860_v36 = vadd.f32 %v23526_v27, %v23463_v8 }
 0xffc   : > { %v23784_v26 = vpop.eup %20927  ;;  %v8762_v28 = vsel %vm6827_vm10, %v23848_v54, -inf }
 0xffd   : > { %v23786_v59 = vpop.eup %20929  ;;  %v7716_v50 = vsel %vm6827_vm10, %v23784_v26, 0.0  ;;  %v8771_v30 = vsel %vm6827_vm10, %v23854_v41, -inf  ;;  %v8768_v47 = vsel %vm6827_vm10, %v23860_v36, -inf }
 0xffe   : > { %7717 = vadd.xlane.f32.xlu1 %v7716_v50  ;;  %v7713_v49 = vsel %vm6827_vm10, %v23786_v59, 0.0 }
 0xfff   : > { %7714 = vadd.xlane.f32.xlu0 %v7713_v49 }
0x1000   : > { %v23792_v62 = vpop.eup %20931 }
0x1001   : > { %v23794_v11 = vpop.eup %20933  ;;  %v7722_v3 = vsel %vm6827_vm10, %v23792_v62, 0.0 }
0x1002   : > { %7723 = vadd.xlane.f32.xlu1 %v7722_v3  ;;  %v7719_v21 = vsel %vm6827_vm10, %v23794_v11, 0.0 }
0x1003   : > { %7720 = vadd.xlane.f32.xlu0 %v7719_v21 }
0x1004   : > { %v23800_v33 = vpop.eup %20935 }
0x1005   : > { %v23802_v19 = vpop.eup %20937  ;;  %v7728_v2 = vsel %vm6827_vm10, %v23800_v33, 0.0 }
0x1006   : > { %7729 = vadd.xlane.f32.xlu1 %v7728_v2  ;;  %v7725_v14 = vsel %vm6827_vm10, %v23802_v19, 0.0 }
0x1007   : > { %7726 = vadd.xlane.f32.xlu0 %v7725_v14 }
0x100a   : > { %8748 = vmax.xlane.f32.xlu1 %v8747_v31 }
0x100b   : > { %8745 = vmax.xlane.f32.xlu0 %v8744_v12 }
0x100e   : > { %8754 = vmax.xlane.f32.xlu1 %v8753_v34 }
0x100f   : > { %8751 = vmax.xlane.f32.xlu0 %v8750_v38 }
0x1012   : > { %8760 = vmax.xlane.f32.xlu1 %v8759_v20 }
0x1013   : > { %8757 = vmax.xlane.f32.xlu0 %v8756_v45 }
0x1016   : > { %8766 = vmax.xlane.f32.xlu1 %v8765_v43 }
0x1017   : > { %8763 = vmax.xlane.f32.xlu0 %v8762_v28 }
0x101a   : > { %8772 = vmax.xlane.f32.xlu1 %v8771_v30 }
0x101b   : > { %8769 = vmax.xlane.f32.xlu0 %v8768_v47 }
0x1083   : > { %v7706_v29 = vpop.xlane.xlu1 %7705 }
0x1084   : > { %20939 = vrcp.f32 %v7706_v29  ;;  %v7703_v16 = vpop.xlane.xlu0 %7702 }
0x1085   : > { %20941 = vrcp.f32 %v7703_v16 }
0x1087   : > { %v7712_v55 = vpop.xlane.xlu1 %7711 }
0x1088   : > { %20943 = vrcp.f32 %v7712_v55  ;;  %v7709_v27 = vpop.xlane.xlu0 %7708 }
0x1089   : > { %20945 = vrcp.f32 %v7709_v27 }
0x108b   : > { %v7718_v50 = vpop.xlane.xlu1 %7717 }
0x108c   : > { %20947 = vrcp.f32 %v7718_v50  ;;  %v7715_v49 = vpop.xlane.xlu0 %7714 }
0x108d   : > { %20949 = vrcp.f32 %v7715_v49 }
0x108e   : > { %v20940_v3 = vpop.eup %20939 }
0x108f   : > { %v20942_v21 = vpop.eup %20941  ;;  %v7724_v2 = vpop.xlane.xlu1 %7723  ;;  %v7742_v12 = vmul.f32 %v20940_v3, %v23768_v4 }
0x1090   : > { %20951 = vrcp.f32 %v7724_v2  ;;  %v7721_v14 = vpop.xlane.xlu0 %7720  ;;  %v7741_v31 = vmul.f32 %v20942_v21, %v23770_v0 }
0x1091   : > { %20953 = vrcp.f32 %v7721_v14 }
0x1092   : > { %v20944_v34 = vpop.eup %20943  ;;  %18719 = vmatprep.mubr.msk.f32.mxu1 %vm6827_vm10, %v7741_v31 }
0x1093   : > { %v20946_v38 = vpop.eup %20945  ;;  %v7730_v20 = vpop.xlane.xlu1 %7729  ;;  %18720 = vmatmul.mubr.msk.f32.vlgmr.msra.gmra.mrb[172].mxu1 %vm6827_vm10, %v7742_v12  ;;  %v7744_v28 = vmul.f32 %v20944_v34, %v23776_v44 }
0x1094   : > { %20955 = vrcp.f32 %v7730_v20  ;;  %v7727_v45 = vpop.xlane.xlu0 %7726  ;;  %v7743_v43 = vmul.f32 %v20946_v38, %v23778_v57 }
0x1095   : > { %20957 = vrcp.f32 %v7727_v45 }
0x1096   : > { %v20948_v30 = vpop.eup %20947  ;;  %18722 = vmatprep.mubr.msk.f32.mxu1 %vm6827_vm10, %v7743_v43 }
0x1097   : > { %v20950_v0 = vpop.eup %20949  ;;  %v8749_v4 = vpop.xlane.xlu1 %8748  ;;  %18723 = vmatmul.mubr.msk.f32.gmra.mrb[174].mxu1 %vm6827_vm10, %v7744_v28  ;;  %v7746_v27 = vmul.f32 %v20948_v30, %v23784_v26 }
0x1098   : > { %v8775_v47 = vsub.f32 %v23806_v6, %v8749_v4  ;;  %v8746_v29 = vpop.xlane.xlu0 %8745  ;;  %v7745_v16 = vmul.f32 %v20950_v0, %v23786_v59 }
0x1099   : > { %v8774_v55 = vsub.f32 %v23812_v63, %v8746_v29 }
0x109a   : > { %v20952_v57 = vpop.eup %20951  ;;  %v8786_v50 = vmul.f32 1.442695, %v8775_v47  ;;  %18725 = vmatprep.mubr.msk.f32.mxu1 %vm6827_vm10, %v7745_v16 }
0x109b   : > { %v20954_v44 = vpop.eup %20953  ;;  %v8784_v49 = vmul.f32 1.442695, %v8774_v55  ;;  %v8755_v3 = vpop.xlane.xlu1 %8754  ;;  %18726 = vmatmul.mubr.msk.f32.gmra.mrb[176].mxu1 %vm6827_vm10, %v7746_v27  ;;  %v7748_v26 = vmul.f32 %v20952_v57, %v23792_v62 }
0x109c   : > { %20959 = vpow2.f32 %v8786_v50  ;;  %v8777_v21 = vsub.f32 %v23818_v24, %v8755_v3  ;;  %v8752_v6 = vpop.xlane.xlu0 %8751  ;;  %v7747_v2 = vmul.f32 %v20954_v44, %v23794_v11 }
0x109d   : > { %20961 = vpow2.f32 %v8784_v49  ;;  %v8776_v59 = vsub.f32 %v23824_v51, %v8752_v6 }
0x109e   : > { %v20956_v63 = vpop.eup %20955  ;;  %v8790_v14 = vmul.f32 1.442695, %v8777_v21  ;;  %18728 = vmatprep.mubr.msk.f32.mxu1 %vm6827_vm10, %v7747_v2 }
0x109f   : > { %v20958_v31 = vpop.eup %20957  ;;  %v8788_v12 = vmul.f32 1.442695, %v8776_v59  ;;  %v8761_v34 = vpop.xlane.xlu1 %8760  ;;  %18729 = vmatmul.mubr.msk.f32.gmra.mrb[178].mxu1 %vm6827_vm10, %v7748_v26  ;;  %v7750_v62 = vmul.f32 %v20956_v63, %v23800_v33 }
0x10a0   : > { %20963 = vpow2.f32 %v8790_v14  ;;  %v8779_v24 = vsub.f32 %v23830_v22, %v8761_v34  ;;  %v8758_v38 = vpop.xlane.xlu0 %8757  ;;  %v7749_v11 = vmul.f32 %v20958_v31, %v23802_v19  ;;  %v7896_v34 = vld [vmem:[%s25884_s26 + $0x8] sm:$0xff] }
0x10a1   : > { %20965 = vpow2.f32 %v8788_v12  ;;  %v8778_v51 = vsub.f32 %v23836_v25, %v8758_v38  ;;  %18734 = vmatprep.subr.mxu1 %v7896_v34 }
0x10a2   : > { %v8794_v20 = vmul.f32 1.442695, %v8779_v24  ;;  %18731 = vmatprep.mubr.msk.f32.mxu1 %vm6827_vm10, %v7749_v11  ;;  %18735 = vmatpush3.msra.mxu1 %v7896_v34  ;;  %v7083_v24 = vld [vmem:[%s25884_s26] sm:$0xff] }
0x10a3   : > { %v8792_v45 = vmul.f32 1.442695, %v8778_v51  ;;  %v8767_v43 = vpop.xlane.xlu1 %8766  ;;  %18732 = vmatmul.mubr.msk.f32.gmra.mrb[180].mxu1 %vm6827_vm10, %v7750_v62  ;;  %18751 = vmatprep.subr.mxu1 %v7083_v24  ;;  %v8435_v51 = vld [vmem:[%s21473_s12 + $0x50] sm:$0xff] }
0x10a4   : > { %20967 = vpow2.f32 %v8794_v20  ;;  %v8781_v28 = vsub.f32 %v23842_v56, %v8767_v43  ;;  %v8764_v30 = vpop.xlane.xlu0 %8763 }
0x10a5   : > { %20969 = vpow2.f32 %v8792_v45  ;;  %v8780_v22 = vsub.f32 %v23848_v54, %v8764_v30 }
0x10a6   : > { %v23896_v19 = vpop.eup %20959  ;;  %v8798_v0 = vmul.f32 1.442695, %v8781_v28 }
0x10a7   : > { %v23898_v25 = vpop.eup %20961  ;;  %v8796_v33 = vmul.f32 1.442695, %v8780_v22  ;;  %v8773_v4 = vpop.xlane.xlu1 %8772  ;;  %v8807_v47 = vsel %vm6827_vm10, %v23896_v19, 0.0 }
0x10a8   : > { %20971 = vpow2.f32 %v8798_v0  ;;  %v8783_v29 = vsub.f32 %v23854_v41, %v8773_v4  ;;  %8808 = vadd.xlane.f32.xlu1 %v8807_v47  ;;  %v8770_v16 = vpop.xlane.xlu0 %8769  ;;  %v8804_v56 = vsel %vm6827_vm10, %v23898_v25, 0.0 }
0x10a9   : > { %20973 = vpow2.f32 %v8796_v33  ;;  %v8782_v54 = vsub.f32 %v23860_v36, %v8770_v16  ;;  %8805 = vadd.xlane.f32.xlu0 %v8804_v56 }
0x10aa   : > { %v23906_v55 = vpop.eup %20963  ;;  %v8802_v27 = vmul.f32 1.442695, %v8783_v29 }
0x10ab   : > { %v23908_v57 = vpop.eup %20965  ;;  %v8800_v50 = vmul.f32 1.442695, %v8782_v54  ;;  %v8813_v44 = vsel %vm6827_vm10, %v23906_v55, 0.0 }
0x10ac   : > { %20975 = vpow2.f32 %v8802_v27  ;;  %8814 = vadd.xlane.f32.xlu1 %v8813_v44  ;;  %v8810_v41 = vsel %vm6827_vm10, %v23908_v57, 0.0 }
0x10ad   : > { %20977 = vpow2.f32 %v8800_v50  ;;  %8811 = vadd.xlane.f32.xlu0 %v8810_v41 }
0x10ae   : > { %v23914_v49 = vpop.eup %20967 }
0x10af   : > { %v23916_v36 = vpop.eup %20969  ;;  %v8819_v3 = vsel %vm6827_vm10, %v23914_v49, 0.0 }
0x10b0   : > { %8820 = vadd.xlane.f32.xlu1 %v8819_v3  ;;  %v8816_v21 = vsel %vm6827_vm10, %v23916_v36, 0.0 }
0x10b1   : > { %8817 = vadd.xlane.f32.xlu0 %v8816_v21 }
0x10b2   : > { %v23922_v6 = vpop.eup %20971 }
0x10b3   : > { %v23924_v2 = vpop.eup %20973  ;;  %v8825_v59 = vsel %vm6827_vm10, %v23922_v6, 0.0 }
0x10b4   : > { %8826 = vadd.xlane.f32.xlu1 %v8825_v59  ;;  %v8822_v26 = vsel %vm6827_vm10, %v23924_v2, 0.0 }
0x10b5   : > { %8823 = vadd.xlane.f32.xlu0 %v8822_v26 }
0x10b6   : > { %v23930_v63 = vpop.eup %20975 }
0x10b7   : > { %v23932_v14 = vpop.eup %20977  ;;  %v8831_v31 = vsel %vm6827_vm10, %v23930_v63, 0.0 }
0x10b8   : > { %8832 = vadd.xlane.f32.xlu1 %v8831_v31  ;;  %v8828_v12 = vsel %vm6827_vm10, %v23932_v14, 0.0 }
0x10b9   : > { %8829 = vadd.xlane.f32.xlu0 %v8828_v12 }
0x1166   : > { %v18721_v38 = vpop.f32.mrb[172].mxu1 }
0x1167   : > { %v7847_v11 = vpop.f32.mrb[173].mxu1 }
0x1168   : > { %18736 = vmatprep.mubr.msk.f32.mxu1 %vm6651_vm7, %v7847_v11 }
0x1169   : > { %18737 = vmatmul.mubr.msk.f32.vlgmr.msra.gmra.mrb[182].mxu1 %vm6651_vm7, %v18721_v38 }
0x116a   : > { %v18724_v62 = vpop.f32.mrb[174].mxu1  ;;  %18752 = vmatpush3.msra.mxu1 %v7083_v24 }
0x116b   : > { %v7857_v20 = vpop.f32.mrb[175].mxu1  ;;  %18802 = vmatprep.subr.msk.mxu1 %vm1526_vm5, %v8435_v51 }
0x116c   : > { %18739 = vmatprep.mubr.msk.f32.mxu1 %vm6651_vm7, %v7857_v20 }
0x116d   : > { %18740 = vmatmul.mubr.msk.f32.gmra.mrb[184].mxu1 %vm6651_vm7, %v18724_v62 }
0x116e   : > { %v18727_v45 = vpop.f32.mrb[176].mxu1 }
0x116f   : > { %v7867_v43 = vpop.f32.mrb[177].mxu1 }
0x1170   : > { %18742 = vmatprep.mubr.msk.f32.mxu1 %vm6651_vm7, %v7867_v43 }
0x1171   : > { %18743 = vmatmul.mubr.msk.f32.gmra.mrb[186].mxu1 %vm6651_vm7, %v18727_v45 }
0x1172   : > { %v18730_v28 = vpop.f32.mrb[178].mxu1 }
0x1173   : > { %v7877_v30 = vpop.f32.mrb[179].mxu1 }
0x1174   : > { %18745 = vmatprep.mubr.msk.f32.mxu1 %vm6651_vm7, %v7877_v30  ;;  %v8999_v30 = vld [vmem:[%s25884_s26 + $0x10] sm:$0xff] }
0x1175   : > { %18746 = vmatmul.mubr.msk.f32.gmra.mrb[188].mxu1 %vm6651_vm7, %v18730_v28 }
0x1176   : > { %v18733_v22 = vpop.f32.mrb[180].mxu1 }
0x1177   : > { %v7887_v0 = vpop.f32.mrb[181].mxu1 }
0x1178   : > { %18748 = vmatprep.mubr.msk.f32.mxu1 %vm6651_vm7, %v7887_v0 }
0x1179   : > { %18749 = vmatmul.mubr.msk.f32.gmra.mrb[190].mxu1 %vm6651_vm7, %v18733_v22 }
0x117a   : > { %18753 = vmatprep.mubr.msk.f32.mxu1 %vm6651_vm7, %v23658_v17 }
0x117d   : > { %18754 = vmatmul.mubr.msk.f32.vlgmr.msra.gmra.mrb[182].mxu1 %vm6651_vm7, %v23656_v39  ;;  %v8806_v39 = vpop.xlane.xlu0 %8805 }
0x117e   : > { %18756 = vmatprep.mubr.msk.f32.mxu1 %vm6651_vm7, %v23662_v37  ;;  %18803 = vmatpush3.xpose.msk.msra.mxu1 %vm1526_vm5, %v8435_v51  ;;  %20979 = vrcp.f32 %v8806_v39  ;;  %v16422_v37 = vld [vmem:[%s25872_s23 + $0xa] ss:$0 sm:$0xff] }
0x1181   : > { %18757 = vmatmul.mubr.msk.f32.gmra.mrb[184].mxu1 %vm6651_vm7, %v23660_v35 }
0x1182   : > { %18759 = vmatprep.mubr.msk.f32.mxu1 %vm6651_vm7, %v23666_v60 }
0x1185   : > { %18760 = vmatmul.mubr.msk.f32.gmra.mrb[186].mxu1 %vm6651_vm7, %v23664_v52  ;;  %v8809_v52 = vpop.xlane.xlu1 %8808 }
0x1186   : > { %18762 = vmatprep.mubr.msk.f32.mxu1 %vm6651_vm7, %v23670_v18  ;;  %20981 = vrcp.f32 %v8809_v52 }
0x1188   : > { %v20980_v17 = vpop.eup %20979 }
0x1189   : > { %18763 = vmatmul.mubr.msk.f32.gmra.mrb[188].mxu1 %vm6651_vm7, %v23668_v15  ;;  %v8844_v35 = vmul.f32 %v20980_v17, %v23898_v25  ;;  %v8815_v16 = vpop.xlane.xlu1 %8814 }
0x118a   : > { %18765 = vmatprep.mubr.msk.f32.mxu1 %vm6651_vm7, %v23674_v13  ;;  %v8812_v13 = vpop.xlane.xlu0 %8811 }
0x118b   : > { %20983 = vrcp.f32 %v8812_v13 }
0x118c   : > { %20985 = vrcp.f32 %v8815_v16 }
0x118d   : > { %18766 = vmatmul.mubr.msk.f32.gmra.mrb[190].mxu1 %vm6651_vm7, %v23672_v32  ;;  %v8821_v3 = vpop.xlane.xlu1 %8820 }
0x118e   : > { %18804 = vmatprep.mubr.msk.f32.mxu1 %vm1526_vm5, %v23125_v23  ;;  %v8818_v27 = vpop.xlane.xlu0 %8817 }
0x118f   : > { %20987 = vrcp.f32 %v8818_v27  ;;  %v21339_v27 = vld [vmem:[%s25872_s23 + $0x3] ss:$0 sm:$0xff] }
0x1190   : > { %20989 = vrcp.f32 %v8821_v3  ;;  %v20982_v43 = vpop.eup %20981 }
0x1191   : > { %18805 = vmatmul.mubr.msk.f32.vlgmr.msra.gmra.mrb[192].mxu1 %vm1526_vm5, %v23128_v46  ;;  %v8827_v62 = vpop.xlane.xlu1 %8826  ;;  %v8845_v0 = vmul.f32 %v20982_v43, %v23896_v19 }
0x1192   : > { %18807 = vmatprep.mubr.msk.f32.mxu1 %vm1526_vm5, %v23142_v40  ;;  %v8824_v34 = vpop.xlane.xlu0 %8823 }
0x1193   : > { %20991 = vrcp.f32 %v8824_v34 }
0x1194   : > { %20993 = vrcp.f32 %v8827_v62 }
0x1195   : > { %18808 = vmatmul.mubr.msk.f32.gmra.mrb[194].mxu1 %vm1526_vm5, %v23149_v58  ;;  %v20984_v22 = vpop.eup %20983  ;;  %v8833_v39 = vpop.xlane.xlu1 %8832 }
0x1196   : > { %18810 = vmatprep.mubr.msk.f32.mxu1 %vm1526_vm5, %v23163_v42  ;;  %v8830_v28 = vpop.xlane.xlu0 %8829  ;;  %v20986_v17 = vpop.eup %20985 }
0x1197   : > { %20995 = vrcp.f32 %v8830_v28  ;;  %v8847_v52 = vmul.f32 %v20986_v17, %v23906_v55 }
0x1198   : > { %20997 = vrcp.f32 %v8833_v39 }
0x1199   : > { %18811 = vmatmul.mubr.msk.f32.gmra.mrb[196].mxu1 %vm1526_vm5, %v23166_v48 }
0x119a   : > { %18813 = vmatprep.mubr.msk.f32.mxu1 %vm1526_vm5, %v23179_v9 }
0x119d   : > { %18814 = vmatmul.mubr.msk.f32.gmra.mrb[198].mxu1 %vm1526_vm5, %v23182_v7 }
0x119e   : > { %18816 = vmatprep.mubr.msk.f32.mxu1 %vm1526_vm5, %v23194_v61 }
0x11a1   : > { %18817 = vmatmul.mubr.msk.f32.gmra.mrb[200].mxu1 %vm1526_vm5, %v23196_v1 }
0x11a2   : > { %18874 = vmatprep.mubr.msk.f32.mxu1 %vm6827_vm10, %v8844_v35  ;;  %v8846_v35 = vmul.f32 %v20984_v22, %v23908_v57 }
0x1264   : > { %v18806_v60 = vpop.f32.mrb[192].mxu1 }
0x1265   : > { %v8516_v15 = vadd.f32 %v18806_v60, %v16422_v37  ;;  %v8510_v18 = vpop.f32.mrb[193].mxu1 }
0x1266   : > { %v8511_v32 = vadd.f32 %v16422_v37, %v8510_v18 }
0x1268   : > { %v20136_v33 = vpack.c.bf16 %v8516_v15, %v8511_v32  ;;  %v18809_v4 = vpop.f32.mrb[194].mxu1 }
0x1269   : > { %v8526_v47 = vadd.f32 %v18809_v4, %v16422_v37  ;;  %v8520_v29 = vpop.f32.mrb[195].mxu1 }
0x126a   : > { %v8521_v56 = vadd.f32 %v16422_v37, %v8520_v29  ;;  %20137 = vmatprep.subr.bf16.mxu1 %v20136_v33 }
0x126b   : > { %20139 = vmatpush3.bf16.msra.mxu1 %v20136_v33 }
0x126c   : > { %v20140_v25 = vpack.c.bf16 %v8526_v47, %v8521_v56  ;;  %v18812_v54 = vpop.f32.mrb[196].mxu1 }
0x126d   : > { %v8536_v50 = vadd.f32 %v18812_v54, %v16422_v37  ;;  %v8530_v44 = vpop.f32.mrb[197].mxu1 }
0x126e   : > { %v8531_v41 = vadd.f32 %v16422_v37, %v8530_v44  ;;  %20141 = vmatprep.subr.bf16.mxu1 %v20140_v25 }
0x126f   : > { %20143 = vmatpush3.bf16.msra.mxu1 %v20140_v25 }
0x1270   : > { %v20144_v21 = vpack.c.bf16 %v8536_v50, %v8531_v41  ;;  %v18815_v59 = vpop.f32.mrb[198].mxu1  ;;  %v9231_v50 = vadd.f32 %v21339_v27, %v23538_v10  ;;  %v16486_v41 = vld [vmem:[%s25872_s23 + $0x7] ss:$0 sm:$0xff] }
0x1271   : > { %v8546_v26 = vadd.f32 %v18815_v59, %v16422_v37  ;;  %v8540_v31 = vpop.f32.mrb[199].mxu1 }
0x1272   : > { %v8541_v12 = vadd.f32 %v16422_v37, %v8540_v31  ;;  %20145 = vmatprep.subr.bf16.mxu1 %v20144_v21  ;;  %v9527_v44 = vmul.f32 0.35355338, %v9231_v50 }
0x1273   : > { %20147 = vmatpush3.bf16.msra.mxu1 %v20144_v21 }
0x1274   : > { %v20148_v24 = vpack.c.bf16 %v8546_v26, %v8541_v12  ;;  %v18818_v38 = vpop.f32.mrb[200].mxu1 }
0x1275   : > { %v8556_v11 = vadd.f32 %v18818_v38, %v16422_v37  ;;  %v8550_v51 = vpop.f32.mrb[201].mxu1 }
0x1276   : > { %v8551_v20 = vadd.f32 %v16422_v37, %v8550_v51  ;;  %20149 = vmatprep.subr.bf16.mxu1 %v20148_v24  ;;  %v20988_v37 = vpop.eup %20987 }
0x1277   : > { %20151 = vmatpush3.bf16.msra.mxu1 %v20148_v24  ;;  %v20990_v60 = vpop.eup %20989  ;;  %v8848_v15 = vmul.f32 %v20988_v37, %v23916_v36 }
0x1278   : > { %v20152_v45 = vpack.c.bf16 %v8556_v11, %v8551_v20  ;;  %v20992_v18 = vpop.eup %20991  ;;  %v8849_v19 = vmul.f32 %v20990_v60, %v23914_v49  ;;  %v9279_v49 = vld [vmem:[%s21473_s12 + $0x38] sm:$0xff]  ;;  %v9528_v60 = vmul.f32 0.35355338, %v23536_v5 }
0x1279   : > { %v20994_v57 = vpop.eup %20993  ;;  %v8850_v32 = vmul.f32 %v20992_v18, %v23924_v2  ;;  %v25890_v5 = vld [vmem:[#allocation43_spill] sm:$0xff] }
0x127a   : > { %20153 = vmatprep.subr.bf16.mxu1 %v20152_v45  ;;  %v20996_v13 = vpop.eup %20995  ;;  %v8851_v55 = vmul.f32 %v20994_v57, %v23922_v6 }
0x127b   : > { %20155 = vmatpush3.bf16.msra.mxu1 %v20152_v45  ;;  %v20998_v33 = vpop.eup %20997  ;;  %v8852_v36 = vmul.f32 %v20996_v13, %v23932_v14 }
0x127c   : > { %18889 = vmatprep.subr.mxu1 %v8999_v30  ;;  %v8853_v4 = vmul.f32 %v20998_v33, %v23930_v63 }
0x127e   : > { %18875 = vmatmul.mubr.msk.f32.vlgmr.msra.gmra.mrb[202].mxu1 %vm6827_vm10, %v8845_v0 }
0x127f   : > { %18877 = vmatprep.mubr.msk.f32.mxu1 %vm6827_vm10, %v8846_v35  ;;  %18890 = vmatpush3.msra.mxu1 %v8999_v30 }
0x1280   : > { %18923 = vmatprep.subr.msk.mxu1 %vm1526_vm5, %v9279_v49 }
0x1282   : > { %18878 = vmatmul.mubr.msk.f32.gmra.mrb[204].mxu1 %vm6827_vm10, %v8847_v52 }
0x1283   : > { %18880 = vmatprep.mubr.msk.f32.mxu1 %vm6827_vm10, %v8848_v15  ;;  %v25885_v15 = vld [vmem:[#allocation40_spill] sm:$0xff] }
0x1284   : > { %v9529_v18 = vmul.f32 0.35355338, %v25885_v15 }
0x1286   : > { %18881 = vmatmul.mubr.msk.f32.gmra.mrb[206].mxu1 %vm6827_vm10, %v8849_v19  ;;  %v25886_v19 = vld [vmem:[#allocation39_spill] sm:$0xff] }
0x1287   : > { %18883 = vmatprep.mubr.msk.f32.mxu1 %vm6827_vm10, %v8850_v32  ;;  %v9530_v57 = vmul.f32 0.35355338, %v25886_v19  ;;  %v25887_v32 = vld [vmem:[#allocation42_spill] sm:$0xff] }
0x1288   : > { %v9531_v13 = vmul.f32 0.35355338, %v25887_v32 }
0x128a   : > { %18884 = vmatmul.mubr.msk.f32.gmra.mrb[208].mxu1 %vm6827_vm10, %v8851_v55  ;;  %v25888_v55 = vld [vmem:[#allocation41_spill] sm:$0xff] }
0x128b   : > { %18886 = vmatprep.mubr.msk.f32.mxu1 %vm6827_vm10, %v8852_v36  ;;  %v9532_v33 = vmul.f32 0.35355338, %v25888_v55  ;;  %v25889_v36 = vld [vmem:[#allocation44_spill] sm:$0xff] }
0x128e   : > { %18887 = vmatmul.mubr.msk.f32.gmra.mrb[210].mxu1 %vm6827_vm10, %v8853_v4  ;;  %v9533_v4 = vmul.f32 0.35355338, %v25889_v36 }
0x1351   : > { %v18876_v2 = vpop.f32.mrb[202].mxu1 }
0x1352   : > { %v8950_v47 = vpop.f32.mrb[203].mxu1 }
0x1353   : > { %18891 = vmatprep.mubr.msk.f32.mxu1 %vm6651_vm7, %v8950_v47 }
0x1354   : > { %18892 = vmatmul.mubr.msk.f32.vlgmr.msra.gmra.mrb[182].mxu1 %vm6651_vm7, %v18876_v2  ;;  %v25891_v2 = vld [vmem:[#allocation46_spill] sm:$0xff] }
0x1355   : > { %v18879_v6 = vpop.f32.mrb[204].mxu1  ;;  %18924 = vmatpush3.xpose.msk.msra.mxu1 %vm1526_vm5, %v9279_v49  ;;  %v9534_v49 = vmul.f32 0.35355338, %v25890_v5  ;;  %v9535_v47 = vmul.f32 0.35355338, %v25891_v2 }
0x1356   : > { %v8960_v14 = vpop.f32.mrb[205].mxu1 }
0x1357   : > { %18894 = vmatprep.mubr.msk.f32.mxu1 %vm6651_vm7, %v8960_v14 }
0x1358   : > { %18895 = vmatmul.mubr.msk.f32.gmra.mrb[184].mxu1 %vm6651_vm7, %v18879_v6  ;;  %v25892_v6 = vld [vmem:[#allocation45_spill] sm:$0xff] }
0x1359   : > { %v18882_v63 = vpop.f32.mrb[206].mxu1  ;;  %v9536_v14 = vmul.f32 0.35355338, %v25892_v6 }
0x135a   : > { %v8970_v29 = vpop.f32.mrb[207].mxu1 }
0x135b   : > { %18897 = vmatprep.mubr.msk.f32.mxu1 %vm6651_vm7, %v8970_v29 }
0x135c   : > { %18898 = vmatmul.mubr.msk.f32.gmra.mrb[186].mxu1 %vm6651_vm7, %v18882_v63 }
0x135d   : > { %v18885_v16 = vpop.f32.mrb[208].mxu1 }
0x135e   : > { %v8980_v56 = vpop.f32.mrb[209].mxu1 }
0x135f   : > { %18900 = vmatprep.mubr.msk.f32.mxu1 %vm6651_vm7, %v8980_v56 }
0x1360   : > { %18901 = vmatmul.mubr.msk.f32.gmra.mrb[188].mxu1 %vm6651_vm7, %v18885_v16 }
0x1361   : > { %v18888_v25 = vpop.f32.mrb[210].mxu1 }
0x1362   : > { %v8990_v54 = vpop.f32.mrb[211].mxu1 }
0x1363   : > { %18903 = vmatprep.mubr.msk.f32.mxu1 %vm6651_vm7, %v8990_v54 }
0x1364   : > { %18904 = vmatmul.mubr.msk.f32.gmra.mrb[190].mxu1 %vm6651_vm7, %v18888_v25 }
0x1365   : > { %18925 = vmatprep.mubr.msk.f32.mxu1 %vm1526_vm5, %v23125_v23 }
0x1368   : > { %18926 = vmatmul.mubr.msk.f32.vlgmr.msra.gmra.mrb[212].mxu1 %vm1526_vm5, %v23128_v46 }
0x1369   : > { %18928 = vmatprep.mubr.msk.f32.mxu1 %vm1526_vm5, %v23142_v40 }
0x136c   : > { %18929 = vmatmul.mubr.msk.f32.gmra.mrb[214].mxu1 %vm1526_vm5, %v23149_v58 }
0x136d   : > { %18931 = vmatprep.mubr.msk.f32.mxu1 %vm1526_vm5, %v23163_v42 }
0x1370   : > { %18932 = vmatmul.mubr.msk.f32.gmra.mrb[216].mxu1 %vm1526_vm5, %v23166_v48 }
0x1371   : > { %18934 = vmatprep.mubr.msk.f32.mxu1 %vm1526_vm5, %v23179_v9 }
0x1374   : > { %18935 = vmatmul.mubr.msk.f32.gmra.mrb[218].mxu1 %vm1526_vm5, %v23182_v7 }
0x1375   : > { %18937 = vmatprep.mubr.msk.f32.mxu1 %vm1526_vm5, %v23194_v61 }
0x1378   : > { %18938 = vmatmul.mubr.msk.f32.gmra.mrb[220].mxu1 %vm1526_vm5, %v23196_v1 }
0x1379   : > { %18977 = vmatprep.mubr.msk.f32.mxu1 %vm6651_vm7, %v9527_v44 }
0x143b   : > { %v18927_v3 = vpop.f32.mrb[212].mxu1 }
0x143c   : > { %v9360_v21 = vadd.f32 %v18927_v3, %v16486_v41  ;;  %v9354_v59 = vpop.f32.mrb[213].mxu1 }
0x143d   : > { %v9355_v26 = vadd.f32 %v16486_v41, %v9354_v59 }
0x143f   : > { %v20156_v31 = vpack.c.bf16 %v9360_v21, %v9355_v26  ;;  %v18930_v12 = vpop.f32.mrb[214].mxu1 }
0x1440   : > { %v9370_v10 = vadd.f32 %v18930_v12, %v16486_v41  ;;  %v9364_v34 = vpop.f32.mrb[215].mxu1 }
0x1441   : > { %v9365_v24 = vadd.f32 %v16486_v41, %v9364_v34  ;;  %20158 = vmatprep.subr.msk.bf16.mxu1 %vm23331_vm8, %v20156_v31 }
0x1442   : > { %20161 = vmatpush3.bf16.xpose.msk.msra.mxu1 %vm23331_vm8, %v20156_v31 }
0x1443   : > { %v20162_v38 = vpack.c.bf16 %v9370_v10, %v9365_v24  ;;  %v18933_v11 = vpop.f32.mrb[216].mxu1 }
0x1444   : > { %v9380_v51 = vadd.f32 %v18933_v11, %v16486_v41  ;;  %v9374_v62 = vpop.f32.mrb[217].mxu1 }
0x1445   : > { %v9375_v20 = vadd.f32 %v16486_v41, %v9374_v62  ;;  %20164 = vmatprep.subr.msk.bf16.mxu1 %vm23331_vm8, %v20162_v38 }
0x1447   : > { %v20168_v45 = vpack.c.bf16 %v9380_v51, %v9375_v20  ;;  %v18936_v43 = vpop.f32.mrb[218].mxu1 }
0x1448   : > { %v9390_v28 = vadd.f32 %v18936_v43, %v16486_v41  ;;  %v9384_v30 = vpop.f32.mrb[219].mxu1 }
0x1449   : > { %v9385_v22 = vadd.f32 %v16486_v41, %v9384_v30 }
0x144a   : > { %20167 = vmatpush3.bf16.xpose.msk.msra.mxu1 %vm23331_vm8, %v20162_v38 }
0x144b   : > { %v20174_v0 = vpack.c.bf16 %v9390_v28, %v9385_v22  ;;  %v18939_v39 = vpop.f32.mrb[220].mxu1  ;;  %20170 = vmatprep.subr.msk.bf16.mxu1 %vm23331_vm8, %v20168_v45 }
0x144c   : > { %v9400_v17 = vadd.f32 %v18939_v39, %v16486_v41  ;;  %v9394_v35 = vpop.f32.mrb[221].mxu1 }
0x144d   : > { %v9395_v37 = vadd.f32 %v16486_v41, %v9394_v35 }
0x144f   : > { %v20180_v52 = vpack.c.bf16 %v9400_v17, %v9395_v37 }
0x1452   : > { %20173 = vmatpush3.bf16.xpose.msk.msra.mxu1 %vm23331_vm8, %v20168_v45 }
0x1453   : > { %20176 = vmatprep.subr.msk.bf16.mxu1 %vm23331_vm8, %v20174_v0 }
0x145a   : > { %20179 = vmatpush3.bf16.xpose.msk.msra.mxu1 %vm23331_vm8, %v20174_v0 }
0x145b   : > { %20182 = vmatprep.subr.msk.bf16.mxu1 %vm23331_vm8, %v20180_v52 }
0x1462   : > { %20185 = vmatpush3.bf16.xpose.msk.msra.mxu1 %vm23331_vm8, %v20180_v52 }
0x1469   : > { %18978 = vmatmul.mubr.msk.f32.vlgmr.msra.gmra.mrb[222].mxu1 %vm6651_vm7, %v9528_v60 }
0x146a   : > { %18980 = vmatprep.mubr.msk.f32.mxu1 %vm6651_vm7, %v9529_v18 }
0x146d   : > { %18981 = vmatmul.mubr.msk.f32.gmra.mrb[224].mxu1 %vm6651_vm7, %v9530_v57 }
0x146e   : > { %18983 = vmatprep.mubr.msk.f32.mxu1 %vm6651_vm7, %v9531_v13 }
0x1471   : > { %18984 = vmatmul.mubr.msk.f32.gmra.mrb[226].mxu1 %vm6651_vm7, %v9532_v33 }
0x1472   : > { %18986 = vmatprep.mubr.msk.f32.mxu1 %vm6651_vm7, %v9533_v4 }
0x1475   : > { %18987 = vmatmul.mubr.msk.f32.gmra.mrb[228].mxu1 %vm6651_vm7, %v9534_v49 }
0x1476   : > { %18989 = vmatprep.mubr.msk.f32.mxu1 %vm6651_vm7, %v9535_v47 }
0x1479   : > { %18990 = vmatmul.mubr.msk.f32.gmra.mrb[230].mxu1 %vm6651_vm7, %v9536_v14 }
0x153c   : > { %v18979_v63 = vpop.f32.mrb[222].mxu1 }
0x153d   : > { %v9669_v29 = vadd.f32 %v18979_v63, %v23463_v8  ;;  %v9663_v16 = vpop.f32.mrb[223].mxu1 }
0x153e   : > { %v9664_v56 = vadd.f32 %v9663_v16, %v23463_v8 }
0x153f   : > { %v9715_v25 = vsel %vm6827_vm10, %v9669_v29, -inf }
0x1540   : > { %9716 = vmax.xlane.f32.xlu1 %v9715_v25  ;;  %v18982_v54 = vpop.f32.mrb[224].mxu1  ;;  %v9712_v27 = vsel %vm6827_vm10, %v9664_v56, -inf }
0x1541   : > { %v9679_v50 = vadd.f32 %v18982_v54, %v23463_v8  ;;  %v9673_v44 = vpop.f32.mrb[225].mxu1  ;;  %9713 = vmax.xlane.f32.xlu0 %v9712_v27 }
0x1542   : > { %v9674_v41 = vadd.f32 %v9673_v44, %v23463_v8 }
0x1543   : > { %v9721_v3 = vsel %vm6827_vm10, %v9679_v50, -inf }
0x1544   : > { %9722 = vmax.xlane.f32.xlu1 %v9721_v3  ;;  %v18985_v21 = vpop.f32.mrb[226].mxu1  ;;  %v9718_v59 = vsel %vm6827_vm10, %v9674_v41, -inf }
0x1545   : > { %v9689_v26 = vadd.f32 %v18985_v21, %v23463_v8  ;;  %v9683_v31 = vpop.f32.mrb[227].mxu1  ;;  %9719 = vmax.xlane.f32.xlu0 %v9718_v59 }
0x1546   : > { %v9684_v12 = vadd.f32 %v9683_v31, %v23463_v8 }
0x1547   : > { %v9727_v10 = vsel %vm6827_vm10, %v9689_v26, -inf }
0x1548   : > { %9728 = vmax.xlane.f32.xlu1 %v9727_v10  ;;  %v18988_v34 = vpop.f32.mrb[228].mxu1  ;;  %v9724_v24 = vsel %vm6827_vm10, %v9684_v12, -inf }
0x1549   : > { %v9699_v38 = vadd.f32 %v18988_v34, %v23463_v8  ;;  %v9693_v11 = vpop.f32.mrb[229].mxu1  ;;  %9725 = vmax.xlane.f32.xlu0 %v9724_v24 }
0x154a   : > { %v9694_v51 = vadd.f32 %v9693_v11, %v23463_v8 }
0x154b   : > { %v9733_v62 = vsel %vm6827_vm10, %v9699_v38, -inf }
0x154c   : > { %9734 = vmax.xlane.f32.xlu1 %v9733_v62  ;;  %v18991_v20 = vpop.f32.mrb[230].mxu1  ;;  %v9730_v45 = vsel %vm6827_vm10, %v9694_v51, -inf }
0x154d   : > { %v9709_v43 = vadd.f32 %v18991_v20, %v23463_v8  ;;  %v9703_v28 = vpop.f32.mrb[231].mxu1  ;;  %9731 = vmax.xlane.f32.xlu0 %v9730_v45 }
0x154e   : > { %v9704_v30 = vadd.f32 %v9703_v28, %v23463_v8 }
0x154f   : > { %v9739_v22 = vsel %vm6827_vm10, %v9709_v43, -inf }
0x1550   : > { %9740 = vmax.xlane.f32.xlu1 %v9739_v22  ;;  %v9736_v0 = vsel %vm6827_vm10, %v9704_v30, -inf  ;;  %v9967_v22 = vld [vmem:[%s25884_s26 + $0x18] sm:$0xff] }
0x1551   : > { %9737 = vmax.xlane.f32.xlu0 %v9736_v0  ;;  %19027 = vmatprep.subr.mxu1 %v9967_v22 }
0x1552   : > { %19028 = vmatpush3.msra.mxu1 %v9967_v22 }
0x15cd   : > { %v9717_v39 = vpop.xlane.xlu1 %9716 }
0x15ce   : > { %v9743_v17 = vsub.f32 %v9669_v29, %v9717_v39  ;;  %v9714_v35 = vpop.xlane.xlu0 %9713 }
0x15cf   : > { %v9742_v37 = vsub.f32 %v9664_v56, %v9714_v35 }
0x15d0   : > { %v9754_v52 = vmul.f32 1.442695, %v9743_v17 }
0x15d1   : > { %v9752_v60 = vmul.f32 1.442695, %v9742_v37  ;;  %v9723_v15 = vpop.xlane.xlu1 %9722 }
0x15d2   : > { %20999 = vpow2.f32 %v9754_v52  ;;  %v9745_v18 = vsub.f32 %v9679_v50, %v9723_v15  ;;  %v9720_v19 = vpop.xlane.xlu0 %9719 }
0x15d3   : > { %21001 = vpow2.f32 %v9752_v60  ;;  %v9744_v57 = vsub.f32 %v9674_v41, %v9720_v19 }
0x15d4   : > { %v9758_v32 = vmul.f32 1.442695, %v9745_v18 }
0x15d5   : > { %v9756_v13 = vmul.f32 1.442695, %v9744_v57  ;;  %v9729_v55 = vpop.xlane.xlu1 %9728 }
0x15d6   : > { %21003 = vpow2.f32 %v9758_v32  ;;  %v9747_v33 = vsub.f32 %v9689_v26, %v9729_v55  ;;  %v9726_v36 = vpop.xlane.xlu0 %9725 }
0x15d7   : > { %21005 = vpow2.f32 %v9756_v13  ;;  %v9746_v4 = vsub.f32 %v9684_v12, %v9726_v36 }
0x15d8   : > { %v9762_v5 = vmul.f32 1.442695, %v9747_v33 }
0x15d9   : > { %v9760_v49 = vmul.f32 1.442695, %v9746_v4  ;;  %v9735_v2 = vpop.xlane.xlu1 %9734 }
0x15da   : > { %21007 = vpow2.f32 %v9762_v5  ;;  %v9749_v47 = vsub.f32 %v9699_v38, %v9735_v2  ;;  %v9732_v6 = vpop.xlane.xlu0 %9731 }
0x15db   : > { %21009 = vpow2.f32 %v9760_v49  ;;  %v9748_v14 = vsub.f32 %v9694_v51, %v9732_v6 }
0x15dc   : > { %v24110_v63 = vpop.eup %20999  ;;  %v9766_v29 = vmul.f32 1.442695, %v9749_v47 }
0x15dd   : > { %v21002_v16 = vpop.eup %21001  ;;  %v9764_v56 = vmul.f32 1.442695, %v9748_v14  ;;  %v9741_v25 = vpop.xlane.xlu1 %9740  ;;  %v9775_v54 = vsel %vm6827_vm10, %v24110_v63, 0.0 }
0x15de   : > { %21011 = vpow2.f32 %v9766_v29  ;;  %v9751_v27 = vsub.f32 %v9709_v43, %v9741_v25  ;;  %9776 = vadd.xlane.f32.xlu1 %v9775_v54  ;;  %v9738_v50 = vpop.xlane.xlu0 %9737  ;;  %v9772_v44 = vsel %vm6827_vm10, %v21002_v16, 0.0 }
0x15df   : > { %21013 = vpow2.f32 %v9764_v56  ;;  %v9750_v41 = vsub.f32 %v9704_v30, %v9738_v50  ;;  %9773 = vadd.xlane.f32.xlu0 %v9772_v44 }
0x15e0   : > { %v21004_v3 = vpop.eup %21003  ;;  %v9770_v21 = vmul.f32 1.442695, %v9751_v27 }
0x15e1   : > { %v21006_v59 = vpop.eup %21005  ;;  %v9768_v26 = vmul.f32 1.442695, %v9750_v41  ;;  %v9781_v31 = vsel %vm6827_vm10, %v21004_v3, 0.0 }
0x15e2   : > { %21015 = vpow2.f32 %v9770_v21  ;;  %9782 = vadd.xlane.f32.xlu1 %v9781_v31  ;;  %v9778_v12 = vsel %vm6827_vm10, %v21006_v59, 0.0 }
0x15e3   : > { %21017 = vpow2.f32 %v9768_v26  ;;  %9779 = vadd.xlane.f32.xlu0 %v9778_v12 }
0x15e4   : > { %v21008_v10 = vpop.eup %21007 }
0x15e5   : > { %v21010_v34 = vpop.eup %21009  ;;  %v9787_v24 = vsel %vm6827_vm10, %v21008_v10, 0.0 }
0x15e6   : > { %9788 = vadd.xlane.f32.xlu1 %v9787_v24  ;;  %v9784_v38 = vsel %vm6827_vm10, %v21010_v34, 0.0 }
0x15e7   : > { %9785 = vadd.xlane.f32.xlu0 %v9784_v38 }
0x15e8   : > { %v21012_v11 = vpop.eup %21011 }
0x15e9   : > { %v21014_v51 = vpop.eup %21013  ;;  %v9793_v62 = vsel %vm6827_vm10, %v21012_v11, 0.0 }
0x15ea   : > { %9794 = vadd.xlane.f32.xlu1 %v9793_v62  ;;  %v9790_v20 = vsel %vm6827_vm10, %v21014_v51, 0.0 }
0x15eb   : > { %9791 = vadd.xlane.f32.xlu0 %v9790_v20 }
0x15ec   : > { %v21016_v45 = vpop.eup %21015 }
0x15ed   : > { %v21018_v43 = vpop.eup %21017  ;;  %v9799_v28 = vsel %vm6827_vm10, %v21016_v45, 0.0 }
0x15ee   : > { %9800 = vadd.xlane.f32.xlu1 %v9799_v28  ;;  %v9796_v30 = vsel %vm6827_vm10, %v21018_v43, 0.0 }
0x15ef   : > { %9797 = vadd.xlane.f32.xlu0 %v9796_v30 }
0x166b   : > { %v9777_v0 = vpop.xlane.xlu1 %9776 }
0x166c   : > { %21019 = vrcp.f32 %v9777_v0  ;;  %v9774_v39 = vpop.xlane.xlu0 %9773 }
0x166d   : > { %21021 = vrcp.f32 %v9774_v39 }
0x166f   : > { %v9783_v17 = vpop.xlane.xlu1 %9782 }
0x1670   : > { %21023 = vrcp.f32 %v9783_v17  ;;  %v9780_v35 = vpop.xlane.xlu0 %9779 }
0x1671   : > { %21025 = vrcp.f32 %v9780_v35 }
0x1673   : > { %v9789_v37 = vpop.xlane.xlu1 %9788 }
0x1674   : > { %21027 = vrcp.f32 %v9789_v37  ;;  %v9786_v52 = vpop.xlane.xlu0 %9785 }
0x1675   : > { %21029 = vrcp.f32 %v9786_v52 }
0x1676   : > { %v21020_v60 = vpop.eup %21019 }
0x1677   : > { %v21022_v15 = vpop.eup %21021  ;;  %v9795_v18 = vpop.xlane.xlu1 %9794  ;;  %v9813_v32 = vmul.f32 %v21020_v60, %v24110_v63 }
0x1678   : > { %21031 = vrcp.f32 %v9795_v18  ;;  %v9792_v19 = vpop.xlane.xlu0 %9791  ;;  %v9812_v57 = vmul.f32 %v21022_v15, %v21002_v16 }
0x1679   : > { %21033 = vrcp.f32 %v9792_v19 }
0x167a   : > { %v21024_v13 = vpop.eup %21023  ;;  %19012 = vmatprep.mubr.msk.f32.mxu0 %vm6827_vm10, %v9812_v57 }
0x167b   : > { %v21026_v55 = vpop.eup %21025  ;;  %v9801_v33 = vpop.xlane.xlu1 %9800  ;;  %19013 = vmatmul.mubr.msk.f32.vlgmr.msra.gmra.mrb[82].mxu0 %vm6827_vm10, %v9813_v32  ;;  %v9815_v5 = vmul.f32 %v21024_v13, %v21004_v3 }
0x167c   : > { %21035 = vrcp.f32 %v9801_v33  ;;  %v9798_v36 = vpop.xlane.xlu0 %9797  ;;  %v9814_v4 = vmul.f32 %v21026_v55, %v21006_v59 }
0x167d   : > { %21037 = vrcp.f32 %v9798_v36 }
0x167e   : > { %v21028_v49 = vpop.eup %21027  ;;  %19015 = vmatprep.mubr.msk.f32.mxu0 %vm6827_vm10, %v9814_v4 }
0x167f   : > { %v21030_v2 = vpop.eup %21029  ;;  %19016 = vmatmul.mubr.msk.f32.gmra.mrb[84].mxu0 %vm6827_vm10, %v9815_v5  ;;  %v9817_v6 = vmul.f32 %v21028_v49, %v21008_v10 }
0x1680   : > { %v9816_v47 = vmul.f32 %v21030_v2, %v21010_v34  ;;  %v16550_v34 = vld [vmem:[%s25893_s28] ss:$0 sm:$0xff]  ;;  %s25902_s28 = sld [smem:[#allocation14_spill]] }
0x1682   : > { %v21032_v14 = vpop.eup %21031  ;;  %19018 = vmatprep.mubr.msk.f32.mxu0 %vm6827_vm10, %v9816_v47 }
0x1683   : > { %v21034_v63 = vpop.eup %21033  ;;  %19019 = vmatmul.mubr.msk.f32.gmra.mrb[86].mxu0 %vm6827_vm10, %v9817_v6  ;;  %v9819_v16 = vmul.f32 %v21032_v14, %v21012_v11 }
0x1684   : > { %v9818_v29 = vmul.f32 %v21034_v63, %v21014_v51 }
0x1686   : > { %v21036_v56 = vpop.eup %21035  ;;  %19021 = vmatprep.mubr.msk.f32.mxu0 %vm6827_vm10, %v9818_v29 }
0x1687   : > { %v21038_v25 = vpop.eup %21037  ;;  %19022 = vmatmul.mubr.msk.f32.gmra.mrb[88].mxu0 %vm6827_vm10, %v9819_v16  ;;  %v9821_v27 = vmul.f32 %v21036_v56, %v21016_v45 }
0x1688   : > { %v9820_v54 = vmul.f32 %v21038_v25, %v21018_v43 }
0x168a   : > { %19024 = vmatprep.mubr.msk.f32.mxu0 %vm6827_vm10, %v9820_v54 }
0x168b   : > { %19025 = vmatmul.mubr.msk.f32.gmra.mrb[90].mxu0 %vm6827_vm10, %v9821_v27 }
0x174e   : > { %v19014_v50 = vpop.f32.mrb[82].mxu0 }
0x174f   : > { %v9918_v44 = vpop.f32.mrb[83].mxu0 }
0x1750   : > { %19029 = vmatprep.mubr.msk.f32.mxu1 %vm6651_vm7, %v9918_v44 }
0x1751   : > { %19030 = vmatmul.mubr.msk.f32.vlgmr.msra.gmra.mrb[182].mxu1 %vm6651_vm7, %v19014_v50 }
0x1752   : > { %v19017_v41 = vpop.f32.mrb[84].mxu0 }
0x1753   : > { %v9928_v3 = vpop.f32.mrb[85].mxu0 }
0x1754   : > { %19032 = vmatprep.mubr.msk.f32.mxu1 %vm6651_vm7, %v9928_v3 }
0x1755   : > { %19033 = vmatmul.mubr.msk.f32.gmra.mrb[184].mxu1 %vm6651_vm7, %v19017_v41 }
0x1756   : > { %v19020_v21 = vpop.f32.mrb[86].mxu0 }
0x1757   : > { %v9938_v59 = vpop.f32.mrb[87].mxu0 }
0x1758   : > { %19035 = vmatprep.mubr.msk.f32.mxu1 %vm6651_vm7, %v9938_v59 }
0x1759   : > { %19036 = vmatmul.mubr.msk.f32.gmra.mrb[186].mxu1 %vm6651_vm7, %v19020_v21 }
0x175a   : > { %v19023_v26 = vpop.f32.mrb[88].mxu0 }
0x175b   : > { %v9948_v31 = vpop.f32.mrb[89].mxu0 }
0x175c   : > { %19038 = vmatprep.mubr.msk.f32.mxu1 %vm6651_vm7, %v9948_v31 }
0x175d   : > { %19039 = vmatmul.mubr.msk.f32.gmra.mrb[188].mxu1 %vm6651_vm7, %v19023_v26 }
0x175e   : > { %v19026_v12 = vpop.f32.mrb[90].mxu0 }
0x175f   : > { %v9958_v10 = vpop.f32.mrb[91].mxu0 }
0x1760   : > { %19041 = vmatprep.mubr.msk.f32.mxu1 %vm6651_vm7, %v9958_v10 }
0x1761   : > { %19042 = vmatmul.mubr.msk.f32.gmra.mrb[190].mxu1 %vm6651_vm7, %v19026_v12 }
0x1824   : > { %v19031_v24 = vpop.f32.mrb[182].mxu1 }
0x1825   : > { %v10131_v38 = vadd.f32 %v19031_v24, %v16550_v34  ;;  %v10064_v11 = vpop.f32.mrb[183].mxu1 }
0x1826   : > { %v10130_v51 = vadd.f32 %v16550_v34, %v10064_v11 }
0x1827   : > { %v10141_v62 = vadd.f32 %v10131_v38, %v23128_v46 }
0x1828   : > { %v10140_v20 = vadd.f32 %v10130_v51, %v23125_v23  ;;  %v19034_v45 = vpop.f32.mrb[184].mxu1 }
0x1829   : > { %v10133_v43 = vadd.f32 %v19034_v45, %v16550_v34  ;;  %v10074_v28 = vpop.f32.mrb[185].mxu1  ;;  %v10155_v30 = vsel %vm1526_vm5, %v10141_v62, 0.0 }
0x182a   : > { %v10132_v22 = vadd.f32 %v16550_v34, %v10074_v28  ;;  %10156 = vadd.xlane.f32.xlu1 %v10155_v30  ;;  %v10152_v0 = vsel %vm1526_vm5, %v10140_v20, 0.0 }
0x182b   : > { %v10143_v39 = vadd.f32 %v10133_v43, %v23149_v58  ;;  %10153 = vadd.xlane.f32.xlu0 %v10152_v0 }
0x182c   : > { %v10142_v17 = vadd.f32 %v10132_v22, %v23142_v40  ;;  %v19037_v35 = vpop.f32.mrb[186].mxu1 }
0x182d   : > { %v10135_v37 = vadd.f32 %v19037_v35, %v16550_v34  ;;  %v10084_v52 = vpop.f32.mrb[187].mxu1  ;;  %v10161_v46 = vsel %vm1526_vm5, %v10143_v39, 0.0 }
0x182e   : > { %v10134_v23 = vadd.f32 %v16550_v34, %v10084_v52  ;;  %10162 = vadd.xlane.f32.xlu1 %v10161_v46  ;;  %v10158_v60 = vsel %vm1526_vm5, %v10142_v17, 0.0 }
0x182f   : > { %v10145_v15 = vadd.f32 %v10135_v37, %v23166_v48  ;;  %10159 = vadd.xlane.f32.xlu0 %v10158_v60 }
0x1830   : > { %v10144_v18 = vadd.f32 %v10134_v23, %v23163_v42  ;;  %v19040_v19 = vpop.f32.mrb[188].mxu1 }
0x1831   : > { %v10137_v57 = vadd.f32 %v19040_v19, %v16550_v34  ;;  %v10094_v58 = vpop.f32.mrb[189].mxu1  ;;  %v10167_v32 = vsel %vm1526_vm5, %v10145_v15, 0.0 }
0x1832   : > { %v10136_v40 = vadd.f32 %v16550_v34, %v10094_v58  ;;  %10168 = vadd.xlane.f32.xlu1 %v10167_v32  ;;  %v10164_v13 = vsel %vm1526_vm5, %v10144_v18, 0.0 }
0x1833   : > { %v10147_v55 = vadd.f32 %v10137_v57, %v23182_v7  ;;  %10165 = vadd.xlane.f32.xlu0 %v10164_v13 }
0x1834   : > { %v10146_v33 = vadd.f32 %v10136_v40, %v23179_v9  ;;  %v19043_v36 = vpop.f32.mrb[190].mxu1 }
0x1835   : > { %v10139_v4 = vadd.f32 %v19043_v36, %v16550_v34  ;;  %v10104_v48 = vpop.f32.mrb[191].mxu1  ;;  %v10173_v5 = vsel %vm1526_vm5, %v10147_v55, 0.0  ;;  %v10316_v36 = vld [vmem:[%s25894_s1 + $0x10] sm:$0xff] }
0x1836   : > { %v10138_v42 = vadd.f32 %v16550_v34, %v10104_v48  ;;  %10174 = vadd.xlane.f32.xlu1 %v10173_v5  ;;  %v10170_v49 = vsel %vm1526_vm5, %v10146_v33, 0.0  ;;  %v10317_v48 = vld [vmem:[%s25894_s1 + $0x18] sm:$0xff] }
0x1837   : > { %v10149_v2 = vadd.f32 %v10139_v4, %v23196_v1  ;;  %10171 = vadd.xlane.f32.xlu0 %v10170_v49  ;;  %v20210_v5 = vpack.c.bf16 %v10317_v48, %v10316_v36 }
0x1838   : > { %v10148_v47 = vadd.f32 %v10138_v42, %v23194_v61 }
0x1839   : > { %v10179_v6 = vsel %vm1526_vm5, %v10149_v2, 0.0 }
0x183a   : > { %10180 = vadd.xlane.f32.xlu1 %v10179_v6  ;;  %v10176_v7 = vsel %vm1526_vm5, %v10148_v47, 0.0 }
0x183b   : > { %10177 = vadd.xlane.f32.xlu0 %v10176_v7 }
0x18b7   : > { %v10157_v9 = vpop.xlane.xlu1 %10156 }
0x18b8   : > { %v10183_v14 = vmul.f32 0.03125, %v10157_v9  ;;  %v10154_v63 = vpop.xlane.xlu0 %10153 }
0x18b9   : > { %v10182_v29 = vmul.f32 0.03125, %v10154_v63 }
0x18ba   : > { %v24166_v16 = vsub.f32 %v10141_v62, %v10183_v14 }
0x18bb   : > { %v24168_v56 = vsub.f32 %v10140_v20, %v10182_v29  ;;  %v10163_v25 = vpop.xlane.xlu1 %10162 }
0x18bc   : > { %v10185_v54 = vmul.f32 0.03125, %v10163_v25  ;;  %v10160_v1 = vpop.xlane.xlu0 %10159  ;;  %v10203_v61 = vmul.f32 %v24166_v16, %v24166_v16 }
0x18bd   : > { %v10184_v27 = vmul.f32 0.03125, %v10160_v1  ;;  %v10202_v50 = vmul.f32 %v24168_v56, %v24168_v56 }
0x18be   : > { %v24174_v44 = vsub.f32 %v10143_v39, %v10185_v54  ;;  %v10215_v41 = vsel %vm1526_vm5, %v10203_v61, 0.0 }
0x18bf   : > { %v24177_v3 = vsub.f32 %v10142_v17, %v10184_v27  ;;  %v10169_v21 = vpop.xlane.xlu1 %10168  ;;  %10216 = vadd.xlane.f32.xlu1 %v10215_v41  ;;  %v10212_v59 = vsel %vm1526_vm5, %v10202_v50, 0.0 }
0x18c0   : > { %v10187_v26 = vmul.f32 0.03125, %v10169_v21  ;;  %10213 = vadd.xlane.f32.xlu0 %v10212_v59  ;;  %v10166_v31 = vpop.xlane.xlu0 %10165  ;;  %v10205_v12 = vmul.f32 %v24174_v44, %v24174_v44 }
0x18c1   : > { %v10186_v10 = vmul.f32 0.03125, %v10166_v31  ;;  %v10204_v34 = vmul.f32 %v24177_v3, %v24177_v3 }
0x18c2   : > { %v24184_v24 = vsub.f32 %v10145_v15, %v10187_v26  ;;  %v10221_v38 = vsel %vm1526_vm5, %v10205_v12, 0.0 }
0x18c3   : > { %v24187_v11 = vsub.f32 %v10144_v18, %v10186_v10  ;;  %v10175_v51 = vpop.xlane.xlu1 %10174  ;;  %10222 = vadd.xlane.f32.xlu1 %v10221_v38  ;;  %v10218_v62 = vsel %vm1526_vm5, %v10204_v34, 0.0  ;;  %v16551_v34 = vld [vmem:[%s25895_s2] ss:$0 sm:$0xff]  ;;  %s25903_s2 = sld [smem:[#allocation16_spill]] }
0x18c4   : > { %v10189_v20 = vmul.f32 0.03125, %v10175_v51  ;;  %10219 = vadd.xlane.f32.xlu0 %v10218_v62  ;;  %v10172_v45 = vpop.xlane.xlu0 %10171  ;;  %v10207_v43 = vmul.f32 %v24184_v24, %v24184_v24 }
0x18c5   : > { %v10188_v28 = vmul.f32 0.03125, %v10172_v45  ;;  %v10206_v30 = vmul.f32 %v24187_v11, %v24187_v11 }
0x18c6   : > { %v24194_v22 = vsub.f32 %v10147_v55, %v10189_v20  ;;  %v10227_v0 = vsel %vm1526_vm5, %v10207_v43, 0.0  ;;  %v10314_v55 = vld [vmem:[%s25894_s1] sm:$0xff] }
0x18c7   : > { %v24197_v39 = vsub.f32 %v10146_v33, %v10188_v28  ;;  %10228 = vadd.xlane.f32.xlu1 %v10227_v0  ;;  %v10181_v17 = vpop.xlane.xlu1 %10180  ;;  %v10224_v35 = vsel %vm1526_vm5, %v10206_v30, 0.0  ;;  %v10315_v33 = vld [vmem:[%s25894_s1 + $0x8] sm:$0xff] }
0x18c8   : > { %v10191_v37 = vmul.f32 0.03125, %v10181_v17  ;;  %10225 = vadd.xlane.f32.xlu0 %v10224_v35  ;;  %v10178_v52 = vpop.xlane.xlu0 %10177  ;;  %v10209_v46 = vmul.f32 %v24194_v22, %v24194_v22  ;;  %v20206_v4 = vpack.c.bf16 %v10315_v33, %v10314_v55  ;;  %v16552_v35 = vld [vmem:[%s25896_s7] ss:$0 sm:$0xff]  ;;  %s25904_s7 = sld [smem:[#allocation17_spill]] }
0x18c9   : > { %v10190_v23 = vmul.f32 0.03125, %v10178_v52  ;;  %v10208_v60 = vmul.f32 %v24197_v39, %v24197_v39 }
0x18ca   : > { %v24204_v15 = vsub.f32 %v10149_v2, %v10191_v37  ;;  %v10233_v18 = vsel %vm1526_vm5, %v10209_v46, 0.0  ;;  %20207 = vmatprep.subr.bf16.mxu0 %v20206_v4 }
0x18cb   : > { %v24207_v19 = vsub.f32 %v10148_v47, %v10190_v23  ;;  %10234 = vadd.xlane.f32.xlu1 %v10233_v18  ;;  %v10230_v57 = vsel %vm1526_vm5, %v10208_v60, 0.0  ;;  %20209 = vmatpush3.bf16.msra.mxu0 %v20206_v4 }
0x18cc   : > { %10231 = vadd.xlane.f32.xlu0 %v10230_v57  ;;  %v10211_v58 = vmul.f32 %v24204_v15, %v24204_v15  ;;  %20211 = vmatprep.subr.bf16.mxu0 %v20210_v5 }
0x18cd   : > { %v10210_v32 = vmul.f32 %v24207_v19, %v24207_v19 }
0x18ce   : > { %v10239_v40 = vsel %vm1526_vm5, %v10211_v58, 0.0 }
0x18cf   : > { %10240 = vadd.xlane.f32.xlu1 %v10239_v40  ;;  %v10236_v13 = vsel %vm1526_vm5, %v10210_v32, 0.0  ;;  %20213 = vmatpush3.bf16.msra.mxu0 %v20210_v5 }
0x18d0   : > { %10237 = vadd.xlane.f32.xlu0 %v10236_v13 }
0x194c   : > { %v10217_v42 = vpop.xlane.xlu1 %10216 }
0x194d   : > { %v10243_v49 = vmul.f32 0.03125, %v10217_v42  ;;  %v10214_v2 = vpop.xlane.xlu0 %10213 }
0x194e   : > { %v10242_v47 = vmul.f32 0.03125, %v10214_v2 }
0x194f   : > { %v10253_v6 = vadd.f32 1e-05, %v10243_v49 }
0x1950   : > { %v10252_v7 = vadd.f32 1e-05, %v10242_v47  ;;  %v10223_v9 = vpop.xlane.xlu1 %10222 }
0x1951   : > { %21039 = vrsqrt.f32 %v10253_v6  ;;  %v10245_v14 = vmul.f32 0.03125, %v10223_v9  ;;  %v10220_v63 = vpop.xlane.xlu0 %10219 }
0x1952   : > { %21041 = vrsqrt.f32 %v10252_v7  ;;  %v10244_v29 = vmul.f32 0.03125, %v10220_v63 }
0x1953   : > { %v10255_v25 = vadd.f32 1e-05, %v10245_v14 }
0x1954   : > { %v10254_v54 = vadd.f32 1e-05, %v10244_v29  ;;  %v10229_v1 = vpop.xlane.xlu1 %10228 }
0x1955   : > { %21043 = vrsqrt.f32 %v10255_v25  ;;  %v10247_v61 = vmul.f32 0.03125, %v10229_v1  ;;  %v10226_v27 = vpop.xlane.xlu0 %10225  ;;  %v10562_v1 = vld [vmem:[%s25897_s10 + $0x10] sm:$0xff] }
0x1956   : > { %21045 = vrsqrt.f32 %v10254_v54  ;;  %v10246_v50 = vmul.f32 0.03125, %v10226_v27  ;;  %v10561_v54 = vld [vmem:[%s25897_s10 + $0x8] sm:$0xff]  ;;  %v10563_v27 = vld [vmem:[%s25897_s10 + $0x18] sm:$0xff] }
0x1957   : > { %v10257_v41 = vadd.f32 1e-05, %v10247_v61 }
0x1958   : > { %v10256_v21 = vadd.f32 1e-05, %v10246_v50  ;;  %v10235_v59 = vpop.xlane.xlu1 %10234  ;;  %v20218_v50 = vpack.c.bf16 %v10563_v27, %v10562_v1 }
0x1959   : > { %21047 = vrsqrt.f32 %v10257_v41  ;;  %v10249_v26 = vmul.f32 0.03125, %v10235_v59  ;;  %v10232_v31 = vpop.xlane.xlu0 %10231  ;;  %v10564_v41 = vld [vmem:[%s25897_s10 + $0x20] sm:$0xff] }
0x195a   : > { %21049 = vrsqrt.f32 %v10256_v21  ;;  %v10248_v12 = vmul.f32 0.03125, %v10232_v31  ;;  %v10565_v21 = vld [vmem:[%s25897_s10 + $0x28] sm:$0xff]  ;;  %v10567_v31 = vld [vmem:[%s25897_s10 + $0x38] sm:$0xff] }
0x195b   : > { %v21040_v10 = vpop.eup %21039  ;;  %v10259_v38 = vadd.f32 1e-05, %v10249_v26  ;;  %v20222_v59 = vpack.c.bf16 %v10565_v21, %v10564_v41  ;;  %v10566_v26 = vld [vmem:[%s25897_s10 + $0x30] sm:$0xff] }
0x195c   : > { %v21042_v51 = vpop.eup %21041  ;;  %v10273_v62 = vmul.f32 %v21040_v10, %v24166_v16  ;;  %v10258_v20 = vadd.f32 1e-05, %v10248_v12  ;;  %v10241_v45 = vpop.xlane.xlu1 %10240  ;;  %v20226_v12 = vpack.c.bf16 %v10567_v31, %v10566_v26  ;;  %v16553_v10 = vld [vmem:[%s25898_s11] ss:$0 sm:$0xff]  ;;  %s25905_s11 = sld [smem:[#allocation18_spill]] }
0x195d   : > { %21051 = vrsqrt.f32 %v10259_v38  ;;  %v10251_v43 = vmul.f32 0.03125, %v10241_v45  ;;  %v10238_v28 = vpop.xlane.xlu0 %10237  ;;  %v10272_v30 = vmul.f32 %v21042_v51, %v24168_v56 }
0x195e   : > { %v10289_v0 = vmul.f32 %v16551_v34, %v10273_v62  ;;  %21053 = vrsqrt.f32 %v10258_v20  ;;  %v10250_v17 = vmul.f32 0.03125, %v10238_v28 }
0x195f   : > { %v21044_v37 = vpop.eup %21043  ;;  %v10261_v52 = vadd.f32 1e-05, %v10251_v43  ;;  %v10288_v46 = vmul.f32 %v16551_v34, %v10272_v30 }
0x1960   : > { %v21046_v23 = vpop.eup %21045  ;;  %v10260_v60 = vadd.f32 1e-05, %v10250_v17  ;;  %v10275_v18 = vmul.f32 %v21044_v37, %v24174_v44  ;;  %v24228_v58 = vadd.f32 %v16552_v35, %v10289_v0 }
0x1961   : > { %21055 = vrsqrt.f32 %v10261_v52  ;;  %v24225_v16 = vadd.f32 %v16552_v35, %v10288_v46  ;;  %v10274_v57 = vmul.f32 %v21046_v23, %v24177_v3 }
0x1962   : > { %21057 = vrsqrt.f32 %v10260_v60  ;;  %v10291_v56 = vmul.f32 %v16551_v34, %v10275_v18 }
0x1963   : > { %v21048_v32 = vpop.eup %21047  ;;  %19052 = vmatprep.mubr.msk.f32.mxu0 %vm1526_vm5, %v24225_v16  ;;  %v10290_v40 = vmul.f32 %v16551_v34, %v10274_v57 }
0x1964   : > { %v21050_v13 = vpop.eup %21049  ;;  %19053 = vmatmul.mubr.msk.f32.vlgmr.msra.gmra.mrb[92].mxu0 %vm1526_vm5, %v24228_v58  ;;  %v10277_v44 = vmul.f32 %v21048_v32, %v24184_v24  ;;  %v24238_v3 = vadd.f32 %v16552_v35, %v10291_v56 }
0x1965   : > { %v24235_v55 = vadd.f32 %v16552_v35, %v10290_v40  ;;  %v10276_v33 = vmul.f32 %v21050_v13, %v24187_v11 }
0x1966   : > { %v10293_v36 = vmul.f32 %v16551_v34, %v10277_v44 }
0x1967   : > { %v21052_v4 = vpop.eup %21051  ;;  %19055 = vmatprep.mubr.msk.f32.mxu0 %vm1526_vm5, %v24235_v55  ;;  %v10292_v48 = vmul.f32 %v16551_v34, %v10276_v33 }
0x1968   : > { %v21054_v5 = vpop.eup %21053  ;;  %19056 = vmatmul.mubr.msk.f32.gmra.mrb[94].mxu0 %vm1526_vm5, %v24238_v3  ;;  %v10279_v42 = vmul.f32 %v21052_v4, %v24194_v22  ;;  %v24248_v2 = vadd.f32 %v16552_v35, %v10293_v36 }
0x1969   : > { %v24245_v49 = vadd.f32 %v16552_v35, %v10292_v48  ;;  %v10278_v24 = vmul.f32 %v21054_v5, %v24197_v39 }
0x196a   : > { %v10295_v11 = vmul.f32 %v16551_v34, %v10279_v42 }
0x196b   : > { %v21056_v47 = vpop.eup %21055  ;;  %19058 = vmatprep.mubr.msk.f32.mxu0 %vm1526_vm5, %v24245_v49  ;;  %v10294_v6 = vmul.f32 %v16551_v34, %v10278_v24 }
0x196c   : > { %v21058_v7 = vpop.eup %21057  ;;  %19059 = vmatmul.mubr.msk.f32.gmra.mrb[96].mxu0 %vm1526_vm5, %v24248_v2  ;;  %v10281_v22 = vmul.f32 %v21056_v47, %v24204_v15  ;;  %v24258_v14 = vadd.f32 %v16552_v35, %v10295_v11 }
0x196d   : > { %v24255_v9 = vadd.f32 %v16552_v35, %v10294_v6  ;;  %v10280_v39 = vmul.f32 %v21058_v7, %v24207_v19  ;;  %v10560_v19 = vld [vmem:[%s25897_s10] sm:$0xff] }
0x196e   : > { %v10297_v63 = vmul.f32 %v16551_v34, %v10281_v22  ;;  %v20214_v61 = vpack.c.bf16 %v10561_v54, %v10560_v19 }
0x196f   : > { %19061 = vmatprep.mubr.msk.f32.mxu0 %vm1526_vm5, %v24255_v9  ;;  %v10296_v29 = vmul.f32 %v16551_v34, %v10280_v39 }
0x1970   : > { %19062 = vmatmul.mubr.msk.f32.gmra.mrb[98].mxu0 %vm1526_vm5, %v24258_v14  ;;  %v24266_v15 = vadd.f32 %v16552_v35, %v10297_v63  ;;  %20215 = vmatprep.subr.bf16.mxu0 %v20214_v61 }
0x1971   : > { %v24264_v25 = vadd.f32 %v16552_v35, %v10296_v29  ;;  %20217 = vmatpush3.bf16.msra.mxu0 %v20214_v61 }
0x1972   : > { %20219 = vmatprep.subr.bf16.mxu0 %v20218_v50 }
0x1973   : > { %19064 = vmatprep.mubr.msk.f32.mxu0 %vm1526_vm5, %v24264_v25 }
0x1974   : > { %19065 = vmatmul.mubr.msk.f32.gmra.mrb[100].mxu0 %vm1526_vm5, %v24266_v15 }
0x1975   : > { %20221 = vmatpush3.bf16.msra.mxu0 %v20218_v50 }
0x1976   : > { %20223 = vmatprep.subr.bf16.mxu0 %v20222_v59 }
0x1979   : > { %20225 = vmatpush3.bf16.msra.mxu0 %v20222_v59 }
0x197a   : > { %20227 = vmatprep.subr.bf16.mxu0 %v20226_v12 }
0x197d   : > { %20229 = vmatpush3.bf16.msra.mxu0 %v20226_v12 }
0x1a37   : > { %v19054_v34 = vpop.f32.mrb[92].mxu0 }
0x1a38   : > { %v24281_v38 = vadd.f32 %v19054_v34, %v16553_v10  ;;  %v10421_v51 = vpop.f32.mrb[93].mxu0 }
0x1a39   : > { %v24283_v62 = vadd.f32 %v16553_v10, %v10421_v51 }
0x1a3a   : > { %v10481_v20 = vmul.f32 0.044715, %v24281_v38 }
0x1a3b   : > { %v10480_v45 = vmul.f32 0.044715, %v24283_v62  ;;  %v19057_v43 = vpop.f32.mrb[94].mxu0 }
0x1a3c   : > { %v10491_v28 = vmul.f32 %v10481_v20, %v24281_v38  ;;  %v24288_v30 = vadd.f32 %v19057_v43, %v16553_v10  ;;  %v10431_v0 = vpop.f32.mrb[95].mxu0 }
0x1a3d   : > { %v10490_v17 = vmul.f32 %v10480_v45, %v24283_v62  ;;  %v24291_v35 = vadd.f32 %v16553_v10, %v10431_v0 }
0x1a3e   : > { %v10501_v37 = vmul.f32 %v10491_v28, %v24281_v38  ;;  %v10483_v52 = vmul.f32 0.044715, %v24288_v30 }
0x1a3f   : > { %v10500_v46 = vmul.f32 %v10490_v17, %v24283_v62  ;;  %v10482_v23 = vmul.f32 0.044715, %v24291_v35  ;;  %v19060_v60 = vpop.f32.mrb[96].mxu0 }
0x1a40   : > { %v10511_v18 = vadd.f32 %v10501_v37, %v24281_v38  ;;  %v10493_v57 = vmul.f32 %v10483_v52, %v24288_v30  ;;  %v24299_v56 = vadd.f32 %v19060_v60, %v16553_v10  ;;  %v10441_v32 = vpop.f32.mrb[97].mxu0 }
0x1a41   : > { %v10510_v40 = vadd.f32 %v10500_v46, %v24283_v62  ;;  %v10492_v13 = vmul.f32 %v10482_v23, %v24291_v35  ;;  %v24303_v44 = vadd.f32 %v16553_v10, %v10441_v32 }
0x1a42   : > { %v10521_v33 = vmul.f32 0.7978846, %v10511_v18  ;;  %v10503_v36 = vmul.f32 %v10493_v57, %v24288_v30  ;;  %v10485_v4 = vmul.f32 0.044715, %v24299_v56 }
0x1a43   : > { %v10502_v48 = vmul.f32 %v10492_v13, %v24291_v35  ;;  %v10484_v5 = vmul.f32 0.044715, %v24303_v44  ;;  %v19063_v42 = vpop.f32.mrb[98].mxu0  ;;  %v10520_v24 = vmul.f32 0.7978846, %v10510_v40 }
0x1a44   : > { %21059 = vtanh.f32 %v10521_v33  ;;  %v10513_v11 = vadd.f32 %v10503_v36, %v24288_v30  ;;  %v10495_v47 = vmul.f32 %v10485_v4, %v24299_v56  ;;  %v24311_v6 = vadd.f32 %v19063_v42, %v16553_v10  ;;  %v10451_v7 = vpop.f32.mrb[99].mxu0 }
0x1a45   : > { %v10512_v22 = vadd.f32 %v10502_v48, %v24291_v35  ;;  %v10494_v39 = vmul.f32 %v10484_v5, %v24303_v44  ;;  %v24315_v63 = vadd.f32 %v16553_v10, %v10451_v7  ;;  %21061 = vtanh.f32 %v10520_v24 }
0x1a46   : > { %v10505_v29 = vmul.f32 %v10495_v47, %v24299_v56  ;;  %v10487_v19 = vmul.f32 0.044715, %v24311_v6  ;;  %v10523_v54 = vmul.f32 0.7978846, %v10513_v11  ;;  %v10470_v33 = vmul.f32 0.5, %v24283_v62 }
0x1a47   : > { %v10504_v1 = vmul.f32 %v10494_v39, %v24303_v44  ;;  %v10486_v61 = vmul.f32 0.044715, %v24315_v63  ;;  %v19066_v27 = vpop.f32.mrb[100].mxu0  ;;  %v10522_v50 = vmul.f32 0.7978846, %v10512_v22  ;;  %v10471_v4 = vmul.f32 0.5, %v24281_v38 }
0x1a48   : > { %v10515_v41 = vadd.f32 %v10505_v29, %v24299_v56  ;;  %v10497_v21 = vmul.f32 %v10487_v19, %v24311_v6  ;;  %v24323_v59 = vadd.f32 %v19066_v27, %v16553_v10  ;;  %v10461_v26 = vpop.f32.mrb[101].mxu0  ;;  %21063 = vtanh.f32 %v10523_v54 }
0x1a49   : > { %v10514_v31 = vadd.f32 %v10504_v1, %v24303_v44  ;;  %v10496_v12 = vmul.f32 %v10486_v61, %v24315_v63  ;;  %v24327_v34 = vadd.f32 %v16553_v10, %v10461_v26  ;;  %21065 = vtanh.f32 %v10522_v50 }
0x1a4a   : > { %v10507_v51 = vmul.f32 %v10497_v21, %v24311_v6  ;;  %v10489_v20 = vmul.f32 0.044715, %v24323_v59  ;;  %v10525_v45 = vmul.f32 0.7978846, %v10515_v41  ;;  %v10472_v39 = vmul.f32 0.5, %v24291_v35 }
0x1a4b   : > { %v10506_v43 = vmul.f32 %v10496_v12, %v24315_v63  ;;  %v10488_v28 = vmul.f32 0.044715, %v24327_v34  ;;  %v10524_v0 = vmul.f32 0.7978846, %v10514_v31  ;;  %v10473_v38 = vmul.f32 0.5, %v24288_v30 }
0x1a4c   : > { %v10517_v17 = vadd.f32 %v10507_v51, %v24311_v6  ;;  %v10499_v37 = vmul.f32 %v10489_v20, %v24323_v59  ;;  %21067 = vtanh.f32 %v10525_v45  ;;  %v10474_v27 = vmul.f32 0.5, %v24303_v44 }
0x1a4d   : > { %v10516_v52 = vadd.f32 %v10506_v43, %v24315_v63  ;;  %v10498_v10 = vmul.f32 %v10488_v28, %v24327_v34  ;;  %21069 = vtanh.f32 %v10524_v0  ;;  %v10475_v35 = vmul.f32 0.5, %v24299_v56 }
0x1a4e   : > { %v21060_v46 = vpop.eup %21059  ;;  %v10509_v23 = vmul.f32 %v10499_v37, %v24323_v59  ;;  %v10527_v60 = vmul.f32 0.7978846, %v10517_v17  ;;  %v10476_v12 = vmul.f32 0.5, %v24315_v63  ;;  %v10477_v44 = vmul.f32 0.5, %v24311_v6  ;;  %v16564_v6 = vld [vmem:[%s25899_s0] ss:$0 sm:$0xff] }
0x1a4f   : > { %v21062_v18 = vpop.eup %21061  ;;  %v10541_v57 = vadd.f32 1.0, %v21060_v46  ;;  %v10508_v32 = vmul.f32 %v10498_v10, %v24327_v34  ;;  %v10526_v40 = vmul.f32 0.7978846, %v10516_v52  ;;  %v10478_v0 = vmul.f32 0.5, %v24327_v34  ;;  %s25906_s0 = sld [smem:[#allocation21_spill]] }
0x1a50   : > { %v10519_v13 = vadd.f32 %v10509_v23, %v24323_v59  ;;  %v10540_v36 = vadd.f32 1.0, %v21062_v18  ;;  %21071 = vtanh.f32 %v10527_v60  ;;  %v10479_v63 = vmul.f32 0.5, %v24323_v59 }
0x1a51   : > { %v10518_v48 = vadd.f32 %v10508_v32, %v24327_v34  ;;  %21073 = vtanh.f32 %v10526_v40  ;;  %v10551_v47 = vmul.f32 %v10541_v57, %v10471_v4 }
0x1a52   : > { %v21064_v5 = vpop.eup %21063  ;;  %v10550_v42 = vmul.f32 %v10540_v36, %v10470_v33  ;;  %v10529_v24 = vmul.f32 0.7978846, %v10519_v13 }
0x1a53   : > { %v21066_v11 = vpop.eup %21065  ;;  %v10543_v7 = vadd.f32 1.0, %v21064_v5  ;;  %v10528_v22 = vmul.f32 0.7978846, %v10518_v48 }
0x1a54   : > { %19083 = vmatprep.mubr.msk.f32.mxu0 %vm10575_vm11, %v10550_v42  ;;  %v10542_v62 = vadd.f32 1.0, %v21066_v11  ;;  %21075 = vtanh.f32 %v10529_v24 }
0x1a55   : > { %19084 = vmatmul.mubr.msk.f32.vlgmr.msra.gmra.mrb[102].mxu0 %vm10575_vm11, %v10551_v47  ;;  %21077 = vtanh.f32 %v10528_v22  ;;  %v10553_v1 = vmul.f32 %v10543_v7, %v10473_v38 }
0x1a56   : > { %v21068_v29 = vpop.eup %21067  ;;  %v10552_v19 = vmul.f32 %v10542_v62, %v10472_v39 }
0x1a57   : > { %v21070_v54 = vpop.eup %21069  ;;  %v10545_v61 = vadd.f32 1.0, %v21068_v29 }
0x1a58   : > { %19086 = vmatprep.mubr.msk.f32.mxu0 %vm10575_vm11, %v10552_v19  ;;  %v10544_v50 = vadd.f32 1.0, %v21070_v54 }
0x1a59   : > { %19087 = vmatmul.mubr.msk.f32.gmra.mrb[104].mxu0 %vm10575_vm11, %v10553_v1  ;;  %v10555_v31 = vmul.f32 %v10545_v61, %v10475_v35 }
0x1a5a   : > { %v21072_v41 = vpop.eup %21071  ;;  %v10554_v21 = vmul.f32 %v10544_v50, %v10474_v27 }
0x1a5b   : > { %v21074_v26 = vpop.eup %21073  ;;  %v10547_v30 = vadd.f32 1.0, %v21072_v41 }
0x1a5c   : > { %19089 = vmatprep.mubr.msk.f32.mxu0 %vm10575_vm11, %v10554_v21  ;;  %v10546_v51 = vadd.f32 1.0, %v21074_v26 }
0x1a5d   : > { %19090 = vmatmul.mubr.msk.f32.gmra.mrb[106].mxu0 %vm10575_vm11, %v10555_v31  ;;  %v10557_v28 = vmul.f32 %v10547_v30, %v10477_v44 }
0x1a5e   : > { %v21076_v20 = vpop.eup %21075  ;;  %v10556_v45 = vmul.f32 %v10546_v51, %v10476_v12 }
0x1a5f   : > { %v21078_v43 = vpop.eup %21077  ;;  %v10549_v56 = vadd.f32 1.0, %v21076_v20 }
0x1a60   : > { %19092 = vmatprep.mubr.msk.f32.mxu0 %vm10575_vm11, %v10556_v45  ;;  %v10548_v17 = vadd.f32 1.0, %v21078_v43 }
0x1a61   : > { %19093 = vmatmul.mubr.msk.f32.gmra.mrb[108].mxu0 %vm10575_vm11, %v10557_v28  ;;  %v10559_v52 = vmul.f32 %v10549_v56, %v10479_v63 }
0x1a62   : > { %v10558_v37 = vmul.f32 %v10548_v17, %v10478_v0 }
0x1a64   : > { %19095 = vmatprep.mubr.msk.f32.mxu0 %vm10575_vm11, %v10558_v37 }
0x1a65   : > { %19096 = vmatmul.mubr.msk.f32.gmra.mrb[110].mxu0 %vm10575_vm11, %v10559_v52 }
0x1b28   : > { %v19085_v10 = vpop.f32.mrb[102].mxu0 }
0x1b29   : > { %v10678_v46 = vadd.f32 %v19085_v10, %v16564_v6  ;;  %v10672_v23 = vpop.f32.mrb[103].mxu0 }
0x1b2a   : > { %v10673_v60 = vadd.f32 %v16564_v6, %v10672_v23 }
0x1b2b   : > { %v10722_v18 = vadd.f32 %v10678_v46, %v24228_v58 }
0x1b2c   : > { %v10721_v34 = vadd.f32 %v10673_v60, %v24225_v16  ;;  %v19088_v57 = vpop.f32.mrb[104].mxu0 }
0x1b2d   : > { %v10688_v32 = vadd.f32 %v19088_v57, %v16564_v6  ;;  %v10682_v40 = vpop.f32.mrb[105].mxu0  ;;  %v10736_v59 = vsel %vm1526_vm5, %v10722_v18, 0.0 }
0x1b2e   : > { %v10683_v13 = vadd.f32 %v16564_v6, %v10682_v40  ;;  %10737 = vadd.xlane.f32.xlu1 %v10736_v59  ;;  %v10733_v33 = vsel %vm1526_vm5, %v10721_v34, 0.0 }
0x1b2f   : > { %v10724_v36 = vadd.f32 %v10688_v32, %v24238_v3  ;;  %10734 = vadd.xlane.f32.xlu0 %v10733_v33 }
0x1b30   : > { %v10723_v4 = vadd.f32 %v10683_v13, %v24235_v55  ;;  %v19091_v48 = vpop.f32.mrb[106].mxu0 }
0x1b31   : > { %v10698_v5 = vadd.f32 %v19091_v48, %v16564_v6  ;;  %v10692_v42 = vpop.f32.mrb[107].mxu0  ;;  %v10742_v58 = vsel %vm1526_vm5, %v10724_v36, 0.0 }
0x1b32   : > { %v10693_v16 = vadd.f32 %v16564_v6, %v10692_v42  ;;  %10743 = vadd.xlane.f32.xlu1 %v10742_v58  ;;  %v10739_v24 = vsel %vm1526_vm5, %v10723_v4, 0.0 }
0x1b33   : > { %v10726_v11 = vadd.f32 %v10698_v5, %v24248_v2  ;;  %10740 = vadd.xlane.f32.xlu0 %v10739_v24 }
0x1b34   : > { %v10725_v47 = vadd.f32 %v10693_v16, %v24245_v49  ;;  %v19094_v7 = vpop.f32.mrb[108].mxu0 }
0x1b35   : > { %v10708_v22 = vadd.f32 %v19094_v7, %v16564_v6  ;;  %v10702_v3 = vpop.f32.mrb[109].mxu0  ;;  %v10748_v39 = vsel %vm1526_vm5, %v10726_v11, 0.0 }
0x1b36   : > { %v10703_v55 = vadd.f32 %v16564_v6, %v10702_v3  ;;  %10749 = vadd.xlane.f32.xlu1 %v10748_v39  ;;  %v10745_v62 = vsel %vm1526_vm5, %v10725_v47, 0.0 }
0x1b37   : > { %v10728_v38 = vadd.f32 %v10708_v22, %v24258_v14  ;;  %10746 = vadd.xlane.f32.xlu0 %v10745_v62 }
0x1b38   : > { %v10727_v29 = vadd.f32 %v10703_v55, %v24255_v9  ;;  %v19097_v19 = vpop.f32.mrb[110].mxu0 }
0x1b39   : > { %v10718_v54 = vadd.f32 %v19097_v19, %v16564_v6  ;;  %v10712_v2 = vpop.f32.mrb[111].mxu0  ;;  %v10754_v1 = vsel %vm1526_vm5, %v10728_v38, 0.0  ;;  %v24439_v19 = vld [vmem:[%s25900_s18 + $0x40] sm:$0xff] }
0x1b3a   : > { %v10713_v49 = vadd.f32 %v16564_v6, %v10712_v2  ;;  %10755 = vadd.xlane.f32.xlu1 %v10754_v1  ;;  %v10751_v61 = vsel %vm1526_vm5, %v10727_v29, 0.0 }
0x1b3b   : > { %v10730_v27 = vadd.f32 %v10718_v54, %v24266_v15  ;;  %10752 = vadd.xlane.f32.xlu0 %v10751_v61 }
0x1b3c   : > { %v10729_v50 = vadd.f32 %v10713_v49, %v24264_v25 }
0x1b3d   : > { %v10760_v35 = vsel %vm1526_vm5, %v10730_v27, 0.0 }
0x1b3e   : > { %10761 = vadd.xlane.f32.xlu1 %v10760_v35  ;;  %v10757_v14 = vsel %vm1526_vm5, %v10729_v50, 0.0 }
0x1b3f   : > { %10758 = vadd.xlane.f32.xlu0 %v10757_v14 }
0x1bbb   : > { %v10738_v9 = vpop.xlane.xlu1 %10737 }
0x1bbc   : > { %v10764_v41 = vmul.f32 0.03125, %v10738_v9  ;;  %v10735_v21 = vpop.xlane.xlu0 %10734 }
0x1bbd   : > { %v10763_v26 = vmul.f32 0.03125, %v10735_v21 }
0x1bbe   : > { %v24382_v31 = vsub.f32 %v10722_v18, %v10764_v41 }
0x1bbf   : > { %v24384_v30 = vsub.f32 %v10721_v34, %v10763_v26  ;;  %v10744_v12 = vpop.xlane.xlu1 %10743 }
0x1bc0   : > { %v10766_v51 = vmul.f32 0.03125, %v10744_v12  ;;  %v10741_v15 = vpop.xlane.xlu0 %10740  ;;  %v10784_v25 = vmul.f32 %v24382_v31, %v24382_v31 }
0x1bc1   : > { %v10765_v44 = vmul.f32 0.03125, %v10741_v15  ;;  %v10783_v20 = vmul.f32 %v24384_v30, %v24384_v30 }
0x1bc2   : > { %v24390_v45 = vsub.f32 %v10724_v36, %v10766_v51  ;;  %v10796_v43 = vsel %vm1526_vm5, %v10784_v25, 0.0 }
0x1bc3   : > { %v24393_v28 = vsub.f32 %v10723_v4, %v10765_v44  ;;  %v10750_v56 = vpop.xlane.xlu1 %10749  ;;  %10797 = vadd.xlane.f32.xlu1 %v10796_v43  ;;  %v10793_v0 = vsel %vm1526_vm5, %v10783_v20, 0.0 }
0x1bc4   : > { %v10768_v17 = vmul.f32 0.03125, %v10750_v56  ;;  %v10747_v63 = vpop.xlane.xlu0 %10746  ;;  %10794 = vadd.xlane.f32.xlu0 %v10793_v0  ;;  %v10786_v37 = vmul.f32 %v24390_v45, %v24390_v45 }
0x1bc5   : > { %v10767_v52 = vmul.f32 0.03125, %v10747_v63  ;;  %v10785_v6 = vmul.f32 %v24393_v28, %v24393_v28  ;;  %v24444_v63 = vld [vmem:[%s25901_s22] ss:$0 sm:$0xff]  ;;  %s25907_s22 = sld [smem:[#allocation19_spill]] }
0x1bc6   : > { %v24400_v10 = vsub.f32 %v10726_v11, %v10768_v17  ;;  %v10802_v46 = vsel %vm1526_vm5, %v10786_v37, 0.0 }
0x1bc7   : > { %v24403_v23 = vsub.f32 %v10725_v47, %v10767_v52  ;;  %v10756_v60 = vpop.xlane.xlu1 %10755  ;;  %10803 = vadd.xlane.f32.xlu1 %v10802_v46  ;;  %v10799_v18 = vsel %vm1526_vm5, %v10785_v6, 0.0 }
0x1bc8   : > { %v10770_v34 = vmul.f32 0.03125, %v10756_v60  ;;  %v10753_v57 = vpop.xlane.xlu0 %10752  ;;  %10800 = vadd.xlane.f32.xlu0 %v10799_v18  ;;  %v10788_v32 = vmul.f32 %v24400_v10, %v24400_v10 }
0x1bc9   : > { %v10769_v40 = vmul.f32 0.03125, %v10753_v57  ;;  %v10787_v59 = vmul.f32 %v24403_v23, %v24403_v23 }
0x1bca   : > { %v24410_v13 = vsub.f32 %v10728_v38, %v10770_v34  ;;  %v10808_v33 = vsel %vm1526_vm5, %v10788_v32, 0.0  ;;  %v11049_v38 = vld [vmem:[%s25900_s18 + $0x20] sm:$0xff] }
0x1bcb   : > { %v24413_v36 = vsub.f32 %v10727_v29, %v10769_v40  ;;  %10809 = vadd.xlane.f32.xlu1 %v10808_v33  ;;  %v10762_v4 = vpop.xlane.xlu1 %10761  ;;  %v10805_v48 = vsel %vm1526_vm5, %v10787_v59, 0.0  ;;  %19115 = vmatprep.subr.msk.mxu0 %vm1526_vm5, %v11049_v38  ;;  %v10895_v29 = vld [vmem:[%s25900_s18] sm:$0xff] }
0x1bcc   : > { %v10772_v5 = vmul.f32 0.03125, %v10762_v4  ;;  %10806 = vadd.xlane.f32.xlu0 %v10805_v48  ;;  %v10759_v42 = vpop.xlane.xlu0 %10758  ;;  %v10790_v58 = vmul.f32 %v24410_v13, %v24410_v13  ;;  %19116 = vmatpush3.xpose.msk.msra.mxu0 %vm1526_vm5, %v11049_v38  ;;  %v16576_v32 = vld [vmem:[%s25902_s28] ss:$0 sm:$0xff]  ;;  %s25908_s28 = sld [smem:[#allocation20_spill]] }
0x1bcd   : > { %v10771_v16 = vmul.f32 0.03125, %v10759_v42  ;;  %v10789_v24 = vmul.f32 %v24413_v36, %v24413_v36  ;;  %19098 = vmatprep.subr.msk.mxu1 %vm1526_vm5, %v10895_v29 }
0x1bce   : > { %v24420_v11 = vsub.f32 %v10730_v27, %v10772_v5  ;;  %v10814_v47 = vsel %vm1526_vm5, %v10790_v58, 0.0  ;;  %19099 = vmatpush3.xpose.msk.msra.mxu1 %vm1526_vm5, %v10895_v29 }
0x1bcf   : > { %v24423_v7 = vsub.f32 %v10729_v50, %v10771_v16  ;;  %10815 = vadd.xlane.f32.xlu1 %v10814_v47  ;;  %v10811_v22 = vsel %vm1526_vm5, %v10789_v24, 0.0  ;;  %19132 = vmatprep.subr.msk.mxu1 %vm1526_vm5, %v24439_v19 }
0x1bd0   : > { %10812 = vadd.xlane.f32.xlu0 %v10811_v22  ;;  %v10792_v3 = vmul.f32 %v24420_v11, %v24420_v11 }
0x1bd1   : > { %v10791_v39 = vmul.f32 %v24423_v7, %v24423_v7 }
0x1bd2   : > { %v10820_v55 = vsel %vm1526_vm5, %v10792_v3, 0.0 }
0x1bd3   : > { %10821 = vadd.xlane.f32.xlu1 %v10820_v55  ;;  %v10817_v62 = vsel %vm1526_vm5, %v10791_v39, 0.0 }
0x1bd4   : > { %10818 = vadd.xlane.f32.xlu0 %v10817_v62 }
0x1c50   : > { %v10798_v54 = vpop.xlane.xlu1 %10797 }
0x1c51   : > { %v10824_v2 = vmul.f32 0.03125, %v10798_v54  ;;  %v10795_v1 = vpop.xlane.xlu0 %10794 }
0x1c52   : > { %v10823_v49 = vmul.f32 0.03125, %v10795_v1 }
0x1c53   : > { %v10834_v61 = vadd.f32 1e-05, %v10824_v2 }
0x1c54   : > { %v10833_v27 = vadd.f32 1e-05, %v10823_v49  ;;  %v10804_v50 = vpop.xlane.xlu1 %10803 }
0x1c55   : > { %21079 = vrsqrt.f32 %v10834_v61  ;;  %v10826_v35 = vmul.f32 0.03125, %v10804_v50  ;;  %v10801_v14 = vpop.xlane.xlu0 %10800 }
0x1c56   : > { %21081 = vrsqrt.f32 %v10833_v27  ;;  %v10825_v9 = vmul.f32 0.03125, %v10801_v14 }
0x1c57   : > { %v10836_v41 = vadd.f32 1e-05, %v10826_v35 }
0x1c58   : > { %v10835_v21 = vadd.f32 1e-05, %v10825_v9  ;;  %v10810_v26 = vpop.xlane.xlu1 %10809 }
0x1c59   : > { %21083 = vrsqrt.f32 %v10836_v41  ;;  %v10828_v12 = vmul.f32 0.03125, %v10810_v26  ;;  %v10807_v51 = vpop.xlane.xlu0 %10806  ;;  %v16589_v41 = vld [vmem:[%s25903_s2 + $0x4] ss:$0 sm:$0xff] }
0x1c5a   : > { %21085 = vrsqrt.f32 %v10835_v21  ;;  %v10827_v15 = vmul.f32 0.03125, %v10807_v51  ;;  %v24551_v21 = vld [vmem:[%s25903_s2] ss:$0 sm:$0xff] }
0x1c5b   : > { %v10838_v25 = vadd.f32 1e-05, %v10828_v12 }
0x1c5c   : > { %v10837_v44 = vadd.f32 1e-05, %v10827_v15  ;;  %v10816_v20 = vpop.xlane.xlu1 %10815 }
0x1c5d   : > { %21087 = vrsqrt.f32 %v10838_v25  ;;  %v10830_v43 = vmul.f32 0.03125, %v10816_v20  ;;  %v10813_v56 = vpop.xlane.xlu0 %10812 }
0x1c5e   : > { %21089 = vrsqrt.f32 %v10837_v44  ;;  %v10829_v0 = vmul.f32 0.03125, %v10813_v56 }
0x1c5f   : > { %v21080_v17 = vpop.eup %21079  ;;  %v10840_v37 = vadd.f32 1e-05, %v10830_v43 }
0x1c60   : > { %v21082_v52 = vpop.eup %21081  ;;  %v10854_v6 = vmul.f32 %v21080_v17, %v24382_v31  ;;  %v10839_v46 = vadd.f32 1e-05, %v10829_v0  ;;  %v10822_v60 = vpop.xlane.xlu1 %10821 }
0x1c61   : > { %v10853_v18 = vmul.f32 %v21082_v52, %v24384_v30  ;;  %21091 = vrsqrt.f32 %v10840_v37  ;;  %v10832_v34 = vmul.f32 0.03125, %v10822_v60  ;;  %v10819_v57 = vpop.xlane.xlu0 %10818 }
0x1c62   : > { %v10870_v40 = vmul.f32 %v24444_v63, %v10854_v6  ;;  %21093 = vrsqrt.f32 %v10839_v46  ;;  %v10831_v59 = vmul.f32 0.03125, %v10819_v57 }
0x1c63   : > { %v21084_v33 = vpop.eup %21083  ;;  %v10869_v4 = vmul.f32 %v24444_v63, %v10853_v18  ;;  %v10842_v48 = vadd.f32 1e-05, %v10832_v34 }
0x1c64   : > { %v21086_v5 = vpop.eup %21085  ;;  %v10856_v42 = vmul.f32 %v21084_v33, %v24390_v45  ;;  %v10841_v31 = vadd.f32 1e-05, %v10831_v59  ;;  %v24455_v16 = vadd.f32 %v16576_v32, %v10870_v40 }
0x1c65   : > { %v24452_v58 = vadd.f32 %v16576_v32, %v10869_v4  ;;  %v10855_v30 = vmul.f32 %v21086_v5, %v24393_v28  ;;  %21095 = vrsqrt.f32 %v10842_v48 }
0x1c66   : > { %v10872_v24 = vmul.f32 %v24444_v63, %v10856_v42  ;;  %21097 = vrsqrt.f32 %v10841_v31 }
0x1c67   : > { %v21088_v47 = vpop.eup %21087  ;;  %v10871_v22 = vmul.f32 %v24444_v63, %v10855_v30  ;;  %19100 = vmatprep.mubr.msk.f32.mxu1 %vm1526_vm5, %v24452_v58  ;;  %19117 = vmatprep.mubr.msk.f32.mxu0 %vm1526_vm5, %v24452_v58 }
0x1c68   : > { %v21090_v45 = vpop.eup %21089  ;;  %v10858_v3 = vmul.f32 %v21088_v47, %v24400_v10  ;;  %19101 = vmatmul.mubr.msk.f32.vlgmr.msra.gmra.mrb[232].mxu1 %vm1526_vm5, %v24455_v16  ;;  %19118 = vmatmul.mubr.msk.f32.vlgmr.msra.gmra.mrb[112].mxu0 %vm1526_vm5, %v24455_v16  ;;  %v24473_v55 = vadd.f32 %v16576_v32, %v10872_v24 }
0x1c69   : > { %v24468_v28 = vadd.f32 %v16576_v32, %v10871_v22  ;;  %v10857_v39 = vmul.f32 %v21090_v45, %v24403_v23  ;;  %19133 = vmatpush3.xpose.msk.msra.mxu1 %vm1526_vm5, %v24439_v19 }
0x1c6a   : > { %v10874_v62 = vmul.f32 %v24444_v63, %v10858_v3 }
0x1c6b   : > { %v21092_v38 = vpop.eup %21091  ;;  %v10873_v10 = vmul.f32 %v24444_v63, %v10857_v39  ;;  %19103 = vmatprep.mubr.msk.f32.mxu1 %vm1526_vm5, %v24468_v28  ;;  %19120 = vmatprep.mubr.msk.f32.mxu0 %vm1526_vm5, %v24468_v28 }
0x1c6c   : > { %v21094_v29 = vpop.eup %21093  ;;  %v10860_v54 = vmul.f32 %v21092_v38, %v24410_v13  ;;  %19104 = vmatmul.mubr.msk.f32.gmra.mrb[234].mxu1 %vm1526_vm5, %v24473_v55  ;;  %19121 = vmatmul.mubr.msk.f32.gmra.mrb[114].mxu0 %vm1526_vm5, %v24473_v55  ;;  %v24489_v2 = vadd.f32 %v16576_v32, %v10874_v62  ;;  %v16601_v62 = vld [vmem:[%s25903_s2 + $0x8] ss:$0 sm:$0xff] }
0x1c6d   : > { %v24486_v23 = vadd.f32 %v16576_v32, %v10873_v10  ;;  %v10859_v19 = vmul.f32 %v21094_v29, %v24413_v36 }
0x1c6e   : > { %v10876_v1 = vmul.f32 %v24444_v63, %v10860_v54 }
0x1c6f   : > { %v21096_v49 = vpop.eup %21095  ;;  %v10875_v61 = vmul.f32 %v24444_v63, %v10859_v19  ;;  %19106 = vmatprep.mubr.msk.f32.mxu1 %vm1526_vm5, %v24486_v23  ;;  %19123 = vmatprep.mubr.msk.f32.mxu0 %vm1526_vm5, %v24486_v23 }
0x1c70   : > { %v21098_v13 = vpop.eup %21097  ;;  %v10862_v27 = vmul.f32 %v21096_v49, %v24420_v11  ;;  %19107 = vmatmul.mubr.msk.f32.gmra.mrb[236].mxu1 %vm1526_vm5, %v24489_v2  ;;  %19124 = vmatmul.mubr.msk.f32.gmra.mrb[116].mxu0 %vm1526_vm5, %v24489_v2  ;;  %v24505_v35 = vadd.f32 %v16576_v32, %v10876_v1 }
0x1c71   : > { %v24502_v36 = vadd.f32 %v16576_v32, %v10875_v61  ;;  %v10861_v50 = vmul.f32 %v21098_v13, %v24423_v7 }
0x1c72   : > { %v10878_v14 = vmul.f32 %v24444_v63, %v10862_v27 }
0x1c73   : > { %v10877_v9 = vmul.f32 %v24444_v63, %v10861_v50  ;;  %19109 = vmatprep.mubr.msk.f32.mxu1 %vm1526_vm5, %v24502_v36  ;;  %19126 = vmatprep.mubr.msk.f32.mxu0 %vm1526_vm5, %v24502_v36 }
0x1c74   : > { %19110 = vmatmul.mubr.msk.f32.gmra.mrb[238].mxu1 %vm1526_vm5, %v24505_v35  ;;  %19127 = vmatmul.mubr.msk.f32.gmra.mrb[118].mxu0 %vm1526_vm5, %v24505_v35  ;;  %v24519_v7 = vadd.f32 %v16576_v32, %v10878_v14 }
0x1c75   : > { %v24517_v11 = vadd.f32 %v16576_v32, %v10877_v9 }
0x1c77   : > { %19112 = vmatprep.mubr.msk.f32.mxu1 %vm1526_vm5, %v24517_v11  ;;  %19129 = vmatprep.mubr.msk.f32.mxu0 %vm1526_vm5, %v24517_v11 }
0x1c78   : > { %19113 = vmatmul.mubr.msk.f32.gmra.mrb[240].mxu1 %vm1526_vm5, %v24519_v7  ;;  %19130 = vmatmul.mubr.msk.f32.gmra.mrb[120].mxu0 %vm1526_vm5, %v24519_v7 }
0x1c79   : > { %19134 = vmatprep.mubr.msk.f32.mxu1 %vm1526_vm5, %v24452_v58 }
0x1c7c   : > { %19135 = vmatmul.mubr.msk.f32.vlgmr.msra.gmra.mrb[242].mxu1 %vm1526_vm5, %v24455_v16 }
0x1c7d   : > { %19137 = vmatprep.mubr.msk.f32.mxu1 %vm1526_vm5, %v24468_v28 }
0x1c80   : > { %19138 = vmatmul.mubr.msk.f32.gmra.mrb[244].mxu1 %vm1526_vm5, %v24473_v55 }
0x1c81   : > { %19140 = vmatprep.mubr.msk.f32.mxu1 %vm1526_vm5, %v24486_v23 }
0x1c84   : > { %19141 = vmatmul.mubr.msk.f32.gmra.mrb[246].mxu1 %vm1526_vm5, %v24489_v2 }
0x1c85   : > { %19143 = vmatprep.mubr.msk.f32.mxu1 %vm1526_vm5, %v24502_v36 }
0x1c88   : > { %19144 = vmatmul.mubr.msk.f32.gmra.mrb[248].mxu1 %vm1526_vm5, %v24505_v35 }
0x1c89   : > { %19146 = vmatprep.mubr.msk.f32.mxu1 %vm1526_vm5, %v24517_v11 }
0x1c8c   : > { %19147 = vmatmul.mubr.msk.f32.gmra.mrb[250].mxu1 %vm1526_vm5, %v24519_v7 }
0x1d3b   : > { %v24553_v26 = vpop.f32.mrb[232].mxu1  ;;  %v19119_v12 = vpop.f32.mrb[112].mxu0 }
0x1d3c   : > { %v11130_v51 = vadd.f32 %v19119_v12, %v16589_v41  ;;  %v11000_v15 = vpop.f32.mrb[233].mxu1  ;;  %v11124_v25 = vpop.f32.mrb[113].mxu0 }
0x1d3d   : > { %v11001_v44 = vadd.f32 %v24551_v21, %v11000_v15  ;;  %v11125_v20 = vadd.f32 %v16589_v41, %v11124_v25 }
0x1d3f   : > { %v11297_v43 = vmul.f32 0.35355338, %v11001_v44  ;;  %v20230_v56 = vpack.c.bf16 %v11130_v51, %v11125_v20  ;;  %v24556_v0 = vpop.f32.mrb[234].mxu1  ;;  %v19122_v17 = vpop.f32.mrb[114].mxu0 }
0x1d40   : > { %v11140_v63 = vadd.f32 %v19122_v17, %v16589_v41  ;;  %v24558_v37 = vpop.f32.mrb[235].mxu1  ;;  %v11134_v52 = vpop.f32.mrb[115].mxu0 }
0x1d41   : > { %v11135_v6 = vadd.f32 %v16589_v41, %v11134_v52  ;;  %20232 = vmatprep.subr.msk.bf16.mxu0 %vm23331_vm8, %v20230_v56  ;;  %19169 = vmatprep.mubr.msk.f32.mxu0 %vm6651_vm7, %v11297_v43  ;;  %v11862_v52 = vld [vmem:[%s25900_s18 + $0x28] sm:$0xff] }
0x1d42   : > { %20235 = vmatpush3.bf16.xpose.msk.msra.mxu0 %vm23331_vm8, %v20230_v56 }
0x1d43   : > { %v20236_v46 = vpack.c.bf16 %v11140_v63, %v11135_v6  ;;  %v24565_v60 = vpop.f32.mrb[236].mxu1  ;;  %v19125_v18 = vpop.f32.mrb[116].mxu0 }
0x1d44   : > { %v11150_v34 = vadd.f32 %v19125_v18, %v16589_v41  ;;  %v24567_v57 = vpop.f32.mrb[237].mxu1  ;;  %v11144_v32 = vpop.f32.mrb[117].mxu0 }
0x1d45   : > { %v11145_v40 = vadd.f32 %v16589_v41, %v11144_v32  ;;  %20238 = vmatprep.subr.msk.bf16.mxu0 %vm23331_vm8, %v20236_v46 }
0x1d47   : > { %v20242_v59 = vpack.c.bf16 %v11150_v34, %v11145_v40  ;;  %v24571_v33 = vpop.f32.mrb[238].mxu1  ;;  %v19128_v4 = vpop.f32.mrb[118].mxu0  ;;  %v11011_v34 = vadd.f32 %v24551_v21, %v24558_v37  ;;  %v11016_v40 = vadd.f32 %v24556_v0, %v24551_v21  ;;  %v11026_v37 = vadd.f32 %v24565_v60, %v24551_v21 }
0x1d48   : > { %v11160_v48 = vadd.f32 %v19128_v4, %v16589_v41  ;;  %v24573_v5 = vpop.f32.mrb[239].mxu1  ;;  %v11154_v42 = vpop.f32.mrb[119].mxu0  ;;  %v11021_v4 = vadd.f32 %v24551_v21, %v24567_v57  ;;  %v11036_v57 = vadd.f32 %v24571_v33, %v24551_v21 }
0x1d49   : > { %v11155_v31 = vadd.f32 %v16589_v41, %v11154_v42  ;;  %v11031_v42 = vadd.f32 %v24551_v21, %v24573_v5  ;;  %v11302_v0 = vmul.f32 0.35355338, %v11026_v37 }
0x1d4a   : > { %20241 = vmatpush3.bf16.xpose.msk.msra.mxu0 %vm23331_vm8, %v20236_v46  ;;  %v11006_v46 = vadd.f32 %v24553_v26, %v24551_v21  ;;  %v11300_v26 = vmul.f32 0.35355338, %v11016_v40  ;;  %v11304_v60 = vmul.f32 0.35355338, %v11036_v57 }
0x1d4b   : > { %v20248_v30 = vpack.c.bf16 %v11160_v48, %v11155_v31  ;;  %v24577_v24 = vpop.f32.mrb[240].mxu1  ;;  %v19131_v47 = vpop.f32.mrb[120].mxu0  ;;  %20244 = vmatprep.subr.msk.bf16.mxu0 %vm23331_vm8, %v20242_v59  ;;  %v11301_v48 = vmul.f32 0.35355338, %v11021_v4  ;;  %v11303_v31 = vmul.f32 0.35355338, %v11031_v42 }
0x1d4c   : > { %v11170_v22 = vadd.f32 %v19131_v47, %v16589_v41  ;;  %v24581_v45 = vpop.f32.mrb[241].mxu1  ;;  %v11164_v3 = vpop.f32.mrb[121].mxu0  ;;  %v11298_v32 = vmul.f32 0.35355338, %v11006_v46  ;;  %v11046_v5 = vadd.f32 %v24577_v24, %v24551_v21 }
0x1d4d   : > { %v11165_v39 = vadd.f32 %v16589_v41, %v11164_v3 }
0x1d4f   : > { %v20254_v38 = vpack.c.bf16 %v11170_v22, %v11165_v39  ;;  %v19136_v10 = vpop.f32.mrb[242].mxu1  ;;  %v11306_v22 = vmul.f32 0.35355338, %v11046_v5 }
0x1d50   : > { %v11254_v29 = vadd.f32 %v19136_v10, %v16601_v62  ;;  %v11248_v54 = vpop.f32.mrb[243].mxu1 }
0x1d51   : > { %v11249_v19 = vadd.f32 %v16601_v62, %v11248_v54 }
0x1d52   : > { %20247 = vmatpush3.bf16.xpose.msk.msra.mxu0 %vm23331_vm8, %v20242_v59  ;;  %v11299_v59 = vmul.f32 0.35355338, %v11011_v34 }
0x1d53   : > { %v20260_v1 = vpack.c.bf16 %v11254_v29, %v11249_v19  ;;  %v19139_v49 = vpop.f32.mrb[244].mxu1  ;;  %20250 = vmatprep.subr.msk.bf16.mxu0 %vm23331_vm8, %v20248_v30 }
0x1d54   : > { %v11264_v61 = vadd.f32 %v19139_v49, %v16601_v62  ;;  %v11258_v13 = vpop.f32.mrb[245].mxu1 }
0x1d55   : > { %v11259_v27 = vadd.f32 %v16601_v62, %v11258_v13  ;;  %20261 = vmatprep.subr.bf16.mxu1 %v20260_v1 }
0x1d56   : > { %20263 = vmatpush3.bf16.msra.mxu1 %v20260_v1 }
0x1d57   : > { %v20264_v50 = vpack.c.bf16 %v11264_v61, %v11259_v27  ;;  %v19142_v14 = vpop.f32.mrb[246].mxu1 }
0x1d58   : > { %v11274_v9 = vadd.f32 %v19142_v14, %v16601_v62  ;;  %v11268_v41 = vpop.f32.mrb[247].mxu1 }
0x1d59   : > { %v11269_v12 = vadd.f32 %v16601_v62, %v11268_v41  ;;  %20265 = vmatprep.subr.bf16.mxu1 %v20264_v50 }
0x1d5a   : > { %20253 = vmatpush3.bf16.xpose.msk.msra.mxu0 %vm23331_vm8, %v20248_v30  ;;  %20267 = vmatpush3.bf16.msra.mxu1 %v20264_v50  ;;  %v11041_v30 = vadd.f32 %v24551_v21, %v24581_v45 }
0x1d5b   : > { %v20268_v51 = vpack.c.bf16 %v11274_v9, %v11269_v12  ;;  %v19145_v15 = vpop.f32.mrb[248].mxu1  ;;  %20256 = vmatprep.subr.msk.bf16.mxu0 %vm23331_vm8, %v20254_v38 }
0x1d5c   : > { %v11284_v25 = vadd.f32 %v19145_v15, %v16601_v62  ;;  %v11278_v44 = vpop.f32.mrb[249].mxu1  ;;  %v11305_v47 = vmul.f32 0.35355338, %v11041_v30 }
0x1d5d   : > { %v11279_v20 = vadd.f32 %v16601_v62, %v11278_v44  ;;  %20269 = vmatprep.subr.bf16.mxu1 %v20268_v51 }
0x1d5e   : > { %20271 = vmatpush3.bf16.msra.mxu1 %v20268_v51 }
0x1d5f   : > { %v20272_v43 = vpack.c.bf16 %v11284_v25, %v11279_v20  ;;  %v19148_v56 = vpop.f32.mrb[250].mxu1 }
0x1d60   : > { %v11294_v17 = vadd.f32 %v19148_v56, %v16601_v62  ;;  %v11288_v63 = vpop.f32.mrb[251].mxu1  ;;  %v16655_v56 = vld [vmem:[%s25903_s2 + $0x5] ss:$0 sm:$0xff] }
0x1d61   : > { %v11289_v6 = vadd.f32 %v16601_v62, %v11288_v63  ;;  %20273 = vmatprep.subr.bf16.mxu1 %v20272_v43 }
0x1d62   : > { %20259 = vmatpush3.bf16.xpose.msk.msra.mxu0 %vm23331_vm8, %v20254_v38  ;;  %20275 = vmatpush3.bf16.msra.mxu1 %v20272_v43 }
0x1d63   : > { %v20276_v18 = vpack.c.bf16 %v11294_v17, %v11289_v6  ;;  %19236 = vmatprep.subr.msk.mxu0 %vm1526_vm5, %v11862_v52 }
0x1d65   : > { %20277 = vmatprep.subr.bf16.mxu1 %v20276_v18 }
0x1d66   : > { %20279 = vmatpush3.bf16.msra.mxu1 %v20276_v18 }
0x1d69   : > { %19170 = vmatmul.mubr.msk.f32.vlgmr.msra.gmra.mrb[122].mxu0 %vm6651_vm7, %v11298_v32 }
0x1d6a   : > { %19172 = vmatprep.mubr.msk.f32.mxu0 %vm6651_vm7, %v11299_v59  ;;  %19237 = vmatpush3.xpose.msk.msra.mxu0 %vm1526_vm5, %v11862_v52 }
0x1d6d   : > { %19173 = vmatmul.mubr.msk.f32.gmra.mrb[124].mxu0 %vm6651_vm7, %v11300_v26 }
0x1d6e   : > { %19175 = vmatprep.mubr.msk.f32.mxu0 %vm6651_vm7, %v11301_v48 }
0x1d71   : > { %19176 = vmatmul.mubr.msk.f32.gmra.mrb[126].mxu0 %vm6651_vm7, %v11302_v0 }
0x1d72   : > { %19178 = vmatprep.mubr.msk.f32.mxu0 %vm6651_vm7, %v11303_v31 }
0x1d75   : > { %19179 = vmatmul.mubr.msk.f32.gmra.mrb[128].mxu0 %vm6651_vm7, %v11304_v60 }
0x1d76   : > { %19181 = vmatprep.mubr.msk.f32.mxu0 %vm6651_vm7, %v11305_v47 }
0x1d79   : > { %19182 = vmatmul.mubr.msk.f32.gmra.mrb[130].mxu0 %vm6651_vm7, %v11306_v22 }
0x1d7a   : > { %19238 = vmatprep.mubr.msk.f32.mxu0 %vm1526_vm5, %v24452_v58 }
0x1d7d   : > { %19239 = vmatmul.mubr.msk.f32.vlgmr.msra.gmra.mrb[132].mxu0 %vm1526_vm5, %v24455_v16 }
0x1d7e   : > { %19241 = vmatprep.mubr.msk.f32.mxu0 %vm1526_vm5, %v24468_v28 }
0x1d81   : > { %19242 = vmatmul.mubr.msk.f32.gmra.mrb[134].mxu0 %vm1526_vm5, %v24473_v55 }
0x1d82   : > { %19244 = vmatprep.mubr.msk.f32.mxu0 %vm1526_vm5, %v24486_v23 }
0x1d85   : > { %19245 = vmatmul.mubr.msk.f32.gmra.mrb[136].mxu0 %vm1526_vm5, %v24489_v2 }
0x1d86   : > { %19247 = vmatprep.mubr.msk.f32.mxu0 %vm1526_vm5, %v24502_v36 }
0x1d89   : > { %19248 = vmatmul.mubr.msk.f32.gmra.mrb[138].mxu0 %vm1526_vm5, %v24505_v35 }
0x1d8a   : > { %19250 = vmatprep.mubr.msk.f32.mxu0 %vm1526_vm5, %v24517_v11 }
0x1d8d   : > { %19251 = vmatmul.mubr.msk.f32.gmra.mrb[140].mxu0 %vm1526_vm5, %v24519_v7 }
0x1e3c   : > { %v19171_v21 = vpop.f32.mrb[122].mxu0 }
0x1e3d   : > { %v24645_v33 = vadd.f32 %v19171_v21, %v23463_v8  ;;  %v11433_v24 = vpop.f32.mrb[123].mxu0 }
0x1e3e   : > { %v24648_v45 = vadd.f32 %v11433_v24, %v23463_v8 }
0x1e3f   : > { %v11485_v3 = vsel %vm6827_vm10, %v24645_v33, -inf }
0x1e40   : > { %11486 = vmax.xlane.f32.xlu1 %v11485_v3  ;;  %v19174_v39 = vpop.f32.mrb[124].mxu0  ;;  %v11482_v62 = vsel %vm6827_vm10, %v24648_v45, -inf }
0x1e41   : > { %v24655_v38 = vadd.f32 %v19174_v39, %v23463_v8  ;;  %v11443_v10 = vpop.f32.mrb[125].mxu0  ;;  %11483 = vmax.xlane.f32.xlu0 %v11482_v62 }
0x1e42   : > { %v24658_v29 = vadd.f32 %v11443_v10, %v23463_v8 }
0x1e43   : > { %v11491_v54 = vsel %vm6827_vm10, %v24655_v38, -inf }
0x1e44   : > { %11492 = vmax.xlane.f32.xlu1 %v11491_v54  ;;  %v19177_v19 = vpop.f32.mrb[126].mxu0  ;;  %v11488_v1 = vsel %vm6827_vm10, %v24658_v29, -inf }
0x1e45   : > { %v24665_v49 = vadd.f32 %v19177_v19, %v23463_v8  ;;  %v11453_v61 = vpop.f32.mrb[127].mxu0  ;;  %11489 = vmax.xlane.f32.xlu0 %v11488_v1 }
0x1e46   : > { %v24668_v13 = vadd.f32 %v11453_v61, %v23463_v8 }
0x1e47   : > { %v11497_v27 = vsel %vm6827_vm10, %v24665_v49, -inf }
0x1e48   : > { %11498 = vmax.xlane.f32.xlu1 %v11497_v27  ;;  %v19180_v50 = vpop.f32.mrb[128].mxu0  ;;  %v11494_v14 = vsel %vm6827_vm10, %v24668_v13, -inf }
0x1e49   : > { %v24675_v9 = vadd.f32 %v19180_v50, %v23463_v8  ;;  %v11463_v41 = vpop.f32.mrb[129].mxu0  ;;  %11495 = vmax.xlane.f32.xlu0 %v11494_v14 }
0x1e4a   : > { %v24678_v12 = vadd.f32 %v11463_v41, %v23463_v8 }
0x1e4b   : > { %v11503_v51 = vsel %vm6827_vm10, %v24675_v9, -inf }
0x1e4c   : > { %11504 = vmax.xlane.f32.xlu1 %v11503_v51  ;;  %v19183_v15 = vpop.f32.mrb[130].mxu0  ;;  %v11500_v25 = vsel %vm6827_vm10, %v24678_v12, -inf }
0x1e4d   : > { %v24685_v44 = vadd.f32 %v19183_v15, %v23463_v8  ;;  %11501 = vmax.xlane.f32.xlu0 %v11500_v25  ;;  %v11473_v20 = vpop.f32.mrb[131].mxu0 }
0x1e4e   : > { %v24688_v43 = vadd.f32 %v11473_v20, %v23463_v8 }
0x1e4f   : > { %v11509_v17 = vsel %vm6827_vm10, %v24685_v44, -inf }
0x1e50   : > { %11510 = vmax.xlane.f32.xlu1 %v11509_v17  ;;  %v19240_v63 = vpop.f32.mrb[132].mxu0  ;;  %v11506_v52 = vsel %vm6827_vm10, %v24688_v43, -inf }
0x1e51   : > { %v11943_v6 = vadd.f32 %v19240_v63, %v16655_v56  ;;  %v11937_v46 = vpop.f32.mrb[133].mxu0  ;;  %11507 = vmax.xlane.f32.xlu0 %v11506_v52 }
0x1e52   : > { %v11938_v18 = vadd.f32 %v16655_v56, %v11937_v46 }
0x1e54   : > { %v20280_v34 = vpack.c.bf16 %v11943_v6, %v11938_v18  ;;  %v19243_v32 = vpop.f32.mrb[134].mxu0 }
0x1e55   : > { %v11953_v40 = vadd.f32 %v19243_v32, %v16655_v56  ;;  %v11947_v59 = vpop.f32.mrb[135].mxu0 }
0x1e56   : > { %v11948_v4 = vadd.f32 %v16655_v56, %v11947_v59  ;;  %20282 = vmatprep.subr.msk.bf16.mxu0 %vm23331_vm8, %v20280_v34 }
0x1e57   : > { %20285 = vmatpush3.bf16.xpose.msk.msra.mxu0 %vm23331_vm8, %v20280_v34 }
0x1e58   : > { %v20286_v26 = vpack.c.bf16 %v11953_v40, %v11948_v4  ;;  %v19246_v37 = vpop.f32.mrb[136].mxu0 }
0x1e59   : > { %v11963_v48 = vadd.f32 %v19246_v37, %v16655_v56  ;;  %v11957_v42 = vpop.f32.mrb[137].mxu0 }
0x1e5a   : > { %v11958_v0 = vadd.f32 %v16655_v56, %v11957_v42  ;;  %20288 = vmatprep.subr.msk.bf16.mxu0 %vm23331_vm8, %v20286_v26 }
0x1e5c   : > { %v20292_v57 = vpack.c.bf16 %v11963_v48, %v11958_v0  ;;  %v19249_v31 = vpop.f32.mrb[138].mxu0 }
0x1e5d   : > { %v11973_v30 = vadd.f32 %v19249_v31, %v16655_v56  ;;  %v11967_v60 = vpop.f32.mrb[139].mxu0 }
0x1e5e   : > { %v11968_v5 = vadd.f32 %v16655_v56, %v11967_v60 }
0x1e5f   : > { %20291 = vmatpush3.bf16.xpose.msk.msra.mxu0 %vm23331_vm8, %v20286_v26 }
0x1e60   : > { %v20298_v47 = vpack.c.bf16 %v11973_v30, %v11968_v5  ;;  %v19252_v22 = vpop.f32.mrb[140].mxu0  ;;  %20294 = vmatprep.subr.msk.bf16.mxu0 %vm23331_vm8, %v20292_v57 }
0x1e61   : > { %v11983_v21 = vadd.f32 %v19252_v22, %v16655_v56  ;;  %v11977_v24 = vpop.f32.mrb[141].mxu0 }
0x1e62   : > { %v11978_v3 = vadd.f32 %v16655_v56, %v11977_v24 }
0x1e64   : > { %v20304_v39 = vpack.c.bf16 %v11983_v21, %v11978_v3  ;;  %v11738_v3 = vld [vmem:[%s25900_s18 + $0x8] sm:$0xff] }
0x1e65   : > { %19219 = vmatprep.subr.msk.mxu1 %vm1526_vm5, %v11738_v3 }
0x1e67   : > { %20297 = vmatpush3.bf16.xpose.msk.msra.mxu0 %vm23331_vm8, %v20292_v57 }
0x1e68   : > { %20300 = vmatprep.subr.msk.bf16.mxu0 %vm23331_vm8, %v20298_v47 }
0x1e6f   : > { %20303 = vmatpush3.bf16.xpose.msk.msra.mxu0 %vm23331_vm8, %v20298_v47 }
0x1e70   : > { %20306 = vmatprep.subr.msk.bf16.mxu0 %vm23331_vm8, %v20304_v39 }
0x1e77   : > { %20309 = vmatpush3.bf16.xpose.msk.msra.mxu0 %vm23331_vm8, %v20304_v39 }
0x1ecd   : > { %v11487_v62 = vpop.xlane.xlu1 %11486 }
0x1ece   : > { %v11513_v10 = vsub.f32 %v24645_v33, %v11487_v62  ;;  %v11484_v54 = vpop.xlane.xlu0 %11483 }
0x1ecf   : > { %v11512_v19 = vsub.f32 %v24648_v45, %v11484_v54 }
0x1ed0   : > { %v11524_v1 = vmul.f32 1.442695, %v11513_v10 }
0x1ed1   : > { %v11522_v61 = vmul.f32 1.442695, %v11512_v19  ;;  %v11493_v27 = vpop.xlane.xlu1 %11492 }
0x1ed2   : > { %21099 = vpow2.f32 %v11524_v1  ;;  %v11515_v50 = vsub.f32 %v24655_v38, %v11493_v27  ;;  %v11490_v14 = vpop.xlane.xlu0 %11489 }
0x1ed3   : > { %21101 = vpow2.f32 %v11522_v61  ;;  %v11514_v41 = vsub.f32 %v24658_v29, %v11490_v14 }
0x1ed4   : > { %v11528_v51 = vmul.f32 1.442695, %v11515_v50 }
0x1ed5   : > { %v11526_v15 = vmul.f32 1.442695, %v11514_v41  ;;  %v11499_v25 = vpop.xlane.xlu1 %11498 }
0x1ed6   : > { %21103 = vpow2.f32 %v11528_v51  ;;  %v11517_v20 = vsub.f32 %v24665_v49, %v11499_v25  ;;  %v11496_v33 = vpop.xlane.xlu0 %11495  ;;  %v11986_v25 = vld [vmem:[%s25900_s18 + $0x48] sm:$0xff] }
0x1ed7   : > { %21105 = vpow2.f32 %v11526_v15  ;;  %v11516_v45 = vsub.f32 %v24668_v13, %v11496_v33 }
0x1ed8   : > { %v11532_v56 = vmul.f32 1.442695, %v11517_v20 }
0x1ed9   : > { %v11530_v17 = vmul.f32 1.442695, %v11516_v45  ;;  %v11505_v63 = vpop.xlane.xlu1 %11504 }
0x1eda   : > { %21107 = vpow2.f32 %v11532_v56  ;;  %v11519_v38 = vsub.f32 %v24675_v9, %v11505_v63  ;;  %v11502_v52 = vpop.xlane.xlu0 %11501 }
0x1edb   : > { %21109 = vpow2.f32 %v11530_v17  ;;  %v11518_v29 = vsub.f32 %v24678_v12, %v11502_v52 }
0x1edc   : > { %v21100_v6 = vpop.eup %21099  ;;  %v11536_v46 = vmul.f32 1.442695, %v11519_v38 }
0x1edd   : > { %v21102_v18 = vpop.eup %21101  ;;  %v11534_v34 = vmul.f32 1.442695, %v11518_v29  ;;  %v11511_v32 = vpop.xlane.xlu1 %11510  ;;  %v11545_v49 = vsel %vm6827_vm10, %v21100_v6, 0.0 }
0x1ede   : > { %21111 = vpow2.f32 %v11536_v46  ;;  %v11521_v13 = vsub.f32 %v24685_v44, %v11511_v32  ;;  %11546 = vadd.xlane.f32.xlu1 %v11545_v49  ;;  %v11508_v40 = vpop.xlane.xlu0 %11507  ;;  %v11542_v59 = vsel %vm6827_vm10, %v21102_v18, 0.0 }
0x1edf   : > { %21113 = vpow2.f32 %v11534_v34  ;;  %v11520_v9 = vsub.f32 %v24688_v43, %v11508_v40  ;;  %11543 = vadd.xlane.f32.xlu0 %v11542_v59  ;;  %v12841_v59 = vld [vmem:[%s25900_s18 + $0x10] sm:$0xff] }
0x1ee0   : > { %v21104_v4 = vpop.eup %21103  ;;  %v11540_v12 = vmul.f32 1.442695, %v11521_v13  ;;  %19374 = vmatprep.subr.msk.mxu0 %vm1526_vm5, %v12841_v59 }
0x1ee1   : > { %v21106_v26 = vpop.eup %21105  ;;  %v11538_v37 = vmul.f32 1.442695, %v11520_v9  ;;  %v11551_v48 = vsel %vm6827_vm10, %v21104_v4, 0.0 }
0x1ee2   : > { %21115 = vpow2.f32 %v11540_v12  ;;  %11552 = vadd.xlane.f32.xlu1 %v11551_v48  ;;  %v11548_v42 = vsel %vm6827_vm10, %v21106_v26, 0.0 }
0x1ee3   : > { %21117 = vpow2.f32 %v11538_v37  ;;  %11549 = vadd.xlane.f32.xlu0 %v11548_v42 }
0x1ee4   : > { %v21108_v44 = vpop.eup %21107 }
0x1ee5   : > { %v21110_v0 = vpop.eup %21109  ;;  %v11557_v57 = vsel %vm6827_vm10, %v21108_v44, 0.0 }
0x1ee6   : > { %11558 = vadd.xlane.f32.xlu1 %v11557_v57  ;;  %v11554_v43 = vsel %vm6827_vm10, %v21110_v0, 0.0 }
0x1ee7   : > { %11555 = vadd.xlane.f32.xlu0 %v11554_v43  ;;  %v16643_v43 = vld [vmem:[%s25903_s2 + $0x1] ss:$0 sm:$0xff] }
0x1ee8   : > { %v21112_v31 = vpop.eup %21111 }
0x1ee9   : > { %v21114_v30 = vpop.eup %21113  ;;  %v11563_v60 = vsel %vm6827_vm10, %v21112_v31, 0.0 }
0x1eea   : > { %11564 = vadd.xlane.f32.xlu1 %v11563_v60  ;;  %v11560_v5 = vsel %vm6827_vm10, %v21114_v30, 0.0 }
0x1eeb   : > { %11561 = vadd.xlane.f32.xlu0 %v11560_v5 }
0x1eec   : > { %v21116_v47 = vpop.eup %21115 }
0x1eed   : > { %v21118_v22 = vpop.eup %21117  ;;  %v11569_v21 = vsel %vm6827_vm10, %v21116_v47, 0.0 }
0x1eee   : > { %11570 = vadd.xlane.f32.xlu1 %v11569_v21  ;;  %v11566_v24 = vsel %vm6827_vm10, %v21118_v22, 0.0 }
0x1eef   : > { %11567 = vadd.xlane.f32.xlu0 %v11566_v24 }
0x1f6b   : > { %v11547_v39 = vpop.xlane.xlu1 %11546 }
0x1f6c   : > { %21119 = vrcp.f32 %v11547_v39  ;;  %v11544_v62 = vpop.xlane.xlu0 %11543 }
0x1f6d   : > { %21121 = vrcp.f32 %v11544_v62  ;;  %v12965_v62 = vld [vmem:[%s25900_s18 + $0x30] sm:$0xff] }
0x1f6f   : > { %v11553_v10 = vpop.xlane.xlu1 %11552 }
0x1f70   : > { %21123 = vrcp.f32 %v11553_v10  ;;  %v11550_v54 = vpop.xlane.xlu0 %11549 }
0x1f71   : > { %21125 = vrcp.f32 %v11550_v54 }
0x1f73   : > { %v11559_v19 = vpop.xlane.xlu1 %11558 }
0x1f74   : > { %21127 = vrcp.f32 %v11559_v19  ;;  %v11556_v1 = vpop.xlane.xlu0 %11555 }
0x1f75   : > { %21129 = vrcp.f32 %v11556_v1 }
0x1f76   : > { %v21120_v61 = vpop.eup %21119 }
0x1f77   : > { %v21122_v27 = vpop.eup %21121  ;;  %v11565_v50 = vpop.xlane.xlu1 %11564  ;;  %v11583_v51 = vmul.f32 %v21120_v61, %v21100_v6 }
0x1f78   : > { %21131 = vrcp.f32 %v11565_v50  ;;  %v11562_v14 = vpop.xlane.xlu0 %11561  ;;  %v11582_v41 = vmul.f32 %v21122_v27, %v21102_v18 }
0x1f79   : > { %21133 = vrcp.f32 %v11562_v14 }
0x1f7a   : > { %v21124_v15 = vpop.eup %21123  ;;  %19204 = vmatprep.mubr.msk.f32.mxu1 %vm6827_vm10, %v11582_v41 }
0x1f7b   : > { %v21126_v20 = vpop.eup %21125  ;;  %v11571_v33 = vpop.xlane.xlu1 %11570  ;;  %19205 = vmatmul.mubr.msk.f32.vlgmr.msra.gmra.mrb[252].mxu1 %vm6827_vm10, %v11583_v51  ;;  %v11585_v17 = vmul.f32 %v21124_v15, %v21104_v4 }
0x1f7c   : > { %21135 = vrcp.f32 %v11571_v33  ;;  %19220 = vmatpush3.xpose.msk.msra.mxu1 %vm1526_vm5, %v11738_v3  ;;  %v11568_v45 = vpop.xlane.xlu0 %11567  ;;  %v11584_v56 = vmul.f32 %v21126_v20, %v21106_v26 }
0x1f7d   : > { %21137 = vrcp.f32 %v11568_v45  ;;  %19253 = vmatprep.subr.msk.mxu1 %vm1526_vm5, %v11986_v25 }
0x1f7e   : > { %v21128_v63 = vpop.eup %21127  ;;  %19207 = vmatprep.mubr.msk.f32.mxu1 %vm6827_vm10, %v11584_v56 }
0x1f7f   : > { %v21130_v38 = vpop.eup %21129  ;;  %19208 = vmatmul.mubr.msk.f32.gmra.mrb[254].mxu1 %vm6827_vm10, %v11585_v17  ;;  %v11587_v29 = vmul.f32 %v21128_v63, %v21108_v44 }
0x1f80   : > { %v11586_v52 = vmul.f32 %v21130_v38, %v21110_v0  ;;  %v16667_v38 = vld [vmem:[%s25903_s2 + $0x9] ss:$0 sm:$0xff] }
0x1f82   : > { %v21132_v6 = vpop.eup %21131  ;;  %19210 = vmatprep.mubr.msk.f32.mxu1 %vm6827_vm10, %v11586_v52 }
0x1f83   : > { %v21134_v46 = vpop.eup %21133  ;;  %19211 = vmatmul.mubr.msk.f32.gmra.mrb[0].mxu1 %vm6827_vm10, %v11587_v29  ;;  %v11589_v34 = vmul.f32 %v21132_v6, %v21112_v31 }
0x1f84   : > { %v11588_v18 = vmul.f32 %v21134_v46, %v21114_v30 }
0x1f86   : > { %v21136_v32 = vpop.eup %21135  ;;  %19213 = vmatprep.mubr.msk.f32.mxu1 %vm6827_vm10, %v11588_v18 }
0x1f87   : > { %v21138_v49 = vpop.eup %21137  ;;  %19214 = vmatmul.mubr.msk.f32.gmra.mrb[2].mxu1 %vm6827_vm10, %v11589_v34  ;;  %v11591_v40 = vmul.f32 %v21136_v32, %v21116_v47 }
0x1f88   : > { %v11590_v13 = vmul.f32 %v21138_v49, %v21118_v22 }
0x1f8a   : > { %19216 = vmatprep.mubr.msk.f32.mxu1 %vm6827_vm10, %v11590_v13 }
0x1f8b   : > { %19217 = vmatmul.mubr.msk.f32.gmra.mrb[4].mxu1 %vm6827_vm10, %v11591_v40 }
0x1f8c   : > { %19221 = vmatprep.mubr.msk.f32.mxu1 %vm1526_vm5, %v24452_v58 }
0x1f8f   : > { %19222 = vmatmul.mubr.msk.f32.vlgmr.msra.gmra.mrb[6].mxu1 %vm1526_vm5, %v24455_v16 }
0x1f90   : > { %19224 = vmatprep.mubr.msk.f32.mxu1 %vm1526_vm5, %v24468_v28  ;;  %19254 = vmatpush3.xpose.msk.msra.mxu1 %vm1526_vm5, %v11986_v25 }
0x1f93   : > { %19225 = vmatmul.mubr.msk.f32.gmra.mrb[8].mxu1 %vm1526_vm5, %v24473_v55 }
0x1f94   : > { %19227 = vmatprep.mubr.msk.f32.mxu1 %vm1526_vm5, %v24486_v23 }
0x1f97   : > { %19228 = vmatmul.mubr.msk.f32.gmra.mrb[10].mxu1 %vm1526_vm5, %v24489_v2 }
0x1f98   : > { %19230 = vmatprep.mubr.msk.f32.mxu1 %vm1526_vm5, %v24502_v36 }
0x1f9b   : > { %19231 = vmatmul.mubr.msk.f32.gmra.mrb[12].mxu1 %vm1526_vm5, %v24505_v35 }
0x1f9c   : > { %19233 = vmatprep.mubr.msk.f32.mxu1 %vm1526_vm5, %v24517_v11 }
0x1f9f   : > { %19234 = vmatmul.mubr.msk.f32.gmra.mrb[14].mxu1 %vm1526_vm5, %v24519_v7 }
0x1fa0   : > { %19255 = vmatprep.mubr.msk.f32.mxu1 %vm1526_vm5, %v24452_v58 }
0x1fa3   : > { %19256 = vmatmul.mubr.msk.f32.vlgmr.msra.gmra.mrb[16].mxu1 %vm1526_vm5, %v24455_v16 }
0x1fa4   : > { %19258 = vmatprep.mubr.msk.f32.mxu1 %vm1526_vm5, %v24468_v28 }
0x1fa7   : > { %19259 = vmatmul.mubr.msk.f32.gmra.mrb[18].mxu1 %vm1526_vm5, %v24473_v55 }
0x1fa8   : > { %19261 = vmatprep.mubr.msk.f32.mxu1 %vm1526_vm5, %v24486_v23 }
0x1fab   : > { %19262 = vmatmul.mubr.msk.f32.gmra.mrb[20].mxu1 %vm1526_vm5, %v24489_v2 }
0x1fac   : > { %19264 = vmatprep.mubr.msk.f32.mxu1 %vm1526_vm5, %v24502_v36 }
0x1faf   : > { %19265 = vmatmul.mubr.msk.f32.gmra.mrb[22].mxu1 %vm1526_vm5, %v24505_v35 }
0x1fb0   : > { %19267 = vmatprep.mubr.msk.f32.mxu1 %vm1526_vm5, %v24517_v11 }
0x1fb3   : > { %19268 = vmatmul.mubr.msk.f32.gmra.mrb[24].mxu1 %vm1526_vm5, %v24519_v7 }
0x204e   : > { %v24793_v9 = vpop.f32.mrb[252].mxu1 }
0x204f   : > { %v24795_v4 = vpop.f32.mrb[253].mxu1 }
0x2052   : > { %v24797_v12 = vpop.f32.mrb[254].mxu1 }
0x2053   : > { %v24799_v26 = vpop.f32.mrb[255].mxu1 }
0x2056   : > { %v24801_v37 = vpop.f32.mrb[0].mxu1 }
0x2057   : > { %v24803_v48 = vpop.f32.mrb[1].mxu1 }
0x205a   : > { %v24805_v42 = vpop.f32.mrb[2].mxu1 }
0x205b   : > { %v24807_v44 = vpop.f32.mrb[3].mxu1 }
0x205e   : > { %v24809_v0 = vpop.f32.mrb[4].mxu1 }
0x205f   : > { %v24811_v57 = vpop.f32.mrb[5].mxu1 }
0x2062   : > { %v19223_v31 = vpop.f32.mrb[6].mxu1 }
0x2063   : > { %v11819_v30 = vadd.f32 %v19223_v31, %v16643_v43  ;;  %v11813_v60 = vpop.f32.mrb[7].mxu1 }
0x2064   : > { %v11814_v5 = vadd.f32 %v16643_v43, %v11813_v60 }
0x2065   : > { %v12111_v21 = vmul.f32 0.35355338, %v11819_v30 }
0x2066   : > { %v12110_v47 = vmul.f32 0.35355338, %v11814_v5  ;;  %v19226_v22 = vpop.f32.mrb[8].mxu1 }
0x2067   : > { %v11829_v24 = vadd.f32 %v19226_v22, %v16643_v43  ;;  %v11823_v3 = vpop.f32.mrb[9].mxu1 }
0x2068   : > { %v11824_v39 = vadd.f32 %v16643_v43, %v11823_v3  ;;  %19290 = vmatprep.mubr.msk.f32.mxu0 %vm6651_vm7, %v12110_v47 }
0x2069   : > { %19291 = vmatmul.mubr.msk.f32.vlgmr.msra.gmra.mrb[142].mxu0 %vm6651_vm7, %v12111_v21  ;;  %v12113_v19 = vmul.f32 0.35355338, %v11829_v24 }
0x206a   : > { %v12112_v10 = vmul.f32 0.35355338, %v11824_v39  ;;  %v19229_v54 = vpop.f32.mrb[10].mxu1  ;;  %19375 = vmatpush3.xpose.msk.msra.mxu0 %vm1526_vm5, %v12841_v59 }
0x206b   : > { %v11839_v1 = vadd.f32 %v19229_v54, %v16643_v43  ;;  %v11833_v61 = vpop.f32.mrb[11].mxu1  ;;  %19391 = vmatprep.subr.msk.mxu0 %vm1526_vm5, %v12965_v62 }
0x206c   : > { %v11834_v27 = vadd.f32 %v16643_v43, %v11833_v61  ;;  %19293 = vmatprep.mubr.msk.f32.mxu0 %vm6651_vm7, %v12112_v10 }
0x206d   : > { %19294 = vmatmul.mubr.msk.f32.gmra.mrb[144].mxu0 %vm6651_vm7, %v12113_v19  ;;  %v12115_v41 = vmul.f32 0.35355338, %v11839_v1 }
0x206e   : > { %v12114_v50 = vmul.f32 0.35355338, %v11834_v27  ;;  %v19232_v14 = vpop.f32.mrb[12].mxu1 }
0x206f   : > { %v11849_v51 = vadd.f32 %v19232_v14, %v16643_v43  ;;  %v11843_v15 = vpop.f32.mrb[13].mxu1 }
0x2070   : > { %v11844_v25 = vadd.f32 %v16643_v43, %v11843_v15  ;;  %19296 = vmatprep.mubr.msk.f32.mxu0 %vm6651_vm7, %v12114_v50 }
0x2071   : > { %19297 = vmatmul.mubr.msk.f32.gmra.mrb[146].mxu0 %vm6651_vm7, %v12115_v41  ;;  %v12117_v45 = vmul.f32 0.35355338, %v11849_v51 }
0x2072   : > { %v12116_v20 = vmul.f32 0.35355338, %v11844_v25  ;;  %v19235_v33 = vpop.f32.mrb[14].mxu1 }
0x2073   : > { %v11859_v56 = vadd.f32 %v19235_v33, %v16643_v43  ;;  %v11853_v17 = vpop.f32.mrb[15].mxu1 }
0x2074   : > { %v11854_v63 = vadd.f32 %v16643_v43, %v11853_v17  ;;  %19299 = vmatprep.mubr.msk.f32.mxu0 %vm6651_vm7, %v12116_v20 }
0x2075   : > { %19300 = vmatmul.mubr.msk.f32.gmra.mrb[148].mxu0 %vm6651_vm7, %v12117_v45  ;;  %v12119_v6 = vmul.f32 0.35355338, %v11859_v56 }
0x2076   : > { %v12118_v52 = vmul.f32 0.35355338, %v11854_v63  ;;  %v19257_v29 = vpop.f32.mrb[16].mxu1 }
0x2077   : > { %v12067_v46 = vadd.f32 %v19257_v29, %v16667_v38  ;;  %v12061_v18 = vpop.f32.mrb[17].mxu1 }
0x2078   : > { %v12062_v34 = vadd.f32 %v16667_v38, %v12061_v18  ;;  %19302 = vmatprep.mubr.msk.f32.mxu0 %vm6651_vm7, %v12118_v52 }
0x2079   : > { %19303 = vmatmul.mubr.msk.f32.gmra.mrb[150].mxu0 %vm6651_vm7, %v12119_v6 }
0x207a   : > { %v20310_v32 = vpack.c.bf16 %v12067_v46, %v12062_v34  ;;  %v19260_v49 = vpop.f32.mrb[18].mxu1  ;;  %19376 = vmatprep.mubr.msk.f32.mxu0 %vm1526_vm5, %v24452_v58 }
0x207b   : > { %v12077_v13 = vadd.f32 %v19260_v49, %v16667_v38  ;;  %v12071_v40 = vpop.f32.mrb[19].mxu1 }
0x207c   : > { %v12072_v59 = vadd.f32 %v16667_v38, %v12071_v40  ;;  %20311 = vmatprep.subr.bf16.mxu1 %v20310_v32 }
0x207d   : > { %20313 = vmatpush3.bf16.msra.mxu1 %v20310_v32  ;;  %19377 = vmatmul.mubr.msk.f32.vlgmr.msra.gmra.mrb[152].mxu0 %vm1526_vm5, %v24455_v16 }
0x207e   : > { %v20314_v43 = vpack.c.bf16 %v12077_v13, %v12072_v59  ;;  %v19263_v31 = vpop.f32.mrb[20].mxu1  ;;  %19379 = vmatprep.mubr.msk.f32.mxu0 %vm1526_vm5, %v24468_v28  ;;  %19392 = vmatpush3.xpose.msk.msra.mxu0 %vm1526_vm5, %v12965_v62 }
0x207f   : > { %v12087_v30 = vadd.f32 %v19263_v31, %v16667_v38  ;;  %v12081_v60 = vpop.f32.mrb[21].mxu1 }
0x2080   : > { %v12082_v5 = vadd.f32 %v16667_v38, %v12081_v60  ;;  %20315 = vmatprep.subr.bf16.mxu1 %v20314_v43  ;;  %v24918_v60 = vld [vmem:[%s25903_s2 + $0x2] ss:$0 sm:$0xff] }
0x2081   : > { %20317 = vmatpush3.bf16.msra.mxu1 %v20314_v43  ;;  %19380 = vmatmul.mubr.msk.f32.gmra.mrb[154].mxu0 %vm1526_vm5, %v24473_v55 }
0x2082   : > { %v20318_v47 = vpack.c.bf16 %v12087_v30, %v12082_v5  ;;  %v19266_v22 = vpop.f32.mrb[22].mxu1  ;;  %19382 = vmatprep.mubr.msk.f32.mxu0 %vm1526_vm5, %v24486_v23 }
0x2083   : > { %v12097_v21 = vadd.f32 %v19266_v22, %v16667_v38  ;;  %v12091_v24 = vpop.f32.mrb[23].mxu1 }
0x2084   : > { %v12092_v3 = vadd.f32 %v16667_v38, %v12091_v24  ;;  %20319 = vmatprep.subr.bf16.mxu1 %v20318_v47 }
0x2085   : > { %20321 = vmatpush3.bf16.msra.mxu1 %v20318_v47  ;;  %19383 = vmatmul.mubr.msk.f32.gmra.mrb[156].mxu0 %vm1526_vm5, %v24489_v2 }
0x2086   : > { %v20322_v39 = vpack.c.bf16 %v12097_v21, %v12092_v3  ;;  %v19269_v62 = vpop.f32.mrb[24].mxu1  ;;  %19385 = vmatprep.mubr.msk.f32.mxu0 %vm1526_vm5, %v24502_v36 }
0x2087   : > { %v12107_v10 = vadd.f32 %v19269_v62, %v16667_v38  ;;  %v12101_v54 = vpop.f32.mrb[25].mxu1 }
0x2088   : > { %v12102_v19 = vadd.f32 %v16667_v38, %v12101_v54  ;;  %20323 = vmatprep.subr.bf16.mxu1 %v20322_v39 }
0x2089   : > { %20325 = vmatpush3.bf16.msra.mxu1 %v20322_v39  ;;  %19386 = vmatmul.mubr.msk.f32.gmra.mrb[158].mxu0 %vm1526_vm5, %v24505_v35 }
0x208a   : > { %v20326_v1 = vpack.c.bf16 %v12107_v10, %v12102_v19  ;;  %19388 = vmatprep.mubr.msk.f32.mxu0 %vm1526_vm5, %v24517_v11 }
0x208c   : > { %20327 = vmatprep.subr.bf16.mxu1 %v20326_v1 }
0x208d   : > { %20329 = vmatpush3.bf16.msra.mxu1 %v20326_v1  ;;  %19389 = vmatmul.mubr.msk.f32.gmra.mrb[160].mxu0 %vm1526_vm5, %v24519_v7 }
0x208e   : > { %19393 = vmatprep.mubr.msk.f32.mxu0 %vm1526_vm5, %v24452_v58 }
0x2091   : > { %19394 = vmatmul.mubr.msk.f32.vlgmr.msra.gmra.mrb[162].mxu0 %vm1526_vm5, %v24455_v16 }
0x2092   : > { %19396 = vmatprep.mubr.msk.f32.mxu0 %vm1526_vm5, %v24468_v28 }
0x2095   : > { %19397 = vmatmul.mubr.msk.f32.gmra.mrb[164].mxu0 %vm1526_vm5, %v24473_v55 }
0x2096   : > { %19399 = vmatprep.mubr.msk.f32.mxu0 %vm1526_vm5, %v24486_v23 }
0x2099   : > { %19400 = vmatmul.mubr.msk.f32.gmra.mrb[166].mxu0 %vm1526_vm5, %v24489_v2 }
0x209a   : > { %19402 = vmatprep.mubr.msk.f32.mxu0 %vm1526_vm5, %v24502_v36 }
0x209d   : > { %19403 = vmatmul.mubr.msk.f32.gmra.mrb[168].mxu0 %vm1526_vm5, %v24505_v35 }
0x209e   : > { %19405 = vmatprep.mubr.msk.f32.mxu0 %vm1526_vm5, %v24517_v11 }
0x20a1   : > { %19406 = vmatmul.mubr.msk.f32.gmra.mrb[170].mxu0 %vm1526_vm5, %v24519_v7 }
0x213c   : > { %v19292_v61 = vpop.f32.mrb[142].mxu0 }
0x213d   : > { %v24870_v27 = vadd.f32 %v19292_v61, %v23463_v8  ;;  %v12246_v50 = vpop.f32.mrb[143].mxu0 }
0x213e   : > { %v24873_v14 = vadd.f32 %v12246_v50, %v23463_v8 }
0x213f   : > { %v12298_v41 = vsel %vm6827_vm10, %v24870_v27, -inf }
0x2140   : > { %12299 = vmax.xlane.f32.xlu1 %v12298_v41  ;;  %v19295_v51 = vpop.f32.mrb[144].mxu0  ;;  %v12295_v15 = vsel %vm6827_vm10, %v24873_v14, -inf }
0x2141   : > { %v24880_v25 = vadd.f32 %v19295_v51, %v23463_v8  ;;  %v12256_v20 = vpop.f32.mrb[145].mxu0  ;;  %12296 = vmax.xlane.f32.xlu0 %v12295_v15 }
0x2142   : > { %v24883_v33 = vadd.f32 %v12256_v20, %v23463_v8 }
0x2143   : > { %v12304_v45 = vsel %vm6827_vm10, %v24880_v25, -inf }
0x2144   : > { %12305 = vmax.xlane.f32.xlu1 %v12304_v45  ;;  %v19298_v56 = vpop.f32.mrb[146].mxu0  ;;  %v12301_v17 = vsel %vm6827_vm10, %v24883_v33, -inf }
0x2145   : > { %v24890_v63 = vadd.f32 %v19298_v56, %v23463_v8  ;;  %v12266_v38 = vpop.f32.mrb[147].mxu0  ;;  %12302 = vmax.xlane.f32.xlu0 %v12301_v17  ;;  %v16741_v17 = vld [vmem:[%s25903_s2 + $0x6] ss:$0 sm:$0xff] }
0x2146   : > { %v24893_v52 = vadd.f32 %v12266_v38, %v23463_v8 }
0x2147   : > { %v12310_v29 = vsel %vm6827_vm10, %v24890_v63, -inf }
0x2148   : > { %12311 = vmax.xlane.f32.xlu1 %v12310_v29  ;;  %v19301_v6 = vpop.f32.mrb[148].mxu0  ;;  %v12307_v46 = vsel %vm6827_vm10, %v24893_v52, -inf }
0x2149   : > { %v24900_v18 = vadd.f32 %v19301_v6, %v23463_v8  ;;  %v12276_v34 = vpop.f32.mrb[149].mxu0  ;;  %12308 = vmax.xlane.f32.xlu0 %v12307_v46 }
0x214a   : > { %v24903_v32 = vadd.f32 %v12276_v34, %v23463_v8 }
0x214b   : > { %v12316_v49 = vsel %vm6827_vm10, %v24900_v18, -inf }
0x214c   : > { %12317 = vmax.xlane.f32.xlu1 %v12316_v49  ;;  %v19304_v13 = vpop.f32.mrb[150].mxu0  ;;  %v12313_v40 = vsel %vm6827_vm10, %v24903_v32, -inf }
0x214d   : > { %v24910_v59 = vadd.f32 %v19304_v13, %v23463_v8  ;;  %v12286_v43 = vpop.f32.mrb[151].mxu0  ;;  %12314 = vmax.xlane.f32.xlu0 %v12313_v40 }
0x214e   : > { %v24913_v31 = vadd.f32 %v12286_v43, %v23463_v8 }
0x214f   : > { %v12322_v30 = vsel %vm6827_vm10, %v24910_v59, -inf }
0x2150   : > { %12323 = vmax.xlane.f32.xlu1 %v12322_v30  ;;  %v19378_v5 = vpop.f32.mrb[152].mxu0  ;;  %v12319_v47 = vsel %vm6827_vm10, %v24913_v31, -inf }
0x2151   : > { %v12916_v22 = vpop.f32.mrb[153].mxu0  ;;  %12320 = vmax.xlane.f32.xlu0 %v12319_v47 }
0x2152   : > { %v12917_v21 = vadd.f32 %v24918_v60, %v12916_v22 }
0x2154   : > { %v13213_v24 = vmul.f32 0.35355338, %v12917_v21  ;;  %v19381_v3 = vpop.f32.mrb[154].mxu0 }
0x2155   : > { %v12932_v39 = vadd.f32 %v19381_v3, %v24918_v60  ;;  %v12926_v62 = vpop.f32.mrb[155].mxu0 }
0x2156   : > { %19445 = vmatprep.mubr.msk.f32.mxu0 %vm6651_vm7, %v13213_v24 }
0x2158   : > { %v19384_v10 = vpop.f32.mrb[156].mxu0 }
0x2159   : > { %v12942_v54 = vadd.f32 %v19384_v10, %v24918_v60  ;;  %v12936_v19 = vpop.f32.mrb[157].mxu0 }
0x215a   : > { %v12937_v1 = vadd.f32 %v24918_v60, %v12936_v19 }
0x215c   : > { %v19387_v61 = vpop.f32.mrb[158].mxu0 }
0x215d   : > { %v12952_v50 = vadd.f32 %v19387_v61, %v24918_v60  ;;  %v12946_v41 = vpop.f32.mrb[159].mxu0 }
0x215e   : > { %v12947_v51 = vadd.f32 %v24918_v60, %v12946_v41 }
0x2160   : > { %v19390_v15 = vpop.f32.mrb[160].mxu0 }
0x2161   : > { %v12962_v20 = vadd.f32 %v19390_v15, %v24918_v60  ;;  %v12956_v45 = vpop.f32.mrb[161].mxu0 }
0x2162   : > { %v12957_v56 = vadd.f32 %v24918_v60, %v12956_v45 }
0x2164   : > { %v19395_v38 = vpop.f32.mrb[162].mxu0 }
0x2165   : > { %v13046_v29 = vadd.f32 %v19395_v38, %v16741_v17  ;;  %v13040_v6 = vpop.f32.mrb[163].mxu0 }
0x2166   : > { %v13041_v46 = vadd.f32 %v16741_v17, %v13040_v6 }
0x2168   : > { %v20330_v34 = vpack.c.bf16 %v13046_v29, %v13041_v46  ;;  %v19398_v49 = vpop.f32.mrb[164].mxu0 }
0x2169   : > { %v13056_v13 = vadd.f32 %v19398_v49, %v16741_v17  ;;  %v13050_v40 = vpop.f32.mrb[165].mxu0  ;;  %v12922_v49 = vadd.f32 %v19378_v5, %v24918_v60  ;;  %v13218_v5 = vmul.f32 0.35355338, %v12942_v54 }
0x216a   : > { %v13051_v43 = vadd.f32 %v16741_v17, %v13050_v40  ;;  %20332 = vmatprep.subr.msk.bf16.mxu0 %vm23331_vm8, %v20330_v34 }
0x216b   : > { %20335 = vmatpush3.bf16.xpose.msk.msra.mxu0 %vm23331_vm8, %v20330_v34  ;;  %v13809_v34 = vld [vmem:[%s25900_s18 + $0x18] sm:$0xff] }
0x216c   : > { %v20336_v30 = vpack.c.bf16 %v13056_v13, %v13051_v43  ;;  %v19401_v47 = vpop.f32.mrb[166].mxu0  ;;  %v13214_v13 = vmul.f32 0.35355338, %v12922_v49  ;;  %v14057_v43 = vld [vmem:[%s25900_s18 + $0x58] sm:$0xff] }
0x216d   : > { %v13066_v22 = vadd.f32 %v19401_v47, %v16741_v17  ;;  %v13060_v21 = vpop.f32.mrb[167].mxu0  ;;  %v13217_v47 = vmul.f32 0.35355338, %v12937_v1 }
0x216e   : > { %v13061_v24 = vadd.f32 %v16741_v17, %v13060_v21  ;;  %20338 = vmatprep.subr.msk.bf16.mxu0 %vm23331_vm8, %v20336_v30 }
0x2170   : > { %v20342_v3 = vpack.c.bf16 %v13066_v22, %v13061_v24  ;;  %v19404_v10 = vpop.f32.mrb[168].mxu0  ;;  %v13219_v22 = vmul.f32 0.35355338, %v12947_v51 }
0x2171   : > { %v13076_v19 = vadd.f32 %v19404_v10, %v16741_v17  ;;  %v13070_v61 = vpop.f32.mrb[169].mxu0 }
0x2172   : > { %v13071_v41 = vadd.f32 %v16741_v17, %v13070_v61 }
0x2173   : > { %20341 = vmatpush3.bf16.xpose.msk.msra.mxu0 %vm23331_vm8, %v20336_v30  ;;  %v13216_v30 = vmul.f32 0.35355338, %v12932_v39  ;;  %v13222_v39 = vmul.f32 0.35355338, %v12962_v20 }
0x2174   : > { %v20348_v15 = vpack.c.bf16 %v13076_v19, %v13071_v41  ;;  %v19407_v45 = vpop.f32.mrb[170].mxu0  ;;  %20344 = vmatprep.subr.msk.bf16.mxu0 %vm23331_vm8, %v20342_v3 }
0x2175   : > { %v13086_v38 = vadd.f32 %v19407_v45, %v16741_v17  ;;  %v13080_v29 = vpop.f32.mrb[171].mxu0 }
0x2176   : > { %v13081_v6 = vadd.f32 %v16741_v17, %v13080_v29  ;;  %v12927_v17 = vadd.f32 %v24918_v60, %v12926_v62  ;;  %v13220_v60 = vmul.f32 0.35355338, %v12952_v50  ;;  %v13221_v62 = vmul.f32 0.35355338, %v12957_v56 }
0x2178   : > { %v20354_v46 = vpack.c.bf16 %v13086_v38, %v13081_v6  ;;  %v13215_v40 = vmul.f32 0.35355338, %v12927_v17 }
0x217b   : > { %20347 = vmatpush3.bf16.xpose.msk.msra.mxu0 %vm23331_vm8, %v20342_v3 }
0x217c   : > { %20350 = vmatprep.subr.msk.bf16.mxu0 %vm23331_vm8, %v20348_v15 }
0x2183   : > { %20353 = vmatpush3.bf16.xpose.msk.msra.mxu0 %vm23331_vm8, %v20348_v15 }
0x2184   : > { %20356 = vmatprep.subr.msk.bf16.mxu0 %vm23331_vm8, %v20354_v46 }
0x218b   : > { %20359 = vmatpush3.bf16.xpose.msk.msra.mxu0 %vm23331_vm8, %v20354_v46 }
0x218c   : > { %19512 = vmatprep.subr.msk.mxu0 %vm1526_vm5, %v13809_v34 }
0x2192   : > { %19446 = vmatmul.mubr.msk.f32.vlgmr.msra.gmra.mrb[172].mxu0 %vm6651_vm7, %v13214_v13 }
0x2193   : > { %19448 = vmatprep.mubr.msk.f32.mxu0 %vm6651_vm7, %v13215_v40  ;;  %19513 = vmatpush3.xpose.msk.msra.mxu0 %vm1526_vm5, %v13809_v34 }
0x2194   : > { %19546 = vmatprep.subr.msk.mxu0 %vm1526_vm5, %v14057_v43 }
0x2196   : > { %19449 = vmatmul.mubr.msk.f32.gmra.mrb[174].mxu0 %vm6651_vm7, %v13216_v30 }
0x2197   : > { %19451 = vmatprep.mubr.msk.f32.mxu0 %vm6651_vm7, %v13217_v47 }
0x219a   : > { %19452 = vmatmul.mubr.msk.f32.gmra.mrb[176].mxu0 %vm6651_vm7, %v13218_v5 }
0x219b   : > { %19454 = vmatprep.mubr.msk.f32.mxu0 %vm6651_vm7, %v13219_v22 }
0x219e   : > { %19455 = vmatmul.mubr.msk.f32.gmra.mrb[178].mxu0 %vm6651_vm7, %v13220_v60 }
0x219f   : > { %19457 = vmatprep.mubr.msk.f32.mxu0 %vm6651_vm7, %v13221_v62 }
0x21a2   : > { %19458 = vmatmul.mubr.msk.f32.gmra.mrb[180].mxu0 %vm6651_vm7, %v13222_v39 }
0x21a3   : > { %19514 = vmatprep.mubr.msk.f32.mxu0 %vm1526_vm5, %v24452_v58 }
0x21a6   : > { %19515 = vmatmul.mubr.msk.f32.vlgmr.msra.gmra.mrb[182].mxu0 %vm1526_vm5, %v24455_v16 }
0x21a7   : > { %19517 = vmatprep.mubr.msk.f32.mxu0 %vm1526_vm5, %v24468_v28  ;;  %19547 = vmatpush3.xpose.msk.msra.mxu0 %vm1526_vm5, %v14057_v43 }
0x21aa   : > { %19518 = vmatmul.mubr.msk.f32.gmra.mrb[184].mxu0 %vm1526_vm5, %v24473_v55 }
0x21ab   : > { %19520 = vmatprep.mubr.msk.f32.mxu0 %vm1526_vm5, %v24486_v23 }
0x21ae   : > { %19521 = vmatmul.mubr.msk.f32.gmra.mrb[186].mxu0 %vm1526_vm5, %v24489_v2 }
0x21af   : > { %19523 = vmatprep.mubr.msk.f32.mxu0 %vm1526_vm5, %v24502_v36 }
0x21b2   : > { %19524 = vmatmul.mubr.msk.f32.gmra.mrb[188].mxu0 %vm1526_vm5, %v24505_v35 }
0x21b3   : > { %19526 = vmatprep.mubr.msk.f32.mxu0 %vm1526_vm5, %v24517_v11 }
0x21b6   : > { %19527 = vmatmul.mubr.msk.f32.gmra.mrb[190].mxu0 %vm1526_vm5, %v24519_v7 }
0x21b7   : > { %19548 = vmatprep.mubr.msk.f32.mxu0 %vm1526_vm5, %v24452_v58 }
0x21ba   : > { %19549 = vmatmul.mubr.msk.f32.vlgmr.msra.gmra.mrb[192].mxu0 %vm1526_vm5, %v24455_v16 }
0x21bb   : > { %19551 = vmatprep.mubr.msk.f32.mxu0 %vm1526_vm5, %v24468_v28 }
0x21be   : > { %19552 = vmatmul.mubr.msk.f32.gmra.mrb[194].mxu0 %vm1526_vm5, %v24473_v55 }
0x21bf   : > { %19554 = vmatprep.mubr.msk.f32.mxu0 %vm1526_vm5, %v24486_v23 }
0x21c2   : > { %19555 = vmatmul.mubr.msk.f32.gmra.mrb[196].mxu0 %vm1526_vm5, %v24489_v2 }
0x21c3   : > { %19557 = vmatprep.mubr.msk.f32.mxu0 %vm1526_vm5, %v24502_v36 }
0x21c6   : > { %19558 = vmatmul.mubr.msk.f32.gmra.mrb[198].mxu0 %vm1526_vm5, %v24505_v35 }
0x21c7   : > { %19560 = vmatprep.mubr.msk.f32.mxu0 %vm1526_vm5, %v24517_v11 }
0x21ca   : > { %19561 = vmatmul.mubr.msk.f32.gmra.mrb[200].mxu0 %vm1526_vm5, %v24519_v7 }
0x21cd   : > { %v12300_v54 = vpop.xlane.xlu1 %12299 }
0x21ce   : > { %v12326_v1 = vsub.f32 %v24870_v27, %v12300_v54  ;;  %v12297_v50 = vpop.xlane.xlu0 %12296 }
0x21cf   : > { %v12325_v51 = vsub.f32 %v24873_v14, %v12297_v50 }
0x21d0   : > { %v12337_v20 = vmul.f32 1.442695, %v12326_v1 }
0x21d1   : > { %v12335_v56 = vmul.f32 1.442695, %v12325_v51  ;;  %v12306_v21 = vpop.xlane.xlu1 %12305 }
0x21d2   : > { %21139 = vpow2.f32 %v12337_v20  ;;  %v12328_v24 = vsub.f32 %v24880_v25, %v12306_v21  ;;  %v12303_v3 = vpop.xlane.xlu0 %12302 }
0x21d3   : > { %21141 = vpow2.f32 %v12335_v56  ;;  %v12327_v10 = vsub.f32 %v24883_v33, %v12303_v3 }
0x21d4   : > { %v12341_v19 = vmul.f32 1.442695, %v12328_v24 }
0x21d5   : > { %v12339_v61 = vmul.f32 1.442695, %v12327_v10  ;;  %v12312_v41 = vpop.xlane.xlu1 %12311 }
0x21d6   : > { %21143 = vpow2.f32 %v12341_v19  ;;  %v12330_v15 = vsub.f32 %v24890_v63, %v12312_v41  ;;  %v12309_v27 = vpop.xlane.xlu0 %12308 }
0x21d7   : > { %21145 = vpow2.f32 %v12339_v61  ;;  %v12329_v14 = vsub.f32 %v24893_v52, %v12309_v27 }
0x21d8   : > { %v12345_v45 = vmul.f32 1.442695, %v12330_v15 }
0x21d9   : > { %v12343_v38 = vmul.f32 1.442695, %v12329_v14  ;;  %v12318_v29 = vpop.xlane.xlu1 %12317 }
0x21da   : > { %21147 = vpow2.f32 %v12345_v45  ;;  %v12332_v25 = vsub.f32 %v24900_v18, %v12318_v29  ;;  %v12315_v6 = vpop.xlane.xlu0 %12314 }
0x21db   : > { %21149 = vpow2.f32 %v12343_v38  ;;  %v12331_v33 = vsub.f32 %v24903_v32, %v12315_v6 }
0x21dc   : > { %v25017_v46 = vpop.eup %21139  ;;  %v12349_v34 = vmul.f32 1.442695, %v12332_v25 }
0x21dd   : > { %v25019_v49 = vpop.eup %21141  ;;  %v12347_v63 = vmul.f32 1.442695, %v12331_v33  ;;  %v12324_v17 = vpop.xlane.xlu1 %12323  ;;  %v12358_v52 = vsel %vm6827_vm10, %v25017_v46, 0.0 }
0x21de   : > { %21151 = vpow2.f32 %v12349_v34  ;;  %v12334_v13 = vsub.f32 %v24910_v59, %v12324_v17  ;;  %12359 = vadd.xlane.f32.xlu1 %v12358_v52  ;;  %v12321_v40 = vpop.xlane.xlu0 %12320  ;;  %v12355_v18 = vsel %vm6827_vm10, %v25019_v49, 0.0 }
0x21df   : > { %21153 = vpow2.f32 %v12347_v63  ;;  %v12333_v32 = vsub.f32 %v24913_v31, %v12321_v40  ;;  %12356 = vadd.xlane.f32.xlu0 %v12355_v18 }
0x21e0   : > { %v25027_v43 = vpop.eup %21143  ;;  %v12353_v30 = vmul.f32 1.442695, %v12334_v13 }
0x21e1   : > { %v25029_v47 = vpop.eup %21145  ;;  %v12351_v5 = vmul.f32 1.442695, %v12333_v32  ;;  %v12364_v22 = vsel %vm6827_vm10, %v25027_v43, 0.0 }
0x21e2   : > { %21155 = vpow2.f32 %v12353_v30  ;;  %12365 = vadd.xlane.f32.xlu1 %v12364_v22  ;;  %v12361_v59 = vsel %vm6827_vm10, %v25029_v47, 0.0 }
0x21e3   : > { %21157 = vpow2.f32 %v12351_v5  ;;  %12362 = vadd.xlane.f32.xlu0 %v12361_v59 }
0x21e4   : > { %v25035_v60 = vpop.eup %21147 }
0x21e5   : > { %v25037_v31 = vpop.eup %21149  ;;  %v12370_v62 = vsel %vm6827_vm10, %v25035_v60, 0.0 }
0x21e6   : > { %12371 = vadd.xlane.f32.xlu1 %v12370_v62  ;;  %v12367_v39 = vsel %vm6827_vm10, %v25037_v31, 0.0 }
0x21e7   : > { %12368 = vadd.xlane.f32.xlu0 %v12367_v39 }
0x21e8   : > { %v25043_v54 = vpop.eup %21151 }
0x21e9   : > { %v25045_v1 = vpop.eup %21153  ;;  %v12376_v50 = vsel %vm6827_vm10, %v25043_v54, 0.0 }
0x21ea   : > { %12377 = vadd.xlane.f32.xlu1 %v12376_v50  ;;  %v12373_v51 = vsel %vm6827_vm10, %v25045_v1, 0.0 }
0x21eb   : > { %12374 = vadd.xlane.f32.xlu0 %v12373_v51 }
0x21ec   : > { %v25051_v20 = vpop.eup %21155 }
0x21ed   : > { %v25053_v56 = vpop.eup %21157  ;;  %v12382_v21 = vsel %vm6827_vm10, %v25051_v20, 0.0 }
0x21ee   : > { %12383 = vadd.xlane.f32.xlu1 %v12382_v21  ;;  %v12379_v24 = vsel %vm6827_vm10, %v25053_v56, 0.0 }
0x21ef   : > { %12380 = vadd.xlane.f32.xlu0 %v12379_v24 }
0x2265   : > { %v19447_v3 = vpop.f32.mrb[172].mxu0 }
0x2266   : > { %v25060_v10 = vadd.f32 %v19447_v3, %v23463_v8  ;;  %v13349_v19 = vpop.f32.mrb[173].mxu0 }
0x2267   : > { %v25063_v61 = vadd.f32 %v13349_v19, %v23463_v8 }
0x2268   : > { %v13401_v41 = vsel %vm6827_vm10, %v25060_v10, -inf }
0x2269   : > { %13402 = vmax.xlane.f32.xlu1 %v13401_v41  ;;  %v19450_v15 = vpop.f32.mrb[174].mxu0  ;;  %v13398_v27 = vsel %vm6827_vm10, %v25063_v61, -inf }
0x226a   : > { %v25070_v14 = vadd.f32 %v19450_v15, %v23463_v8  ;;  %v13359_v45 = vpop.f32.mrb[175].mxu0  ;;  %13399 = vmax.xlane.f32.xlu0 %v13398_v27 }
0x226b   : > { %v25073_v38 = vadd.f32 %v13359_v45, %v23463_v8  ;;  %v12360_v29 = vpop.xlane.xlu1 %12359  ;;  %v25106_v45 = vld [vmem:[%s25903_s2 + $0x3] ss:$0 sm:$0xff] }
0x226c   : > { %21159 = vrcp.f32 %v12360_v29  ;;  %v12357_v25 = vpop.xlane.xlu0 %12356  ;;  %v13407_v6 = vsel %vm6827_vm10, %v25070_v14, -inf }
0x226d   : > { %21161 = vrcp.f32 %v12357_v25  ;;  %13408 = vmax.xlane.f32.xlu1 %v13407_v6  ;;  %v19453_v33 = vpop.f32.mrb[176].mxu0  ;;  %v13404_v34 = vsel %vm6827_vm10, %v25073_v38, -inf }
0x226e   : > { %v25080_v63 = vadd.f32 %v19453_v33, %v23463_v8  ;;  %v13369_v17 = vpop.f32.mrb[177].mxu0  ;;  %13405 = vmax.xlane.f32.xlu0 %v13404_v34 }
0x226f   : > { %v25083_v52 = vadd.f32 %v13369_v17, %v23463_v8  ;;  %v12366_v13 = vpop.xlane.xlu1 %12365 }
0x2270   : > { %21163 = vrcp.f32 %v12366_v13  ;;  %v12363_v40 = vpop.xlane.xlu0 %12362  ;;  %v13413_v18 = vsel %vm6827_vm10, %v25080_v63, -inf }
0x2271   : > { %21165 = vrcp.f32 %v12363_v40  ;;  %13414 = vmax.xlane.f32.xlu1 %v13413_v18  ;;  %v19456_v32 = vpop.f32.mrb[178].mxu0  ;;  %v13410_v30 = vsel %vm6827_vm10, %v25083_v52, -inf }
0x2272   : > { %v25090_v5 = vadd.f32 %v19456_v32, %v23463_v8  ;;  %v13379_v22 = vpop.f32.mrb[179].mxu0  ;;  %13411 = vmax.xlane.f32.xlu0 %v13410_v30 }
0x2273   : > { %v25093_v59 = vadd.f32 %v13379_v22, %v23463_v8  ;;  %v12372_v62 = vpop.xlane.xlu1 %12371 }
0x2274   : > { %21167 = vrcp.f32 %v12372_v62  ;;  %v12369_v39 = vpop.xlane.xlu0 %12368  ;;  %v13419_v50 = vsel %vm6827_vm10, %v25090_v5, -inf }
0x2275   : > { %21169 = vrcp.f32 %v12369_v39  ;;  %13420 = vmax.xlane.f32.xlu1 %v13419_v50  ;;  %v19459_v51 = vpop.f32.mrb[180].mxu0  ;;  %v13416_v21 = vsel %vm6827_vm10, %v25093_v59, -inf }
0x2276   : > { %v21160_v24 = vpop.eup %21159  ;;  %v25100_v3 = vadd.f32 %v19459_v51, %v23463_v8  ;;  %v13389_v19 = vpop.f32.mrb[181].mxu0  ;;  %13417 = vmax.xlane.f32.xlu0 %v13416_v21 }
0x2277   : > { %v21162_v41 = vpop.eup %21161  ;;  %v25103_v15 = vadd.f32 %v13389_v19, %v23463_v8  ;;  %v12378_v27 = vpop.xlane.xlu1 %12377  ;;  %v12396_v33 = vmul.f32 %v21160_v24, %v25017_v46 }
0x2278   : > { %21171 = vrcp.f32 %v12378_v27  ;;  %v12375_v29 = vpop.xlane.xlu0 %12374  ;;  %v13425_v25 = vsel %vm6827_vm10, %v25100_v3, -inf  ;;  %v12395_v6 = vmul.f32 %v21162_v41, %v25019_v49 }
0x2279   : > { %21173 = vrcp.f32 %v12375_v29  ;;  %13426 = vmax.xlane.f32.xlu1 %v13425_v25  ;;  %v19516_v34 = vpop.f32.mrb[182].mxu0  ;;  %v13422_v17 = vsel %vm6827_vm10, %v25103_v15, -inf }
0x227a   : > { %v21164_v13 = vpop.eup %21163  ;;  %v25115_v40 = vadd.f32 %v19516_v34, %v25106_v45  ;;  %v25117_v18 = vpop.f32.mrb[183].mxu0  ;;  %13423 = vmax.xlane.f32.xlu0 %v13422_v17  ;;  %19325 = vmatprep.mubr.msk.f32.mxu1 %vm6827_vm10, %v12395_v6 }
0x227b   : > { %v21166_v32 = vpop.eup %21165  ;;  %v12384_v30 = vpop.xlane.xlu1 %12383  ;;  %19326 = vmatmul.mubr.msk.f32.vlgmr.msra.gmra.mrb[26].mxu1 %vm6827_vm10, %v12396_v33  ;;  %v12398_v22 = vmul.f32 %v21164_v13, %v25027_v43 }
0x227c   : > { %21175 = vrcp.f32 %v12384_v30  ;;  %v12381_v46 = vpop.xlane.xlu0 %12380  ;;  %v12397_v49 = vmul.f32 %v21166_v32, %v25029_v47 }
0x227d   : > { %21177 = vrcp.f32 %v12381_v46  ;;  %v19519_v62 = vpop.f32.mrb[184].mxu0 }
0x227e   : > { %v21168_v39 = vpop.eup %21167  ;;  %v25124_v50 = vadd.f32 %v19519_v62, %v25106_v45  ;;  %19328 = vmatprep.mubr.msk.f32.mxu1 %vm6827_vm10, %v12397_v49  ;;  %v13894_v51 = vpop.f32.mrb[185].mxu0 }
0x227f   : > { %v21170_v21 = vpop.eup %21169  ;;  %v25128_v24 = vadd.f32 %v25106_v45, %v13894_v51  ;;  %19329 = vmatmul.mubr.msk.f32.gmra.mrb[28].mxu1 %vm6827_vm10, %v12398_v22  ;;  %v12400_v47 = vmul.f32 %v21168_v39, %v25035_v60  ;;  %v16829_v39 = vld [vmem:[%s25903_s2 + $0xb] ss:$0 sm:$0xff] }
0x2280   : > { %v12399_v19 = vmul.f32 %v21170_v21, %v25037_v31 }
0x2281   : > { %v19522_v43 = vpop.f32.mrb[186].mxu0 }
0x2282   : > { %v21172_v41 = vpop.eup %21171  ;;  %v25134_v27 = vadd.f32 %v19522_v43, %v25106_v45  ;;  %19331 = vmatprep.mubr.msk.f32.mxu1 %vm6827_vm10, %v12399_v19  ;;  %v13904_v29 = vpop.f32.mrb[187].mxu0 }
0x2283   : > { %v21174_v25 = vpop.eup %21173  ;;  %v25138_v6 = vadd.f32 %v25106_v45, %v13904_v29  ;;  %19332 = vmatmul.mubr.msk.f32.gmra.mrb[30].mxu1 %vm6827_vm10, %v12400_v47  ;;  %v12402_v31 = vmul.f32 %v21172_v41, %v25043_v54 }
0x2284   : > { %v12401_v33 = vmul.f32 %v21174_v25, %v25045_v1 }
0x2285   : > { %v19525_v34 = vpop.f32.mrb[188].mxu0 }
0x2286   : > { %v21176_v60 = vpop.eup %21175  ;;  %v25144_v17 = vadd.f32 %v19525_v34, %v25106_v45  ;;  %19334 = vmatprep.mubr.msk.f32.mxu1 %vm6827_vm10, %v12401_v33  ;;  %v13914_v13 = vpop.f32.mrb[189].mxu0 }
0x2287   : > { %v21178_v32 = vpop.eup %21177  ;;  %v25148_v30 = vadd.f32 %v25106_v45, %v13914_v13  ;;  %19335 = vmatmul.mubr.msk.f32.gmra.mrb[32].mxu1 %vm6827_vm10, %v12402_v31  ;;  %v12404_v1 = vmul.f32 %v21176_v60, %v25051_v20  ;;  %v12550_v13 = vld [vmem:[%s25904_s7 + $0x8] sm:$0xff] }
0x2288   : > { %v12403_v46 = vmul.f32 %v21178_v32, %v25053_v56  ;;  %19340 = vmatprep.subr.mxu1 %v12550_v13 }
0x2289   : > { %v19528_v54 = vpop.f32.mrb[190].mxu0  ;;  %19341 = vmatpush3.msra.mxu1 %v12550_v13  ;;  %v14187_v53 = vmul.f32 0.35355338, %v25148_v30 }
0x228a   : > { %v25154_v49 = vadd.f32 %v19528_v54, %v25106_v45  ;;  %19337 = vmatprep.mubr.msk.f32.mxu1 %vm6827_vm10, %v12403_v46  ;;  %v13924_v22 = vpop.f32.mrb[191].mxu0 }
0x228b   : > { %v25158_v62 = vadd.f32 %v25106_v45, %v13924_v22  ;;  %19338 = vmatmul.mubr.msk.f32.gmra.mrb[34].mxu1 %vm6827_vm10, %v12404_v1 }
0x228d   : > { %v19550_v51 = vpop.f32.mrb[192].mxu0 }
0x228e   : > { %v14138_v21 = vadd.f32 %v19550_v51, %v16829_v39  ;;  %v14132_v19 = vpop.f32.mrb[193].mxu0 }
0x228f   : > { %v14133_v56 = vadd.f32 %v16829_v39, %v14132_v19 }
0x2291   : > { %v20410_v47 = vpack.c.bf16 %v14138_v21, %v14133_v56  ;;  %v19553_v20 = vpop.f32.mrb[194].mxu0 }
0x2292   : > { %v14148_v43 = vadd.f32 %v19553_v20, %v16829_v39  ;;  %v14142_v41 = vpop.f32.mrb[195].mxu0 }
0x2293   : > { %v14143_v29 = vadd.f32 %v16829_v39, %v14142_v41  ;;  %20411 = vmatprep.subr.bf16.mxu0 %v20410_v47 }
0x2294   : > { %20413 = vmatpush3.bf16.msra.mxu0 %v20410_v47 }
0x2295   : > { %v20414_v25 = vpack.c.bf16 %v14148_v43, %v14143_v29  ;;  %v19556_v33 = vpop.f32.mrb[196].mxu0  ;;  %v25164_v43 = vld [vmem:[%s25904_s7] sm:$0xff] }
0x2296   : > { %v14158_v31 = vadd.f32 %v19556_v33, %v16829_v39  ;;  %v14152_v34 = vpop.f32.mrb[197].mxu0  ;;  %19357 = vmatprep.subr.mxu1 %v25164_v43 }
0x2297   : > { %v14153_v60 = vadd.f32 %v16829_v39, %v14152_v34  ;;  %20415 = vmatprep.subr.bf16.mxu0 %v20414_v25 }
0x2298   : > { %20417 = vmatpush3.bf16.msra.mxu0 %v20414_v25 }
0x2299   : > { %v20418_v32 = vpack.c.bf16 %v14158_v31, %v14153_v60  ;;  %v19559_v46 = vpop.f32.mrb[198].mxu0 }
0x229a   : > { %v14168_v1 = vadd.f32 %v19559_v46, %v16829_v39  ;;  %v14162_v54 = vpop.f32.mrb[199].mxu0 }
0x229b   : > { %v14163_v22 = vadd.f32 %v16829_v39, %v14162_v54  ;;  %20419 = vmatprep.subr.bf16.mxu0 %v20418_v32 }
0x229c   : > { %20421 = vmatpush3.bf16.msra.mxu0 %v20418_v32 }
0x229d   : > { %v20422_v51 = vpack.c.bf16 %v14168_v1, %v14163_v22  ;;  %v19562_v21 = vpop.f32.mrb[200].mxu0 }
0x229e   : > { %v14178_v19 = vadd.f32 %v19562_v21, %v16829_v39  ;;  %v14172_v56 = vpop.f32.mrb[201].mxu0 }
0x229f   : > { %v14173_v47 = vadd.f32 %v16829_v39, %v14172_v56  ;;  %20423 = vmatprep.subr.bf16.mxu0 %v20422_v51 }
0x22a0   : > { %20425 = vmatpush3.bf16.msra.mxu0 %v20422_v51 }
0x22a1   : > { %v20426_v20 = vpack.c.bf16 %v14178_v19, %v14173_v47 }
0x22a3   : > { %20427 = vmatprep.subr.bf16.mxu0 %v20426_v20 }
0x22a4   : > { %20429 = vmatpush3.bf16.msra.mxu0 %v20426_v20 }
0x22f6   : > { %v13403_v41 = vpop.xlane.xlu1 %13402 }
0x22f7   : > { %v13429_v29 = vsub.f32 %v25060_v10, %v13403_v41  ;;  %v13400_v25 = vpop.xlane.xlu0 %13399 }
0x22f8   : > { %v13428_v33 = vsub.f32 %v25063_v61, %v13400_v25 }
0x22f9   : > { %v13440_v31 = vmul.f32 1.442695, %v13429_v29 }
0x22fa   : > { %v13438_v34 = vmul.f32 1.442695, %v13428_v33  ;;  %v13409_v60 = vpop.xlane.xlu1 %13408 }
0x22fb   : > { %21179 = vpow2.f32 %v13440_v31  ;;  %v13431_v39 = vsub.f32 %v25070_v14, %v13409_v60  ;;  %v13406_v13 = vpop.xlane.xlu0 %13405 }
0x22fc   : > { %21181 = vpow2.f32 %v13438_v34  ;;  %v13430_v32 = vsub.f32 %v25073_v38, %v13406_v13 }
0x22fd   : > { %v13444_v46 = vmul.f32 1.442695, %v13431_v39 }
0x22fe   : > { %v13442_v1 = vmul.f32 1.442695, %v13430_v32  ;;  %v13415_v54 = vpop.xlane.xlu1 %13414 }
0x22ff   : > { %21183 = vpow2.f32 %v13444_v46  ;;  %v13433_v22 = vsub.f32 %v25080_v63, %v13415_v54  ;;  %v13412_v10 = vpop.xlane.xlu0 %13411 }
0x2300   : > { %21185 = vpow2.f32 %v13442_v1  ;;  %v13432_v61 = vsub.f32 %v25083_v52, %v13412_v10 }
0x2301   : > { %v13448_v51 = vmul.f32 1.442695, %v13433_v22 }
0x2302   : > { %v13446_v21 = vmul.f32 1.442695, %v13432_v61  ;;  %v13421_v19 = vpop.xlane.xlu1 %13420 }
0x2303   : > { %21187 = vpow2.f32 %v13448_v51  ;;  %v13435_v14 = vsub.f32 %v25090_v5, %v13421_v19  ;;  %v13418_v56 = vpop.xlane.xlu0 %13417 }
0x2304   : > { %21189 = vpow2.f32 %v13446_v21  ;;  %v13434_v38 = vsub.f32 %v25093_v59, %v13418_v56 }
0x2305   : > { %v25175_v47 = vpop.eup %21179  ;;  %v13452_v20 = vmul.f32 1.442695, %v13435_v14 }
0x2306   : > { %v25177_v41 = vpop.eup %21181  ;;  %v13450_v63 = vmul.f32 1.442695, %v13434_v38  ;;  %v13427_v29 = vpop.xlane.xlu1 %13426  ;;  %v13461_v52 = vsel %vm6827_vm10, %v25175_v47, 0.0 }
0x2307   : > { %21191 = vpow2.f32 %v13452_v20  ;;  %v13437_v25 = vsub.f32 %v25100_v3, %v13427_v29  ;;  %13462 = vadd.xlane.f32.xlu1 %v13461_v52  ;;  %v13424_v33 = vpop.xlane.xlu0 %13423  ;;  %v13458_v5 = vsel %vm6827_vm10, %v25177_v41, 0.0  ;;  %v13089_v20 = vld [vmem:[%s25900_s18 + $0x50] sm:$0xff] }
0x2308   : > { %21193 = vpow2.f32 %v13450_v63  ;;  %v13436_v59 = vsub.f32 %v25103_v15, %v13424_v33  ;;  %13459 = vadd.xlane.f32.xlu0 %v13458_v5 }
0x2309   : > { %v25185_v31 = vpop.eup %21183  ;;  %v13456_v34 = vmul.f32 1.442695, %v13437_v25 }
0x230a   : > { %v25187_v60 = vpop.eup %21185  ;;  %v13454_v39 = vmul.f32 1.442695, %v13436_v59  ;;  %v13467_v13 = vsel %vm6827_vm10, %v25185_v31, 0.0 }
0x230b   : > { %21195 = vpow2.f32 %v13456_v34  ;;  %13468 = vadd.xlane.f32.xlu1 %v13467_v13  ;;  %v13464_v3 = vsel %vm6827_vm10, %v25187_v60, 0.0 }
0x230c   : > { %21197 = vpow2.f32 %v13454_v39  ;;  %13465 = vadd.xlane.f32.xlu0 %v13464_v3 }
0x230d   : > { %v25193_v32 = vpop.eup %21187 }
0x230e   : > { %v25195_v15 = vpop.eup %21189  ;;  %v13473_v46 = vsel %vm6827_vm10, %v25193_v32, 0.0 }
0x230f   : > { %13474 = vadd.xlane.f32.xlu1 %v13473_v46  ;;  %v13470_v1 = vsel %vm6827_vm10, %v25195_v15, 0.0 }
0x2310   : > { %13471 = vadd.xlane.f32.xlu0 %v13470_v1 }
0x2311   : > { %v25201_v54 = vpop.eup %21191 }
0x2312   : > { %v25203_v22 = vpop.eup %21193  ;;  %v13479_v10 = vsel %vm6827_vm10, %v25201_v54, 0.0 }
0x2313   : > { %13480 = vadd.xlane.f32.xlu1 %v13479_v10  ;;  %v13476_v61 = vsel %vm6827_vm10, %v25203_v22, 0.0 }
0x2314   : > { %13477 = vadd.xlane.f32.xlu0 %v13476_v61 }
0x2315   : > { %v25209_v51 = vpop.eup %21195 }
0x2316   : > { %v25211_v21 = vpop.eup %21197  ;;  %v13485_v19 = vsel %vm6827_vm10, %v25209_v51, 0.0 }
0x2317   : > { %13486 = vadd.xlane.f32.xlu1 %v13485_v19  ;;  %v13482_v14 = vsel %vm6827_vm10, %v25211_v21, 0.0 }
0x2318   : > { %13483 = vadd.xlane.f32.xlu0 %v13482_v14 }
0x234e   : > { %v19327_v56 = vpop.f32.mrb[26].mxu1 }
0x234f   : > { %v12501_v38 = vpop.f32.mrb[27].mxu1 }
0x2350   : > { %19342 = vmatprep.mubr.msk.f32.mxu1 %vm6651_vm7, %v12501_v38 }
0x2351   : > { %19343 = vmatmul.mubr.msk.f32.vlgmr.msra.gmra.mrb[36].mxu1 %vm6651_vm7, %v19327_v56 }
0x2352   : > { %v19330_v63 = vpop.f32.mrb[28].mxu1  ;;  %19358 = vmatpush3.msra.mxu1 %v25164_v43 }
0x2353   : > { %v12511_v29 = vpop.f32.mrb[29].mxu1  ;;  %19408 = vmatprep.subr.msk.mxu1 %vm1526_vm5, %v13089_v20 }
0x2354   : > { %19345 = vmatprep.mubr.msk.f32.mxu1 %vm6651_vm7, %v12511_v29 }
0x2355   : > { %19346 = vmatmul.mubr.msk.f32.gmra.mrb[38].mxu1 %vm6651_vm7, %v19330_v63 }
0x2356   : > { %v19333_v52 = vpop.f32.mrb[30].mxu1 }
0x2357   : > { %v12521_v25 = vpop.f32.mrb[31].mxu1 }
0x2358   : > { %19348 = vmatprep.mubr.msk.f32.mxu1 %vm6651_vm7, %v12521_v25 }
0x2359   : > { %19349 = vmatmul.mubr.msk.f32.gmra.mrb[40].mxu1 %vm6651_vm7, %v19333_v52 }
0x235a   : > { %v19336_v33 = vpop.f32.mrb[32].mxu1 }
0x235b   : > { %v12531_v5 = vpop.f32.mrb[33].mxu1 }
0x235c   : > { %19351 = vmatprep.mubr.msk.f32.mxu1 %vm6651_vm7, %v12531_v5 }
0x235d   : > { %19352 = vmatmul.mubr.msk.f32.gmra.mrb[42].mxu1 %vm6651_vm7, %v19336_v33 }
0x235e   : > { %v19339_v43 = vpop.f32.mrb[34].mxu1 }
0x235f   : > { %v12541_v59 = vpop.f32.mrb[35].mxu1 }
0x2360   : > { %19354 = vmatprep.mubr.msk.f32.mxu1 %vm6651_vm7, %v12541_v59 }
0x2361   : > { %19355 = vmatmul.mubr.msk.f32.gmra.mrb[44].mxu1 %vm6651_vm7, %v19339_v43 }
0x2362   : > { %19359 = vmatprep.mubr.msk.f32.mxu1 %vm6651_vm7, %v24795_v4 }
0x2365   : > { %19360 = vmatmul.mubr.msk.f32.vlgmr.msra.gmra.mrb[36].mxu1 %vm6651_vm7, %v24793_v9 }
0x2366   : > { %19362 = vmatprep.mubr.msk.f32.mxu1 %vm6651_vm7, %v24799_v26  ;;  %19409 = vmatpush3.xpose.msk.msra.mxu1 %vm1526_vm5, %v13089_v20  ;;  %v16753_v26 = vld [vmem:[%s25903_s2 + $0xa] ss:$0 sm:$0xff] }
0x2369   : > { %19363 = vmatmul.mubr.msk.f32.gmra.mrb[38].mxu1 %vm6651_vm7, %v24797_v12 }
0x236a   : > { %19365 = vmatprep.mubr.msk.f32.mxu1 %vm6651_vm7, %v24803_v48 }
0x236d   : > { %19366 = vmatmul.mubr.msk.f32.gmra.mrb[40].mxu1 %vm6651_vm7, %v24801_v37 }
0x236e   : > { %19368 = vmatprep.mubr.msk.f32.mxu1 %vm6651_vm7, %v24807_v44 }
0x2371   : > { %19369 = vmatmul.mubr.msk.f32.gmra.mrb[42].mxu1 %vm6651_vm7, %v24805_v42 }
0x2372   : > { %19371 = vmatprep.mubr.msk.f32.mxu1 %vm6651_vm7, %v24811_v57 }
0x2375   : > { %19372 = vmatmul.mubr.msk.f32.gmra.mrb[44].mxu1 %vm6651_vm7, %v24809_v0 }
0x2376   : > { %19410 = vmatprep.mubr.msk.f32.mxu1 %vm1526_vm5, %v24452_v58 }
0x2379   : > { %19411 = vmatmul.mubr.msk.f32.vlgmr.msra.gmra.mrb[46].mxu1 %vm1526_vm5, %v24455_v16 }
0x237a   : > { %19413 = vmatprep.mubr.msk.f32.mxu1 %vm1526_vm5, %v24468_v28 }
0x237d   : > { %19414 = vmatmul.mubr.msk.f32.gmra.mrb[48].mxu1 %vm1526_vm5, %v24473_v55 }
0x237e   : > { %19416 = vmatprep.mubr.msk.f32.mxu1 %vm1526_vm5, %v24486_v23 }
0x2381   : > { %19417 = vmatmul.mubr.msk.f32.gmra.mrb[50].mxu1 %vm1526_vm5, %v24489_v2 }
0x2382   : > { %19419 = vmatprep.mubr.msk.f32.mxu1 %vm1526_vm5, %v24502_v36 }
0x2385   : > { %19420 = vmatmul.mubr.msk.f32.gmra.mrb[52].mxu1 %vm1526_vm5, %v24505_v35 }
0x2386   : > { %19422 = vmatprep.mubr.msk.f32.mxu1 %vm1526_vm5, %v24517_v11 }
0x2389   : > { %19423 = vmatmul.mubr.msk.f32.gmra.mrb[54].mxu1 %vm1526_vm5, %v24519_v7 }
0x2394   : > { %v13463_v37 = vpop.xlane.xlu1 %13462 }
0x2395   : > { %v13460_v9 = vpop.xlane.xlu0 %13459 }
0x2396   : > { %21199 = vrcp.f32 %v13460_v9 }
0x2397   : > { %21201 = vrcp.f32 %v13463_v37 }
0x2398   : > { %v13469_v46 = vpop.xlane.xlu1 %13468 }
0x2399   : > { %v13466_v57 = vpop.xlane.xlu0 %13465 }
0x239a   : > { %21203 = vrcp.f32 %v13466_v57 }
0x239b   : > { %21205 = vrcp.f32 %v13469_v46 }
0x239c   : > { %v13475_v38 = vpop.xlane.xlu1 %13474 }
0x23a0   : > { %v21200_v4 = vpop.eup %21199 }
0x23a1   : > { %v13498_v12 = vmul.f32 %v21200_v4, %v25177_v41  ;;  %v13472_v41 = vpop.xlane.xlu0 %13471  ;;  %v13481_v4 = vpop.xlane.xlu1 %13480 }
0x23a2   : > { %21207 = vrcp.f32 %v13472_v41 }
0x23a3   : > { %19480 = vmatprep.mubr.msk.f32.mxu1 %vm6827_vm10, %v13498_v12  ;;  %21209 = vrcp.f32 %v13475_v38 }
0x23a5   : > { %v13478_v33 = vpop.xlane.xlu0 %13477 }
0x23a6   : > { %21211 = vrcp.f32 %v13478_v33 }
0x23a7   : > { %21213 = vrcp.f32 %v13481_v4 }
0x244c   : > { %v19412_v48 = vpop.f32.mrb[46].mxu1 }
0x244d   : > { %v13170_v42 = vadd.f32 %v19412_v48, %v16753_v26  ;;  %v13164_v44 = vpop.f32.mrb[47].mxu1  ;;  %v21202_v48 = vpop.eup %21201 }
0x244e   : > { %v13165_v0 = vadd.f32 %v16753_v26, %v13164_v44  ;;  %v13653_v44 = vld [vmem:[%s25904_s7 + $0x10] sm:$0xff]  ;;  %v13499_v57 = vmul.f32 %v21202_v48, %v25175_v47 }
0x2450   : > { %v20360_v34 = vpack.c.bf16 %v13170_v42, %v13165_v0  ;;  %v19415_v39 = vpop.f32.mrb[48].mxu1  ;;  %v13484_v42 = vpop.xlane.xlu0 %13483 }
0x2451   : > { %v13180_v13 = vadd.f32 %v19415_v39, %v16753_v26  ;;  %v13174_v3 = vpop.f32.mrb[49].mxu1  ;;  %v21204_v0 = vpop.eup %21203  ;;  %21215 = vrcp.f32 %v13484_v42 }
0x2452   : > { %v13175_v1 = vadd.f32 %v16753_v26, %v13174_v3  ;;  %20361 = vmatprep.subr.bf16.mxu1 %v20360_v34  ;;  %v21206_v39 = vpop.eup %21205 }
0x2453   : > { %20363 = vmatpush3.bf16.msra.mxu1 %v20360_v34  ;;  %v13487_v34 = vpop.xlane.xlu1 %13486  ;;  %v13501_v3 = vmul.f32 %v21206_v39, %v25185_v31 }
0x2454   : > { %v20364_v10 = vpack.c.bf16 %v13180_v13, %v13175_v1  ;;  %v19418_v61 = vpop.f32.mrb[50].mxu1  ;;  %v21208_v13 = vpop.eup %21207  ;;  %21217 = vrcp.f32 %v13487_v34 }
0x2455   : > { %v13190_v19 = vadd.f32 %v19418_v61, %v16753_v26  ;;  %v13184_v14 = vpop.f32.mrb[51].mxu1  ;;  %v21210_v46 = vpop.eup %21209  ;;  %v13502_v1 = vmul.f32 %v21208_v13, %v25195_v15 }
0x2456   : > { %v13185_v56 = vadd.f32 %v16753_v26, %v13184_v14  ;;  %20365 = vmatprep.subr.bf16.mxu1 %v20364_v10  ;;  %v13503_v47 = vmul.f32 %v21210_v46, %v25193_v32  ;;  %v13933_v32 = vld [vmem:[%s25900_s18 + $0x38] sm:$0xff] }
0x2457   : > { %20367 = vmatpush3.bf16.msra.mxu1 %v20364_v10  ;;  %v21212_v10 = vpop.eup %21211 }
0x2458   : > { %v20368_v20 = vpack.c.bf16 %v13190_v19, %v13185_v56  ;;  %v19421_v63 = vpop.f32.mrb[52].mxu1  ;;  %v13504_v61 = vmul.f32 %v21212_v10, %v25203_v22 }
0x2459   : > { %v13200_v29 = vadd.f32 %v19421_v63, %v16753_v26  ;;  %v13194_v52 = vpop.f32.mrb[53].mxu1 }
0x245a   : > { %v13195_v25 = vadd.f32 %v16753_v26, %v13194_v52  ;;  %20369 = vmatprep.subr.bf16.mxu1 %v20368_v20 }
0x245b   : > { %20371 = vmatpush3.bf16.msra.mxu1 %v20368_v20 }
0x245c   : > { %v20372_v5 = vpack.c.bf16 %v13200_v29, %v13195_v25  ;;  %v19424_v43 = vpop.f32.mrb[54].mxu1  ;;  %v13885_v25 = vadd.f32 %v25106_v45, %v25117_v18 }
0x245d   : > { %v13210_v59 = vadd.f32 %v19424_v43, %v16753_v26  ;;  %v13204_v9 = vpop.f32.mrb[55].mxu1 }
0x245e   : > { %v13205_v12 = vadd.f32 %v16753_v26, %v13204_v9  ;;  %20373 = vmatprep.subr.bf16.mxu1 %v20372_v5  ;;  %v13500_v26 = vmul.f32 %v21204_v0, %v25187_v60  ;;  %v21214_v60 = vpop.eup %21213  ;;  %v14181_v33 = vmul.f32 0.35355338, %v13885_v25 }
0x245f   : > { %20375 = vmatpush3.bf16.msra.mxu1 %v20372_v5  ;;  %v21216_v41 = vpop.eup %21215  ;;  %v13505_v31 = vmul.f32 %v21214_v60, %v25201_v54  ;;  %v16817_v5 = vld [vmem:[%s25903_s2 + $0x7] ss:$0 sm:$0xff] }
0x2460   : > { %v20376_v37 = vpack.c.bf16 %v13210_v59, %v13205_v12  ;;  %v21218_v19 = vpop.eup %21217  ;;  %v13506_v15 = vmul.f32 %v21216_v41, %v25211_v21 }
0x2461   : > { %v13507_v14 = vmul.f32 %v21218_v19, %v25209_v51  ;;  %v14183_v19 = vmul.f32 0.35355338, %v25128_v24  ;;  %v14189_v24 = vmul.f32 0.35355338, %v25158_v62 }
0x2462   : > { %20377 = vmatprep.subr.bf16.mxu1 %v20376_v37 }
0x2463   : > { %20379 = vmatpush3.bf16.msra.mxu1 %v20376_v37 }
0x2464   : > { %19495 = vmatprep.subr.mxu1 %v13653_v44 }
0x2466   : > { %19481 = vmatmul.mubr.msk.f32.vlgmr.msra.gmra.mrb[56].mxu1 %vm6827_vm10, %v13499_v57 }
0x2467   : > { %19483 = vmatprep.mubr.msk.f32.mxu1 %vm6827_vm10, %v13500_v26  ;;  %19496 = vmatpush3.msra.mxu1 %v13653_v44 }
0x2468   : > { %19529 = vmatprep.subr.msk.mxu1 %vm1526_vm5, %v13933_v32 }
0x246a   : > { %19484 = vmatmul.mubr.msk.f32.gmra.mrb[58].mxu1 %vm6827_vm10, %v13501_v3 }
0x246b   : > { %19486 = vmatprep.mubr.msk.f32.mxu1 %vm6827_vm10, %v13502_v1 }
0x246e   : > { %19487 = vmatmul.mubr.msk.f32.gmra.mrb[60].mxu1 %vm6827_vm10, %v13503_v47 }
0x246f   : > { %19489 = vmatprep.mubr.msk.f32.mxu1 %vm6827_vm10, %v13504_v61 }
0x2472   : > { %19490 = vmatmul.mubr.msk.f32.gmra.mrb[62].mxu1 %vm6827_vm10, %v13505_v31  ;;  %v14182_v31 = vmul.f32 0.35355338, %v25115_v40  ;;  %v14188_v40 = vmul.f32 0.35355338, %v25144_v17 }
0x2473   : > { %19492 = vmatprep.mubr.msk.f32.mxu1 %vm6827_vm10, %v13506_v15  ;;  %v14184_v15 = vmul.f32 0.35355338, %v25124_v50  ;;  %v14190_v50 = vmul.f32 0.35355338, %v25154_v49 }
0x2476   : > { %19493 = vmatmul.mubr.msk.f32.gmra.mrb[64].mxu1 %vm6827_vm10, %v13507_v14  ;;  %v14185_v14 = vmul.f32 0.35355338, %v25138_v6 }
0x2539   : > { %v19482_v22 = vpop.f32.mrb[56].mxu1 }
0x253a   : > { %v13604_v56 = vpop.f32.mrb[57].mxu1 }
0x253b   : > { %19497 = vmatprep.mubr.msk.f32.mxu1 %vm6651_vm7, %v13604_v56 }
0x253c   : > { %19498 = vmatmul.mubr.msk.f32.vlgmr.msra.gmra.mrb[36].mxu1 %vm6651_vm7, %v19482_v22 }
0x253d   : > { %v19485_v54 = vpop.f32.mrb[58].mxu1  ;;  %19530 = vmatpush3.xpose.msk.msra.mxu1 %vm1526_vm5, %v13933_v32  ;;  %v14186_v32 = vmul.f32 0.35355338, %v25134_v27 }
0x253e   : > { %v13614_v21 = vpop.f32.mrb[59].mxu1 }
0x253f   : > { %19500 = vmatprep.mubr.msk.f32.mxu1 %vm6651_vm7, %v13614_v21 }
0x2540   : > { %19501 = vmatmul.mubr.msk.f32.gmra.mrb[38].mxu1 %vm6651_vm7, %v19485_v54 }
0x2541   : > { %v19488_v51 = vpop.f32.mrb[60].mxu1 }
0x2542   : > { %v13624_v38 = vpop.f32.mrb[61].mxu1 }
0x2543   : > { %19503 = vmatprep.mubr.msk.f32.mxu1 %vm6651_vm7, %v13624_v38 }
0x2544   : > { %19504 = vmatmul.mubr.msk.f32.gmra.mrb[40].mxu1 %vm6651_vm7, %v19488_v51 }
0x2545   : > { %v19491_v20 = vpop.f32.mrb[62].mxu1 }
0x2546   : > { %v13634_v63 = vpop.f32.mrb[63].mxu1 }
0x2547   : > { %19506 = vmatprep.mubr.msk.f32.mxu1 %vm6651_vm7, %v13634_v63 }
0x2548   : > { %19507 = vmatmul.mubr.msk.f32.gmra.mrb[42].mxu1 %vm6651_vm7, %v19491_v20 }
0x2549   : > { %v19494_v29 = vpop.f32.mrb[64].mxu1 }
0x254a   : > { %v13644_v52 = vpop.f32.mrb[65].mxu1 }
0x254b   : > { %19509 = vmatprep.mubr.msk.f32.mxu1 %vm6651_vm7, %v13644_v52 }
0x254c   : > { %19510 = vmatmul.mubr.msk.f32.gmra.mrb[44].mxu1 %vm6651_vm7, %v19494_v29 }
0x254d   : > { %19531 = vmatprep.mubr.msk.f32.mxu1 %vm1526_vm5, %v24452_v58 }
0x2550   : > { %19532 = vmatmul.mubr.msk.f32.vlgmr.msra.gmra.mrb[66].mxu1 %vm1526_vm5, %v24455_v16 }
0x2551   : > { %19534 = vmatprep.mubr.msk.f32.mxu1 %vm1526_vm5, %v24468_v28 }
0x2554   : > { %19535 = vmatmul.mubr.msk.f32.gmra.mrb[68].mxu1 %vm1526_vm5, %v24473_v55 }
0x2555   : > { %19537 = vmatprep.mubr.msk.f32.mxu1 %vm1526_vm5, %v24486_v23 }
0x2558   : > { %19538 = vmatmul.mubr.msk.f32.gmra.mrb[70].mxu1 %vm1526_vm5, %v24489_v2 }
0x2559   : > { %19540 = vmatprep.mubr.msk.f32.mxu1 %vm1526_vm5, %v24502_v36 }
0x255c   : > { %19541 = vmatmul.mubr.msk.f32.gmra.mrb[72].mxu1 %vm1526_vm5, %v24505_v35 }
0x255d   : > { %19543 = vmatprep.mubr.msk.f32.mxu1 %vm1526_vm5, %v24517_v11 }
0x2560   : > { %19544 = vmatmul.mubr.msk.f32.gmra.mrb[74].mxu1 %vm1526_vm5, %v24519_v7 }
0x2561   : > { %19583 = vmatprep.mubr.msk.f32.mxu1 %vm6651_vm7, %v14181_v33 }
0x2623   : > { %v19533_v43 = vpop.f32.mrb[66].mxu1 }
0x2624   : > { %v14014_v59 = vadd.f32 %v19533_v43, %v16817_v5  ;;  %v14008_v9 = vpop.f32.mrb[67].mxu1 }
0x2625   : > { %v14009_v4 = vadd.f32 %v16817_v5, %v14008_v9 }
0x2627   : > { %v20380_v12 = vpack.c.bf16 %v14014_v59, %v14009_v4  ;;  %v19536_v37 = vpop.f32.mrb[68].mxu1 }
0x2628   : > { %v14024_v45 = vadd.f32 %v19536_v37, %v16817_v5  ;;  %v14018_v18 = vpop.f32.mrb[69].mxu1 }
0x2629   : > { %v14019_v48 = vadd.f32 %v16817_v5, %v14018_v18  ;;  %20382 = vmatprep.subr.msk.bf16.mxu1 %vm23331_vm8, %v20380_v12 }
0x262a   : > { %20385 = vmatpush3.bf16.xpose.msk.msra.mxu1 %vm23331_vm8, %v20380_v12 }
0x262b   : > { %v20386_v42 = vpack.c.bf16 %v14024_v45, %v14019_v48  ;;  %v19539_v44 = vpop.f32.mrb[70].mxu1 }
0x262c   : > { %v14034_v0 = vadd.f32 %v19539_v44, %v16817_v5  ;;  %v14028_v57 = vpop.f32.mrb[71].mxu1 }
0x262d   : > { %v14029_v34 = vadd.f32 %v16817_v5, %v14028_v57  ;;  %20388 = vmatprep.subr.msk.bf16.mxu1 %vm23331_vm8, %v20386_v42 }
0x262f   : > { %v20392_v39 = vpack.c.bf16 %v14034_v0, %v14029_v34  ;;  %v19542_v26 = vpop.f32.mrb[72].mxu1 }
0x2630   : > { %v14044_v13 = vadd.f32 %v19542_v26, %v16817_v5  ;;  %v14038_v3 = vpop.f32.mrb[73].mxu1 }
0x2631   : > { %v14039_v46 = vadd.f32 %v16817_v5, %v14038_v3 }
0x2632   : > { %20391 = vmatpush3.bf16.xpose.msk.msra.mxu1 %vm23331_vm8, %v20386_v42 }
0x2633   : > { %v20398_v1 = vpack.c.bf16 %v14044_v13, %v14039_v46  ;;  %v19545_v10 = vpop.f32.mrb[74].mxu1  ;;  %20394 = vmatprep.subr.msk.bf16.mxu1 %vm23331_vm8, %v20392_v39 }
0x2634   : > { %v14054_v47 = vadd.f32 %v19545_v10, %v16817_v5  ;;  %v14048_v60 = vpop.f32.mrb[75].mxu1 }
0x2635   : > { %v14049_v61 = vadd.f32 %v16817_v5, %v14048_v60 }
0x2637   : > { %v20404_v41 = vpack.c.bf16 %v14054_v47, %v14049_v61 }
0x263a   : > { %20397 = vmatpush3.bf16.xpose.msk.msra.mxu1 %vm23331_vm8, %v20392_v39 }
0x263b   : > { %20400 = vmatprep.subr.msk.bf16.mxu1 %vm23331_vm8, %v20398_v1 }
0x2642   : > { %20403 = vmatpush3.bf16.xpose.msk.msra.mxu1 %vm23331_vm8, %v20398_v1 }
0x2643   : > { %20406 = vmatprep.subr.msk.bf16.mxu1 %vm23331_vm8, %v20404_v41 }
0x264a   : > { %20409 = vmatpush3.bf16.xpose.msk.msra.mxu1 %vm23331_vm8, %v20404_v41 }
0x2651   : > { %19584 = vmatmul.mubr.msk.f32.vlgmr.msra.gmra.mrb[76].mxu1 %vm6651_vm7, %v14182_v31 }
0x2652   : > { %19586 = vmatprep.mubr.msk.f32.mxu1 %vm6651_vm7, %v14183_v19 }
0x2655   : > { %19587 = vmatmul.mubr.msk.f32.gmra.mrb[78].mxu1 %vm6651_vm7, %v14184_v15 }
0x2656   : > { %19589 = vmatprep.mubr.msk.f32.mxu1 %vm6651_vm7, %v14185_v14 }
0x2659   : > { %19590 = vmatmul.mubr.msk.f32.gmra.mrb[80].mxu1 %vm6651_vm7, %v14186_v32 }
0x265a   : > { %19592 = vmatprep.mubr.msk.f32.mxu1 %vm6651_vm7, %v14187_v53 }
0x265d   : > { %19593 = vmatmul.mubr.msk.f32.gmra.mrb[82].mxu1 %vm6651_vm7, %v14188_v40 }
0x265e   : > { %19595 = vmatprep.mubr.msk.f32.mxu1 %vm6651_vm7, %v14189_v24 }
0x2661   : > { %19596 = vmatmul.mubr.msk.f32.gmra.mrb[84].mxu1 %vm6651_vm7, %v14190_v50 }
0x2724   : > { %v19585_v6 = vpop.f32.mrb[76].mxu1 }
0x2725   : > { %v14323_v27 = vadd.f32 %v19585_v6, %v23463_v8  ;;  %v14317_v30 = vpop.f32.mrb[77].mxu1 }
0x2726   : > { %v14318_v22 = vadd.f32 %v14317_v30, %v23463_v8 }
0x2727   : > { %v14369_v56 = vsel %vm6827_vm10, %v14323_v27, -inf }
0x2728   : > { %14370 = vmax.xlane.f32.xlu1 %v14369_v56  ;;  %v19588_v17 = vpop.f32.mrb[78].mxu1  ;;  %v14366_v62 = vsel %vm6827_vm10, %v14318_v22, -inf }
0x2729   : > { %v14333_v54 = vadd.f32 %v19588_v17, %v23463_v8  ;;  %v14327_v21 = vpop.f32.mrb[79].mxu1  ;;  %14367 = vmax.xlane.f32.xlu0 %v14366_v62 }
0x272a   : > { %v14328_v49 = vadd.f32 %v14327_v21, %v23463_v8 }
0x272b   : > { %v14375_v51 = vsel %vm6827_vm10, %v14333_v54, -inf }
0x272c   : > { %14376 = vmax.xlane.f32.xlu1 %v14375_v51  ;;  %v19591_v38 = vpop.f32.mrb[80].mxu1  ;;  %v14372_v20 = vsel %vm6827_vm10, %v14328_v49, -inf }
0x272d   : > { %v14343_v63 = vadd.f32 %v19591_v38, %v23463_v8  ;;  %v14337_v29 = vpop.f32.mrb[81].mxu1  ;;  %14373 = vmax.xlane.f32.xlu0 %v14372_v20 }
0x272e   : > { %v14338_v52 = vadd.f32 %v14337_v29, %v23463_v8 }
0x272f   : > { %v14381_v25 = vsel %vm6827_vm10, %v14343_v63, -inf }
0x2730   : > { %14382 = vmax.xlane.f32.xlu1 %v14381_v25  ;;  %v19594_v33 = vpop.f32.mrb[82].mxu1  ;;  %v14378_v5 = vsel %vm6827_vm10, %v14338_v52, -inf }
0x2731   : > { %v14353_v43 = vadd.f32 %v19594_v33, %v23463_v8  ;;  %v14347_v59 = vpop.f32.mrb[83].mxu1  ;;  %14379 = vmax.xlane.f32.xlu0 %v14378_v5 }
0x2732   : > { %v14348_v9 = vadd.f32 %v14347_v59, %v23463_v8 }
0x2733   : > { %v14387_v4 = vsel %vm6827_vm10, %v14353_v43, -inf }
0x2734   : > { %14388 = vmax.xlane.f32.xlu1 %v14387_v4  ;;  %v19597_v12 = vpop.f32.mrb[84].mxu1  ;;  %v14384_v37 = vsel %vm6827_vm10, %v14348_v9, -inf }
0x2735   : > { %v14363_v45 = vadd.f32 %v19597_v12, %v23463_v8  ;;  %v14357_v18 = vpop.f32.mrb[85].mxu1  ;;  %14385 = vmax.xlane.f32.xlu0 %v14384_v37 }
0x2736   : > { %v14358_v48 = vadd.f32 %v14357_v18, %v23463_v8  ;;  %v14621_v18 = vld [vmem:[%s25904_s7 + $0x18] sm:$0xff] }
0x2737   : > { %v14393_v42 = vsel %vm6827_vm10, %v14363_v45, -inf  ;;  %19633 = vmatprep.subr.mxu1 %v14621_v18 }
0x2738   : > { %14394 = vmax.xlane.f32.xlu1 %v14393_v42  ;;  %v14390_v44 = vsel %vm6827_vm10, %v14358_v48, -inf  ;;  %19634 = vmatpush3.msra.mxu1 %v14621_v18 }
0x2739   : > { %14391 = vmax.xlane.f32.xlu0 %v14390_v44 }
0x27b5   : > { %v14371_v0 = vpop.xlane.xlu1 %14370 }
0x27b6   : > { %v14397_v57 = vsub.f32 %v14323_v27, %v14371_v0  ;;  %v14368_v34 = vpop.xlane.xlu0 %14367 }
0x27b7   : > { %v14396_v39 = vsub.f32 %v14318_v22, %v14368_v34 }
0x27b8   : > { %v14408_v26 = vmul.f32 1.442695, %v14397_v57 }
0x27b9   : > { %v14406_v13 = vmul.f32 1.442695, %v14396_v39  ;;  %v14377_v3 = vpop.xlane.xlu1 %14376 }
0x27ba   : > { %21219 = vpow2.f32 %v14408_v26  ;;  %v14399_v46 = vsub.f32 %v14333_v54, %v14377_v3  ;;  %v14374_v1 = vpop.xlane.xlu0 %14373 }
0x27bb   : > { %21221 = vpow2.f32 %v14406_v13  ;;  %v14398_v10 = vsub.f32 %v14328_v49, %v14374_v1 }
0x27bc   : > { %v14412_v47 = vmul.f32 1.442695, %v14399_v46 }
0x27bd   : > { %v14410_v8 = vmul.f32 1.442695, %v14398_v10  ;;  %v14383_v60 = vpop.xlane.xlu1 %14382 }
0x27be   : > { %21223 = vpow2.f32 %v14412_v47  ;;  %v14401_v61 = vsub.f32 %v14343_v63, %v14383_v60  ;;  %v14380_v41 = vpop.xlane.xlu0 %14379 }
0x27bf   : > { %21225 = vpow2.f32 %v14410_v8  ;;  %v14400_v31 = vsub.f32 %v14338_v52, %v14380_v41 }
0x27c0   : > { %v14416_v19 = vmul.f32 1.442695, %v14401_v61 }
0x27c1   : > { %v14414_v15 = vmul.f32 1.442695, %v14400_v31  ;;  %v14389_v14 = vpop.xlane.xlu1 %14388 }
0x27c2   : > { %21227 = vpow2.f32 %v14416_v19  ;;  %v14403_v32 = vsub.f32 %v14353_v43, %v14389_v14  ;;  %v14386_v53 = vpop.xlane.xlu0 %14385 }
0x27c3   : > { %21229 = vpow2.f32 %v14414_v15  ;;  %v14402_v40 = vsub.f32 %v14348_v9, %v14386_v53 }
0x27c4   : > { %v25388_v24 = vpop.eup %21219  ;;  %v14420_v50 = vmul.f32 1.442695, %v14403_v32 }
0x27c5   : > { %v21222_v6 = vpop.eup %21221  ;;  %v14418_v27 = vmul.f32 1.442695, %v14402_v40  ;;  %v14395_v30 = vpop.xlane.xlu1 %14394  ;;  %v14429_v22 = vsel %vm6827_vm10, %v25388_v24, 0.0 }
0x27c6   : > { %21231 = vpow2.f32 %v14420_v50  ;;  %v14405_v56 = vsub.f32 %v14363_v45, %v14395_v30  ;;  %14430 = vadd.xlane.f32.xlu1 %v14429_v22  ;;  %v14392_v17 = vpop.xlane.xlu0 %14391  ;;  %v14426_v62 = vsel %vm6827_vm10, %v21222_v6, 0.0 }
0x27c7   : > { %21233 = vpow2.f32 %v14418_v27  ;;  %v14404_v54 = vsub.f32 %v14358_v48, %v14392_v17  ;;  %14427 = vadd.xlane.f32.xlu0 %v14426_v62 }
0x27c8   : > { %v21224_v21 = vpop.eup %21223  ;;  %v14424_v49 = vmul.f32 1.442695, %v14405_v56 }
0x27c9   : > { %v21226_v51 = vpop.eup %21225  ;;  %v14422_v38 = vmul.f32 1.442695, %v14404_v54  ;;  %v14435_v20 = vsel %vm6827_vm10, %v21224_v21, 0.0 }
0x27ca   : > { %21235 = vpow2.f32 %v14424_v49  ;;  %14436 = vadd.xlane.f32.xlu1 %v14435_v20  ;;  %v14432_v63 = vsel %vm6827_vm10, %v21226_v51, 0.0 }
0x27cb   : > { %21237 = vpow2.f32 %v14422_v38  ;;  %14433 = vadd.xlane.f32.xlu0 %v14432_v63  ;;  %v16881_v63 = vld [vmem:[%s25905_s11] ss:$0 sm:$0xff]  ;;  %s25909_s11 = sld [smem:[#allocation23_spill]] }
0x27cc   : > { %v21228_v29 = vpop.eup %21227 }
0x27cd   : > { %v21230_v52 = vpop.eup %21229  ;;  %v14441_v25 = vsel %vm6827_vm10, %v21228_v29, 0.0 }
0x27ce   : > { %14442 = vadd.xlane.f32.xlu1 %v14441_v25  ;;  %v14438_v33 = vsel %vm6827_vm10, %v21230_v52, 0.0 }
0x27cf   : > { %14439 = vadd.xlane.f32.xlu0 %v14438_v33 }
0x27d0   : > { %v21232_v5 = vpop.eup %21231 }
0x27d1   : > { %v21234_v43 = vpop.eup %21233  ;;  %v14447_v59 = vsel %vm6827_vm10, %v21232_v5, 0.0 }
0x27d2   : > { %14448 = vadd.xlane.f32.xlu1 %v14447_v59  ;;  %v14444_v9 = vsel %vm6827_vm10, %v21234_v43, 0.0 }
0x27d3   : > { %14445 = vadd.xlane.f32.xlu0 %v14444_v9 }
0x27d4   : > { %v21236_v4 = vpop.eup %21235 }
0x27d5   : > { %v21238_v12 = vpop.eup %21237  ;;  %v14453_v37 = vsel %vm6827_vm10, %v21236_v4, 0.0 }
0x27d6   : > { %14454 = vadd.xlane.f32.xlu1 %v14453_v37  ;;  %v14450_v45 = vsel %vm6827_vm10, %v21238_v12, 0.0 }
0x27d7   : > { %14451 = vadd.xlane.f32.xlu0 %v14450_v45 }
0x2853   : > { %v14431_v48 = vpop.xlane.xlu1 %14430 }
0x2854   : > { %21239 = vrcp.f32 %v14431_v48  ;;  %v14428_v42 = vpop.xlane.xlu0 %14427 }
0x2855   : > { %21241 = vrcp.f32 %v14428_v42 }
0x2857   : > { %v14437_v44 = vpop.xlane.xlu1 %14436 }
0x2858   : > { %21243 = vrcp.f32 %v14437_v44  ;;  %v14434_v0 = vpop.xlane.xlu0 %14433 }
0x2859   : > { %21245 = vrcp.f32 %v14434_v0 }
0x285b   : > { %v14443_v57 = vpop.xlane.xlu1 %14442 }
0x285c   : > { %21247 = vrcp.f32 %v14443_v57  ;;  %v14440_v34 = vpop.xlane.xlu0 %14439 }
0x285d   : > { %21249 = vrcp.f32 %v14440_v34 }
0x285e   : > { %v21240_v39 = vpop.eup %21239 }
0x285f   : > { %v21242_v26 = vpop.eup %21241  ;;  %v14449_v13 = vpop.xlane.xlu1 %14448  ;;  %v14467_v1 = vmul.f32 %v21240_v39, %v25388_v24 }
0x2860   : > { %21251 = vrcp.f32 %v14449_v13  ;;  %v14446_v3 = vpop.xlane.xlu0 %14445  ;;  %v14466_v46 = vmul.f32 %v21242_v26, %v21222_v6 }
0x2861   : > { %21253 = vrcp.f32 %v14446_v3 }
0x2862   : > { %v21244_v10 = vpop.eup %21243  ;;  %19618 = vmatprep.mubr.msk.f32.mxu0 %vm6827_vm10, %v14466_v46 }
0x2863   : > { %v21246_v47 = vpop.eup %21245  ;;  %v14455_v8 = vpop.xlane.xlu1 %14454  ;;  %19619 = vmatmul.mubr.msk.f32.vlgmr.msra.gmra.mrb[202].mxu0 %vm6827_vm10, %v14467_v1  ;;  %v14469_v41 = vmul.f32 %v21244_v10, %v21224_v21 }
0x2864   : > { %21255 = vrcp.f32 %v14455_v8  ;;  %v14452_v60 = vpop.xlane.xlu0 %14451  ;;  %v14468_v61 = vmul.f32 %v21246_v47, %v21226_v51 }
0x2865   : > { %21257 = vrcp.f32 %v14452_v60 }
0x2866   : > { %v21248_v31 = vpop.eup %21247  ;;  %19621 = vmatprep.mubr.msk.f32.mxu0 %vm6827_vm10, %v14468_v61 }
0x2867   : > { %v21250_v19 = vpop.eup %21249  ;;  %19622 = vmatmul.mubr.msk.f32.gmra.mrb[204].mxu0 %vm6827_vm10, %v14469_v41  ;;  %v14471_v14 = vmul.f32 %v21248_v31, %v21228_v29 }
0x2868   : > { %v14470_v15 = vmul.f32 %v21250_v19, %v21230_v52 }
0x286a   : > { %v21252_v32 = vpop.eup %21251  ;;  %19624 = vmatprep.mubr.msk.f32.mxu0 %vm6827_vm10, %v14470_v15 }
0x286b   : > { %v21254_v53 = vpop.eup %21253  ;;  %19625 = vmatmul.mubr.msk.f32.gmra.mrb[206].mxu0 %vm6827_vm10, %v14471_v14  ;;  %v14473_v24 = vmul.f32 %v21252_v32, %v21232_v5 }
0x286c   : > { %v14472_v40 = vmul.f32 %v21254_v53, %v21234_v43 }
0x286e   : > { %v21256_v50 = vpop.eup %21255  ;;  %19627 = vmatprep.mubr.msk.f32.mxu0 %vm6827_vm10, %v14472_v40 }
0x286f   : > { %v21258_v6 = vpop.eup %21257  ;;  %19628 = vmatmul.mubr.msk.f32.gmra.mrb[208].mxu0 %vm6827_vm10, %v14473_v24  ;;  %v14475_v30 = vmul.f32 %v21256_v50, %v21236_v4 }
0x2870   : > { %v14474_v27 = vmul.f32 %v21258_v6, %v21238_v12 }
0x2872   : > { %19630 = vmatprep.mubr.msk.f32.mxu0 %vm6827_vm10, %v14474_v27 }
0x2873   : > { %19631 = vmatmul.mubr.msk.f32.gmra.mrb[210].mxu0 %vm6827_vm10, %v14475_v30 }
0x2936   : > { %v19620_v22 = vpop.f32.mrb[202].mxu0 }
0x2937   : > { %v14572_v56 = vpop.f32.mrb[203].mxu0 }
0x2938   : > { %19635 = vmatprep.mubr.msk.f32.mxu1 %vm6651_vm7, %v14572_v56 }
0x2939   : > { %19636 = vmatmul.mubr.msk.f32.vlgmr.msra.gmra.mrb[36].mxu1 %vm6651_vm7, %v19620_v22 }
0x293a   : > { %v19623_v17 = vpop.f32.mrb[204].mxu0 }
0x293b   : > { %v14582_v62 = vpop.f32.mrb[205].mxu0 }
0x293c   : > { %19638 = vmatprep.mubr.msk.f32.mxu1 %vm6651_vm7, %v14582_v62 }
0x293d   : > { %19639 = vmatmul.mubr.msk.f32.gmra.mrb[38].mxu1 %vm6651_vm7, %v19623_v17 }
0x293e   : > { %v19626_v54 = vpop.f32.mrb[206].mxu0 }
0x293f   : > { %v14592_v21 = vpop.f32.mrb[207].mxu0 }
0x2940   : > { %19641 = vmatprep.mubr.msk.f32.mxu1 %vm6651_vm7, %v14592_v21 }
0x2941   : > { %19642 = vmatmul.mubr.msk.f32.gmra.mrb[40].mxu1 %vm6651_vm7, %v19626_v54 }
0x2942   : > { %v19629_v49 = vpop.f32.mrb[208].mxu0 }
0x2943   : > { %v14602_v51 = vpop.f32.mrb[209].mxu0 }
0x2944   : > { %19644 = vmatprep.mubr.msk.f32.mxu1 %vm6651_vm7, %v14602_v51 }
0x2945   : > { %19645 = vmatmul.mubr.msk.f32.gmra.mrb[42].mxu1 %vm6651_vm7, %v19629_v49 }
0x2946   : > { %v19632_v38 = vpop.f32.mrb[210].mxu0 }
0x2947   : > { %v14612_v20 = vpop.f32.mrb[211].mxu0 }
0x2948   : > { %19647 = vmatprep.mubr.msk.f32.mxu1 %vm6651_vm7, %v14612_v20 }
0x2949   : > { %19648 = vmatmul.mubr.msk.f32.gmra.mrb[44].mxu1 %vm6651_vm7, %v19632_v38 }
0x2a0c   : > { %v19637_v29 = vpop.f32.mrb[36].mxu1 }
0x2a0d   : > { %v14785_v52 = vadd.f32 %v19637_v29, %v16881_v63  ;;  %v14718_v25 = vpop.f32.mrb[37].mxu1 }
0x2a0e   : > { %v14784_v33 = vadd.f32 %v16881_v63, %v14718_v25 }
0x2a0f   : > { %v14795_v5 = vadd.f32 %v14785_v52, %v24455_v16 }
0x2a10   : > { %v14794_v43 = vadd.f32 %v14784_v33, %v24452_v58  ;;  %v19640_v59 = vpop.f32.mrb[38].mxu1 }
0x2a11   : > { %v14787_v9 = vadd.f32 %v19640_v59, %v16881_v63  ;;  %v14728_v4 = vpop.f32.mrb[39].mxu1  ;;  %v14809_v12 = vsel %vm1526_vm5, %v14795_v5, 0.0 }
0x2a12   : > { %v14786_v37 = vadd.f32 %v16881_v63, %v14728_v4  ;;  %14810 = vadd.xlane.f32.xlu1 %v14809_v12  ;;  %v14806_v45 = vsel %vm1526_vm5, %v14794_v43, 0.0 }
0x2a13   : > { %v14797_v18 = vadd.f32 %v14787_v9, %v24473_v55  ;;  %14807 = vadd.xlane.f32.xlu0 %v14806_v45 }
0x2a14   : > { %v14796_v48 = vadd.f32 %v14786_v37, %v24468_v28  ;;  %v19643_v42 = vpop.f32.mrb[40].mxu1 }
0x2a15   : > { %v14789_v44 = vadd.f32 %v19643_v42, %v16881_v63  ;;  %v14738_v0 = vpop.f32.mrb[41].mxu1  ;;  %v14815_v16 = vsel %vm1526_vm5, %v14797_v18, 0.0 }
0x2a16   : > { %v14788_v58 = vadd.f32 %v16881_v63, %v14738_v0  ;;  %14816 = vadd.xlane.f32.xlu1 %v14815_v16  ;;  %v14812_v57 = vsel %vm1526_vm5, %v14796_v48, 0.0 }
0x2a17   : > { %v14799_v34 = vadd.f32 %v14789_v44, %v24489_v2  ;;  %14813 = vadd.xlane.f32.xlu0 %v14812_v57 }
0x2a18   : > { %v14798_v39 = vadd.f32 %v14788_v58, %v24486_v23  ;;  %v19646_v26 = vpop.f32.mrb[42].mxu1 }
0x2a19   : > { %v14791_v13 = vadd.f32 %v19646_v26, %v16881_v63  ;;  %v14748_v55 = vpop.f32.mrb[43].mxu1  ;;  %v14821_v3 = vsel %vm1526_vm5, %v14799_v34, 0.0 }
0x2a1a   : > { %v14790_v28 = vadd.f32 %v16881_v63, %v14748_v55  ;;  %14822 = vadd.xlane.f32.xlu1 %v14821_v3  ;;  %v14818_v46 = vsel %vm1526_vm5, %v14798_v39, 0.0 }
0x2a1b   : > { %v14801_v1 = vadd.f32 %v14791_v13, %v24505_v35  ;;  %14819 = vadd.xlane.f32.xlu0 %v14818_v46  ;;  %v14969_v46 = vld [vmem:[%s25906_s0 + $0x8] sm:$0xff] }
0x2a1c   : > { %v14800_v10 = vadd.f32 %v14790_v28, %v24502_v36  ;;  %v19649_v47 = vpop.f32.mrb[44].mxu1  ;;  %v14968_v28 = vld [vmem:[%s25906_s0] sm:$0xff] }
0x2a1d   : > { %v14793_v8 = vadd.f32 %v19649_v47, %v16881_v63  ;;  %v14758_v2 = vpop.f32.mrb[45].mxu1  ;;  %v14827_v60 = vsel %vm1526_vm5, %v14801_v1, 0.0  ;;  %v14971_v47 = vld [vmem:[%s25906_s0 + $0x18] sm:$0xff] }
0x2a1e   : > { %v14792_v23 = vadd.f32 %v16881_v63, %v14758_v2  ;;  %14828 = vadd.xlane.f32.xlu1 %v14827_v60  ;;  %v14824_v61 = vsel %vm1526_vm5, %v14800_v10, 0.0 }
0x2a1f   : > { %v14803_v41 = vadd.f32 %v14793_v8, %v24519_v7  ;;  %14825 = vadd.xlane.f32.xlu0 %v14824_v61 }
0x2a20   : > { %v14802_v31 = vadd.f32 %v14792_v23, %v24517_v11 }
0x2a21   : > { %v14833_v19 = vsel %vm1526_vm5, %v14803_v41, 0.0 }
0x2a22   : > { %14834 = vadd.xlane.f32.xlu1 %v14833_v19  ;;  %v14830_v35 = vsel %vm1526_vm5, %v14802_v31, 0.0 }
0x2a23   : > { %14831 = vadd.xlane.f32.xlu0 %v14830_v35 }
0x2a9f   : > { %v14811_v36 = vpop.xlane.xlu1 %14810 }
0x2aa0   : > { %v14837_v15 = vmul.f32 0.03125, %v14811_v36  ;;  %v14808_v14 = vpop.xlane.xlu0 %14807 }
0x2aa1   : > { %v14836_v32 = vmul.f32 0.03125, %v14808_v14 }
0x2aa2   : > { %v25444_v53 = vsub.f32 %v14795_v5, %v14837_v15 }
0x2aa3   : > { %v25446_v40 = vsub.f32 %v14794_v43, %v14836_v32  ;;  %v14817_v24 = vpop.xlane.xlu1 %14816 }
0x2aa4   : > { %v14839_v50 = vmul.f32 0.03125, %v14817_v24  ;;  %v14814_v7 = vpop.xlane.xlu0 %14813  ;;  %v14857_v11 = vmul.f32 %v25444_v53, %v25444_v53 }
0x2aa5   : > { %v14838_v6 = vmul.f32 0.03125, %v14814_v7  ;;  %v14856_v27 = vmul.f32 %v25446_v40, %v25446_v40 }
0x2aa6   : > { %v25452_v30 = vsub.f32 %v14797_v18, %v14839_v50  ;;  %v14869_v22 = vsel %vm1526_vm5, %v14857_v11, 0.0 }
0x2aa7   : > { %v25455_v56 = vsub.f32 %v14796_v48, %v14838_v6  ;;  %v14823_v17 = vpop.xlane.xlu1 %14822  ;;  %14870 = vadd.xlane.f32.xlu1 %v14869_v22  ;;  %v14866_v62 = vsel %vm1526_vm5, %v14856_v27, 0.0 }
0x2aa8   : > { %v14841_v54 = vmul.f32 0.03125, %v14823_v17  ;;  %14867 = vadd.xlane.f32.xlu0 %v14866_v62  ;;  %v14820_v21 = vpop.xlane.xlu0 %14819  ;;  %v14859_v49 = vmul.f32 %v25452_v30, %v25452_v30 }
0x2aa9   : > { %v14840_v51 = vmul.f32 0.03125, %v14820_v21  ;;  %v14858_v38 = vmul.f32 %v25455_v56, %v25455_v56 }
0x2aaa   : > { %v25462_v20 = vsub.f32 %v14799_v34, %v14841_v54  ;;  %v14875_v63 = vsel %vm1526_vm5, %v14859_v49, 0.0  ;;  %v16882_v49 = vld [vmem:[%s25907_s22] ss:$0 sm:$0xff]  ;;  %s25910_s22 = sld [smem:[#allocation22_spill]] }
0x2aab   : > { %v25465_v29 = vsub.f32 %v14798_v39, %v14840_v51  ;;  %v14829_v52 = vpop.xlane.xlu1 %14828  ;;  %14876 = vadd.xlane.f32.xlu1 %v14875_v63  ;;  %v14872_v25 = vsel %vm1526_vm5, %v14858_v38, 0.0 }
0x2aac   : > { %v14843_v33 = vmul.f32 0.03125, %v14829_v52  ;;  %14873 = vadd.xlane.f32.xlu0 %v14872_v25  ;;  %v14826_v5 = vpop.xlane.xlu0 %14825  ;;  %v14861_v43 = vmul.f32 %v25462_v20, %v25462_v20 }
0x2aad   : > { %v14842_v59 = vmul.f32 0.03125, %v14826_v5  ;;  %v14860_v9 = vmul.f32 %v25465_v29, %v25465_v29 }
0x2aae   : > { %v25472_v4 = vsub.f32 %v14801_v1, %v14843_v33  ;;  %v14881_v12 = vsel %vm1526_vm5, %v14861_v43, 0.0  ;;  %v14970_v1 = vld [vmem:[%s25906_s0 + $0x10] sm:$0xff]  ;;  %s25914_s0 = sld [smem:[#allocation26_spill]] }
0x2aaf   : > { %v25475_v37 = vsub.f32 %v14800_v10, %v14842_v59  ;;  %14882 = vadd.xlane.f32.xlu1 %v14881_v12  ;;  %v14835_v45 = vpop.xlane.xlu1 %14834  ;;  %v14878_v18 = vsel %vm1526_vm5, %v14860_v9, 0.0  ;;  %v20430_v10 = vpack.c.bf16 %v14969_v46, %v14968_v28  ;;  %v20434_v8 = vpack.c.bf16 %v14971_v47, %v14970_v1  ;;  %v16883_v59 = vld [vmem:[%s25908_s28] ss:$0 sm:$0xff]  ;;  %s25911_s28 = sld [smem:[#allocation24_spill]] }
0x2ab0   : > { %v14845_v48 = vmul.f32 0.03125, %v14835_v45  ;;  %14879 = vadd.xlane.f32.xlu0 %v14878_v18  ;;  %v14832_v42 = vpop.xlane.xlu0 %14831  ;;  %v14863_v44 = vmul.f32 %v25472_v4, %v25472_v4 }
0x2ab1   : > { %v14844_v0 = vmul.f32 0.03125, %v14832_v42  ;;  %v14862_v16 = vmul.f32 %v25475_v37, %v25475_v37  ;;  %20431 = vmatprep.subr.bf16.mxu0 %v20430_v10 }
0x2ab2   : > { %v25482_v58 = vsub.f32 %v14803_v41, %v14845_v48  ;;  %v14887_v57 = vsel %vm1526_vm5, %v14863_v44, 0.0  ;;  %20433 = vmatpush3.bf16.msra.mxu0 %v20430_v10 }
0x2ab3   : > { %v25485_v34 = vsub.f32 %v14802_v31, %v14844_v0  ;;  %14888 = vadd.xlane.f32.xlu1 %v14887_v57  ;;  %v14884_v39 = vsel %vm1526_vm5, %v14862_v16, 0.0  ;;  %20435 = vmatprep.subr.bf16.mxu0 %v20434_v8 }
0x2ab4   : > { %14885 = vadd.xlane.f32.xlu0 %v14884_v39  ;;  %v14865_v26 = vmul.f32 %v25482_v58, %v25482_v58 }
0x2ab5   : > { %v14864_v13 = vmul.f32 %v25485_v34, %v25485_v34 }
0x2ab6   : > { %v14893_v55 = vsel %vm1526_vm5, %v14865_v26, 0.0  ;;  %20437 = vmatpush3.bf16.msra.mxu0 %v20434_v8 }
0x2ab7   : > { %14894 = vadd.xlane.f32.xlu1 %v14893_v55  ;;  %v14890_v3 = vsel %vm1526_vm5, %v14864_v13, 0.0 }
0x2ab8   : > { %14891 = vadd.xlane.f32.xlu0 %v14890_v3 }
0x2b34   : > { %v14871_v2 = vpop.xlane.xlu1 %14870 }
0x2b35   : > { %v14897_v60 = vmul.f32 0.03125, %v14871_v2  ;;  %v14868_v23 = vpop.xlane.xlu0 %14867 }
0x2b36   : > { %v14896_v61 = vmul.f32 0.03125, %v14868_v23 }
0x2b37   : > { %v14907_v41 = vadd.f32 1e-05, %v14897_v60 }
0x2b38   : > { %v14906_v31 = vadd.f32 1e-05, %v14896_v61  ;;  %v14877_v19 = vpop.xlane.xlu1 %14876 }
0x2b39   : > { %21259 = vrsqrt.f32 %v14907_v41  ;;  %v14899_v35 = vmul.f32 0.03125, %v14877_v19  ;;  %v14874_v36 = vpop.xlane.xlu0 %14873 }
0x2b3a   : > { %21261 = vrsqrt.f32 %v14906_v31  ;;  %v14898_v15 = vmul.f32 0.03125, %v14874_v36 }
0x2b3b   : > { %v14909_v14 = vadd.f32 1e-05, %v14899_v35 }
0x2b3c   : > { %v14908_v32 = vadd.f32 1e-05, %v14898_v15  ;;  %v14883_v24 = vpop.xlane.xlu1 %14882  ;;  %v15215_v15 = vld [vmem:[%s25909_s11 + $0x8] sm:$0xff] }
0x2b3d   : > { %21263 = vrsqrt.f32 %v14909_v14  ;;  %v14901_v50 = vmul.f32 0.03125, %v14883_v24  ;;  %v14880_v7 = vpop.xlane.xlu0 %14879  ;;  %v15216_v14 = vld [vmem:[%s25909_s11 + $0x10] sm:$0xff]  ;;  %v15217_v24 = vld [vmem:[%s25909_s11 + $0x18] sm:$0xff] }
0x2b3e   : > { %21265 = vrsqrt.f32 %v14908_v32  ;;  %v14900_v11 = vmul.f32 0.03125, %v14880_v7  ;;  %v15218_v7 = vld [vmem:[%s25909_s11 + $0x20] sm:$0xff] }
0x2b3f   : > { %v14911_v6 = vadd.f32 1e-05, %v14901_v50  ;;  %v20442_v50 = vpack.c.bf16 %v15217_v24, %v15216_v14 }
0x2b40   : > { %v14910_v27 = vadd.f32 1e-05, %v14900_v11  ;;  %v14889_v22 = vpop.xlane.xlu1 %14888  ;;  %v15219_v11 = vld [vmem:[%s25909_s11 + $0x28] sm:$0xff] }
0x2b41   : > { %21267 = vrsqrt.f32 %v14911_v6  ;;  %v14903_v17 = vmul.f32 0.03125, %v14889_v22  ;;  %v14886_v62 = vpop.xlane.xlu0 %14885  ;;  %v20446_v6 = vpack.c.bf16 %v15219_v11, %v15218_v7  ;;  %v15221_v22 = vld [vmem:[%s25909_s11 + $0x38] sm:$0xff] }
0x2b42   : > { %21269 = vrsqrt.f32 %v14910_v27  ;;  %v14902_v54 = vmul.f32 0.03125, %v14886_v62  ;;  %v15220_v27 = vld [vmem:[%s25909_s11 + $0x30] sm:$0xff]  ;;  %v16884_v62 = vld [vmem:[%s25910_s22] ss:$0 sm:$0xff]  ;;  %s25912_s22 = sld [smem:[#allocation27_spill]] }
0x2b43   : > { %v21260_v21 = vpop.eup %21259  ;;  %v14913_v51 = vadd.f32 1e-05, %v14903_v17  ;;  %v20450_v17 = vpack.c.bf16 %v15221_v22, %v15220_v27 }
0x2b44   : > { %v21262_v38 = vpop.eup %21261  ;;  %v14927_v63 = vmul.f32 %v21260_v21, %v25444_v53  ;;  %v14912_v52 = vadd.f32 1e-05, %v14902_v54  ;;  %v14895_v25 = vpop.xlane.xlu1 %14894 }
0x2b45   : > { %21271 = vrsqrt.f32 %v14913_v51  ;;  %v14905_v33 = vmul.f32 0.03125, %v14895_v25  ;;  %v14892_v5 = vpop.xlane.xlu0 %14891  ;;  %v14926_v43 = vmul.f32 %v21262_v38, %v25446_v40 }
0x2b46   : > { %v14943_v9 = vmul.f32 %v16882_v49, %v14927_v63  ;;  %21273 = vrsqrt.f32 %v14912_v52  ;;  %v14904_v12 = vmul.f32 0.03125, %v14892_v5 }
0x2b47   : > { %v21264_v45 = vpop.eup %21263  ;;  %v14915_v18 = vadd.f32 1e-05, %v14905_v33  ;;  %v14942_v48 = vmul.f32 %v16882_v49, %v14926_v43 }
0x2b48   : > { %v21266_v42 = vpop.eup %21265  ;;  %v14914_v44 = vadd.f32 1e-05, %v14904_v12  ;;  %v14929_v0 = vmul.f32 %v21264_v45, %v25452_v30  ;;  %v25506_v57 = vadd.f32 %v16883_v59, %v14943_v9 }
0x2b49   : > { %21275 = vrsqrt.f32 %v14915_v18  ;;  %v25503_v53 = vadd.f32 %v16883_v59, %v14942_v48  ;;  %v14928_v16 = vmul.f32 %v21266_v42, %v25455_v56 }
0x2b4a   : > { %21277 = vrsqrt.f32 %v14914_v44  ;;  %v14945_v40 = vmul.f32 %v16882_v49, %v14929_v0 }
0x2b4b   : > { %v21268_v39 = vpop.eup %21267  ;;  %19658 = vmatprep.mubr.msk.f32.mxu0 %vm1526_vm5, %v25503_v53  ;;  %v14944_v26 = vmul.f32 %v16882_v49, %v14928_v16 }
0x2b4c   : > { %v21270_v13 = vpop.eup %21269  ;;  %19659 = vmatmul.mubr.msk.f32.vlgmr.msra.gmra.mrb[212].mxu0 %vm1526_vm5, %v25506_v57  ;;  %v14931_v30 = vmul.f32 %v21268_v39, %v25462_v20  ;;  %v25516_v56 = vadd.f32 %v16883_v59, %v14945_v40 }
0x2b4d   : > { %v25513_v55 = vadd.f32 %v16883_v59, %v14944_v26  ;;  %v14930_v3 = vmul.f32 %v21270_v13, %v25465_v29 }
0x2b4e   : > { %v14947_v28 = vmul.f32 %v16882_v49, %v14931_v30 }
0x2b4f   : > { %v21272_v46 = vpop.eup %21271  ;;  %19661 = vmatprep.mubr.msk.f32.mxu0 %vm1526_vm5, %v25513_v55  ;;  %v14946_v1 = vmul.f32 %v16882_v49, %v14930_v3 }
0x2b50   : > { %v21274_v10 = vpop.eup %21273  ;;  %19662 = vmatmul.mubr.msk.f32.gmra.mrb[214].mxu0 %vm1526_vm5, %v25516_v56  ;;  %v14933_v47 = vmul.f32 %v21272_v46, %v25472_v4  ;;  %v25526_v2 = vadd.f32 %v16883_v59, %v14947_v28 }
0x2b51   : > { %v25523_v8 = vadd.f32 %v16883_v59, %v14946_v1  ;;  %v14932_v20 = vmul.f32 %v21274_v10, %v25475_v37 }
0x2b52   : > { %v14949_v29 = vmul.f32 %v16882_v49, %v14933_v47 }
0x2b53   : > { %v21276_v60 = vpop.eup %21275  ;;  %19664 = vmatprep.mubr.msk.f32.mxu0 %vm1526_vm5, %v25523_v8  ;;  %v14948_v23 = vmul.f32 %v16882_v49, %v14932_v20 }
0x2b54   : > { %v21278_v61 = vpop.eup %21277  ;;  %19665 = vmatmul.mubr.msk.f32.gmra.mrb[216].mxu0 %vm1526_vm5, %v25526_v2  ;;  %v14935_v4 = vmul.f32 %v21276_v60, %v25482_v58  ;;  %v25536_v31 = vadd.f32 %v16883_v59, %v14949_v29 }
0x2b55   : > { %v25533_v41 = vadd.f32 %v16883_v59, %v14948_v23  ;;  %v14934_v37 = vmul.f32 %v21278_v61, %v25485_v34  ;;  %v15214_v34 = vld [vmem:[%s25909_s11] sm:$0xff] }
0x2b56   : > { %v14951_v19 = vmul.f32 %v16882_v49, %v14935_v4  ;;  %v20438_v32 = vpack.c.bf16 %v15215_v15, %v15214_v34 }
0x2b57   : > { %19667 = vmatprep.mubr.msk.f32.mxu0 %vm1526_vm5, %v25533_v41  ;;  %v14950_v35 = vmul.f32 %v16882_v49, %v14934_v37 }
0x2b58   : > { %19668 = vmatmul.mubr.msk.f32.gmra.mrb[218].mxu0 %vm1526_vm5, %v25536_v31  ;;  %v25544_v58 = vadd.f32 %v16883_v59, %v14951_v19  ;;  %20439 = vmatprep.subr.bf16.mxu0 %v20438_v32 }
0x2b59   : > { %v25542_v36 = vadd.f32 %v16883_v59, %v14950_v35  ;;  %20441 = vmatpush3.bf16.msra.mxu0 %v20438_v32 }
0x2b5a   : > { %20443 = vmatprep.subr.bf16.mxu0 %v20442_v50 }
0x2b5b   : > { %19670 = vmatprep.mubr.msk.f32.mxu0 %vm1526_vm5, %v25542_v36 }
0x2b5c   : > { %19671 = vmatmul.mubr.msk.f32.gmra.mrb[220].mxu0 %vm1526_vm5, %v25544_v58 }
0x2b5d   : > { %20445 = vmatpush3.bf16.msra.mxu0 %v20442_v50 }
0x2b5e   : > { %20447 = vmatprep.subr.bf16.mxu0 %v20446_v6 }
0x2b61   : > { %20449 = vmatpush3.bf16.msra.mxu0 %v20446_v6 }
0x2b62   : > { %20451 = vmatprep.subr.bf16.mxu0 %v20450_v17 }
0x2b65   : > { %20453 = vmatpush3.bf16.msra.mxu0 %v20450_v17 }
0x2c1f   : > { %v19660_v54 = vpop.f32.mrb[212].mxu0 }
0x2c20   : > { %v25559_v21 = vadd.f32 %v19660_v54, %v16884_v62  ;;  %v15075_v49 = vpop.f32.mrb[213].mxu0 }
0x2c21   : > { %v25561_v51 = vadd.f32 %v16884_v62, %v15075_v49 }
0x2c22   : > { %v15135_v38 = vmul.f32 0.044715, %v25559_v21 }
0x2c23   : > { %v15134_v63 = vmul.f32 0.044715, %v25561_v51  ;;  %v19663_v52 = vpop.f32.mrb[214].mxu0 }
0x2c24   : > { %v15145_v25 = vmul.f32 %v15135_v38, %v25559_v21  ;;  %v25566_v33 = vadd.f32 %v19663_v52, %v16884_v62  ;;  %v15085_v5 = vpop.f32.mrb[215].mxu0 }
0x2c25   : > { %v15144_v43 = vmul.f32 %v15134_v63, %v25561_v51  ;;  %v25569_v59 = vadd.f32 %v16884_v62, %v15085_v5 }
0x2c26   : > { %v15155_v9 = vmul.f32 %v15145_v25, %v25559_v21  ;;  %v15137_v12 = vmul.f32 0.044715, %v25566_v33 }
0x2c27   : > { %v15154_v45 = vmul.f32 %v15144_v43, %v25561_v51  ;;  %v15136_v18 = vmul.f32 0.044715, %v25569_v59  ;;  %v19666_v48 = vpop.f32.mrb[216].mxu0 }
0x2c28   : > { %v15165_v42 = vadd.f32 %v15155_v9, %v25559_v21  ;;  %v15147_v44 = vmul.f32 %v15137_v12, %v25566_v33  ;;  %v25577_v0 = vadd.f32 %v19666_v48, %v16884_v62  ;;  %v15095_v16 = vpop.f32.mrb[217].mxu0 }
0x2c29   : > { %v15164_v40 = vadd.f32 %v15154_v45, %v25561_v51  ;;  %v15146_v39 = vmul.f32 %v15136_v18, %v25569_v59  ;;  %v25581_v26 = vadd.f32 %v16884_v62, %v15095_v16 }
0x2c2a   : > { %v15175_v13 = vmul.f32 0.7978846, %v15165_v42  ;;  %v15157_v30 = vmul.f32 %v15147_v44, %v25566_v33  ;;  %v15139_v3 = vmul.f32 0.044715, %v25577_v0 }
0x2c2b   : > { %v15156_v28 = vmul.f32 %v15146_v39, %v25569_v59  ;;  %v15138_v46 = vmul.f32 0.044715, %v25581_v26  ;;  %v19669_v1 = vpop.f32.mrb[218].mxu0  ;;  %v15174_v10 = vmul.f32 0.7978846, %v15164_v40  ;;  %v15124_v40 = vmul.f32 0.5, %v25561_v51 }
0x2c2c   : > { %21279 = vtanh.f32 %v15175_v13  ;;  %v15167_v47 = vadd.f32 %v15157_v30, %v25566_v33  ;;  %v15149_v20 = vmul.f32 %v15139_v3, %v25577_v0  ;;  %v25589_v29 = vadd.f32 %v19669_v1, %v16884_v62  ;;  %v15105_v60 = vpop.f32.mrb[219].mxu0 }
0x2c2d   : > { %v15166_v23 = vadd.f32 %v15156_v28, %v25569_v59  ;;  %v15148_v61 = vmul.f32 %v15138_v46, %v25581_v26  ;;  %v25593_v4 = vadd.f32 %v16884_v62, %v15105_v60  ;;  %21281 = vtanh.f32 %v15174_v10 }
0x2c2e   : > { %v15159_v37 = vmul.f32 %v15149_v20, %v25577_v0  ;;  %v15141_v19 = vmul.f32 0.044715, %v25589_v29  ;;  %v15177_v35 = vmul.f32 0.7978846, %v15167_v47  ;;  %v15125_v13 = vmul.f32 0.5, %v25559_v21 }
0x2c2f   : > { %v15158_v34 = vmul.f32 %v15148_v61, %v25581_v26  ;;  %v15140_v15 = vmul.f32 0.044715, %v25593_v4  ;;  %v19672_v14 = vpop.f32.mrb[220].mxu0  ;;  %v15176_v32 = vmul.f32 0.7978846, %v15166_v23  ;;  %v15126_v60 = vmul.f32 0.5, %v25569_v59 }
0x2c30   : > { %v15169_v24 = vadd.f32 %v15159_v37, %v25577_v0  ;;  %v15151_v50 = vmul.f32 %v15141_v19, %v25589_v29  ;;  %v25601_v7 = vadd.f32 %v19672_v14, %v16884_v62  ;;  %v15115_v11 = vpop.f32.mrb[221].mxu0  ;;  %21283 = vtanh.f32 %v15177_v35 }
0x2c31   : > { %v15168_v6 = vadd.f32 %v15158_v34, %v25581_v26  ;;  %v15150_v27 = vmul.f32 %v15140_v15, %v25593_v4  ;;  %v25605_v22 = vadd.f32 %v16884_v62, %v15115_v11  ;;  %21285 = vtanh.f32 %v15176_v32 }
0x2c32   : > { %v15161_v17 = vmul.f32 %v15151_v50, %v25589_v29  ;;  %v15143_v54 = vmul.f32 0.044715, %v25601_v7  ;;  %v15179_v49 = vmul.f32 0.7978846, %v15169_v24  ;;  %v15127_v21 = vmul.f32 0.5, %v25566_v33 }
0x2c33   : > { %v15160_v38 = vmul.f32 %v15150_v27, %v25593_v4  ;;  %v15142_v63 = vmul.f32 0.044715, %v25605_v22  ;;  %v15178_v52 = vmul.f32 0.7978846, %v15168_v6  ;;  %v15128_v34 = vmul.f32 0.5, %v25581_v26 }
0x2c34   : > { %v15171_v25 = vadd.f32 %v15161_v17, %v25589_v29  ;;  %v15153_v5 = vmul.f32 %v15143_v54, %v25601_v7  ;;  %21287 = vtanh.f32 %v15179_v49  ;;  %v15129_v59 = vmul.f32 0.5, %v25577_v0 }
0x2c35   : > { %v15170_v43 = vadd.f32 %v15160_v38, %v25593_v4  ;;  %v15152_v62 = vmul.f32 %v15142_v63, %v25605_v22  ;;  %21289 = vtanh.f32 %v15178_v52  ;;  %v15130_v11 = vmul.f32 0.5, %v25593_v4 }
0x2c36   : > { %v21280_v9 = vpop.eup %21279  ;;  %v15163_v12 = vmul.f32 %v15153_v5, %v25601_v7  ;;  %v15181_v45 = vmul.f32 0.7978846, %v15171_v25  ;;  %v15131_v26 = vmul.f32 0.5, %v25589_v29  ;;  %v15132_v38 = vmul.f32 0.5, %v25605_v22  ;;  %v16895_v29 = vld [vmem:[%s25911_s28] ss:$0 sm:$0xff] }
0x2c37   : > { %v21282_v18 = vpop.eup %21281  ;;  %v15195_v48 = vadd.f32 1.0, %v21280_v9  ;;  %v15162_v42 = vmul.f32 %v15152_v62, %v25605_v22  ;;  %v15180_v44 = vmul.f32 0.7978846, %v15170_v43  ;;  %v15133_v4 = vmul.f32 0.5, %v25601_v7  ;;  %s25913_s28 = sld [smem:[#allocation25_spill]] }
0x2c38   : > { %v15173_v16 = vadd.f32 %v15163_v12, %v25601_v7  ;;  %v15194_v39 = vadd.f32 1.0, %v21282_v18  ;;  %21291 = vtanh.f32 %v15181_v45 }
0x2c39   : > { %v15172_v30 = vadd.f32 %v15162_v42, %v25605_v22  ;;  %21293 = vtanh.f32 %v15180_v44  ;;  %v15205_v10 = vmul.f32 %v15195_v48, %v15125_v13 }
0x2c3a   : > { %v21284_v3 = vpop.eup %21283  ;;  %v15204_v28 = vmul.f32 %v15194_v39, %v15124_v40  ;;  %v15183_v46 = vmul.f32 0.7978846, %v15173_v16 }
0x2c3b   : > { %v21286_v1 = vpop.eup %21285  ;;  %v15197_v47 = vadd.f32 1.0, %v21284_v3  ;;  %v15182_v20 = vmul.f32 0.7978846, %v15172_v30 }
0x2c3c   : > { %19689 = vmatprep.mubr.msk.f32.mxu0 %vm10575_vm11, %v15204_v28  ;;  %v15196_v23 = vadd.f32 1.0, %v21286_v1  ;;  %21295 = vtanh.f32 %v15183_v46 }
0x2c3d   : > { %19690 = vmatmul.mubr.msk.f32.vlgmr.msra.gmra.mrb[222].mxu0 %vm10575_vm11, %v15205_v10  ;;  %21297 = vtanh.f32 %v15182_v20  ;;  %v15207_v19 = vmul.f32 %v15197_v47, %v15127_v21 }
0x2c3e   : > { %v21288_v51 = vpop.eup %21287  ;;  %v15206_v61 = vmul.f32 %v15196_v23, %v15126_v60 }
0x2c3f   : > { %v21290_v37 = vpop.eup %21289  ;;  %v15199_v35 = vadd.f32 1.0, %v21288_v51 }
0x2c40   : > { %19692 = vmatprep.mubr.msk.f32.mxu0 %vm10575_vm11, %v15206_v61  ;;  %v15198_v15 = vadd.f32 1.0, %v21290_v37 }
0x2c41   : > { %19693 = vmatmul.mubr.msk.f32.gmra.mrb[224].mxu0 %vm10575_vm11, %v15207_v19  ;;  %v15209_v50 = vmul.f32 %v15199_v35, %v15129_v59 }
0x2c42   : > { %v21292_v14 = vpop.eup %21291  ;;  %v15208_v32 = vmul.f32 %v15198_v15, %v15128_v34 }
0x2c43   : > { %v21294_v24 = vpop.eup %21293  ;;  %v15201_v33 = vadd.f32 1.0, %v21292_v14 }
0x2c44   : > { %19695 = vmatprep.mubr.msk.f32.mxu0 %vm10575_vm11, %v15208_v32  ;;  %v15200_v6 = vadd.f32 1.0, %v21294_v24 }
0x2c45   : > { %19696 = vmatmul.mubr.msk.f32.gmra.mrb[226].mxu0 %vm10575_vm11, %v15209_v50  ;;  %v15211_v49 = vmul.f32 %v15201_v33, %v15131_v26 }
0x2c46   : > { %v21296_v27 = vpop.eup %21295  ;;  %v15210_v17 = vmul.f32 %v15200_v6, %v15130_v11 }
0x2c47   : > { %v21298_v54 = vpop.eup %21297  ;;  %v15203_v0 = vadd.f32 1.0, %v21296_v27 }
0x2c48   : > { %19698 = vmatprep.mubr.msk.f32.mxu0 %vm10575_vm11, %v15210_v17  ;;  %v15202_v63 = vadd.f32 1.0, %v21298_v54 }
0x2c49   : > { %19699 = vmatmul.mubr.msk.f32.gmra.mrb[228].mxu0 %vm10575_vm11, %v15211_v49  ;;  %v15213_v25 = vmul.f32 %v15203_v0, %v15133_v4 }
0x2c4a   : > { %v15212_v52 = vmul.f32 %v15202_v63, %v15132_v38 }
0x2c4c   : > { %19701 = vmatprep.mubr.msk.f32.mxu0 %vm10575_vm11, %v15212_v52 }
0x2c4d   : > { %19702 = vmatmul.mubr.msk.f32.gmra.mrb[230].mxu0 %vm10575_vm11, %v15213_v25 }
0x2d10   : > { %v19691_v5 = vpop.f32.mrb[222].mxu0 }
0x2d11   : > { %v15331_v43 = vadd.f32 %v19691_v5, %v16895_v29  ;;  %v15325_v62 = vpop.f32.mrb[223].mxu0 }
0x2d12   : > { %v15326_v9 = vadd.f32 %v16895_v29, %v15325_v62 }
0x2d13   : > { %v15375_v12 = vadd.f32 %v15331_v43, %v25506_v57 }
0x2d14   : > { %v15374_v22 = vadd.f32 %v15326_v9, %v25503_v53  ;;  %v19694_v45 = vpop.f32.mrb[224].mxu0 }
0x2d15   : > { %v15341_v18 = vadd.f32 %v19694_v45, %v16895_v29  ;;  %v15335_v48 = vpop.f32.mrb[225].mxu0  ;;  %v15389_v7 = vsel %vm1526_vm5, %v15375_v12, 0.0 }
0x2d16   : > { %v15336_v42 = vadd.f32 %v16895_v29, %v15335_v48  ;;  %15390 = vadd.xlane.f32.xlu1 %v15389_v7  ;;  %v15386_v44 = vsel %vm1526_vm5, %v15374_v22, 0.0 }
0x2d17   : > { %v15377_v16 = vadd.f32 %v15341_v18, %v25516_v56  ;;  %15387 = vadd.xlane.f32.xlu0 %v15386_v44 }
0x2d18   : > { %v15376_v40 = vadd.f32 %v15336_v42, %v25513_v55  ;;  %v19697_v39 = vpop.f32.mrb[226].mxu0 }
0x2d19   : > { %v15351_v13 = vadd.f32 %v19697_v39, %v16895_v29  ;;  %v15345_v30 = vpop.f32.mrb[227].mxu0  ;;  %v15395_v57 = vsel %vm1526_vm5, %v15377_v16, 0.0 }
0x2d1a   : > { %v15346_v53 = vadd.f32 %v16895_v29, %v15345_v30  ;;  %15396 = vadd.xlane.f32.xlu1 %v15395_v57  ;;  %v15392_v3 = vsel %vm1526_vm5, %v15376_v40, 0.0 }
0x2d1b   : > { %v15379_v28 = vadd.f32 %v15351_v13, %v25526_v2  ;;  %15393 = vadd.xlane.f32.xlu0 %v15392_v3 }
0x2d1c   : > { %v15378_v46 = vadd.f32 %v15346_v53, %v25523_v8  ;;  %v19700_v1 = vpop.f32.mrb[228].mxu0 }
0x2d1d   : > { %v15361_v10 = vadd.f32 %v19700_v1, %v16895_v29  ;;  %v15355_v56 = vpop.f32.mrb[229].mxu0  ;;  %v15401_v47 = vsel %vm1526_vm5, %v15379_v28, 0.0 }
0x2d1e   : > { %v15356_v55 = vadd.f32 %v16895_v29, %v15355_v56  ;;  %15402 = vadd.xlane.f32.xlu1 %v15401_v47  ;;  %v15398_v20 = vsel %vm1526_vm5, %v15378_v46, 0.0 }
0x2d1f   : > { %v15381_v60 = vadd.f32 %v15361_v10, %v25536_v31  ;;  %15399 = vadd.xlane.f32.xlu0 %v15398_v20  ;;  %v15549_v20 = vld [vmem:[%s25912_s22 + $0x8] sm:$0xff] }
0x2d20   : > { %v15380_v23 = vadd.f32 %v15356_v55, %v25533_v41  ;;  %v19703_v21 = vpop.f32.mrb[230].mxu0  ;;  %v15548_v55 = vld [vmem:[%s25912_s22] sm:$0xff] }
0x2d21   : > { %v15371_v51 = vadd.f32 %v19703_v21, %v16895_v29  ;;  %v15365_v2 = vpop.f32.mrb[231].mxu0  ;;  %v15407_v61 = vsel %vm1526_vm5, %v15381_v60, 0.0  ;;  %v15551_v21 = vld [vmem:[%s25912_s22 + $0x18] sm:$0xff] }
0x2d22   : > { %v15366_v8 = vadd.f32 %v16895_v29, %v15365_v2  ;;  %15408 = vadd.xlane.f32.xlu1 %v15407_v61  ;;  %v15404_v37 = vsel %vm1526_vm5, %v15380_v23, 0.0  ;;  %v15714_v2 = vld [vmem:[%s21603_s27] sm:$0xff]  ;;  %v15715_v61 = vld [vmem:[%s21603_s27 + $0x8] sm:$0xff] }
0x2d23   : > { %v15383_v19 = vadd.f32 %v15371_v51, %v25544_v58  ;;  %15405 = vadd.xlane.f32.xlu0 %v15404_v37 }
0x2d24   : > { %v15382_v35 = vadd.f32 %v15366_v8, %v25542_v36  ;;  %v20462_v8 = vpack.c.bf16 %v15715_v61, %v15714_v2 }
0x2d25   : > { %v15413_v34 = vsel %vm1526_vm5, %v15383_v19, 0.0 }
0x2d26   : > { %15414 = vadd.xlane.f32.xlu1 %v15413_v34  ;;  %v15410_v31 = vsel %vm1526_vm5, %v15382_v35, 0.0  ;;  %20463 = vmatprep.subr.bf16.mxu0 %v20462_v8 }
0x2d27   : > { %15411 = vadd.xlane.f32.xlu0 %v15410_v31  ;;  %20465 = vmatpush3.bf16.msra.mxu0 %v20462_v8 }
0x2da3   : > { %v15391_v41 = vpop.xlane.xlu1 %15390 }
0x2da4   : > { %v15417_v15 = vmul.f32 0.03125, %v15391_v41  ;;  %v15388_v59 = vpop.xlane.xlu0 %15387 }
0x2da5   : > { %v15416_v14 = vmul.f32 0.03125, %v15388_v59 }
0x2da6   : > { %v25660_v32 = vsub.f32 %v15375_v12, %v15417_v15 }
0x2da7   : > { %v25662_v24 = vsub.f32 %v15374_v22, %v15416_v14  ;;  %v15397_v50 = vpop.xlane.xlu1 %15396 }
0x2da8   : > { %v15419_v33 = vmul.f32 0.03125, %v15397_v50  ;;  %v15394_v58 = vpop.xlane.xlu0 %15393  ;;  %v15437_v36 = vmul.f32 %v25660_v32, %v25660_v32 }
0x2da9   : > { %v15418_v11 = vmul.f32 0.03125, %v15394_v58  ;;  %v15436_v6 = vmul.f32 %v25662_v24, %v25662_v24 }
0x2daa   : > { %v25668_v26 = vsub.f32 %v15377_v16, %v15419_v33  ;;  %v15449_v27 = vsel %vm1526_vm5, %v15437_v36, 0.0 }
0x2dab   : > { %v25671_v17 = vsub.f32 %v15376_v40, %v15418_v11  ;;  %v15403_v54 = vpop.xlane.xlu1 %15402  ;;  %15450 = vadd.xlane.f32.xlu1 %v15449_v27  ;;  %v15446_v49 = vsel %vm1526_vm5, %v15436_v6, 0.0 }
0x2dac   : > { %v15421_v0 = vmul.f32 0.03125, %v15403_v54  ;;  %v15400_v38 = vpop.xlane.xlu0 %15399  ;;  %15447 = vadd.xlane.f32.xlu0 %v15446_v49  ;;  %v15439_v63 = vmul.f32 %v25668_v26, %v25668_v26 }
0x2dad   : > { %v15420_v4 = vmul.f32 0.03125, %v15400_v38  ;;  %v15438_v52 = vmul.f32 %v25671_v17, %v25671_v17 }
0x2dae   : > { %v25678_v25 = vsub.f32 %v15379_v28, %v15421_v0  ;;  %v15455_v29 = vsel %vm1526_vm5, %v15439_v63, 0.0 }
0x2daf   : > { %v25681_v5 = vsub.f32 %v15378_v46, %v15420_v4  ;;  %v15409_v43 = vpop.xlane.xlu1 %15408  ;;  %15456 = vadd.xlane.f32.xlu1 %v15455_v29  ;;  %v15452_v62 = vsel %vm1526_vm5, %v15438_v52, 0.0  ;;  %v16906_v29 = vld [vmem:[%s25913_s28] ss:$0 sm:$0xff] }
0x2db0   : > { %v15423_v9 = vmul.f32 0.03125, %v15409_v43  ;;  %v15406_v12 = vpop.xlane.xlu0 %15405  ;;  %15453 = vadd.xlane.f32.xlu0 %v15452_v62  ;;  %v15441_v22 = vmul.f32 %v25678_v25, %v25678_v25 }
0x2db1   : > { %v15422_v45 = vmul.f32 0.03125, %v15406_v12  ;;  %v15440_v18 = vmul.f32 %v25681_v5, %v25681_v5 }
0x2db2   : > { %v25688_v48 = vsub.f32 %v15381_v60, %v15423_v9  ;;  %v15461_v7 = vsel %vm1526_vm5, %v15441_v22, 0.0  ;;  %v20454_v60 = vpack.c.bf16 %v15549_v20, %v15548_v55 }
0x2db3   : > { %v25691_v42 = vsub.f32 %v15380_v23, %v15422_v45  ;;  %15462 = vadd.xlane.f32.xlu1 %v15461_v7  ;;  %v15415_v44 = vpop.xlane.xlu1 %15414  ;;  %v15458_v16 = vsel %vm1526_vm5, %v15440_v18, 0.0  ;;  %v15550_v23 = vld [vmem:[%s25912_s22 + $0x10] sm:$0xff] }
0x2db4   : > { %v15425_v40 = vmul.f32 0.03125, %v15415_v44  ;;  %15459 = vadd.xlane.f32.xlu0 %v15458_v16  ;;  %v15412_v39 = vpop.xlane.xlu0 %15411  ;;  %v15443_v13 = vmul.f32 %v25688_v48, %v25688_v48  ;;  %20455 = vmatprep.subr.bf16.mxu1 %v20454_v60  ;;  %v20458_v51 = vpack.c.bf16 %v15551_v21, %v15550_v23  ;;  %v16907_v44 = vld [vmem:[%s25914_s0] ss:$0 sm:$0xff]  ;;  %s20701_s0 = smul.u32 80, %s25916_s16 }
0x2db5   : > { %v15424_v30 = vmul.f32 0.03125, %v15412_v39  ;;  %v15442_v57 = vmul.f32 %v25691_v42, %v25691_v42  ;;  %20457 = vmatpush3.bf16.msra.mxu1 %v20454_v60 }
0x2db6   : > { %v25698_v53 = vsub.f32 %v15383_v19, %v15425_v40  ;;  %v15467_v3 = vsel %vm1526_vm5, %v15443_v13, 0.0  ;;  %20459 = vmatprep.subr.bf16.mxu1 %v20458_v51  ;;  %s1266_s28 = scalar_lea.vmem %s21613_s6, %s20701_s0 }
0x2db7   : > { %v25701_v28 = vsub.f32 %v15382_v35, %v15424_v30  ;;  %15468 = vadd.xlane.f32.xlu1 %v15467_v3  ;;  %v15464_v46 = vsel %vm1526_vm5, %v15442_v57, 0.0 }
0x2db8   : > { %15465 = vadd.xlane.f32.xlu0 %v15464_v46  ;;  %v15445_v1 = vmul.f32 %v25698_v53, %v25698_v53 }
0x2db9   : > { %v15444_v10 = vmul.f32 %v25701_v28, %v25701_v28  ;;  %20461 = vmatpush3.bf16.msra.mxu1 %v20458_v51 }
0x2dba   : > { %v15473_v56 = vsel %vm1526_vm5, %v15445_v1, 0.0 }
0x2dbb   : > { %15474 = vadd.xlane.f32.xlu1 %v15473_v56  ;;  %v15470_v47 = vsel %vm1526_vm5, %v15444_v10, 0.0 }
0x2dbc   : > { %15471 = vadd.xlane.f32.xlu0 %v15470_v47 }
0x2e38   : > { %v15451_v37 = vpop.xlane.xlu1 %15450 }
0x2e39   : > { %v15477_v19 = vmul.f32 0.03125, %v15451_v37  ;;  %v15448_v35 = vpop.xlane.xlu0 %15447 }
0x2e3a   : > { %v15476_v34 = vmul.f32 0.03125, %v15448_v35 }
0x2e3b   : > { %v15487_v31 = vadd.f32 1e-05, %v15477_v19 }
0x2e3c   : > { %v15486_v41 = vadd.f32 1e-05, %v15476_v34  ;;  %v15457_v15 = vpop.xlane.xlu1 %15456 }
0x2e3d   : > { %21299 = vrsqrt.f32 %v15487_v31  ;;  %v15479_v59 = vmul.f32 0.03125, %v15457_v15  ;;  %v15454_v14 = vpop.xlane.xlu0 %15453 }
0x2e3e   : > { %21301 = vrsqrt.f32 %v15486_v41  ;;  %v15478_v50 = vmul.f32 0.03125, %v15454_v14 }
0x2e3f   : > { %v15489_v33 = vadd.f32 1e-05, %v15479_v59 }
0x2e40   : > { %v15488_v58 = vadd.f32 1e-05, %v15478_v50  ;;  %v15463_v36 = vpop.xlane.xlu1 %15462 }
0x2e41   : > { %21303 = vrsqrt.f32 %v15489_v33  ;;  %v15481_v11 = vmul.f32 0.03125, %v15463_v36  ;;  %v15460_v6 = vpop.xlane.xlu0 %15459  ;;  %v15717_v33 = vld [vmem:[%s21603_s27 + $0x18] sm:$0xff]  ;;  %v16908_v36 = vld [vmem:[%s21598_s20] ss:$0 sm:$0xff] }
0x2e42   : > { %21305 = vrsqrt.f32 %v15488_v58  ;;  %v15480_v27 = vmul.f32 0.03125, %v15460_v6 }
0x2e43   : > { %v15491_v54 = vadd.f32 1e-05, %v15481_v11 }
0x2e44   : > { %v15490_v49 = vadd.f32 1e-05, %v15480_v27  ;;  %v15469_v0 = vpop.xlane.xlu1 %15468 }
0x2e45   : > { %21307 = vrsqrt.f32 %v15491_v54  ;;  %v15483_v38 = vmul.f32 0.03125, %v15469_v0  ;;  %v15466_v63 = vpop.xlane.xlu0 %15465 }
0x2e46   : > { %21309 = vrsqrt.f32 %v15490_v49  ;;  %v15482_v4 = vmul.f32 0.03125, %v15466_v63 }
0x2e47   : > { %v21300_v52 = vpop.eup %21299  ;;  %v15493_v43 = vadd.f32 1e-05, %v15483_v38 }
0x2e48   : > { %v21302_v62 = vpop.eup %21301  ;;  %v15507_v9 = vmul.f32 %v21300_v52, %v25660_v32  ;;  %v15492_v12 = vadd.f32 1e-05, %v15482_v4  ;;  %v15475_v22 = vpop.xlane.xlu1 %15474 }
0x2e49   : > { %21311 = vrsqrt.f32 %v15493_v43  ;;  %v15485_v45 = vmul.f32 0.03125, %v15475_v22  ;;  %v15472_v18 = vpop.xlane.xlu0 %15471  ;;  %v15506_v7 = vmul.f32 %v21302_v62, %v25662_v24 }
0x2e4a   : > { %v15523_v16 = vmul.f32 %v16906_v29, %v15507_v9  ;;  %21313 = vrsqrt.f32 %v15492_v12  ;;  %v15484_v40 = vmul.f32 0.03125, %v15472_v18 }
0x2e4b   : > { %v21304_v39 = vpop.eup %21303  ;;  %v15495_v13 = vadd.f32 1e-05, %v15485_v45  ;;  %v15522_v30 = vmul.f32 %v16906_v29, %v15506_v7 }
0x2e4c   : > { %v21306_v57 = vpop.eup %21305  ;;  %v15509_v3 = vmul.f32 %v21304_v39, %v25668_v26  ;;  %v15494_v46 = vadd.f32 1e-05, %v15484_v40  ;;  %v15539_v10 = vadd.f32 %v16907_v44, %v15523_v16 }
0x2e4d   : > { %21315 = vrsqrt.f32 %v15495_v13  ;;  %v15538_v32 = vadd.f32 %v16907_v44, %v15522_v30  ;;  %v15508_v1 = vmul.f32 %v21306_v57, %v25671_v17 }
0x2e4e   : > { %v15525_v56 = vmul.f32 %v16906_v29, %v15509_v3  ;;  %21317 = vrsqrt.f32 %v15494_v46 }
0x2e4f   : > { %v21308_v47 = vpop.eup %21307  ;;  %19712 = vmatprep.mubr.msk.f32.mxu1 %vm1526_vm5, %v15538_v32  ;;  %v15524_v24 = vmul.f32 %v16906_v29, %v15508_v1  ;;  %v16919_v1 = vld [vmem:[%s21608_s4] ss:$0 sm:$0xff] }
0x2e50   : > { %v21310_v55 = vpop.eup %21309  ;;  %v15511_v20 = vmul.f32 %v21308_v47, %v25678_v25  ;;  %19713 = vmatmul.mubr.msk.f32.vlgmr.msra.gmra.mrb[86].mxu1 %vm1526_vm5, %v15539_v10  ;;  %v15541_v23 = vadd.f32 %v16907_v44, %v15525_v56 }
0x2e51   : > { %v15540_v60 = vadd.f32 %v16907_v44, %v15524_v24  ;;  %v15510_v26 = vmul.f32 %v21310_v55, %v25681_v5 }
0x2e52   : > { %v15527_v21 = vmul.f32 %v16906_v29, %v15511_v20 }
0x2e53   : > { %v21312_v51 = vpop.eup %21311  ;;  %19715 = vmatprep.mubr.msk.f32.mxu1 %vm1526_vm5, %v15540_v60  ;;  %v15526_v17 = vmul.f32 %v16906_v29, %v15510_v26 }
0x2e54   : > { %v21314_v2 = vpop.eup %21313  ;;  %v15513_v61 = vmul.f32 %v21312_v51, %v25688_v48  ;;  %19716 = vmatmul.mubr.msk.f32.gmra.mrb[88].mxu1 %vm1526_vm5, %v15541_v23  ;;  %v15543_v25 = vadd.f32 %v16907_v44, %v15527_v21 }
0x2e55   : > { %v15542_v8 = vadd.f32 %v16907_v44, %v15526_v17  ;;  %v15512_v37 = vmul.f32 %v21314_v2, %v25691_v42 }
0x2e56   : > { %v15529_v19 = vmul.f32 %v16906_v29, %v15513_v61 }
0x2e57   : > { %v21316_v35 = vpop.eup %21315  ;;  %19718 = vmatprep.mubr.msk.f32.mxu1 %vm1526_vm5, %v15542_v8  ;;  %v15528_v5 = vmul.f32 %v16906_v29, %v15512_v37 }
0x2e58   : > { %v21318_v34 = vpop.eup %21317  ;;  %v15515_v31 = vmul.f32 %v21316_v35, %v25698_v53  ;;  %19719 = vmatmul.mubr.msk.f32.gmra.mrb[90].mxu1 %vm1526_vm5, %v15543_v25  ;;  %v15545_v15 = vadd.f32 %v16907_v44, %v15529_v19  ;;  %v15716_v53 = vld [vmem:[%s21603_s27 + $0x10] sm:$0xff] }
0x2e59   : > { %v15544_v41 = vadd.f32 %v16907_v44, %v15528_v5  ;;  %v15514_v48 = vmul.f32 %v21318_v34, %v25701_v28  ;;  %v20466_v58 = vpack.c.bf16 %v15717_v33, %v15716_v53 }
0x2e5a   : > { %v15531_v59 = vmul.f32 %v16906_v29, %v15515_v31 }
0x2e5b   : > { %19721 = vmatprep.mubr.msk.f32.mxu1 %vm1526_vm5, %v15544_v41  ;;  %v15530_v42 = vmul.f32 %v16906_v29, %v15514_v48  ;;  %20467 = vmatprep.subr.bf16.mxu0 %v20466_v58 }
0x2e5c   : > { %19722 = vmatmul.mubr.msk.f32.gmra.mrb[92].mxu1 %vm1526_vm5, %v15545_v15  ;;  %v15547_v50 = vadd.f32 %v16907_v44, %v15531_v59  ;;  %20469 = vmatpush3.bf16.msra.mxu0 %v20466_v58 }
0x2e5d   : > { %v15546_v14 = vadd.f32 %v16907_v44, %v15530_v42 }
0x2e5f   : > { %19724 = vmatprep.mubr.msk.f32.mxu1 %vm1526_vm5, %v15546_v14 }
0x2e60   : > { %19725 = vmatmul.mubr.msk.f32.gmra.mrb[94].mxu1 %vm1526_vm5, %v15547_v50 }
0x2f23   : > { %v19714_v28 = vpop.f32.mrb[86].mxu1 }
0x2f24   : > { %v15661_v11 = vadd.f32 %v19714_v28, %v16908_v36  ;;  %v15655_v6 = vpop.f32.mrb[87].mxu1 }
0x2f25   : > { %v15656_v27 = vadd.f32 %v16908_v36, %v15655_v6 }
0x2f27   : > { %21319 = vtanh.f32 %v15656_v27  ;;  %v19717_v54 = vpop.f32.mrb[88].mxu1 }
0x2f28   : > { %21321 = vtanh.f32 %v15661_v11  ;;  %v15671_v49 = vadd.f32 %v19717_v54, %v16908_v36  ;;  %v15665_v0 = vpop.f32.mrb[89].mxu1 }
0x2f29   : > { %v15666_v38 = vadd.f32 %v16908_v36, %v15665_v0 }
0x2f2b   : > { %21323 = vtanh.f32 %v15666_v38  ;;  %v19720_v63 = vpop.f32.mrb[90].mxu1 }
0x2f2c   : > { %21325 = vtanh.f32 %v15671_v49  ;;  %v15681_v4 = vadd.f32 %v19720_v63, %v16908_v36  ;;  %v15675_v52 = vpop.f32.mrb[91].mxu1 }
0x2f2d   : > { %v15676_v29 = vadd.f32 %v16908_v36, %v15675_v52 }
0x2f2f   : > { %21327 = vtanh.f32 %v15676_v29  ;;  %v19723_v43 = vpop.f32.mrb[92].mxu1 }
0x2f30   : > { %21329 = vtanh.f32 %v15681_v4  ;;  %v15691_v62 = vadd.f32 %v19723_v43, %v16908_v36  ;;  %v15685_v9 = vpop.f32.mrb[93].mxu1 }
0x2f31   : > { %v21320_v12 = vpop.eup %21319  ;;  %v15686_v22 = vadd.f32 %v16908_v36, %v15685_v9 }
0x2f32   : > { %v21322_v45 = vpop.eup %21321  ;;  %19735 = vmatprep.mubr.msk.f32.mxu0 %vm1526_vm5, %v21320_v12 }
0x2f33   : > { %21331 = vtanh.f32 %v15686_v22  ;;  %v19726_v18 = vpop.f32.mrb[94].mxu1  ;;  %19736 = vmatmul.mubr.msk.f32.vlgmr.msra.gmra.mrb[232].mxu0 %vm1526_vm5, %v21322_v45 }
0x2f34   : > { %21333 = vtanh.f32 %v15691_v62  ;;  %v15701_v7 = vadd.f32 %v19726_v18, %v16908_v36  ;;  %v15695_v44 = vpop.f32.mrb[95].mxu1 }
0x2f35   : > { %v21324_v16 = vpop.eup %21323  ;;  %v15696_v40 = vadd.f32 %v16908_v36, %v15695_v44 }
0x2f36   : > { %v21326_v39 = vpop.eup %21325  ;;  %19738 = vmatprep.mubr.msk.f32.mxu0 %vm1526_vm5, %v21324_v16 }
0x2f37   : > { %21335 = vtanh.f32 %v15696_v40  ;;  %19739 = vmatmul.mubr.msk.f32.gmra.mrb[234].mxu0 %vm1526_vm5, %v21326_v39 }
0x2f38   : > { %21337 = vtanh.f32 %v15701_v7 }
0x2f39   : > { %v21328_v13 = vpop.eup %21327 }
0x2f3a   : > { %v21330_v30 = vpop.eup %21329  ;;  %19741 = vmatprep.mubr.msk.f32.mxu0 %vm1526_vm5, %v21328_v13 }
0x2f3b   : > { %19742 = vmatmul.mubr.msk.f32.gmra.mrb[236].mxu0 %vm1526_vm5, %v21330_v30 }
0x2f3d   : > { %v21332_v57 = vpop.eup %21331 }
0x2f3e   : > { %v21334_v3 = vpop.eup %21333  ;;  %19744 = vmatprep.mubr.msk.f32.mxu0 %vm1526_vm5, %v21332_v57 }
0x2f3f   : > { %19745 = vmatmul.mubr.msk.f32.gmra.mrb[238].mxu0 %vm1526_vm5, %v21334_v3 }
0x2f41   : > { %v21336_v46 = vpop.eup %21335 }
0x2f42   : > { %v21338_v32 = vpop.eup %21337  ;;  %19747 = vmatprep.mubr.msk.f32.mxu0 %vm1526_vm5, %v21336_v46 }
0x2f43   : > { %19748 = vmatmul.mubr.msk.f32.gmra.mrb[240].mxu0 %vm1526_vm5, %v21338_v32 }
0x3006   : > { %v19737_v10 = vpop.f32.mrb[232].mxu0 }
0x3007   : > { %v15827_v56 = vadd.f32 %v19737_v10, %v16919_v1  ;;  %v15821_v47 = vpop.f32.mrb[233].mxu0 }
0x3008   : > { %v15822_v24 = vadd.f32 %v16919_v1, %v15821_v47 }
0x3009   : > { %15871 = vst [vmem:[%s1266_s28 + $0x8] sm:$0xff] %v15827_v56 }
0x300a   : > { %15870 = vst [vmem:[%s1266_s28] sm:$0xff] %v15822_v24  ;;  %v19740_v55 = vpop.f32.mrb[234].mxu0 }
0x300b   : > { %v15837_v20 = vadd.f32 %v19740_v55, %v16919_v1  ;;  %v15831_v60 = vpop.f32.mrb[235].mxu0 }
0x300c   : > { %v15832_v26 = vadd.f32 %v16919_v1, %v15831_v60 }
0x300d   : > { %15873 = vst [vmem:[%s1266_s28 + $0x18] sm:$0xff] %v15837_v20 }
0x300e   : > { %15872 = vst [vmem:[%s1266_s28 + $0x10] sm:$0xff] %v15832_v26  ;;  %v19743_v23 = vpop.f32.mrb[236].mxu0 }
0x300f   : > { %v15847_v21 = vadd.f32 %v19743_v23, %v16919_v1  ;;  %v15841_v51 = vpop.f32.mrb[237].mxu0 }
0x3010   : > { %v15842_v17 = vadd.f32 %v16919_v1, %v15841_v51 }
0x3011   : > { %15875 = vst [vmem:[%s1266_s28 + $0x28] sm:$0xff] %v15847_v21 }
0x3012   : > { %15874 = vst [vmem:[%s1266_s28 + $0x20] sm:$0xff] %v15842_v17  ;;  %v19746_v2 = vpop.f32.mrb[238].mxu0 }
0x3013   : > { %v15857_v61 = vadd.f32 %v19746_v2, %v16919_v1  ;;  %v15851_v8 = vpop.f32.mrb[239].mxu0 }
0x3014   : > { %v15852_v37 = vadd.f32 %v16919_v1, %v15851_v8 }
0x3015   : > { %15877 = vst [vmem:[%s1266_s28 + $0x38] sm:$0xff] %v15857_v61 }
0x3016   : > { %15876 = vst [vmem:[%s1266_s28 + $0x30] sm:$0xff] %v15852_v37  ;;  %v19749_v25 = vpop.f32.mrb[240].mxu0 }
0x3017   : > { %v15867_v19 = vadd.f32 %v19749_v25, %v16919_v1  ;;  %v15861_v35 = vpop.f32.mrb[241].mxu0 }
0x3018   : > { %v15862_v5 = vadd.f32 %v16919_v1, %v15861_v35 }
0x3019   : > { %15879 = vst [vmem:[%s1266_s28 + $0x48] sm:$0xff] %v15867_v19 }
0x301a   : > { %15878 = vst [vmem:[%s1266_s28 + $0x40] sm:$0xff] %v15862_v5 }
0x301b PF: > { %s95_s15 = sadd.s32 1, %s21346_s15  }
0x301c   : > { %p92_p4 = scmp.ge.s32.totalorder %s95_s15, 4  }
0x301e   :  { %94 = sbr.rel (!%p92_p4) target bundleno = 75 (0x4b), region = 260 }

</bundles_post_ra>
